<compile_context>
chip_gen: v7x
topology: tpu7x:2x2x1
jax: 0.10.0
libtpu: 0.0.40
codegen_flags: <defaults>
</compile_context>

<pallas_src>
import functools

import jax
import jax.numpy as jnp
from jax.experimental import pallas as pl
from jax.experimental.pallas import tpu as pltpu


# --------------------------------------------------------------------------- #
# Pallas kernel: fused masked multi-group bidirectional LSTM
# --------------------------------------------------------------------------- #
def _bilstm_kernel(x_ref, len_ref, wih_ref, whh_ref, b_ref, h0_ref, c0_ref,
                   y_ref, hc_ref):
    """Fused masked BiLSTM(s) with packed-sequence semantics.

    G BiLSTMs ("groups") that share the same input x and lengths are fused.
    Column layout everywhere is group-major inside each gate block:
      gates (width 8*G*H): [ FWD: i|f|g|o | REV: i|f|g|o ], each block G*H wide
      state (width 2*G*H): [ FWD dirs (G*H) | REV dirs (G*H) ]

    x_ref   : (T*Bp, D)   time-major rows, bf16, Bp = batch padded to 8
    len_ref : (Bp, 1)     int32 valid lengths (0 on padding rows)
    wih_ref : (D, 8GH)    bf16 fused input-projection weights
    whh_ref : (2GH, 8GH)  bf16 block-diagonal recurrent weights
    b_ref   : (1, 8GH)    f32 fused biases
    h0/c0   : (Bp, 2GH)   f32 initial states
    y_ref   : (T*Bp, 2GH) f32 masked per-step outputs [fwd | rev]
    hc_ref  : (2Bp, 2GH)  f32 final states: rows [0:Bp]=h, [Bp:2Bp]=c
    """
    TB, _ = x_ref.shape
    Bp = len_ref.shape[0]
    T = TB // Bp
    GH = whh_ref.shape[0] // 2
    GH4 = 4 * GH

    # Hoisted input projection for all directions/groups: one big matmul.
    gx = jnp.dot(x_ref[...], wih_ref[...],
                 preferred_element_type=jnp.float32) + b_ref[...]   # (T*Bp, 8GH) f32

    lens = len_ref[...]          # (Bp, 1) int32
    whh = whh_ref[...]           # hoisted weight load (bf16), reused every step

    h_f = h0_ref[:, 0:GH]
    h_r = h0_ref[:, GH:2 * GH]
    c_f = c0_ref[:, 0:GH]
    c_r = c0_ref[:, GH:2 * GH]

    def cell(pre, c_old):
        i_g = jax.nn.sigmoid(pre[:, 0:GH])
        f_g = jax.nn.sigmoid(pre[:, GH:2 * GH])
        g_g = jnp.tanh(pre[:, 2 * GH:3 * GH])
        o_g = jax.nn.sigmoid(pre[:, 3 * GH:4 * GH])
        c_new = f_g * c_old + i_g * g_g
        return o_g * jnp.tanh(c_new), c_new

    y_fwd = [None] * T
    y_rev = [None] * T

    # Fully unrolled static time loop; fwd processes t, rev processes T-1-t.
    for t in range(T):
        tr = T - 1 - t

        # One fused recurrent matmul for both directions (block-diag weights).
        h_all = jnp.concatenate([h_f, h_r], axis=1).astype(whh.dtype)   # (Bp, 2GH)
        rec = jnp.dot(h_all, whh, preferred_element_type=jnp.float32)   # (Bp, 8GH)

        pre_f = gx[t * Bp:(t + 1) * Bp, 0:GH4] + rec[:, 0:GH4]
        pre_r = gx[tr * Bp:(tr + 1) * Bp, GH4:2 * GH4] + rec[:, GH4:2 * GH4]

        hf_new, cf_new = cell(pre_f, c_f)
        hr_new, cr_new = cell(pre_r, c_r)

        # packed-sequence semantics: freeze state / zero output on padded steps
        valid_f = lens > t            # (Bp, 1) bool
        valid_r = lens > tr

        h_f = jnp.where(valid_f, hf_new, h_f)
        c_f = jnp.where(valid_f, cf_new, c_f)
        h_r = jnp.where(valid_r, hr_new, h_r)
        c_r = jnp.where(valid_r, cr_new, c_r)

        y_fwd[t] = jnp.where(valid_f, hf_new, 0.0)
        y_rev[tr] = jnp.where(valid_r, hr_new, 0.0)

    # Lane-dense, sublane-aligned stores: full-width [fwd | rev] rows per step.
    for t in range(T):
        y_ref[t * Bp:(t + 1) * Bp, :] = jnp.concatenate([y_fwd[t], y_rev[t]], axis=1)

    hc_ref[0:Bp, :] = jnp.concatenate([h_f, h_r], axis=1)
    hc_ref[Bp:2 * Bp, :] = jnp.concatenate([c_f, c_r], axis=1)


def bilstm_fused(x, seq_lengths, packed, h0=None, c0=None):
    """Run one fused (possibly multi-group) BiLSTM kernel.

    x: (B, T, D) batch-major f32; seq_lengths: (B,) ints.
    packed: dict with fused weights (wih (D,8GH) bf16, whh (2GH,8GH) bf16,
            b (1,8GH) f32).  h0/c0: optional (B, 2GH) f32 in [fwd | rev] layout.
    Returns (y (B, T, 2GH) [fwd | rev], h_final (B, 2GH), c_final (B, 2GH)).
    """
    B, T, D = x.shape
    GH = packed["whh"].shape[0] // 2
    Bp = ((B + 7) // 8) * 8          # sublane-align the per-timestep row count

    xt = jnp.transpose(x, (1, 0, 2)).astype(jnp.bfloat16)          # (T, B, D)
    x2d = (jnp.zeros((T, Bp, D), jnp.bfloat16).at[:, :B, :].set(xt)
           .reshape(T * Bp, D))
    lens = jnp.zeros((Bp, 1), jnp.int32).at[:B, 0].set(seq_lengths.astype(jnp.int32))

    def pad_state(s):
        if s is None:
            return jnp.zeros((Bp, 2 * GH), jnp.float32)
        return jnp.zeros((Bp, 2 * GH), jnp.float32).at[:B, :].set(
            s.astype(jnp.float32))

    h0p, c0p = pad_state(h0), pad_state(c0)

    vmem = pl.BlockSpec(memory_space=pltpu.MemorySpace.VMEM)
    y2d, hc = pl.pallas_call(
        _bilstm_kernel,
        in_specs=[vmem] * 7,
        out_specs=(vmem, vmem),
        out_shape=(jax.ShapeDtypeStruct((T * Bp, 2 * GH), jnp.float32),
                   jax.ShapeDtypeStruct((2 * Bp, 2 * GH), jnp.float32)),
    )(x2d, lens, packed["wih"], packed["whh"], packed["b"], h0p, c0p)

    y = jnp.transpose(y2d.reshape(T, Bp, 2 * GH)[:, :B, :], (1, 0, 2))   # (B,T,2GH)
    return y, hc[0:B, :], hc[Bp:Bp + B, :]


# --------------------------------------------------------------------------- #
# Weight packing: PyTorch-layout per-direction weights -> fused kernel layout
# --------------------------------------------------------------------------- #
def pack_lstm_groups(groups):
    """Fuse G BiLSTMs (sharing input & lengths) into one kernel weight set."""
    G = len(groups)
    H = groups[0]["whh_f"].shape[0]
    GH = G * H

    def fuse_ih(key):
        return jnp.concatenate(
            [jnp.concatenate([g[key][:, q * H:(q + 1) * H] for g in groups], axis=1)
             for q in range(4)], axis=1)

    def fuse_b(key):
        return jnp.concatenate(
            [jnp.concatenate([g[key][q * H:(q + 1) * H] for g in groups], axis=0)
             for q in range(4)], axis=0)

    def fuse_hh(key):
        out = jnp.zeros((GH, 4 * GH), jnp.float32)
        for gi, g in enumerate(groups):
            for q in range(4):
                out = out.at[gi * H:(gi + 1) * H,
                             q * GH + gi * H:q * GH + (gi + 1) * H].set(
                    g[key][:, q * H:(q + 1) * H])
        return out

    wih = jnp.concatenate([fuse_ih("wih_f"), fuse_ih("wih_r")], axis=1)      # (D, 8GH)
    b = jnp.concatenate([fuse_b("b_f"), fuse_b("b_r")], axis=0)[None, :]     # (1, 8GH)
    whh = jnp.zeros((2 * GH, 8 * GH), jnp.float32)
    whh = whh.at[0:GH, 0:4 * GH].set(fuse_hh("whh_f"))
    whh = whh.at[GH:2 * GH, 4 * GH:8 * GH].set(fuse_hh("whh_r"))
    return dict(wih=wih.astype(jnp.bfloat16),
                whh=whh.astype(jnp.bfloat16),
                b=b.astype(jnp.float32))


# --------------------------------------------------------------------------- #
# Tiny linears stay in plain XLA (a separate pallas_call is pure overhead)
# --------------------------------------------------------------------------- #
def dense(x, p):
    return jnp.dot(x, p["w"]) + p["b"]


# --------------------------------------------------------------------------- #
# Model glue (plain JAX)
# --------------------------------------------------------------------------- #
def get_subseq_indices(time_first, cfg):
    """time_first: (B, T) int32. Mirrors HierarchicalVAE.get_subseq_indices."""
    B, T = time_first.shape
    deltas = time_first - time_first[:, 0:1]
    intervals = jnp.arange(0, cfg["n_times_p1"], cfg["subseq_steps"], dtype=jnp.int32)
    idcs = jax.vmap(lambda d: jnp.searchsorted(d, intervals, side="right"))(deltas) - 1
    dup = idcs[:, 1:] == idcs[:, :-1]
    idcs = idcs[:, 1:]
    idcs = jnp.where(dup, T, idcs)
    idcs = jnp.sort(idcs, axis=-1)
    lengths = jnp.sum(idcs < T, axis=-1)
    # pad_sequence pads with 0; sentinel positions are masked out downstream,
    # so replacing them with a valid gather index 0 preserves semantics.
    gather_idx = jnp.where(idcs >= T, 0, idcs).astype(jnp.int32)
    return gather_idx, lengths


def tulvae_forward(params, loc_embedded, time_padded, seq_lengths, u, rng_keys, cfg):
    B, T, E = loc_embedded.shape
    H = cfg["n_hidden"]
    U = cfg["n_users"]
    k = cfg["k"]
    GH = 2 * H          # merged encoder kernel: groups = [poi, clf]

    # ---- merged poi-encoder + classifier BiLSTM (one kernel, batch B) ----
    y_enc, h_enc, c_enc = bilstm_fused(loc_embedded, seq_lengths, params["enc_lstm"])
    poi_unpacked = jnp.concatenate([y_enc[..., 0:H], y_enc[..., GH:GH + H]], axis=-1)
    poi_hidden = jnp.concatenate([h_enc[:, 0:H], h_enc[:, GH:GH + H]], axis=-1)
    poi_cell = jnp.stack([c_enc[:, 0:H], c_enc[:, GH:GH + H]], axis=0)       # (2,B,H)
    clf_hidden = jnp.concatenate([h_enc[:, H:2 * H], h_enc[:, GH + H:GH + 2 * H]],
                                 axis=-1)
    clf_logits = dense(clf_hidden, params["clf_out"])          # dropout = identity

    # ---- subseq encoder (batch B, deduplicated across the k MC samples) ----
    gather_idx, subseq_lengths = get_subseq_indices(time_padded[..., 0], cfg)
    subseq_input = jnp.take_along_axis(poi_unpacked, gather_idx[:, :, None], axis=1)
    _, subseq_hidden, _ = bilstm_fused(subseq_input, subseq_lengths,
                                       params["subseq_lstm"])

    poi_mu = dense(poi_hidden, params["fc_mu_poi"])
    poi_logvar = dense(poi_hidden, params["fc_logvar_poi"])
    sub_mu = dense(subseq_hidden, params["fc_mu_subseq"])
    sub_logvar = dense(subseq_hidden, params["fc_logvar_subseq"])
    mu_b = jnp.concatenate([poi_mu, sub_mu], axis=-1)                       # (B, 2Z)
    logvar_b = jnp.concatenate([poi_logvar, sub_logvar], axis=-1)

    # expand (repeat_interleave) to B*k only now — encoders ran once per row
    Bk = B * k
    mu = jnp.repeat(mu_b, k, axis=0)
    logvar = jnp.repeat(logvar_b, k, axis=0)
    eps = jax.random.normal(rng_keys["eps"], (Bk, mu.shape[-1]), jnp.float32)
    z = mu + eps * jnp.exp(0.5 * logvar)

    # ---- user sampling ----
    u_rand = jax.random.randint(rng_keys["u"], (B, k - 1), 0, U, dtype=jnp.int32)
    u_sample = jnp.concatenate([u_rand, u[:, None].astype(jnp.int32)],
                               axis=-1).reshape(-1)                          # (B*k,)
    # TODO(synk): original `u_sample.repeat(batch_size)` omitted (shape bug for B>1).

    # ---- decoder (batch B*k) ----
    exp_loc = jnp.repeat(loc_embedded, k, axis=0)
    user_one_hot = jax.nn.one_hot(u_sample, U, dtype=jnp.float32)[:, None, :]
    user_one_hot = jnp.broadcast_to(user_one_hot, (Bk, T, U))
    loc_shifted = jnp.roll(exp_loc, shift=1, axis=1)
    # TODO(synk): EMBEDDING_TYPES start-token embedding undefined in reference.
    loc_shifted = loc_shifted.at[:, 0].set(params["start_embed"][None, :])
    dec_in = jnp.concatenate([loc_shifted, user_one_hot], axis=-1)           # (Bk,T,E+U)

    z_proj = jax.nn.softplus(dense(z, params["fc_decoder_input"]))           # (Bk, 2H)
    h0_raw = jnp.reshape(z_proj, (2, Bk, H))   # raw row-major reshape == torch .view
    h0 = jnp.concatenate([h0_raw[0], h0_raw[1]], axis=1)                     # (Bk, 2H)
    c_rep = jnp.repeat(poi_cell, k, axis=1)                                  # (2, Bk, H)
    c0 = jnp.concatenate([c_rep[0], c_rep[1]], axis=1)

    dec_y, _, _ = bilstm_fused(dec_in, jnp.full((Bk,), T, jnp.int32),
                               params["dec_lstm"], h0=h0, c0=c0)
    rec_logits = dense(dec_y, params["fc_output"])         # (Bk, T, L), dropout = id

    mu = mu.reshape(B, k, -1)
    logvar = logvar.reshape(B, k, -1)
    rec_logits = rec_logits.reshape(B, -1, k, T)           # raw reshape, matches torch
    clf_probas = jax.nn.softmax(clf_logits, axis=-1)
    rows = jnp.repeat(jnp.arange(B), k)
    k_probas = clf_probas[rows, u_sample].reshape(B, k)
    return clf_logits, rec_logits, mu, logvar, k_probas


# --------------------------------------------------------------------------- #
# Deterministic parameter init (PyTorch-like per-direction layout) + packing
# --------------------------------------------------------------------------- #
def init_params(key, cfg):
    E = cfg["emb_dim"]
    H = cfg["n_hidden"]
    Z = cfg["latent_dim"]
    U = cfg["n_users"]
    L = cfg["n_locs_p1"]

    keys = jax.random.split(key, 12)

    def lin(k, d, n):
        k1, k2 = jax.random.split(k)
        return dict(w=0.1 * jax.random.normal(k1, (d, n), jnp.float32),
                    b=0.05 * jax.random.normal(k2, (1, n), jnp.float32))

    def bilstm(k, d, h):
        ks = jax.random.split(k, 6)
        return dict(
            wih_f=0.1 * jax.random.normal(ks[0], (d, 4 * h), jnp.float32),
            wih_r=0.1 * jax.random.normal(ks[1], (d, 4 * h), jnp.float32),
            whh_f=0.1 * jax.random.normal(ks[2], (h, 4 * h), jnp.float32),
            whh_r=0.1 * jax.random.normal(ks[3], (h, 4 * h), jnp.float32),
            b_f=0.05 * jax.random.normal(ks[4], (4 * h,), jnp.float32),
            b_r=0.05 * jax.random.normal(ks[5], (4 * h,), jnp.float32),
        )

    return dict(
        poi_lstm=bilstm(keys[0], E, H),
        subseq_lstm=bilstm(keys[1], 2 * H, H),
        dec_lstm=bilstm(keys[2], E + U, H),
        clf_lstm=bilstm(keys[3], E, H),
        fc_mu_poi=lin(keys[4], 2 * H, Z),
        fc_logvar_poi=lin(keys[5], 2 * H, Z),
        fc_mu_subseq=lin(keys[6], 2 * H, Z),
        fc_logvar_subseq=lin(keys[7], 2 * H, Z),
        fc_decoder_input=lin(keys[8], 2 * Z, 2 * H),
        fc_output=lin(keys[9], 2 * H, L),
        clf_out=lin(keys[10], 2 * H, U),
        start_embed=0.1 * jax.random.normal(keys[11], (E,), jnp.float32),
    )


def pack_params(p):
    """Pack per-direction LSTM weights into fused kernel layout (done once)."""
    packed = dict(
        enc_lstm=pack_lstm_groups([p["poi_lstm"], p["clf_lstm"]]),   # group0=poi, 1=clf
        subseq_lstm=pack_lstm_groups([p["subseq_lstm"]]),
        dec_lstm=pack_lstm_groups([p["dec_lstm"]]),
        start_embed=p["start_embed"],
    )
    for name in ("fc_mu_poi", "fc_logvar_poi", "fc_mu_subseq", "fc_logvar_subseq",
                 "fc_decoder_input", "fc_output", "clf_out"):
        packed[name] = p[name]
    return packed


# --------------------------------------------------------------------------- #
# Main
# --------------------------------------------------------------------------- #
if __name__ == "__main__":
    cfg = dict(
        emb_dim=16,        # embedding.dim (loc_embedding_dim for synthetic embedding)
        n_hidden=32,
        latent_dim=8,
        n_users=5,
        n_locs_p1=21,      # n_locs + 1 = 20 + 1
        n_times_p1=25,     # n_times + 1 = 24 + 1
        subseq_steps=6,
        k=3,               # monte_carlo_samples
    )

    key = jax.random.PRNGKey(0)
    k_params, k_x, k_u, k_eps = jax.random.split(key, 4)

    params_ref = init_params(k_params, cfg)
    params = pack_params(params_ref)   # fused weights built once, outside jit

    B, T, E = 2, 8, cfg["emb_dim"]
    loc_embedded = jax.random.normal(k_x, (B, T, E), jnp.float32)
    # ascending timestamps; padded positions use 2 * n_times_p1 = 50 (as in train_step)
    time_padded = jnp.array([[0, 3, 7, 10, 13, 16, 20, 23],
                             [0, 5, 9, 14, 18, 22, 50, 50]], jnp.int32)[:, :, None]
    seq_lengths = jnp.array([8, 6], jnp.int32)
    u = jnp.array([1, 3], jnp.int32)

    fwd = jax.jit(functools.partial(tulvae_forward, cfg=cfg))
    outputs = fwd(params, loc_embedded, time_padded, seq_lengths, u,
                  dict(u=k_u, eps=k_eps))
    jax.block_until_ready(outputs)

    clf_logits, rec_logits, mu, logvar, k_probas = outputs
    assert clf_logits.shape == (B, cfg["n_users"])
    assert rec_logits.shape == (B, cfg["n_locs_p1"], cfg["k"], T)
    assert mu.shape == (B, cfg["k"], 2 * cfg["latent_dim"])
    assert logvar.shape == (B, cfg["k"], 2 * cfg["latent_dim"])
    assert k_probas.shape == (B, cfg["k"])
    assert all(bool(jnp.all(jnp.isfinite(o))) for o in
               (clf_logits, rec_logits, mu, logvar, k_probas))

    print("KERNEL_OK")
</pallas_src>

<mosaic_0001>
module attributes {stable_mosaic.version = 11 : i64} {
  func.func @_bilstm_kernel(%arg0: memref<64x16xbf16, #tpu.memory_space<vmem>>, %arg1: memref<8x1xi32, #tpu.memory_space<vmem>>, %arg2: memref<16x512xbf16, #tpu.memory_space<vmem>>, %arg3: memref<128x512xbf16, #tpu.memory_space<vmem>>, %arg4: memref<1x512xf32, #tpu.memory_space<vmem>>, %arg5: memref<8x128xf32, #tpu.memory_space<vmem>>, %arg6: memref<8x128xf32, #tpu.memory_space<vmem>>, %arg7: memref<64x128xf32, #tpu.memory_space<vmem>>, %arg8: memref<16x128xf32, #tpu.memory_space<vmem>>) attributes {dimension_semantics = [], scalar_prefetch = 0 : i64, scratch_operands = 0 : i64, tpu.core_type = #tpu.core_type<tc>} {
    %c0 = arith.constant 0 : index
    %c0_0 = arith.constant 0 : index
    %0 = vector.load %arg0[%c0, %c0_0] : memref<64x16xbf16, #tpu.memory_space<vmem>>, vector<64x16xbf16>
    %c0_1 = arith.constant 0 : index
    %c0_2 = arith.constant 0 : index
    %1 = vector.load %arg2[%c0_1, %c0_2] : memref<16x512xbf16, #tpu.memory_space<vmem>>, vector<16x512xbf16>
    %cst = arith.constant dense<0.000000e+00> : vector<64x512xf32>
    %2 = tpu.matmul %0, %1, %cst {dimension_numbers = #tpu.dot_dimension_numbers<[1], [0], [0], [1], [0, 0, 1, 1], [], []>} : vector<64x16xbf16>, vector<16x512xbf16>, vector<64x512xf32> -> vector<64x512xf32>
    %c0_3 = arith.constant 0 : index
    %c0_4 = arith.constant 0 : index
    %3 = vector.load %arg4[%c0_3, %c0_4] : memref<1x512xf32, #tpu.memory_space<vmem>>, vector<1x512xf32>
    %4 = vector.broadcast %3 : vector<1x512xf32> to vector<64x512xf32>
    %5 = arith.addf %2, %4 : vector<64x512xf32>
    %c0_5 = arith.constant 0 : index
    %c0_6 = arith.constant 0 : index
    %6 = vector.load %arg1[%c0_5, %c0_6] : memref<8x1xi32, #tpu.memory_space<vmem>>, vector<8x1xi32>
    %c0_7 = arith.constant 0 : index
    %c0_8 = arith.constant 0 : index
    %7 = vector.load %arg3[%c0_7, %c0_8] : memref<128x512xbf16, #tpu.memory_space<vmem>>, vector<128x512xbf16>
    %c0_9 = arith.constant 0 : index
    %c0_10 = arith.constant 0 : index
    %8 = vector.load %arg5[%c0_9, %c0_10] : memref<8x128xf32, #tpu.memory_space<vmem>>, vector<8x64xf32>
    %c0_11 = arith.constant 0 : index
    %c64 = arith.constant 64 : index
    %9 = vector.load %arg5[%c0_11, %c64] : memref<8x128xf32, #tpu.memory_space<vmem>>, vector<8x64xf32>
    %c0_12 = arith.constant 0 : index
    %c0_13 = arith.constant 0 : index
    %10 = vector.load %arg6[%c0_12, %c0_13] : memref<8x128xf32, #tpu.memory_space<vmem>>, vector<8x64xf32>
    %c0_14 = arith.constant 0 : index
    %c64_15 = arith.constant 64 : index
    %11 = vector.load %arg6[%c0_14, %c64_15] : memref<8x128xf32, #tpu.memory_space<vmem>>, vector<8x64xf32>
    %12 = tpu.concatenate %8, %9 in 1 : vector<8x64xf32>, vector<8x64xf32> -> vector<8x128xf32>
    %13 = arith.truncf %12 : vector<8x128xf32> to vector<8x128xbf16>
    %cst_16 = arith.constant dense<0.000000e+00> : vector<8x512xf32>
    %14 = tpu.matmul %13, %7, %cst_16 {dimension_numbers = #tpu.dot_dimension_numbers<[1], [0], [0], [1], [0, 0, 1, 1], [], []>} : vector<8x128xbf16>, vector<128x512xbf16>, vector<8x512xf32> -> vector<8x512xf32>
    %15 = vector.extract_strided_slice %5 {offsets = [0, 0], sizes = [8, 256], strides = [1, 1]} : vector<64x512xf32> to vector<8x256xf32>
    %16 = vector.extract_strided_slice %14 {offsets = [0, 0], sizes = [8, 256], strides = [1, 1]} : vector<8x512xf32> to vector<8x256xf32>
    %17 = arith.addf %15, %16 : vector<8x256xf32>
    %18 = vector.extract_strided_slice %5 {offsets = [56, 256], sizes = [8, 256], strides = [1, 1]} : vector<64x512xf32> to vector<8x256xf32>
    %19 = vector.extract_strided_slice %14 {offsets = [0, 256], sizes = [8, 256], strides = [1, 1]} : vector<8x512xf32> to vector<8x256xf32>
    %20 = arith.addf %18, %19 : vector<8x256xf32>
    %21 = vector.extract_strided_slice %17 {offsets = [0, 0], sizes = [8, 64], strides = [1, 1]} : vector<8x256xf32> to vector<8x64xf32>
    %22 = arith.negf %21 : vector<8x64xf32>
    %23 = math.exp %22 : vector<8x64xf32>
    %cst_17 = arith.constant 1.000000e+00 : f32
    %24 = vector.broadcast %cst_17 : f32 to vector<8x64xf32>
    %25 = arith.addf %24, %23 : vector<8x64xf32>
    %26 = arith.divf %24, %25 : vector<8x64xf32>
    %27 = vector.extract_strided_slice %17 {offsets = [0, 64], sizes = [8, 64], strides = [1, 1]} : vector<8x256xf32> to vector<8x64xf32>
    %28 = arith.negf %27 : vector<8x64xf32>
    %29 = math.exp %28 : vector<8x64xf32>
    %cst_18 = arith.constant 1.000000e+00 : f32
    %30 = vector.broadcast %cst_18 : f32 to vector<8x64xf32>
    %31 = arith.addf %30, %29 : vector<8x64xf32>
    %32 = arith.divf %30, %31 : vector<8x64xf32>
    %33 = vector.extract_strided_slice %17 {offsets = [0, 128], sizes = [8, 64], strides = [1, 1]} : vector<8x256xf32> to vector<8x64xf32>
    %34 = math.tanh %33 : vector<8x64xf32>
    %35 = vector.extract_strided_slice %17 {offsets = [0, 192], sizes = [8, 64], strides = [1, 1]} : vector<8x256xf32> to vector<8x64xf32>
    %36 = arith.negf %35 : vector<8x64xf32>
    %37 = math.exp %36 : vector<8x64xf32>
    %cst_19 = arith.constant 1.000000e+00 : f32
    %38 = vector.broadcast %cst_19 : f32 to vector<8x64xf32>
    %39 = arith.addf %38, %37 : vector<8x64xf32>
    %40 = arith.divf %38, %39 : vector<8x64xf32>
    %41 = arith.mulf %32, %10 : vector<8x64xf32>
    %42 = arith.mulf %26, %34 : vector<8x64xf32>
    %43 = arith.addf %41, %42 : vector<8x64xf32>
    %44 = math.tanh %43 : vector<8x64xf32>
    %45 = arith.mulf %40, %44 : vector<8x64xf32>
    %46 = vector.extract_strided_slice %20 {offsets = [0, 0], sizes = [8, 64], strides = [1, 1]} : vector<8x256xf32> to vector<8x64xf32>
    %47 = arith.negf %46 : vector<8x64xf32>
    %48 = math.exp %47 : vector<8x64xf32>
    %cst_20 = arith.constant 1.000000e+00 : f32
    %49 = vector.broadcast %cst_20 : f32 to vector<8x64xf32>
    %50 = arith.addf %49, %48 : vector<8x64xf32>
    %51 = arith.divf %49, %50 : vector<8x64xf32>
    %52 = vector.extract_strided_slice %20 {offsets = [0, 64], sizes = [8, 64], strides = [1, 1]} : vector<8x256xf32> to vector<8x64xf32>
    %53 = arith.negf %52 : vector<8x64xf32>
    %54 = math.exp %53 : vector<8x64xf32>
    %cst_21 = arith.constant 1.000000e+00 : f32
    %55 = vector.broadcast %cst_21 : f32 to vector<8x64xf32>
    %56 = arith.addf %55, %54 : vector<8x64xf32>
    %57 = arith.divf %55, %56 : vector<8x64xf32>
    %58 = vector.extract_strided_slice %20 {offsets = [0, 128], sizes = [8, 64], strides = [1, 1]} : vector<8x256xf32> to vector<8x64xf32>
    %59 = math.tanh %58 : vector<8x64xf32>
    %60 = vector.extract_strided_slice %20 {offsets = [0, 192], sizes = [8, 64], strides = [1, 1]} : vector<8x256xf32> to vector<8x64xf32>
    %61 = arith.negf %60 : vector<8x64xf32>
    %62 = math.exp %61 : vector<8x64xf32>
    %cst_22 = arith.constant 1.000000e+00 : f32
    %63 = vector.broadcast %cst_22 : f32 to vector<8x64xf32>
    %64 = arith.addf %63, %62 : vector<8x64xf32>
    %65 = arith.divf %63, %64 : vector<8x64xf32>
    %66 = arith.mulf %57, %11 : vector<8x64xf32>
    %67 = arith.mulf %51, %59 : vector<8x64xf32>
    %68 = arith.addf %66, %67 : vector<8x64xf32>
    %69 = math.tanh %68 : vector<8x64xf32>
    %70 = arith.mulf %65, %69 : vector<8x64xf32>
    %c0_i32 = arith.constant 0 : i32
    %71 = vector.broadcast %c0_i32 : i32 to vector<8x1xi32>
    %72 = arith.cmpi sgt, %6, %71 : vector<8x1xi32>
    %c7_i32 = arith.constant 7 : i32
    %73 = vector.broadcast %c7_i32 : i32 to vector<8x1xi32>
    %74 = arith.cmpi sgt, %6, %73 : vector<8x1xi32>
    %75 = vector.shape_cast %72 : vector<8x1xi1> to vector<8x1xi1>
    %76 = vector.broadcast %75 : vector<8x1xi1> to vector<8x64xi1>
    %77 = arith.select %76, %45, %8 : vector<8x64xi1>, vector<8x64xf32>
    %78 = vector.shape_cast %72 : vector<8x1xi1> to vector<8x1xi1>
    %79 = vector.broadcast %78 : vector<8x1xi1> to vector<8x64xi1>
    %80 = arith.select %79, %43, %10 : vector<8x64xi1>, vector<8x64xf32>
    %81 = vector.shape_cast %74 : vector<8x1xi1> to vector<8x1xi1>
    %82 = vector.broadcast %81 : vector<8x1xi1> to vector<8x64xi1>
    %83 = arith.select %82, %70, %9 : vector<8x64xi1>, vector<8x64xf32>
    %84 = vector.shape_cast %74 : vector<8x1xi1> to vector<8x1xi1>
    %85 = vector.broadcast %84 : vector<8x1xi1> to vector<8x64xi1>
    %86 = arith.select %85, %68, %11 : vector<8x64xi1>, vector<8x64xf32>
    %cst_23 = arith.constant 0.000000e+00 : f32
    %87 = vector.shape_cast %72 : vector<8x1xi1> to vector<8x1xi1>
    %88 = vector.broadcast %87 : vector<8x1xi1> to vector<8x64xi1>
    %89 = vector.broadcast %cst_23 : f32 to vector<8x64xf32>
    %90 = arith.select %88, %45, %89 : vector<8x64xi1>, vector<8x64xf32>
    %cst_24 = arith.constant 0.000000e+00 : f32
    %91 = vector.shape_cast %74 : vector<8x1xi1> to vector<8x1xi1>
    %92 = vector.broadcast %91 : vector<8x1xi1> to vector<8x64xi1>
    %93 = vector.broadcast %cst_24 : f32 to vector<8x64xf32>
    %94 = arith.select %92, %70, %93 : vector<8x64xi1>, vector<8x64xf32>
    %95 = tpu.concatenate %77, %83 in 1 : vector<8x64xf32>, vector<8x64xf32> -> vector<8x128xf32>
    %96 = arith.truncf %95 : vector<8x128xf32> to vector<8x128xbf16>
    %cst_25 = arith.constant dense<0.000000e+00> : vector<8x512xf32>
    %97 = tpu.matmul %96, %7, %cst_25 {dimension_numbers = #tpu.dot_dimension_numbers<[1], [0], [0], [1], [0, 0, 1, 1], [], []>} : vector<8x128xbf16>, vector<128x512xbf16>, vector<8x512xf32> -> vector<8x512xf32>
    %98 = vector.extract_strided_slice %5 {offsets = [8, 0], sizes = [8, 256], strides = [1, 1]} : vector<64x512xf32> to vector<8x256xf32>
    %99 = vector.extract_strided_slice %97 {offsets = [0, 0], sizes = [8, 256], strides = [1, 1]} : vector<8x512xf32> to vector<8x256xf32>
    %100 = arith.addf %98, %99 : vector<8x256xf32>
    %101 = vector.extract_strided_slice %5 {offsets = [48, 256], sizes = [8, 256], strides = [1, 1]} : vector<64x512xf32> to vector<8x256xf32>
    %102 = vector.extract_strided_slice %97 {offsets = [0, 256], sizes = [8, 256], strides = [1, 1]} : vector<8x512xf32> to vector<8x256xf32>
    %103 = arith.addf %101, %102 : vector<8x256xf32>
    %104 = vector.extract_strided_slice %100 {offsets = [0, 0], sizes = [8, 64], strides = [1, 1]} : vector<8x256xf32> to vector<8x64xf32>
    %105 = arith.negf %104 : vector<8x64xf32>
    %106 = math.exp %105 : vector<8x64xf32>
    %cst_26 = arith.constant 1.000000e+00 : f32
    %107 = vector.broadcast %cst_26 : f32 to vector<8x64xf32>
    %108 = arith.addf %107, %106 : vector<8x64xf32>
    %109 = arith.divf %107, %108 : vector<8x64xf32>
    %110 = vector.extract_strided_slice %100 {offsets = [0, 64], sizes = [8, 64], strides = [1, 1]} : vector<8x256xf32> to vector<8x64xf32>
    %111 = arith.negf %110 : vector<8x64xf32>
    %112 = math.exp %111 : vector<8x64xf32>
    %cst_27 = arith.constant 1.000000e+00 : f32
    %113 = vector.broadcast %cst_27 : f32 to vector<8x64xf32>
    %114 = arith.addf %113, %112 : vector<8x64xf32>
    %115 = arith.divf %113, %114 : vector<8x64xf32>
    %116 = vector.extract_strided_slice %100 {offsets = [0, 128], sizes = [8, 64], strides = [1, 1]} : vector<8x256xf32> to vector<8x64xf32>
    %117 = math.tanh %116 : vector<8x64xf32>
    %118 = vector.extract_strided_slice %100 {offsets = [0, 192], sizes = [8, 64], strides = [1, 1]} : vector<8x256xf32> to vector<8x64xf32>
    %119 = arith.negf %118 : vector<8x64xf32>
    %120 = math.exp %119 : vector<8x64xf32>
    %cst_28 = arith.constant 1.000000e+00 : f32
    %121 = vector.broadcast %cst_28 : f32 to vector<8x64xf32>
    %122 = arith.addf %121, %120 : vector<8x64xf32>
    %123 = arith.divf %121, %122 : vector<8x64xf32>
    %124 = arith.mulf %115, %80 : vector<8x64xf32>
    %125 = arith.mulf %109, %117 : vector<8x64xf32>
    %126 = arith.addf %124, %125 : vector<8x64xf32>
    %127 = math.tanh %126 : vector<8x64xf32>
    %128 = arith.mulf %123, %127 : vector<8x64xf32>
    %129 = vector.extract_strided_slice %103 {offsets = [0, 0], sizes = [8, 64], strides = [1, 1]} : vector<8x256xf32> to vector<8x64xf32>
    %130 = arith.negf %129 : vector<8x64xf32>
    %131 = math.exp %130 : vector<8x64xf32>
    %cst_29 = arith.constant 1.000000e+00 : f32
    %132 = vector.broadcast %cst_29 : f32 to vector<8x64xf32>
    %133 = arith.addf %132, %131 : vector<8x64xf32>
    %134 = arith.divf %132, %133 : vector<8x64xf32>
    %135 = vector.extract_strided_slice %103 {offsets = [0, 64], sizes = [8, 64], strides = [1, 1]} : vector<8x256xf32> to vector<8x64xf32>
    %136 = arith.negf %135 : vector<8x64xf32>
    %137 = math.exp %136 : vector<8x64xf32>
    %cst_30 = arith.constant 1.000000e+00 : f32
    %138 = vector.broadcast %cst_30 : f32 to vector<8x64xf32>
    %139 = arith.addf %138, %137 : vector<8x64xf32>
    %140 = arith.divf %138, %139 : vector<8x64xf32>
    %141 = vector.extract_strided_slice %103 {offsets = [0, 128], sizes = [8, 64], strides = [1, 1]} : vector<8x256xf32> to vector<8x64xf32>
    %142 = math.tanh %141 : vector<8x64xf32>
    %143 = vector.extract_strided_slice %103 {offsets = [0, 192], sizes = [8, 64], strides = [1, 1]} : vector<8x256xf32> to vector<8x64xf32>
    %144 = arith.negf %143 : vector<8x64xf32>
    %145 = math.exp %144 : vector<8x64xf32>
    %cst_31 = arith.constant 1.000000e+00 : f32
    %146 = vector.broadcast %cst_31 : f32 to vector<8x64xf32>
    %147 = arith.addf %146, %145 : vector<8x64xf32>
    %148 = arith.divf %146, %147 : vector<8x64xf32>
    %149 = arith.mulf %140, %86 : vector<8x64xf32>
    %150 = arith.mulf %134, %142 : vector<8x64xf32>
    %151 = arith.addf %149, %150 : vector<8x64xf32>
    %152 = math.tanh %151 : vector<8x64xf32>
    %153 = arith.mulf %148, %152 : vector<8x64xf32>
    %c1_i32 = arith.constant 1 : i32
    %154 = vector.broadcast %c1_i32 : i32 to vector<8x1xi32>
    %155 = arith.cmpi sgt, %6, %154 : vector<8x1xi32>
    %c6_i32 = arith.constant 6 : i32
    %156 = vector.broadcast %c6_i32 : i32 to vector<8x1xi32>
    %157 = arith.cmpi sgt, %6, %156 : vector<8x1xi32>
    %158 = vector.shape_cast %155 : vector<8x1xi1> to vector<8x1xi1>
    %159 = vector.broadcast %158 : vector<8x1xi1> to vector<8x64xi1>
    %160 = arith.select %159, %128, %77 : vector<8x64xi1>, vector<8x64xf32>
    %161 = vector.shape_cast %155 : vector<8x1xi1> to vector<8x1xi1>
    %162 = vector.broadcast %161 : vector<8x1xi1> to vector<8x64xi1>
    %163 = arith.select %162, %126, %80 : vector<8x64xi1>, vector<8x64xf32>
    %164 = vector.shape_cast %157 : vector<8x1xi1> to vector<8x1xi1>
    %165 = vector.broadcast %164 : vector<8x1xi1> to vector<8x64xi1>
    %166 = arith.select %165, %153, %83 : vector<8x64xi1>, vector<8x64xf32>
    %167 = vector.shape_cast %157 : vector<8x1xi1> to vector<8x1xi1>
    %168 = vector.broadcast %167 : vector<8x1xi1> to vector<8x64xi1>
    %169 = arith.select %168, %151, %86 : vector<8x64xi1>, vector<8x64xf32>
    %cst_32 = arith.constant 0.000000e+00 : f32
    %170 = vector.shape_cast %155 : vector<8x1xi1> to vector<8x1xi1>
    %171 = vector.broadcast %170 : vector<8x1xi1> to vector<8x64xi1>
    %172 = vector.broadcast %cst_32 : f32 to vector<8x64xf32>
    %173 = arith.select %171, %128, %172 : vector<8x64xi1>, vector<8x64xf32>
    %cst_33 = arith.constant 0.000000e+00 : f32
    %174 = vector.shape_cast %157 : vector<8x1xi1> to vector<8x1xi1>
    %175 = vector.broadcast %174 : vector<8x1xi1> to vector<8x64xi1>
    %176 = vector.broadcast %cst_33 : f32 to vector<8x64xf32>
    %177 = arith.select %175, %153, %176 : vector<8x64xi1>, vector<8x64xf32>
    %178 = tpu.concatenate %160, %166 in 1 : vector<8x64xf32>, vector<8x64xf32> -> vector<8x128xf32>
    %179 = arith.truncf %178 : vector<8x128xf32> to vector<8x128xbf16>
    %cst_34 = arith.constant dense<0.000000e+00> : vector<8x512xf32>
    %180 = tpu.matmul %179, %7, %cst_34 {dimension_numbers = #tpu.dot_dimension_numbers<[1], [0], [0], [1], [0, 0, 1, 1], [], []>} : vector<8x128xbf16>, vector<128x512xbf16>, vector<8x512xf32> -> vector<8x512xf32>
    %181 = vector.extract_strided_slice %5 {offsets = [16, 0], sizes = [8, 256], strides = [1, 1]} : vector<64x512xf32> to vector<8x256xf32>
    %182 = vector.extract_strided_slice %180 {offsets = [0, 0], sizes = [8, 256], strides = [1, 1]} : vector<8x512xf32> to vector<8x256xf32>
    %183 = arith.addf %181, %182 : vector<8x256xf32>
    %184 = vector.extract_strided_slice %5 {offsets = [40, 256], sizes = [8, 256], strides = [1, 1]} : vector<64x512xf32> to vector<8x256xf32>
    %185 = vector.extract_strided_slice %180 {offsets = [0, 256], sizes = [8, 256], strides = [1, 1]} : vector<8x512xf32> to vector<8x256xf32>
    %186 = arith.addf %184, %185 : vector<8x256xf32>
    %187 = vector.extract_strided_slice %183 {offsets = [0, 0], sizes = [8, 64], strides = [1, 1]} : vector<8x256xf32> to vector<8x64xf32>
    %188 = arith.negf %187 : vector<8x64xf32>
    %189 = math.exp %188 : vector<8x64xf32>
    %cst_35 = arith.constant 1.000000e+00 : f32
    %190 = vector.broadcast %cst_35 : f32 to vector<8x64xf32>
    %191 = arith.addf %190, %189 : vector<8x64xf32>
    %192 = arith.divf %190, %191 : vector<8x64xf32>
    %193 = vector.extract_strided_slice %183 {offsets = [0, 64], sizes = [8, 64], strides = [1, 1]} : vector<8x256xf32> to vector<8x64xf32>
    %194 = arith.negf %193 : vector<8x64xf32>
    %195 = math.exp %194 : vector<8x64xf32>
    %cst_36 = arith.constant 1.000000e+00 : f32
    %196 = vector.broadcast %cst_36 : f32 to vector<8x64xf32>
    %197 = arith.addf %196, %195 : vector<8x64xf32>
    %198 = arith.divf %196, %197 : vector<8x64xf32>
    %199 = vector.extract_strided_slice %183 {offsets = [0, 128], sizes = [8, 64], strides = [1, 1]} : vector<8x256xf32> to vector<8x64xf32>
    %200 = math.tanh %199 : vector<8x64xf32>
    %201 = vector.extract_strided_slice %183 {offsets = [0, 192], sizes = [8, 64], strides = [1, 1]} : vector<8x256xf32> to vector<8x64xf32>
    %202 = arith.negf %201 : vector<8x64xf32>
    %203 = math.exp %202 : vector<8x64xf32>
    %cst_37 = arith.constant 1.000000e+00 : f32
    %204 = vector.broadcast %cst_37 : f32 to vector<8x64xf32>
    %205 = arith.addf %204, %203 : vector<8x64xf32>
    %206 = arith.divf %204, %205 : vector<8x64xf32>
    %207 = arith.mulf %198, %163 : vector<8x64xf32>
    %208 = arith.mulf %192, %200 : vector<8x64xf32>
    %209 = arith.addf %207, %208 : vector<8x64xf32>
    %210 = math.tanh %209 : vector<8x64xf32>
    %211 = arith.mulf %206, %210 : vector<8x64xf32>
    %212 = vector.extract_strided_slice %186 {offsets = [0, 0], sizes = [8, 64], strides = [1, 1]} : vector<8x256xf32> to vector<8x64xf32>
    %213 = arith.negf %212 : vector<8x64xf32>
    %214 = math.exp %213 : vector<8x64xf32>
    %cst_38 = arith.constant 1.000000e+00 : f32
    %215 = vector.broadcast %cst_38 : f32 to vector<8x64xf32>
    %216 = arith.addf %215, %214 : vector<8x64xf32>
    %217 = arith.divf %215, %216 : vector<8x64xf32>
    %218 = vector.extract_strided_slice %186 {offsets = [0, 64], sizes = [8, 64], strides = [1, 1]} : vector<8x256xf32> to vector<8x64xf32>
    %219 = arith.negf %218 : vector<8x64xf32>
    %220 = math.exp %219 : vector<8x64xf32>
    %cst_39 = arith.constant 1.000000e+00 : f32
    %221 = vector.broadcast %cst_39 : f32 to vector<8x64xf32>
    %222 = arith.addf %221, %220 : vector<8x64xf32>
    %223 = arith.divf %221, %222 : vector<8x64xf32>
    %224 = vector.extract_strided_slice %186 {offsets = [0, 128], sizes = [8, 64], strides = [1, 1]} : vector<8x256xf32> to vector<8x64xf32>
    %225 = math.tanh %224 : vector<8x64xf32>
    %226 = vector.extract_strided_slice %186 {offsets = [0, 192], sizes = [8, 64], strides = [1, 1]} : vector<8x256xf32> to vector<8x64xf32>
    %227 = arith.negf %226 : vector<8x64xf32>
    %228 = math.exp %227 : vector<8x64xf32>
    %cst_40 = arith.constant 1.000000e+00 : f32
    %229 = vector.broadcast %cst_40 : f32 to vector<8x64xf32>
    %230 = arith.addf %229, %228 : vector<8x64xf32>
    %231 = arith.divf %229, %230 : vector<8x64xf32>
    %232 = arith.mulf %223, %169 : vector<8x64xf32>
    %233 = arith.mulf %217, %225 : vector<8x64xf32>
    %234 = arith.addf %232, %233 : vector<8x64xf32>
    %235 = math.tanh %234 : vector<8x64xf32>
    %236 = arith.mulf %231, %235 : vector<8x64xf32>
    %c2_i32 = arith.constant 2 : i32
    %237 = vector.broadcast %c2_i32 : i32 to vector<8x1xi32>
    %238 = arith.cmpi sgt, %6, %237 : vector<8x1xi32>
    %c5_i32 = arith.constant 5 : i32
    %239 = vector.broadcast %c5_i32 : i32 to vector<8x1xi32>
    %240 = arith.cmpi sgt, %6, %239 : vector<8x1xi32>
    %241 = vector.shape_cast %238 : vector<8x1xi1> to vector<8x1xi1>
    %242 = vector.broadcast %241 : vector<8x1xi1> to vector<8x64xi1>
    %243 = arith.select %242, %211, %160 : vector<8x64xi1>, vector<8x64xf32>
    %244 = vector.shape_cast %238 : vector<8x1xi1> to vector<8x1xi1>
    %245 = vector.broadcast %244 : vector<8x1xi1> to vector<8x64xi1>
    %246 = arith.select %245, %209, %163 : vector<8x64xi1>, vector<8x64xf32>
    %247 = vector.shape_cast %240 : vector<8x1xi1> to vector<8x1xi1>
    %248 = vector.broadcast %247 : vector<8x1xi1> to vector<8x64xi1>
    %249 = arith.select %248, %236, %166 : vector<8x64xi1>, vector<8x64xf32>
    %250 = vector.shape_cast %240 : vector<8x1xi1> to vector<8x1xi1>
    %251 = vector.broadcast %250 : vector<8x1xi1> to vector<8x64xi1>
    %252 = arith.select %251, %234, %169 : vector<8x64xi1>, vector<8x64xf32>
    %cst_41 = arith.constant 0.000000e+00 : f32
    %253 = vector.shape_cast %238 : vector<8x1xi1> to vector<8x1xi1>
    %254 = vector.broadcast %253 : vector<8x1xi1> to vector<8x64xi1>
    %255 = vector.broadcast %cst_41 : f32 to vector<8x64xf32>
    %256 = arith.select %254, %211, %255 : vector<8x64xi1>, vector<8x64xf32>
    %cst_42 = arith.constant 0.000000e+00 : f32
    %257 = vector.shape_cast %240 : vector<8x1xi1> to vector<8x1xi1>
    %258 = vector.broadcast %257 : vector<8x1xi1> to vector<8x64xi1>
    %259 = vector.broadcast %cst_42 : f32 to vector<8x64xf32>
    %260 = arith.select %258, %236, %259 : vector<8x64xi1>, vector<8x64xf32>
    %261 = tpu.concatenate %243, %249 in 1 : vector<8x64xf32>, vector<8x64xf32> -> vector<8x128xf32>
    %262 = arith.truncf %261 : vector<8x128xf32> to vector<8x128xbf16>
    %cst_43 = arith.constant dense<0.000000e+00> : vector<8x512xf32>
    %263 = tpu.matmul %262, %7, %cst_43 {dimension_numbers = #tpu.dot_dimension_numbers<[1], [0], [0], [1], [0, 0, 1, 1], [], []>} : vector<8x128xbf16>, vector<128x512xbf16>, vector<8x512xf32> -> vector<8x512xf32>
    %264 = vector.extract_strided_slice %5 {offsets = [24, 0], sizes = [8, 256], strides = [1, 1]} : vector<64x512xf32> to vector<8x256xf32>
    %265 = vector.extract_strided_slice %263 {offsets = [0, 0], sizes = [8, 256], strides = [1, 1]} : vector<8x512xf32> to vector<8x256xf32>
    %266 = arith.addf %264, %265 : vector<8x256xf32>
    %267 = vector.extract_strided_slice %5 {offsets = [32, 256], sizes = [8, 256], strides = [1, 1]} : vector<64x512xf32> to vector<8x256xf32>
    %268 = vector.extract_strided_slice %263 {offsets = [0, 256], sizes = [8, 256], strides = [1, 1]} : vector<8x512xf32> to vector<8x256xf32>
    %269 = arith.addf %267, %268 : vector<8x256xf32>
    %270 = vector.extract_strided_slice %266 {offsets = [0, 0], sizes = [8, 64], strides = [1, 1]} : vector<8x256xf32> to vector<8x64xf32>
    %271 = arith.negf %270 : vector<8x64xf32>
    %272 = math.exp %271 : vector<8x64xf32>
    %cst_44 = arith.constant 1.000000e+00 : f32
    %273 = vector.broadcast %cst_44 : f32 to vector<8x64xf32>
    %274 = arith.addf %273, %272 : vector<8x64xf32>
    %275 = arith.divf %273, %274 : vector<8x64xf32>
    %276 = vector.extract_strided_slice %266 {offsets = [0, 64], sizes = [8, 64], strides = [1, 1]} : vector<8x256xf32> to vector<8x64xf32>
    %277 = arith.negf %276 : vector<8x64xf32>
    %278 = math.exp %277 : vector<8x64xf32>
    %cst_45 = arith.constant 1.000000e+00 : f32
    %279 = vector.broadcast %cst_45 : f32 to vector<8x64xf32>
    %280 = arith.addf %279, %278 : vector<8x64xf32>
    %281 = arith.divf %279, %280 : vector<8x64xf32>
    %282 = vector.extract_strided_slice %266 {offsets = [0, 128], sizes = [8, 64], strides = [1, 1]} : vector<8x256xf32> to vector<8x64xf32>
    %283 = math.tanh %282 : vector<8x64xf32>
    %284 = vector.extract_strided_slice %266 {offsets = [0, 192], sizes = [8, 64], strides = [1, 1]} : vector<8x256xf32> to vector<8x64xf32>
    %285 = arith.negf %284 : vector<8x64xf32>
    %286 = math.exp %285 : vector<8x64xf32>
    %cst_46 = arith.constant 1.000000e+00 : f32
    %287 = vector.broadcast %cst_46 : f32 to vector<8x64xf32>
    %288 = arith.addf %287, %286 : vector<8x64xf32>
    %289 = arith.divf %287, %288 : vector<8x64xf32>
    %290 = arith.mulf %281, %246 : vector<8x64xf32>
    %291 = arith.mulf %275, %283 : vector<8x64xf32>
    %292 = arith.addf %290, %291 : vector<8x64xf32>
    %293 = math.tanh %292 : vector<8x64xf32>
    %294 = arith.mulf %289, %293 : vector<8x64xf32>
    %295 = vector.extract_strided_slice %269 {offsets = [0, 0], sizes = [8, 64], strides = [1, 1]} : vector<8x256xf32> to vector<8x64xf32>
    %296 = arith.negf %295 : vector<8x64xf32>
    %297 = math.exp %296 : vector<8x64xf32>
    %cst_47 = arith.constant 1.000000e+00 : f32
    %298 = vector.broadcast %cst_47 : f32 to vector<8x64xf32>
    %299 = arith.addf %298, %297 : vector<8x64xf32>
    %300 = arith.divf %298, %299 : vector<8x64xf32>
    %301 = vector.extract_strided_slice %269 {offsets = [0, 64], sizes = [8, 64], strides = [1, 1]} : vector<8x256xf32> to vector<8x64xf32>
    %302 = arith.negf %301 : vector<8x64xf32>
    %303 = math.exp %302 : vector<8x64xf32>
    %cst_48 = arith.constant 1.000000e+00 : f32
    %304 = vector.broadcast %cst_48 : f32 to vector<8x64xf32>
    %305 = arith.addf %304, %303 : vector<8x64xf32>
    %306 = arith.divf %304, %305 : vector<8x64xf32>
    %307 = vector.extract_strided_slice %269 {offsets = [0, 128], sizes = [8, 64], strides = [1, 1]} : vector<8x256xf32> to vector<8x64xf32>
    %308 = math.tanh %307 : vector<8x64xf32>
    %309 = vector.extract_strided_slice %269 {offsets = [0, 192], sizes = [8, 64], strides = [1, 1]} : vector<8x256xf32> to vector<8x64xf32>
    %310 = arith.negf %309 : vector<8x64xf32>
    %311 = math.exp %310 : vector<8x64xf32>
    %cst_49 = arith.constant 1.000000e+00 : f32
    %312 = vector.broadcast %cst_49 : f32 to vector<8x64xf32>
    %313 = arith.addf %312, %311 : vector<8x64xf32>
    %314 = arith.divf %312, %313 : vector<8x64xf32>
    %315 = arith.mulf %306, %252 : vector<8x64xf32>
    %316 = arith.mulf %300, %308 : vector<8x64xf32>
    %317 = arith.addf %315, %316 : vector<8x64xf32>
    %318 = math.tanh %317 : vector<8x64xf32>
    %319 = arith.mulf %314, %318 : vector<8x64xf32>
    %c3_i32 = arith.constant 3 : i32
    %320 = vector.broadcast %c3_i32 : i32 to vector<8x1xi32>
    %321 = arith.cmpi sgt, %6, %320 : vector<8x1xi32>
    %c4_i32 = arith.constant 4 : i32
    %322 = vector.broadcast %c4_i32 : i32 to vector<8x1xi32>
    %323 = arith.cmpi sgt, %6, %322 : vector<8x1xi32>
    %324 = vector.shape_cast %321 : vector<8x1xi1> to vector<8x1xi1>
    %325 = vector.broadcast %324 : vector<8x1xi1> to vector<8x64xi1>
    %326 = arith.select %325, %294, %243 : vector<8x64xi1>, vector<8x64xf32>
    %327 = vector.shape_cast %321 : vector<8x1xi1> to vector<8x1xi1>
    %328 = vector.broadcast %327 : vector<8x1xi1> to vector<8x64xi1>
    %329 = arith.select %328, %292, %246 : vector<8x64xi1>, vector<8x64xf32>
    %330 = vector.shape_cast %323 : vector<8x1xi1> to vector<8x1xi1>
    %331 = vector.broadcast %330 : vector<8x1xi1> to vector<8x64xi1>
    %332 = arith.select %331, %319, %249 : vector<8x64xi1>, vector<8x64xf32>
    %333 = vector.shape_cast %323 : vector<8x1xi1> to vector<8x1xi1>
    %334 = vector.broadcast %333 : vector<8x1xi1> to vector<8x64xi1>
    %335 = arith.select %334, %317, %252 : vector<8x64xi1>, vector<8x64xf32>
    %cst_50 = arith.constant 0.000000e+00 : f32
    %336 = vector.shape_cast %321 : vector<8x1xi1> to vector<8x1xi1>
    %337 = vector.broadcast %336 : vector<8x1xi1> to vector<8x64xi1>
    %338 = vector.broadcast %cst_50 : f32 to vector<8x64xf32>
    %339 = arith.select %337, %294, %338 : vector<8x64xi1>, vector<8x64xf32>
    %cst_51 = arith.constant 0.000000e+00 : f32
    %340 = vector.shape_cast %323 : vector<8x1xi1> to vector<8x1xi1>
    %341 = vector.broadcast %340 : vector<8x1xi1> to vector<8x64xi1>
    %342 = vector.broadcast %cst_51 : f32 to vector<8x64xf32>
    %343 = arith.select %341, %319, %342 : vector<8x64xi1>, vector<8x64xf32>
    %344 = tpu.concatenate %326, %332 in 1 : vector<8x64xf32>, vector<8x64xf32> -> vector<8x128xf32>
    %345 = arith.truncf %344 : vector<8x128xf32> to vector<8x128xbf16>
    %cst_52 = arith.constant dense<0.000000e+00> : vector<8x512xf32>
    %346 = tpu.matmul %345, %7, %cst_52 {dimension_numbers = #tpu.dot_dimension_numbers<[1], [0], [0], [1], [0, 0, 1, 1], [], []>} : vector<8x128xbf16>, vector<128x512xbf16>, vector<8x512xf32> -> vector<8x512xf32>
    %347 = vector.extract_strided_slice %5 {offsets = [32, 0], sizes = [8, 256], strides = [1, 1]} : vector<64x512xf32> to vector<8x256xf32>
    %348 = vector.extract_strided_slice %346 {offsets = [0, 0], sizes = [8, 256], strides = [1, 1]} : vector<8x512xf32> to vector<8x256xf32>
    %349 = arith.addf %347, %348 : vector<8x256xf32>
    %350 = vector.extract_strided_slice %5 {offsets = [24, 256], sizes = [8, 256], strides = [1, 1]} : vector<64x512xf32> to vector<8x256xf32>
    %351 = vector.extract_strided_slice %346 {offsets = [0, 256], sizes = [8, 256], strides = [1, 1]} : vector<8x512xf32> to vector<8x256xf32>
    %352 = arith.addf %350, %351 : vector<8x256xf32>
    %353 = vector.extract_strided_slice %349 {offsets = [0, 0], sizes = [8, 64], strides = [1, 1]} : vector<8x256xf32> to vector<8x64xf32>
    %354 = arith.negf %353 : vector<8x64xf32>
    %355 = math.exp %354 : vector<8x64xf32>
    %cst_53 = arith.constant 1.000000e+00 : f32
    %356 = vector.broadcast %cst_53 : f32 to vector<8x64xf32>
    %357 = arith.addf %356, %355 : vector<8x64xf32>
    %358 = arith.divf %356, %357 : vector<8x64xf32>
    %359 = vector.extract_strided_slice %349 {offsets = [0, 64], sizes = [8, 64], strides = [1, 1]} : vector<8x256xf32> to vector<8x64xf32>
    %360 = arith.negf %359 : vector<8x64xf32>
    %361 = math.exp %360 : vector<8x64xf32>
    %cst_54 = arith.constant 1.000000e+00 : f32
    %362 = vector.broadcast %cst_54 : f32 to vector<8x64xf32>
    %363 = arith.addf %362, %361 : vector<8x64xf32>
    %364 = arith.divf %362, %363 : vector<8x64xf32>
    %365 = vector.extract_strided_slice %349 {offsets = [0, 128], sizes = [8, 64], strides = [1, 1]} : vector<8x256xf32> to vector<8x64xf32>
    %366 = math.tanh %365 : vector<8x64xf32>
    %367 = vector.extract_strided_slice %349 {offsets = [0, 192], sizes = [8, 64], strides = [1, 1]} : vector<8x256xf32> to vector<8x64xf32>
    %368 = arith.negf %367 : vector<8x64xf32>
    %369 = math.exp %368 : vector<8x64xf32>
    %cst_55 = arith.constant 1.000000e+00 : f32
    %370 = vector.broadcast %cst_55 : f32 to vector<8x64xf32>
    %371 = arith.addf %370, %369 : vector<8x64xf32>
    %372 = arith.divf %370, %371 : vector<8x64xf32>
    %373 = arith.mulf %364, %329 : vector<8x64xf32>
    %374 = arith.mulf %358, %366 : vector<8x64xf32>
    %375 = arith.addf %373, %374 : vector<8x64xf32>
    %376 = math.tanh %375 : vector<8x64xf32>
    %377 = arith.mulf %372, %376 : vector<8x64xf32>
    %378 = vector.extract_strided_slice %352 {offsets = [0, 0], sizes = [8, 64], strides = [1, 1]} : vector<8x256xf32> to vector<8x64xf32>
    %379 = arith.negf %378 : vector<8x64xf32>
    %380 = math.exp %379 : vector<8x64xf32>
    %cst_56 = arith.constant 1.000000e+00 : f32
    %381 = vector.broadcast %cst_56 : f32 to vector<8x64xf32>
    %382 = arith.addf %381, %380 : vector<8x64xf32>
    %383 = arith.divf %381, %382 : vector<8x64xf32>
    %384 = vector.extract_strided_slice %352 {offsets = [0, 64], sizes = [8, 64], strides = [1, 1]} : vector<8x256xf32> to vector<8x64xf32>
    %385 = arith.negf %384 : vector<8x64xf32>
    %386 = math.exp %385 : vector<8x64xf32>
    %cst_57 = arith.constant 1.000000e+00 : f32
    %387 = vector.broadcast %cst_57 : f32 to vector<8x64xf32>
    %388 = arith.addf %387, %386 : vector<8x64xf32>
    %389 = arith.divf %387, %388 : vector<8x64xf32>
    %390 = vector.extract_strided_slice %352 {offsets = [0, 128], sizes = [8, 64], strides = [1, 1]} : vector<8x256xf32> to vector<8x64xf32>
    %391 = math.tanh %390 : vector<8x64xf32>
    %392 = vector.extract_strided_slice %352 {offsets = [0, 192], sizes = [8, 64], strides = [1, 1]} : vector<8x256xf32> to vector<8x64xf32>
    %393 = arith.negf %392 : vector<8x64xf32>
    %394 = math.exp %393 : vector<8x64xf32>
    %cst_58 = arith.constant 1.000000e+00 : f32
    %395 = vector.broadcast %cst_58 : f32 to vector<8x64xf32>
    %396 = arith.addf %395, %394 : vector<8x64xf32>
    %397 = arith.divf %395, %396 : vector<8x64xf32>
    %398 = arith.mulf %389, %335 : vector<8x64xf32>
    %399 = arith.mulf %383, %391 : vector<8x64xf32>
    %400 = arith.addf %398, %399 : vector<8x64xf32>
    %401 = math.tanh %400 : vector<8x64xf32>
    %402 = arith.mulf %397, %401 : vector<8x64xf32>
    %c4_i32_59 = arith.constant 4 : i32
    %403 = vector.broadcast %c4_i32_59 : i32 to vector<8x1xi32>
    %404 = arith.cmpi sgt, %6, %403 : vector<8x1xi32>
    %c3_i32_60 = arith.constant 3 : i32
    %405 = vector.broadcast %c3_i32_60 : i32 to vector<8x1xi32>
    %406 = arith.cmpi sgt, %6, %405 : vector<8x1xi32>
    %407 = vector.shape_cast %404 : vector<8x1xi1> to vector<8x1xi1>
    %408 = vector.broadcast %407 : vector<8x1xi1> to vector<8x64xi1>
    %409 = arith.select %408, %377, %326 : vector<8x64xi1>, vector<8x64xf32>
    %410 = vector.shape_cast %404 : vector<8x1xi1> to vector<8x1xi1>
    %411 = vector.broadcast %410 : vector<8x1xi1> to vector<8x64xi1>
    %412 = arith.select %411, %375, %329 : vector<8x64xi1>, vector<8x64xf32>
    %413 = vector.shape_cast %406 : vector<8x1xi1> to vector<8x1xi1>
    %414 = vector.broadcast %413 : vector<8x1xi1> to vector<8x64xi1>
    %415 = arith.select %414, %402, %332 : vector<8x64xi1>, vector<8x64xf32>
    %416 = vector.shape_cast %406 : vector<8x1xi1> to vector<8x1xi1>
    %417 = vector.broadcast %416 : vector<8x1xi1> to vector<8x64xi1>
    %418 = arith.select %417, %400, %335 : vector<8x64xi1>, vector<8x64xf32>
    %cst_61 = arith.constant 0.000000e+00 : f32
    %419 = vector.shape_cast %404 : vector<8x1xi1> to vector<8x1xi1>
    %420 = vector.broadcast %419 : vector<8x1xi1> to vector<8x64xi1>
    %421 = vector.broadcast %cst_61 : f32 to vector<8x64xf32>
    %422 = arith.select %420, %377, %421 : vector<8x64xi1>, vector<8x64xf32>
    %cst_62 = arith.constant 0.000000e+00 : f32
    %423 = vector.shape_cast %406 : vector<8x1xi1> to vector<8x1xi1>
    %424 = vector.broadcast %423 : vector<8x1xi1> to vector<8x64xi1>
    %425 = vector.broadcast %cst_62 : f32 to vector<8x64xf32>
    %426 = arith.select %424, %402, %425 : vector<8x64xi1>, vector<8x64xf32>
    %427 = tpu.concatenate %409, %415 in 1 : vector<8x64xf32>, vector<8x64xf32> -> vector<8x128xf32>
    %428 = arith.truncf %427 : vector<8x128xf32> to vector<8x128xbf16>
    %cst_63 = arith.constant dense<0.000000e+00> : vector<8x512xf32>
    %429 = tpu.matmul %428, %7, %cst_63 {dimension_numbers = #tpu.dot_dimension_numbers<[1], [0], [0], [1], [0, 0, 1, 1], [], []>} : vector<8x128xbf16>, vector<128x512xbf16>, vector<8x512xf32> -> vector<8x512xf32>
    %430 = vector.extract_strided_slice %5 {offsets = [40, 0], sizes = [8, 256], strides = [1, 1]} : vector<64x512xf32> to vector<8x256xf32>
    %431 = vector.extract_strided_slice %429 {offsets = [0, 0], sizes = [8, 256], strides = [1, 1]} : vector<8x512xf32> to vector<8x256xf32>
    %432 = arith.addf %430, %431 : vector<8x256xf32>
    %433 = vector.extract_strided_slice %5 {offsets = [16, 256], sizes = [8, 256], strides = [1, 1]} : vector<64x512xf32> to vector<8x256xf32>
    %434 = vector.extract_strided_slice %429 {offsets = [0, 256], sizes = [8, 256], strides = [1, 1]} : vector<8x512xf32> to vector<8x256xf32>
    %435 = arith.addf %433, %434 : vector<8x256xf32>
    %436 = vector.extract_strided_slice %432 {offsets = [0, 0], sizes = [8, 64], strides = [1, 1]} : vector<8x256xf32> to vector<8x64xf32>
    %437 = arith.negf %436 : vector<8x64xf32>
    %438 = math.exp %437 : vector<8x64xf32>
    %cst_64 = arith.constant 1.000000e+00 : f32
    %439 = vector.broadcast %cst_64 : f32 to vector<8x64xf32>
    %440 = arith.addf %439, %438 : vector<8x64xf32>
    %441 = arith.divf %439, %440 : vector<8x64xf32>
    %442 = vector.extract_strided_slice %432 {offsets = [0, 64], sizes = [8, 64], strides = [1, 1]} : vector<8x256xf32> to vector<8x64xf32>
    %443 = arith.negf %442 : vector<8x64xf32>
    %444 = math.exp %443 : vector<8x64xf32>
    %cst_65 = arith.constant 1.000000e+00 : f32
    %445 = vector.broadcast %cst_65 : f32 to vector<8x64xf32>
    %446 = arith.addf %445, %444 : vector<8x64xf32>
    %447 = arith.divf %445, %446 : vector<8x64xf32>
    %448 = vector.extract_strided_slice %432 {offsets = [0, 128], sizes = [8, 64], strides = [1, 1]} : vector<8x256xf32> to vector<8x64xf32>
    %449 = math.tanh %448 : vector<8x64xf32>
    %450 = vector.extract_strided_slice %432 {offsets = [0, 192], sizes = [8, 64], strides = [1, 1]} : vector<8x256xf32> to vector<8x64xf32>
    %451 = arith.negf %450 : vector<8x64xf32>
    %452 = math.exp %451 : vector<8x64xf32>
    %cst_66 = arith.constant 1.000000e+00 : f32
    %453 = vector.broadcast %cst_66 : f32 to vector<8x64xf32>
    %454 = arith.addf %453, %452 : vector<8x64xf32>
    %455 = arith.divf %453, %454 : vector<8x64xf32>
    %456 = arith.mulf %447, %412 : vector<8x64xf32>
    %457 = arith.mulf %441, %449 : vector<8x64xf32>
    %458 = arith.addf %456, %457 : vector<8x64xf32>
    %459 = math.tanh %458 : vector<8x64xf32>
    %460 = arith.mulf %455, %459 : vector<8x64xf32>
    %461 = vector.extract_strided_slice %435 {offsets = [0, 0], sizes = [8, 64], strides = [1, 1]} : vector<8x256xf32> to vector<8x64xf32>
    %462 = arith.negf %461 : vector<8x64xf32>
    %463 = math.exp %462 : vector<8x64xf32>
    %cst_67 = arith.constant 1.000000e+00 : f32
    %464 = vector.broadcast %cst_67 : f32 to vector<8x64xf32>
    %465 = arith.addf %464, %463 : vector<8x64xf32>
    %466 = arith.divf %464, %465 : vector<8x64xf32>
    %467 = vector.extract_strided_slice %435 {offsets = [0, 64], sizes = [8, 64], strides = [1, 1]} : vector<8x256xf32> to vector<8x64xf32>
    %468 = arith.negf %467 : vector<8x64xf32>
    %469 = math.exp %468 : vector<8x64xf32>
    %cst_68 = arith.constant 1.000000e+00 : f32
    %470 = vector.broadcast %cst_68 : f32 to vector<8x64xf32>
    %471 = arith.addf %470, %469 : vector<8x64xf32>
    %472 = arith.divf %470, %471 : vector<8x64xf32>
    %473 = vector.extract_strided_slice %435 {offsets = [0, 128], sizes = [8, 64], strides = [1, 1]} : vector<8x256xf32> to vector<8x64xf32>
    %474 = math.tanh %473 : vector<8x64xf32>
    %475 = vector.extract_strided_slice %435 {offsets = [0, 192], sizes = [8, 64], strides = [1, 1]} : vector<8x256xf32> to vector<8x64xf32>
    %476 = arith.negf %475 : vector<8x64xf32>
    %477 = math.exp %476 : vector<8x64xf32>
    %cst_69 = arith.constant 1.000000e+00 : f32
    %478 = vector.broadcast %cst_69 : f32 to vector<8x64xf32>
    %479 = arith.addf %478, %477 : vector<8x64xf32>
    %480 = arith.divf %478, %479 : vector<8x64xf32>
    %481 = arith.mulf %472, %418 : vector<8x64xf32>
    %482 = arith.mulf %466, %474 : vector<8x64xf32>
    %483 = arith.addf %481, %482 : vector<8x64xf32>
    %484 = math.tanh %483 : vector<8x64xf32>
    %485 = arith.mulf %480, %484 : vector<8x64xf32>
    %c5_i32_70 = arith.constant 5 : i32
    %486 = vector.broadcast %c5_i32_70 : i32 to vector<8x1xi32>
    %487 = arith.cmpi sgt, %6, %486 : vector<8x1xi32>
    %c2_i32_71 = arith.constant 2 : i32
    %488 = vector.broadcast %c2_i32_71 : i32 to vector<8x1xi32>
    %489 = arith.cmpi sgt, %6, %488 : vector<8x1xi32>
    %490 = vector.shape_cast %487 : vector<8x1xi1> to vector<8x1xi1>
    %491 = vector.broadcast %490 : vector<8x1xi1> to vector<8x64xi1>
    %492 = arith.select %491, %460, %409 : vector<8x64xi1>, vector<8x64xf32>
    %493 = vector.shape_cast %487 : vector<8x1xi1> to vector<8x1xi1>
    %494 = vector.broadcast %493 : vector<8x1xi1> to vector<8x64xi1>
    %495 = arith.select %494, %458, %412 : vector<8x64xi1>, vector<8x64xf32>
    %496 = vector.shape_cast %489 : vector<8x1xi1> to vector<8x1xi1>
    %497 = vector.broadcast %496 : vector<8x1xi1> to vector<8x64xi1>
    %498 = arith.select %497, %485, %415 : vector<8x64xi1>, vector<8x64xf32>
    %499 = vector.shape_cast %489 : vector<8x1xi1> to vector<8x1xi1>
    %500 = vector.broadcast %499 : vector<8x1xi1> to vector<8x64xi1>
    %501 = arith.select %500, %483, %418 : vector<8x64xi1>, vector<8x64xf32>
    %cst_72 = arith.constant 0.000000e+00 : f32
    %502 = vector.shape_cast %487 : vector<8x1xi1> to vector<8x1xi1>
    %503 = vector.broadcast %502 : vector<8x1xi1> to vector<8x64xi1>
    %504 = vector.broadcast %cst_72 : f32 to vector<8x64xf32>
    %505 = arith.select %503, %460, %504 : vector<8x64xi1>, vector<8x64xf32>
    %cst_73 = arith.constant 0.000000e+00 : f32
    %506 = vector.shape_cast %489 : vector<8x1xi1> to vector<8x1xi1>
    %507 = vector.broadcast %506 : vector<8x1xi1> to vector<8x64xi1>
    %508 = vector.broadcast %cst_73 : f32 to vector<8x64xf32>
    %509 = arith.select %507, %485, %508 : vector<8x64xi1>, vector<8x64xf32>
    %510 = tpu.concatenate %492, %498 in 1 : vector<8x64xf32>, vector<8x64xf32> -> vector<8x128xf32>
    %511 = arith.truncf %510 : vector<8x128xf32> to vector<8x128xbf16>
    %cst_74 = arith.constant dense<0.000000e+00> : vector<8x512xf32>
    %512 = tpu.matmul %511, %7, %cst_74 {dimension_numbers = #tpu.dot_dimension_numbers<[1], [0], [0], [1], [0, 0, 1, 1], [], []>} : vector<8x128xbf16>, vector<128x512xbf16>, vector<8x512xf32> -> vector<8x512xf32>
    %513 = vector.extract_strided_slice %5 {offsets = [48, 0], sizes = [8, 256], strides = [1, 1]} : vector<64x512xf32> to vector<8x256xf32>
    %514 = vector.extract_strided_slice %512 {offsets = [0, 0], sizes = [8, 256], strides = [1, 1]} : vector<8x512xf32> to vector<8x256xf32>
    %515 = arith.addf %513, %514 : vector<8x256xf32>
    %516 = vector.extract_strided_slice %5 {offsets = [8, 256], sizes = [8, 256], strides = [1, 1]} : vector<64x512xf32> to vector<8x256xf32>
    %517 = vector.extract_strided_slice %512 {offsets = [0, 256], sizes = [8, 256], strides = [1, 1]} : vector<8x512xf32> to vector<8x256xf32>
    %518 = arith.addf %516, %517 : vector<8x256xf32>
    %519 = vector.extract_strided_slice %515 {offsets = [0, 0], sizes = [8, 64], strides = [1, 1]} : vector<8x256xf32> to vector<8x64xf32>
    %520 = arith.negf %519 : vector<8x64xf32>
    %521 = math.exp %520 : vector<8x64xf32>
    %cst_75 = arith.constant 1.000000e+00 : f32
    %522 = vector.broadcast %cst_75 : f32 to vector<8x64xf32>
    %523 = arith.addf %522, %521 : vector<8x64xf32>
    %524 = arith.divf %522, %523 : vector<8x64xf32>
    %525 = vector.extract_strided_slice %515 {offsets = [0, 64], sizes = [8, 64], strides = [1, 1]} : vector<8x256xf32> to vector<8x64xf32>
    %526 = arith.negf %525 : vector<8x64xf32>
    %527 = math.exp %526 : vector<8x64xf32>
    %cst_76 = arith.constant 1.000000e+00 : f32
    %528 = vector.broadcast %cst_76 : f32 to vector<8x64xf32>
    %529 = arith.addf %528, %527 : vector<8x64xf32>
    %530 = arith.divf %528, %529 : vector<8x64xf32>
    %531 = vector.extract_strided_slice %515 {offsets = [0, 128], sizes = [8, 64], strides = [1, 1]} : vector<8x256xf32> to vector<8x64xf32>
    %532 = math.tanh %531 : vector<8x64xf32>
    %533 = vector.extract_strided_slice %515 {offsets = [0, 192], sizes = [8, 64], strides = [1, 1]} : vector<8x256xf32> to vector<8x64xf32>
    %534 = arith.negf %533 : vector<8x64xf32>
    %535 = math.exp %534 : vector<8x64xf32>
    %cst_77 = arith.constant 1.000000e+00 : f32
    %536 = vector.broadcast %cst_77 : f32 to vector<8x64xf32>
    %537 = arith.addf %536, %535 : vector<8x64xf32>
    %538 = arith.divf %536, %537 : vector<8x64xf32>
    %539 = arith.mulf %530, %495 : vector<8x64xf32>
    %540 = arith.mulf %524, %532 : vector<8x64xf32>
    %541 = arith.addf %539, %540 : vector<8x64xf32>
    %542 = math.tanh %541 : vector<8x64xf32>
    %543 = arith.mulf %538, %542 : vector<8x64xf32>
    %544 = vector.extract_strided_slice %518 {offsets = [0, 0], sizes = [8, 64], strides = [1, 1]} : vector<8x256xf32> to vector<8x64xf32>
    %545 = arith.negf %544 : vector<8x64xf32>
    %546 = math.exp %545 : vector<8x64xf32>
    %cst_78 = arith.constant 1.000000e+00 : f32
    %547 = vector.broadcast %cst_78 : f32 to vector<8x64xf32>
    %548 = arith.addf %547, %546 : vector<8x64xf32>
    %549 = arith.divf %547, %548 : vector<8x64xf32>
    %550 = vector.extract_strided_slice %518 {offsets = [0, 64], sizes = [8, 64], strides = [1, 1]} : vector<8x256xf32> to vector<8x64xf32>
    %551 = arith.negf %550 : vector<8x64xf32>
    %552 = math.exp %551 : vector<8x64xf32>
    %cst_79 = arith.constant 1.000000e+00 : f32
    %553 = vector.broadcast %cst_79 : f32 to vector<8x64xf32>
    %554 = arith.addf %553, %552 : vector<8x64xf32>
    %555 = arith.divf %553, %554 : vector<8x64xf32>
    %556 = vector.extract_strided_slice %518 {offsets = [0, 128], sizes = [8, 64], strides = [1, 1]} : vector<8x256xf32> to vector<8x64xf32>
    %557 = math.tanh %556 : vector<8x64xf32>
    %558 = vector.extract_strided_slice %518 {offsets = [0, 192], sizes = [8, 64], strides = [1, 1]} : vector<8x256xf32> to vector<8x64xf32>
    %559 = arith.negf %558 : vector<8x64xf32>
    %560 = math.exp %559 : vector<8x64xf32>
    %cst_80 = arith.constant 1.000000e+00 : f32
    %561 = vector.broadcast %cst_80 : f32 to vector<8x64xf32>
    %562 = arith.addf %561, %560 : vector<8x64xf32>
    %563 = arith.divf %561, %562 : vector<8x64xf32>
    %564 = arith.mulf %555, %501 : vector<8x64xf32>
    %565 = arith.mulf %549, %557 : vector<8x64xf32>
    %566 = arith.addf %564, %565 : vector<8x64xf32>
    %567 = math.tanh %566 : vector<8x64xf32>
    %568 = arith.mulf %563, %567 : vector<8x64xf32>
    %c6_i32_81 = arith.constant 6 : i32
    %569 = vector.broadcast %c6_i32_81 : i32 to vector<8x1xi32>
    %570 = arith.cmpi sgt, %6, %569 : vector<8x1xi32>
    %c1_i32_82 = arith.constant 1 : i32
    %571 = vector.broadcast %c1_i32_82 : i32 to vector<8x1xi32>
    %572 = arith.cmpi sgt, %6, %571 : vector<8x1xi32>
    %573 = vector.shape_cast %570 : vector<8x1xi1> to vector<8x1xi1>
    %574 = vector.broadcast %573 : vector<8x1xi1> to vector<8x64xi1>
    %575 = arith.select %574, %543, %492 : vector<8x64xi1>, vector<8x64xf32>
    %576 = vector.shape_cast %570 : vector<8x1xi1> to vector<8x1xi1>
    %577 = vector.broadcast %576 : vector<8x1xi1> to vector<8x64xi1>
    %578 = arith.select %577, %541, %495 : vector<8x64xi1>, vector<8x64xf32>
    %579 = vector.shape_cast %572 : vector<8x1xi1> to vector<8x1xi1>
    %580 = vector.broadcast %579 : vector<8x1xi1> to vector<8x64xi1>
    %581 = arith.select %580, %568, %498 : vector<8x64xi1>, vector<8x64xf32>
    %582 = vector.shape_cast %572 : vector<8x1xi1> to vector<8x1xi1>
    %583 = vector.broadcast %582 : vector<8x1xi1> to vector<8x64xi1>
    %584 = arith.select %583, %566, %501 : vector<8x64xi1>, vector<8x64xf32>
    %cst_83 = arith.constant 0.000000e+00 : f32
    %585 = vector.shape_cast %570 : vector<8x1xi1> to vector<8x1xi1>
    %586 = vector.broadcast %585 : vector<8x1xi1> to vector<8x64xi1>
    %587 = vector.broadcast %cst_83 : f32 to vector<8x64xf32>
    %588 = arith.select %586, %543, %587 : vector<8x64xi1>, vector<8x64xf32>
    %cst_84 = arith.constant 0.000000e+00 : f32
    %589 = vector.shape_cast %572 : vector<8x1xi1> to vector<8x1xi1>
    %590 = vector.broadcast %589 : vector<8x1xi1> to vector<8x64xi1>
    %591 = vector.broadcast %cst_84 : f32 to vector<8x64xf32>
    %592 = arith.select %590, %568, %591 : vector<8x64xi1>, vector<8x64xf32>
    %593 = tpu.concatenate %575, %581 in 1 : vector<8x64xf32>, vector<8x64xf32> -> vector<8x128xf32>
    %594 = arith.truncf %593 : vector<8x128xf32> to vector<8x128xbf16>
    %cst_85 = arith.constant dense<0.000000e+00> : vector<8x512xf32>
    %595 = tpu.matmul %594, %7, %cst_85 {dimension_numbers = #tpu.dot_dimension_numbers<[1], [0], [0], [1], [0, 0, 1, 1], [], []>} : vector<8x128xbf16>, vector<128x512xbf16>, vector<8x512xf32> -> vector<8x512xf32>
    %596 = vector.extract_strided_slice %5 {offsets = [56, 0], sizes = [8, 256], strides = [1, 1]} : vector<64x512xf32> to vector<8x256xf32>
    %597 = vector.extract_strided_slice %595 {offsets = [0, 0], sizes = [8, 256], strides = [1, 1]} : vector<8x512xf32> to vector<8x256xf32>
    %598 = arith.addf %596, %597 : vector<8x256xf32>
    %599 = vector.extract_strided_slice %5 {offsets = [0, 256], sizes = [8, 256], strides = [1, 1]} : vector<64x512xf32> to vector<8x256xf32>
    %600 = vector.extract_strided_slice %595 {offsets = [0, 256], sizes = [8, 256], strides = [1, 1]} : vector<8x512xf32> to vector<8x256xf32>
    %601 = arith.addf %599, %600 : vector<8x256xf32>
    %602 = vector.extract_strided_slice %598 {offsets = [0, 0], sizes = [8, 64], strides = [1, 1]} : vector<8x256xf32> to vector<8x64xf32>
    %603 = arith.negf %602 : vector<8x64xf32>
    %604 = math.exp %603 : vector<8x64xf32>
    %cst_86 = arith.constant 1.000000e+00 : f32
    %605 = vector.broadcast %cst_86 : f32 to vector<8x64xf32>
    %606 = arith.addf %605, %604 : vector<8x64xf32>
    %607 = arith.divf %605, %606 : vector<8x64xf32>
    %608 = vector.extract_strided_slice %598 {offsets = [0, 64], sizes = [8, 64], strides = [1, 1]} : vector<8x256xf32> to vector<8x64xf32>
    %609 = arith.negf %608 : vector<8x64xf32>
    %610 = math.exp %609 : vector<8x64xf32>
    %cst_87 = arith.constant 1.000000e+00 : f32
    %611 = vector.broadcast %cst_87 : f32 to vector<8x64xf32>
    %612 = arith.addf %611, %610 : vector<8x64xf32>
    %613 = arith.divf %611, %612 : vector<8x64xf32>
    %614 = vector.extract_strided_slice %598 {offsets = [0, 128], sizes = [8, 64], strides = [1, 1]} : vector<8x256xf32> to vector<8x64xf32>
    %615 = math.tanh %614 : vector<8x64xf32>
    %616 = vector.extract_strided_slice %598 {offsets = [0, 192], sizes = [8, 64], strides = [1, 1]} : vector<8x256xf32> to vector<8x64xf32>
    %617 = arith.negf %616 : vector<8x64xf32>
    %618 = math.exp %617 : vector<8x64xf32>
    %cst_88 = arith.constant 1.000000e+00 : f32
    %619 = vector.broadcast %cst_88 : f32 to vector<8x64xf32>
    %620 = arith.addf %619, %618 : vector<8x64xf32>
    %621 = arith.divf %619, %620 : vector<8x64xf32>
    %622 = arith.mulf %613, %578 : vector<8x64xf32>
    %623 = arith.mulf %607, %615 : vector<8x64xf32>
    %624 = arith.addf %622, %623 : vector<8x64xf32>
    %625 = math.tanh %624 : vector<8x64xf32>
    %626 = arith.mulf %621, %625 : vector<8x64xf32>
    %627 = vector.extract_strided_slice %601 {offsets = [0, 0], sizes = [8, 64], strides = [1, 1]} : vector<8x256xf32> to vector<8x64xf32>
    %628 = arith.negf %627 : vector<8x64xf32>
    %629 = math.exp %628 : vector<8x64xf32>
    %cst_89 = arith.constant 1.000000e+00 : f32
    %630 = vector.broadcast %cst_89 : f32 to vector<8x64xf32>
    %631 = arith.addf %630, %629 : vector<8x64xf32>
    %632 = arith.divf %630, %631 : vector<8x64xf32>
    %633 = vector.extract_strided_slice %601 {offsets = [0, 64], sizes = [8, 64], strides = [1, 1]} : vector<8x256xf32> to vector<8x64xf32>
    %634 = arith.negf %633 : vector<8x64xf32>
    %635 = math.exp %634 : vector<8x64xf32>
    %cst_90 = arith.constant 1.000000e+00 : f32
    %636 = vector.broadcast %cst_90 : f32 to vector<8x64xf32>
    %637 = arith.addf %636, %635 : vector<8x64xf32>
    %638 = arith.divf %636, %637 : vector<8x64xf32>
    %639 = vector.extract_strided_slice %601 {offsets = [0, 128], sizes = [8, 64], strides = [1, 1]} : vector<8x256xf32> to vector<8x64xf32>
    %640 = math.tanh %639 : vector<8x64xf32>
    %641 = vector.extract_strided_slice %601 {offsets = [0, 192], sizes = [8, 64], strides = [1, 1]} : vector<8x256xf32> to vector<8x64xf32>
    %642 = arith.negf %641 : vector<8x64xf32>
    %643 = math.exp %642 : vector<8x64xf32>
    %cst_91 = arith.constant 1.000000e+00 : f32
    %644 = vector.broadcast %cst_91 : f32 to vector<8x64xf32>
    %645 = arith.addf %644, %643 : vector<8x64xf32>
    %646 = arith.divf %644, %645 : vector<8x64xf32>
    %647 = arith.mulf %638, %584 : vector<8x64xf32>
    %648 = arith.mulf %632, %640 : vector<8x64xf32>
    %649 = arith.addf %647, %648 : vector<8x64xf32>
    %650 = math.tanh %649 : vector<8x64xf32>
    %651 = arith.mulf %646, %650 : vector<8x64xf32>
    %c7_i32_92 = arith.constant 7 : i32
    %652 = vector.broadcast %c7_i32_92 : i32 to vector<8x1xi32>
    %653 = arith.cmpi sgt, %6, %652 : vector<8x1xi32>
    %c0_i32_93 = arith.constant 0 : i32
    %654 = vector.broadcast %c0_i32_93 : i32 to vector<8x1xi32>
    %655 = arith.cmpi sgt, %6, %654 : vector<8x1xi32>
    %656 = vector.shape_cast %653 : vector<8x1xi1> to vector<8x1xi1>
    %657 = vector.broadcast %656 : vector<8x1xi1> to vector<8x64xi1>
    %658 = arith.select %657, %626, %575 : vector<8x64xi1>, vector<8x64xf32>
    %659 = vector.shape_cast %653 : vector<8x1xi1> to vector<8x1xi1>
    %660 = vector.broadcast %659 : vector<8x1xi1> to vector<8x64xi1>
    %661 = arith.select %660, %624, %578 : vector<8x64xi1>, vector<8x64xf32>
    %662 = vector.shape_cast %655 : vector<8x1xi1> to vector<8x1xi1>
    %663 = vector.broadcast %662 : vector<8x1xi1> to vector<8x64xi1>
    %664 = arith.select %663, %651, %581 : vector<8x64xi1>, vector<8x64xf32>
    %665 = vector.shape_cast %655 : vector<8x1xi1> to vector<8x1xi1>
    %666 = vector.broadcast %665 : vector<8x1xi1> to vector<8x64xi1>
    %667 = arith.select %666, %649, %584 : vector<8x64xi1>, vector<8x64xf32>
    %cst_94 = arith.constant 0.000000e+00 : f32
    %668 = vector.shape_cast %653 : vector<8x1xi1> to vector<8x1xi1>
    %669 = vector.broadcast %668 : vector<8x1xi1> to vector<8x64xi1>
    %670 = vector.broadcast %cst_94 : f32 to vector<8x64xf32>
    %671 = arith.select %669, %626, %670 : vector<8x64xi1>, vector<8x64xf32>
    %cst_95 = arith.constant 0.000000e+00 : f32
    %672 = vector.shape_cast %655 : vector<8x1xi1> to vector<8x1xi1>
    %673 = vector.broadcast %672 : vector<8x1xi1> to vector<8x64xi1>
    %674 = vector.broadcast %cst_95 : f32 to vector<8x64xf32>
    %675 = arith.select %673, %651, %674 : vector<8x64xi1>, vector<8x64xf32>
    %676 = tpu.concatenate %90, %675 in 1 : vector<8x64xf32>, vector<8x64xf32> -> vector<8x128xf32>
    %c0_96 = arith.constant 0 : index
    %c0_97 = arith.constant 0 : index
    %677 = vector.load %arg7[%c0_96, %c0_97] : memref<64x128xf32, #tpu.memory_space<vmem>>, vector<8x128xf32>
    tpu.vector_store %arg7[%c0_96, %c0_97], %676 {strides = array<i32>} : memref<64x128xf32, #tpu.memory_space<vmem>>, vector<8x128xf32>,
    %678 = tpu.concatenate %173, %592 in 1 : vector<8x64xf32>, vector<8x64xf32> -> vector<8x128xf32>
    %c8 = arith.constant 8 : index
    %c0_98 = arith.constant 0 : index
    %679 = vector.load %arg7[%c8, %c0_98] : memref<64x128xf32, #tpu.memory_space<vmem>>, vector<8x128xf32>
    tpu.vector_store %arg7[%c8, %c0_98], %678 {strides = array<i32>} : memref<64x128xf32, #tpu.memory_space<vmem>>, vector<8x128xf32>,
    %680 = tpu.concatenate %256, %509 in 1 : vector<8x64xf32>, vector<8x64xf32> -> vector<8x128xf32>
    %c16 = arith.constant 16 : index
    %c0_99 = arith.constant 0 : index
    %681 = vector.load %arg7[%c16, %c0_99] : memref<64x128xf32, #tpu.memory_space<vmem>>, vector<8x128xf32>
    tpu.vector_store %arg7[%c16, %c0_99], %680 {strides = array<i32>} : memref<64x128xf32, #tpu.memory_space<vmem>>, vector<8x128xf32>,
    %682 = tpu.concatenate %339, %426 in 1 : vector<8x64xf32>, vector<8x64xf32> -> vector<8x128xf32>
    %c24 = arith.constant 24 : index
    %c0_100 = arith.constant 0 : index
    %683 = vector.load %arg7[%c24, %c0_100] : memref<64x128xf32, #tpu.memory_space<vmem>>, vector<8x128xf32>
    tpu.vector_store %arg7[%c24, %c0_100], %682 {strides = array<i32>} : memref<64x128xf32, #tpu.memory_space<vmem>>, vector<8x128xf32>,
    %684 = tpu.concatenate %422, %343 in 1 : vector<8x64xf32>, vector<8x64xf32> -> vector<8x128xf32>
    %c32 = arith.constant 32 : index
    %c0_101 = arith.constant 0 : index
    %685 = vector.load %arg7[%c32, %c0_101] : memref<64x128xf32, #tpu.memory_space<vmem>>, vector<8x128xf32>
    tpu.vector_store %arg7[%c32, %c0_101], %684 {strides = array<i32>} : memref<64x128xf32, #tpu.memory_space<vmem>>, vector<8x128xf32>,
    %686 = tpu.concatenate %505, %260 in 1 : vector<8x64xf32>, vector<8x64xf32> -> vector<8x128xf32>
    %c40 = arith.constant 40 : index
    %c0_102 = arith.constant 0 : index
    %687 = vector.load %arg7[%c40, %c0_102] : memref<64x128xf32, #tpu.memory_space<vmem>>, vector<8x128xf32>
    tpu.vector_store %arg7[%c40, %c0_102], %686 {strides = array<i32>} : memref<64x128xf32, #tpu.memory_space<vmem>>, vector<8x128xf32>,
    %688 = tpu.concatenate %588, %177 in 1 : vector<8x64xf32>, vector<8x64xf32> -> vector<8x128xf32>
    %c48 = arith.constant 48 : index
    %c0_103 = arith.constant 0 : index
    %689 = vector.load %arg7[%c48, %c0_103] : memref<64x128xf32, #tpu.memory_space<vmem>>, vector<8x128xf32>
    tpu.vector_store %arg7[%c48, %c0_103], %688 {strides = array<i32>} : memref<64x128xf32, #tpu.memory_space<vmem>>, vector<8x128xf32>,
    %690 = tpu.concatenate %671, %94 in 1 : vector<8x64xf32>, vector<8x64xf32> -> vector<8x128xf32>
    %c56 = arith.constant 56 : index
    %c0_104 = arith.constant 0 : index
    %691 = vector.load %arg7[%c56, %c0_104] : memref<64x128xf32, #tpu.memory_space<vmem>>, vector<8x128xf32>
    tpu.vector_store %arg7[%c56, %c0_104], %690 {strides = array<i32>} : memref<64x128xf32, #tpu.memory_space<vmem>>, vector<8x128xf32>,
    %692 = tpu.concatenate %658, %664 in 1 : vector<8x64xf32>, vector<8x64xf32> -> vector<8x128xf32>
    %c0_105 = arith.constant 0 : index
    %c0_106 = arith.constant 0 : index
    %693 = vector.load %arg8[%c0_105, %c0_106] : memref<16x128xf32, #tpu.memory_space<vmem>>, vector<8x128xf32>
    tpu.vector_store %arg8[%c0_105, %c0_106], %692 {strides = array<i32>} : memref<16x128xf32, #tpu.memory_space<vmem>>, vector<8x128xf32>,
    %694 = tpu.concatenate %661, %667 in 1 : vector<8x64xf32>, vector<8x64xf32> -> vector<8x128xf32>
    %c8_107 = arith.constant 8 : index
    %c0_108 = arith.constant 0 : index
    %695 = vector.load %arg8[%c8_107, %c0_108] : memref<16x128xf32, #tpu.memory_space<vmem>>, vector<8x128xf32>
    tpu.vector_store %arg8[%c8_107, %c0_108], %694 {strides = array<i32>} : memref<16x128xf32, #tpu.memory_space<vmem>>, vector<8x128xf32>,
    return
  }
}

module attributes {stable_mosaic.version = 11 : i64} {
  func.func @_bilstm_kernel(%arg0: memref<32x64xbf16, #tpu.memory_space<vmem>>, %arg1: memref<8x1xi32, #tpu.memory_space<vmem>>, %arg2: memref<64x256xbf16, #tpu.memory_space<vmem>>, %arg3: memref<64x256xbf16, #tpu.memory_space<vmem>>, %arg4: memref<1x256xf32, #tpu.memory_space<vmem>>, %arg5: memref<8x64xf32, #tpu.memory_space<vmem>>, %arg6: memref<8x64xf32, #tpu.memory_space<vmem>>, %arg7: memref<32x64xf32, #tpu.memory_space<vmem>>, %arg8: memref<16x64xf32, #tpu.memory_space<vmem>>) attributes {dimension_semantics = [], scalar_prefetch = 0 : i64, scratch_operands = 0 : i64, tpu.core_type = #tpu.core_type<tc>} {
    %c0 = arith.constant 0 : index
    %c0_0 = arith.constant 0 : index
    %0 = vector.load %arg0[%c0, %c0_0] : memref<32x64xbf16, #tpu.memory_space<vmem>>, vector<32x64xbf16>
    %c0_1 = arith.constant 0 : index
    %c0_2 = arith.constant 0 : index
    %1 = vector.load %arg2[%c0_1, %c0_2] : memref<64x256xbf16, #tpu.memory_space<vmem>>, vector<64x256xbf16>
    %cst = arith.constant dense<0.000000e+00> : vector<32x256xf32>
    %2 = tpu.matmul %0, %1, %cst {dimension_numbers = #tpu.dot_dimension_numbers<[1], [0], [0], [1], [0, 0, 1, 1], [], []>} : vector<32x64xbf16>, vector<64x256xbf16>, vector<32x256xf32> -> vector<32x256xf32>
    %c0_3 = arith.constant 0 : index
    %c0_4 = arith.constant 0 : index
    %3 = vector.load %arg4[%c0_3, %c0_4] : memref<1x256xf32, #tpu.memory_space<vmem>>, vector<1x256xf32>
    %4 = vector.broadcast %3 : vector<1x256xf32> to vector<32x256xf32>
    %5 = arith.addf %2, %4 : vector<32x256xf32>
    %c0_5 = arith.constant 0 : index
    %c0_6 = arith.constant 0 : index
    %6 = vector.load %arg1[%c0_5, %c0_6] : memref<8x1xi32, #tpu.memory_space<vmem>>, vector<8x1xi32>
    %c0_7 = arith.constant 0 : index
    %c0_8 = arith.constant 0 : index
    %7 = vector.load %arg3[%c0_7, %c0_8] : memref<64x256xbf16, #tpu.memory_space<vmem>>, vector<64x256xbf16>
    %c0_9 = arith.constant 0 : index
    %c0_10 = arith.constant 0 : index
    %8 = vector.load %arg5[%c0_9, %c0_10] : memref<8x64xf32, #tpu.memory_space<vmem>>, vector<8x32xf32>
    %c0_11 = arith.constant 0 : index
    %c32 = arith.constant 32 : index
    %9 = vector.load %arg5[%c0_11, %c32] : memref<8x64xf32, #tpu.memory_space<vmem>>, vector<8x32xf32>
    %c0_12 = arith.constant 0 : index
    %c0_13 = arith.constant 0 : index
    %10 = vector.load %arg6[%c0_12, %c0_13] : memref<8x64xf32, #tpu.memory_space<vmem>>, vector<8x32xf32>
    %c0_14 = arith.constant 0 : index
    %c32_15 = arith.constant 32 : index
    %11 = vector.load %arg6[%c0_14, %c32_15] : memref<8x64xf32, #tpu.memory_space<vmem>>, vector<8x32xf32>
    %12 = tpu.concatenate %8, %9 in 1 : vector<8x32xf32>, vector<8x32xf32> -> vector<8x64xf32>
    %13 = arith.truncf %12 : vector<8x64xf32> to vector<8x64xbf16>
    %cst_16 = arith.constant dense<0.000000e+00> : vector<8x256xf32>
    %14 = tpu.matmul %13, %7, %cst_16 {dimension_numbers = #tpu.dot_dimension_numbers<[1], [0], [0], [1], [0, 0, 1, 1], [], []>} : vector<8x64xbf16>, vector<64x256xbf16>, vector<8x256xf32> -> vector<8x256xf32>
    %15 = vector.extract_strided_slice %5 {offsets = [0, 0], sizes = [8, 128], strides = [1, 1]} : vector<32x256xf32> to vector<8x128xf32>
    %16 = vector.extract_strided_slice %14 {offsets = [0, 0], sizes = [8, 128], strides = [1, 1]} : vector<8x256xf32> to vector<8x128xf32>
    %17 = arith.addf %15, %16 : vector<8x128xf32>
    %18 = vector.extract_strided_slice %5 {offsets = [24, 128], sizes = [8, 128], strides = [1, 1]} : vector<32x256xf32> to vector<8x128xf32>
    %19 = vector.extract_strided_slice %14 {offsets = [0, 128], sizes = [8, 128], strides = [1, 1]} : vector<8x256xf32> to vector<8x128xf32>
    %20 = arith.addf %18, %19 : vector<8x128xf32>
    %21 = vector.extract_strided_slice %17 {offsets = [0, 0], sizes = [8, 32], strides = [1, 1]} : vector<8x128xf32> to vector<8x32xf32>
    %22 = arith.negf %21 : vector<8x32xf32>
    %23 = math.exp %22 : vector<8x32xf32>
    %cst_17 = arith.constant 1.000000e+00 : f32
    %24 = vector.broadcast %cst_17 : f32 to vector<8x32xf32>
    %25 = arith.addf %24, %23 : vector<8x32xf32>
    %26 = arith.divf %24, %25 : vector<8x32xf32>
    %27 = vector.extract_strided_slice %17 {offsets = [0, 32], sizes = [8, 32], strides = [1, 1]} : vector<8x128xf32> to vector<8x32xf32>
    %28 = arith.negf %27 : vector<8x32xf32>
    %29 = math.exp %28 : vector<8x32xf32>
    %cst_18 = arith.constant 1.000000e+00 : f32
    %30 = vector.broadcast %cst_18 : f32 to vector<8x32xf32>
    %31 = arith.addf %30, %29 : vector<8x32xf32>
    %32 = arith.divf %30, %31 : vector<8x32xf32>
    %33 = vector.extract_strided_slice %17 {offsets = [0, 64], sizes = [8, 32], strides = [1, 1]} : vector<8x128xf32> to vector<8x32xf32>
    %34 = math.tanh %33 : vector<8x32xf32>
    %35 = vector.extract_strided_slice %17 {offsets = [0, 96], sizes = [8, 32], strides = [1, 1]} : vector<8x128xf32> to vector<8x32xf32>
    %36 = arith.negf %35 : vector<8x32xf32>
    %37 = math.exp %36 : vector<8x32xf32>
    %cst_19 = arith.constant 1.000000e+00 : f32
    %38 = vector.broadcast %cst_19 : f32 to vector<8x32xf32>
    %39 = arith.addf %38, %37 : vector<8x32xf32>
    %40 = arith.divf %38, %39 : vector<8x32xf32>
    %41 = arith.mulf %32, %10 : vector<8x32xf32>
    %42 = arith.mulf %26, %34 : vector<8x32xf32>
    %43 = arith.addf %41, %42 : vector<8x32xf32>
    %44 = math.tanh %43 : vector<8x32xf32>
    %45 = arith.mulf %40, %44 : vector<8x32xf32>
    %46 = vector.extract_strided_slice %20 {offsets = [0, 0], sizes = [8, 32], strides = [1, 1]} : vector<8x128xf32> to vector<8x32xf32>
    %47 = arith.negf %46 : vector<8x32xf32>
    %48 = math.exp %47 : vector<8x32xf32>
    %cst_20 = arith.constant 1.000000e+00 : f32
    %49 = vector.broadcast %cst_20 : f32 to vector<8x32xf32>
    %50 = arith.addf %49, %48 : vector<8x32xf32>
    %51 = arith.divf %49, %50 : vector<8x32xf32>
    %52 = vector.extract_strided_slice %20 {offsets = [0, 32], sizes = [8, 32], strides = [1, 1]} : vector<8x128xf32> to vector<8x32xf32>
    %53 = arith.negf %52 : vector<8x32xf32>
    %54 = math.exp %53 : vector<8x32xf32>
    %cst_21 = arith.constant 1.000000e+00 : f32
    %55 = vector.broadcast %cst_21 : f32 to vector<8x32xf32>
    %56 = arith.addf %55, %54 : vector<8x32xf32>
    %57 = arith.divf %55, %56 : vector<8x32xf32>
    %58 = vector.extract_strided_slice %20 {offsets = [0, 64], sizes = [8, 32], strides = [1, 1]} : vector<8x128xf32> to vector<8x32xf32>
    %59 = math.tanh %58 : vector<8x32xf32>
    %60 = vector.extract_strided_slice %20 {offsets = [0, 96], sizes = [8, 32], strides = [1, 1]} : vector<8x128xf32> to vector<8x32xf32>
    %61 = arith.negf %60 : vector<8x32xf32>
    %62 = math.exp %61 : vector<8x32xf32>
    %cst_22 = arith.constant 1.000000e+00 : f32
    %63 = vector.broadcast %cst_22 : f32 to vector<8x32xf32>
    %64 = arith.addf %63, %62 : vector<8x32xf32>
    %65 = arith.divf %63, %64 : vector<8x32xf32>
    %66 = arith.mulf %57, %11 : vector<8x32xf32>
    %67 = arith.mulf %51, %59 : vector<8x32xf32>
    %68 = arith.addf %66, %67 : vector<8x32xf32>
    %69 = math.tanh %68 : vector<8x32xf32>
    %70 = arith.mulf %65, %69 : vector<8x32xf32>
    %c0_i32 = arith.constant 0 : i32
    %71 = vector.broadcast %c0_i32 : i32 to vector<8x1xi32>
    %72 = arith.cmpi sgt, %6, %71 : vector<8x1xi32>
    %c3_i32 = arith.constant 3 : i32
    %73 = vector.broadcast %c3_i32 : i32 to vector<8x1xi32>
    %74 = arith.cmpi sgt, %6, %73 : vector<8x1xi32>
    %75 = vector.shape_cast %72 : vector<8x1xi1> to vector<8x1xi1>
    %76 = vector.broadcast %75 : vector<8x1xi1> to vector<8x32xi1>
    %77 = arith.select %76, %45, %8 : vector<8x32xi1>, vector<8x32xf32>
    %78 = vector.shape_cast %72 : vector<8x1xi1> to vector<8x1xi1>
    %79 = vector.broadcast %78 : vector<8x1xi1> to vector<8x32xi1>
    %80 = arith.select %79, %43, %10 : vector<8x32xi1>, vector<8x32xf32>
    %81 = vector.shape_cast %74 : vector<8x1xi1> to vector<8x1xi1>
    %82 = vector.broadcast %81 : vector<8x1xi1> to vector<8x32xi1>
    %83 = arith.select %82, %70, %9 : vector<8x32xi1>, vector<8x32xf32>
    %84 = vector.shape_cast %74 : vector<8x1xi1> to vector<8x1xi1>
    %85 = vector.broadcast %84 : vector<8x1xi1> to vector<8x32xi1>
    %86 = arith.select %85, %68, %11 : vector<8x32xi1>, vector<8x32xf32>
    %cst_23 = arith.constant 0.000000e+00 : f32
    %87 = vector.shape_cast %72 : vector<8x1xi1> to vector<8x1xi1>
    %88 = vector.broadcast %87 : vector<8x1xi1> to vector<8x32xi1>
    %89 = vector.broadcast %cst_23 : f32 to vector<8x32xf32>
    %90 = arith.select %88, %45, %89 : vector<8x32xi1>, vector<8x32xf32>
    %cst_24 = arith.constant 0.000000e+00 : f32
    %91 = vector.shape_cast %74 : vector<8x1xi1> to vector<8x1xi1>
    %92 = vector.broadcast %91 : vector<8x1xi1> to vector<8x32xi1>
    %93 = vector.broadcast %cst_24 : f32 to vector<8x32xf32>
    %94 = arith.select %92, %70, %93 : vector<8x32xi1>, vector<8x32xf32>
    %95 = tpu.concatenate %77, %83 in 1 : vector<8x32xf32>, vector<8x32xf32> -> vector<8x64xf32>
    %96 = arith.truncf %95 : vector<8x64xf32> to vector<8x64xbf16>
    %cst_25 = arith.constant dense<0.000000e+00> : vector<8x256xf32>
    %97 = tpu.matmul %96, %7, %cst_25 {dimension_numbers = #tpu.dot_dimension_numbers<[1], [0], [0], [1], [0, 0, 1, 1], [], []>} : vector<8x64xbf16>, vector<64x256xbf16>, vector<8x256xf32> -> vector<8x256xf32>
    %98 = vector.extract_strided_slice %5 {offsets = [8, 0], sizes = [8, 128], strides = [1, 1]} : vector<32x256xf32> to vector<8x128xf32>
    %99 = vector.extract_strided_slice %97 {offsets = [0, 0], sizes = [8, 128], strides = [1, 1]} : vector<8x256xf32> to vector<8x128xf32>
    %100 = arith.addf %98, %99 : vector<8x128xf32>
    %101 = vector.extract_strided_slice %5 {offsets = [16, 128], sizes = [8, 128], strides = [1, 1]} : vector<32x256xf32> to vector<8x128xf32>
    %102 = vector.extract_strided_slice %97 {offsets = [0, 128], sizes = [8, 128], strides = [1, 1]} : vector<8x256xf32> to vector<8x128xf32>
    %103 = arith.addf %101, %102 : vector<8x128xf32>
    %104 = vector.extract_strided_slice %100 {offsets = [0, 0], sizes = [8, 32], strides = [1, 1]} : vector<8x128xf32> to vector<8x32xf32>
    %105 = arith.negf %104 : vector<8x32xf32>
    %106 = math.exp %105 : vector<8x32xf32>
    %cst_26 = arith.constant 1.000000e+00 : f32
    %107 = vector.broadcast %cst_26 : f32 to vector<8x32xf32>
    %108 = arith.addf %107, %106 : vector<8x32xf32>
    %109 = arith.divf %107, %108 : vector<8x32xf32>
    %110 = vector.extract_strided_slice %100 {offsets = [0, 32], sizes = [8, 32], strides = [1, 1]} : vector<8x128xf32> to vector<8x32xf32>
    %111 = arith.negf %110 : vector<8x32xf32>
    %112 = math.exp %111 : vector<8x32xf32>
    %cst_27 = arith.constant 1.000000e+00 : f32
    %113 = vector.broadcast %cst_27 : f32 to vector<8x32xf32>
    %114 = arith.addf %113, %112 : vector<8x32xf32>
    %115 = arith.divf %113, %114 : vector<8x32xf32>
    %116 = vector.extract_strided_slice %100 {offsets = [0, 64], sizes = [8, 32], strides = [1, 1]} : vector<8x128xf32> to vector<8x32xf32>
    %117 = math.tanh %116 : vector<8x32xf32>
    %118 = vector.extract_strided_slice %100 {offsets = [0, 96], sizes = [8, 32], strides = [1, 1]} : vector<8x128xf32> to vector<8x32xf32>
    %119 = arith.negf %118 : vector<8x32xf32>
    %120 = math.exp %119 : vector<8x32xf32>
    %cst_28 = arith.constant 1.000000e+00 : f32
    %121 = vector.broadcast %cst_28 : f32 to vector<8x32xf32>
    %122 = arith.addf %121, %120 : vector<8x32xf32>
    %123 = arith.divf %121, %122 : vector<8x32xf32>
    %124 = arith.mulf %115, %80 : vector<8x32xf32>
    %125 = arith.mulf %109, %117 : vector<8x32xf32>
    %126 = arith.addf %124, %125 : vector<8x32xf32>
    %127 = math.tanh %126 : vector<8x32xf32>
    %128 = arith.mulf %123, %127 : vector<8x32xf32>
    %129 = vector.extract_strided_slice %103 {offsets = [0, 0], sizes = [8, 32], strides = [1, 1]} : vector<8x128xf32> to vector<8x32xf32>
    %130 = arith.negf %129 : vector<8x32xf32>
    %131 = math.exp %130 : vector<8x32xf32>
    %cst_29 = arith.constant 1.000000e+00 : f32
    %132 = vector.broadcast %cst_29 : f32 to vector<8x32xf32>
    %133 = arith.addf %132, %131 : vector<8x32xf32>
    %134 = arith.divf %132, %133 : vector<8x32xf32>
    %135 = vector.extract_strided_slice %103 {offsets = [0, 32], sizes = [8, 32], strides = [1, 1]} : vector<8x128xf32> to vector<8x32xf32>
    %136 = arith.negf %135 : vector<8x32xf32>
    %137 = math.exp %136 : vector<8x32xf32>
    %cst_30 = arith.constant 1.000000e+00 : f32
    %138 = vector.broadcast %cst_30 : f32 to vector<8x32xf32>
    %139 = arith.addf %138, %137 : vector<8x32xf32>
    %140 = arith.divf %138, %139 : vector<8x32xf32>
    %141 = vector.extract_strided_slice %103 {offsets = [0, 64], sizes = [8, 32], strides = [1, 1]} : vector<8x128xf32> to vector<8x32xf32>
    %142 = math.tanh %141 : vector<8x32xf32>
    %143 = vector.extract_strided_slice %103 {offsets = [0, 96], sizes = [8, 32], strides = [1, 1]} : vector<8x128xf32> to vector<8x32xf32>
    %144 = arith.negf %143 : vector<8x32xf32>
    %145 = math.exp %144 : vector<8x32xf32>
    %cst_31 = arith.constant 1.000000e+00 : f32
    %146 = vector.broadcast %cst_31 : f32 to vector<8x32xf32>
    %147 = arith.addf %146, %145 : vector<8x32xf32>
    %148 = arith.divf %146, %147 : vector<8x32xf32>
    %149 = arith.mulf %140, %86 : vector<8x32xf32>
    %150 = arith.mulf %134, %142 : vector<8x32xf32>
    %151 = arith.addf %149, %150 : vector<8x32xf32>
    %152 = math.tanh %151 : vector<8x32xf32>
    %153 = arith.mulf %148, %152 : vector<8x32xf32>
    %c1_i32 = arith.constant 1 : i32
    %154 = vector.broadcast %c1_i32 : i32 to vector<8x1xi32>
    %155 = arith.cmpi sgt, %6, %154 : vector<8x1xi32>
    %c2_i32 = arith.constant 2 : i32
    %156 = vector.broadcast %c2_i32 : i32 to vector<8x1xi32>
    %157 = arith.cmpi sgt, %6, %156 : vector<8x1xi32>
    %158 = vector.shape_cast %155 : vector<8x1xi1> to vector<8x1xi1>
    %159 = vector.broadcast %158 : vector<8x1xi1> to vector<8x32xi1>
    %160 = arith.select %159, %128, %77 : vector<8x32xi1>, vector<8x32xf32>
    %161 = vector.shape_cast %155 : vector<8x1xi1> to vector<8x1xi1>
    %162 = vector.broadcast %161 : vector<8x1xi1> to vector<8x32xi1>
    %163 = arith.select %162, %126, %80 : vector<8x32xi1>, vector<8x32xf32>
    %164 = vector.shape_cast %157 : vector<8x1xi1> to vector<8x1xi1>
    %165 = vector.broadcast %164 : vector<8x1xi1> to vector<8x32xi1>
    %166 = arith.select %165, %153, %83 : vector<8x32xi1>, vector<8x32xf32>
    %167 = vector.shape_cast %157 : vector<8x1xi1> to vector<8x1xi1>
    %168 = vector.broadcast %167 : vector<8x1xi1> to vector<8x32xi1>
    %169 = arith.select %168, %151, %86 : vector<8x32xi1>, vector<8x32xf32>
    %cst_32 = arith.constant 0.000000e+00 : f32
    %170 = vector.shape_cast %155 : vector<8x1xi1> to vector<8x1xi1>
    %171 = vector.broadcast %170 : vector<8x1xi1> to vector<8x32xi1>
    %172 = vector.broadcast %cst_32 : f32 to vector<8x32xf32>
    %173 = arith.select %171, %128, %172 : vector<8x32xi1>, vector<8x32xf32>
    %cst_33 = arith.constant 0.000000e+00 : f32
    %174 = vector.shape_cast %157 : vector<8x1xi1> to vector<8x1xi1>
    %175 = vector.broadcast %174 : vector<8x1xi1> to vector<8x32xi1>
    %176 = vector.broadcast %cst_33 : f32 to vector<8x32xf32>
    %177 = arith.select %175, %153, %176 : vector<8x32xi1>, vector<8x32xf32>
    %178 = tpu.concatenate %160, %166 in 1 : vector<8x32xf32>, vector<8x32xf32> -> vector<8x64xf32>
    %179 = arith.truncf %178 : vector<8x64xf32> to vector<8x64xbf16>
    %cst_34 = arith.constant dense<0.000000e+00> : vector<8x256xf32>
    %180 = tpu.matmul %179, %7, %cst_34 {dimension_numbers = #tpu.dot_dimension_numbers<[1], [0], [0], [1], [0, 0, 1, 1], [], []>} : vector<8x64xbf16>, vector<64x256xbf16>, vector<8x256xf32> -> vector<8x256xf32>
    %181 = vector.extract_strided_slice %5 {offsets = [16, 0], sizes = [8, 128], strides = [1, 1]} : vector<32x256xf32> to vector<8x128xf32>
    %182 = vector.extract_strided_slice %180 {offsets = [0, 0], sizes = [8, 128], strides = [1, 1]} : vector<8x256xf32> to vector<8x128xf32>
    %183 = arith.addf %181, %182 : vector<8x128xf32>
    %184 = vector.extract_strided_slice %5 {offsets = [8, 128], sizes = [8, 128], strides = [1, 1]} : vector<32x256xf32> to vector<8x128xf32>
    %185 = vector.extract_strided_slice %180 {offsets = [0, 128], sizes = [8, 128], strides = [1, 1]} : vector<8x256xf32> to vector<8x128xf32>
    %186 = arith.addf %184, %185 : vector<8x128xf32>
    %187 = vector.extract_strided_slice %183 {offsets = [0, 0], sizes = [8, 32], strides = [1, 1]} : vector<8x128xf32> to vector<8x32xf32>
    %188 = arith.negf %187 : vector<8x32xf32>
    %189 = math.exp %188 : vector<8x32xf32>
    %cst_35 = arith.constant 1.000000e+00 : f32
    %190 = vector.broadcast %cst_35 : f32 to vector<8x32xf32>
    %191 = arith.addf %190, %189 : vector<8x32xf32>
    %192 = arith.divf %190, %191 : vector<8x32xf32>
    %193 = vector.extract_strided_slice %183 {offsets = [0, 32], sizes = [8, 32], strides = [1, 1]} : vector<8x128xf32> to vector<8x32xf32>
    %194 = arith.negf %193 : vector<8x32xf32>
    %195 = math.exp %194 : vector<8x32xf32>
    %cst_36 = arith.constant 1.000000e+00 : f32
    %196 = vector.broadcast %cst_36 : f32 to vector<8x32xf32>
    %197 = arith.addf %196, %195 : vector<8x32xf32>
    %198 = arith.divf %196, %197 : vector<8x32xf32>
    %199 = vector.extract_strided_slice %183 {offsets = [0, 64], sizes = [8, 32], strides = [1, 1]} : vector<8x128xf32> to vector<8x32xf32>
    %200 = math.tanh %199 : vector<8x32xf32>
    %201 = vector.extract_strided_slice %183 {offsets = [0, 96], sizes = [8, 32], strides = [1, 1]} : vector<8x128xf32> to vector<8x32xf32>
    %202 = arith.negf %201 : vector<8x32xf32>
    %203 = math.exp %202 : vector<8x32xf32>
    %cst_37 = arith.constant 1.000000e+00 : f32
    %204 = vector.broadcast %cst_37 : f32 to vector<8x32xf32>
    %205 = arith.addf %204, %203 : vector<8x32xf32>
    %206 = arith.divf %204, %205 : vector<8x32xf32>
    %207 = arith.mulf %198, %163 : vector<8x32xf32>
    %208 = arith.mulf %192, %200 : vector<8x32xf32>
    %209 = arith.addf %207, %208 : vector<8x32xf32>
    %210 = math.tanh %209 : vector<8x32xf32>
    %211 = arith.mulf %206, %210 : vector<8x32xf32>
    %212 = vector.extract_strided_slice %186 {offsets = [0, 0], sizes = [8, 32], strides = [1, 1]} : vector<8x128xf32> to vector<8x32xf32>
    %213 = arith.negf %212 : vector<8x32xf32>
    %214 = math.exp %213 : vector<8x32xf32>
    %cst_38 = arith.constant 1.000000e+00 : f32
    %215 = vector.broadcast %cst_38 : f32 to vector<8x32xf32>
    %216 = arith.addf %215, %214 : vector<8x32xf32>
    %217 = arith.divf %215, %216 : vector<8x32xf32>
    %218 = vector.extract_strided_slice %186 {offsets = [0, 32], sizes = [8, 32], strides = [1, 1]} : vector<8x128xf32> to vector<8x32xf32>
    %219 = arith.negf %218 : vector<8x32xf32>
    %220 = math.exp %219 : vector<8x32xf32>
    %cst_39 = arith.constant 1.000000e+00 : f32
    %221 = vector.broadcast %cst_39 : f32 to vector<8x32xf32>
    %222 = arith.addf %221, %220 : vector<8x32xf32>
    %223 = arith.divf %221, %222 : vector<8x32xf32>
    %224 = vector.extract_strided_slice %186 {offsets = [0, 64], sizes = [8, 32], strides = [1, 1]} : vector<8x128xf32> to vector<8x32xf32>
    %225 = math.tanh %224 : vector<8x32xf32>
    %226 = vector.extract_strided_slice %186 {offsets = [0, 96], sizes = [8, 32], strides = [1, 1]} : vector<8x128xf32> to vector<8x32xf32>
    %227 = arith.negf %226 : vector<8x32xf32>
    %228 = math.exp %227 : vector<8x32xf32>
    %cst_40 = arith.constant 1.000000e+00 : f32
    %229 = vector.broadcast %cst_40 : f32 to vector<8x32xf32>
    %230 = arith.addf %229, %228 : vector<8x32xf32>
    %231 = arith.divf %229, %230 : vector<8x32xf32>
    %232 = arith.mulf %223, %169 : vector<8x32xf32>
    %233 = arith.mulf %217, %225 : vector<8x32xf32>
    %234 = arith.addf %232, %233 : vector<8x32xf32>
    %235 = math.tanh %234 : vector<8x32xf32>
    %236 = arith.mulf %231, %235 : vector<8x32xf32>
    %c2_i32_41 = arith.constant 2 : i32
    %237 = vector.broadcast %c2_i32_41 : i32 to vector<8x1xi32>
    %238 = arith.cmpi sgt, %6, %237 : vector<8x1xi32>
    %c1_i32_42 = arith.constant 1 : i32
    %239 = vector.broadcast %c1_i32_42 : i32 to vector<8x1xi32>
    %240 = arith.cmpi sgt, %6, %239 : vector<8x1xi32>
    %241 = vector.shape_cast %238 : vector<8x1xi1> to vector<8x1xi1>
    %242 = vector.broadcast %241 : vector<8x1xi1> to vector<8x32xi1>
    %243 = arith.select %242, %211, %160 : vector<8x32xi1>, vector<8x32xf32>
    %244 = vector.shape_cast %238 : vector<8x1xi1> to vector<8x1xi1>
    %245 = vector.broadcast %244 : vector<8x1xi1> to vector<8x32xi1>
    %246 = arith.select %245, %209, %163 : vector<8x32xi1>, vector<8x32xf32>
    %247 = vector.shape_cast %240 : vector<8x1xi1> to vector<8x1xi1>
    %248 = vector.broadcast %247 : vector<8x1xi1> to vector<8x32xi1>
    %249 = arith.select %248, %236, %166 : vector<8x32xi1>, vector<8x32xf32>
    %250 = vector.shape_cast %240 : vector<8x1xi1> to vector<8x1xi1>
    %251 = vector.broadcast %250 : vector<8x1xi1> to vector<8x32xi1>
    %252 = arith.select %251, %234, %169 : vector<8x32xi1>, vector<8x32xf32>
    %cst_43 = arith.constant 0.000000e+00 : f32
    %253 = vector.shape_cast %238 : vector<8x1xi1> to vector<8x1xi1>
    %254 = vector.broadcast %253 : vector<8x1xi1> to vector<8x32xi1>
    %255 = vector.broadcast %cst_43 : f32 to vector<8x32xf32>
    %256 = arith.select %254, %211, %255 : vector<8x32xi1>, vector<8x32xf32>
    %cst_44 = arith.constant 0.000000e+00 : f32
    %257 = vector.shape_cast %240 : vector<8x1xi1> to vector<8x1xi1>
    %258 = vector.broadcast %257 : vector<8x1xi1> to vector<8x32xi1>
    %259 = vector.broadcast %cst_44 : f32 to vector<8x32xf32>
    %260 = arith.select %258, %236, %259 : vector<8x32xi1>, vector<8x32xf32>
    %261 = tpu.concatenate %243, %249 in 1 : vector<8x32xf32>, vector<8x32xf32> -> vector<8x64xf32>
    %262 = arith.truncf %261 : vector<8x64xf32> to vector<8x64xbf16>
    %cst_45 = arith.constant dense<0.000000e+00> : vector<8x256xf32>
    %263 = tpu.matmul %262, %7, %cst_45 {dimension_numbers = #tpu.dot_dimension_numbers<[1], [0], [0], [1], [0, 0, 1, 1], [], []>} : vector<8x64xbf16>, vector<64x256xbf16>, vector<8x256xf32> -> vector<8x256xf32>
    %264 = vector.extract_strided_slice %5 {offsets = [24, 0], sizes = [8, 128], strides = [1, 1]} : vector<32x256xf32> to vector<8x128xf32>
    %265 = vector.extract_strided_slice %263 {offsets = [0, 0], sizes = [8, 128], strides = [1, 1]} : vector<8x256xf32> to vector<8x128xf32>
    %266 = arith.addf %264, %265 : vector<8x128xf32>
    %267 = vector.extract_strided_slice %5 {offsets = [0, 128], sizes = [8, 128], strides = [1, 1]} : vector<32x256xf32> to vector<8x128xf32>
    %268 = vector.extract_strided_slice %263 {offsets = [0, 128], sizes = [8, 128], strides = [1, 1]} : vector<8x256xf32> to vector<8x128xf32>
    %269 = arith.addf %267, %268 : vector<8x128xf32>
    %270 = vector.extract_strided_slice %266 {offsets = [0, 0], sizes = [8, 32], strides = [1, 1]} : vector<8x128xf32> to vector<8x32xf32>
    %271 = arith.negf %270 : vector<8x32xf32>
    %272 = math.exp %271 : vector<8x32xf32>
    %cst_46 = arith.constant 1.000000e+00 : f32
    %273 = vector.broadcast %cst_46 : f32 to vector<8x32xf32>
    %274 = arith.addf %273, %272 : vector<8x32xf32>
    %275 = arith.divf %273, %274 : vector<8x32xf32>
    %276 = vector.extract_strided_slice %266 {offsets = [0, 32], sizes = [8, 32], strides = [1, 1]} : vector<8x128xf32> to vector<8x32xf32>
    %277 = arith.negf %276 : vector<8x32xf32>
    %278 = math.exp %277 : vector<8x32xf32>
    %cst_47 = arith.constant 1.000000e+00 : f32
    %279 = vector.broadcast %cst_47 : f32 to vector<8x32xf32>
    %280 = arith.addf %279, %278 : vector<8x32xf32>
    %281 = arith.divf %279, %280 : vector<8x32xf32>
    %282 = vector.extract_strided_slice %266 {offsets = [0, 64], sizes = [8, 32], strides = [1, 1]} : vector<8x128xf32> to vector<8x32xf32>
    %283 = math.tanh %282 : vector<8x32xf32>
    %284 = vector.extract_strided_slice %266 {offsets = [0, 96], sizes = [8, 32], strides = [1, 1]} : vector<8x128xf32> to vector<8x32xf32>
    %285 = arith.negf %284 : vector<8x32xf32>
    %286 = math.exp %285 : vector<8x32xf32>
    %cst_48 = arith.constant 1.000000e+00 : f32
    %287 = vector.broadcast %cst_48 : f32 to vector<8x32xf32>
    %288 = arith.addf %287, %286 : vector<8x32xf32>
    %289 = arith.divf %287, %288 : vector<8x32xf32>
    %290 = arith.mulf %281, %246 : vector<8x32xf32>
    %291 = arith.mulf %275, %283 : vector<8x32xf32>
    %292 = arith.addf %290, %291 : vector<8x32xf32>
    %293 = math.tanh %292 : vector<8x32xf32>
    %294 = arith.mulf %289, %293 : vector<8x32xf32>
    %295 = vector.extract_strided_slice %269 {offsets = [0, 0], sizes = [8, 32], strides = [1, 1]} : vector<8x128xf32> to vector<8x32xf32>
    %296 = arith.negf %295 : vector<8x32xf32>
    %297 = math.exp %296 : vector<8x32xf32>
    %cst_49 = arith.constant 1.000000e+00 : f32
    %298 = vector.broadcast %cst_49 : f32 to vector<8x32xf32>
    %299 = arith.addf %298, %297 : vector<8x32xf32>
    %300 = arith.divf %298, %299 : vector<8x32xf32>
    %301 = vector.extract_strided_slice %269 {offsets = [0, 32], sizes = [8, 32], strides = [1, 1]} : vector<8x128xf32> to vector<8x32xf32>
    %302 = arith.negf %301 : vector<8x32xf32>
    %303 = math.exp %302 : vector<8x32xf32>
    %cst_50 = arith.constant 1.000000e+00 : f32
    %304 = vector.broadcast %cst_50 : f32 to vector<8x32xf32>
    %305 = arith.addf %304, %303 : vector<8x32xf32>
    %306 = arith.divf %304, %305 : vector<8x32xf32>
    %307 = vector.extract_strided_slice %269 {offsets = [0, 64], sizes = [8, 32], strides = [1, 1]} : vector<8x128xf32> to vector<8x32xf32>
    %308 = math.tanh %307 : vector<8x32xf32>
    %309 = vector.extract_strided_slice %269 {offsets = [0, 96], sizes = [8, 32], strides = [1, 1]} : vector<8x128xf32> to vector<8x32xf32>
    %310 = arith.negf %309 : vector<8x32xf32>
    %311 = math.exp %310 : vector<8x32xf32>
    %cst_51 = arith.constant 1.000000e+00 : f32
    %312 = vector.broadcast %cst_51 : f32 to vector<8x32xf32>
    %313 = arith.addf %312, %311 : vector<8x32xf32>
    %314 = arith.divf %312, %313 : vector<8x32xf32>
    %315 = arith.mulf %306, %252 : vector<8x32xf32>
    %316 = arith.mulf %300, %308 : vector<8x32xf32>
    %317 = arith.addf %315, %316 : vector<8x32xf32>
    %318 = math.tanh %317 : vector<8x32xf32>
    %319 = arith.mulf %314, %318 : vector<8x32xf32>
    %c3_i32_52 = arith.constant 3 : i32
    %320 = vector.broadcast %c3_i32_52 : i32 to vector<8x1xi32>
    %321 = arith.cmpi sgt, %6, %320 : vector<8x1xi32>
    %c0_i32_53 = arith.constant 0 : i32
    %322 = vector.broadcast %c0_i32_53 : i32 to vector<8x1xi32>
    %323 = arith.cmpi sgt, %6, %322 : vector<8x1xi32>
    %324 = vector.shape_cast %321 : vector<8x1xi1> to vector<8x1xi1>
    %325 = vector.broadcast %324 : vector<8x1xi1> to vector<8x32xi1>
    %326 = arith.select %325, %294, %243 : vector<8x32xi1>, vector<8x32xf32>
    %327 = vector.shape_cast %321 : vector<8x1xi1> to vector<8x1xi1>
    %328 = vector.broadcast %327 : vector<8x1xi1> to vector<8x32xi1>
    %329 = arith.select %328, %292, %246 : vector<8x32xi1>, vector<8x32xf32>
    %330 = vector.shape_cast %323 : vector<8x1xi1> to vector<8x1xi1>
    %331 = vector.broadcast %330 : vector<8x1xi1> to vector<8x32xi1>
    %332 = arith.select %331, %319, %249 : vector<8x32xi1>, vector<8x32xf32>
    %333 = vector.shape_cast %323 : vector<8x1xi1> to vector<8x1xi1>
    %334 = vector.broadcast %333 : vector<8x1xi1> to vector<8x32xi1>
    %335 = arith.select %334, %317, %252 : vector<8x32xi1>, vector<8x32xf32>
    %cst_54 = arith.constant 0.000000e+00 : f32
    %336 = vector.shape_cast %321 : vector<8x1xi1> to vector<8x1xi1>
    %337 = vector.broadcast %336 : vector<8x1xi1> to vector<8x32xi1>
    %338 = vector.broadcast %cst_54 : f32 to vector<8x32xf32>
    %339 = arith.select %337, %294, %338 : vector<8x32xi1>, vector<8x32xf32>
    %cst_55 = arith.constant 0.000000e+00 : f32
    %340 = vector.shape_cast %323 : vector<8x1xi1> to vector<8x1xi1>
    %341 = vector.broadcast %340 : vector<8x1xi1> to vector<8x32xi1>
    %342 = vector.broadcast %cst_55 : f32 to vector<8x32xf32>
    %343 = arith.select %341, %319, %342 : vector<8x32xi1>, vector<8x32xf32>
    %344 = tpu.concatenate %90, %343 in 1 : vector<8x32xf32>, vector<8x32xf32> -> vector<8x64xf32>
    %c0_56 = arith.constant 0 : index
    %c0_57 = arith.constant 0 : index
    %345 = vector.load %arg7[%c0_56, %c0_57] : memref<32x64xf32, #tpu.memory_space<vmem>>, vector<8x64xf32>
    tpu.vector_store %arg7[%c0_56, %c0_57], %344 {strides = array<i32>} : memref<32x64xf32, #tpu.memory_space<vmem>>, vector<8x64xf32>,
    %346 = tpu.concatenate %173, %260 in 1 : vector<8x32xf32>, vector<8x32xf32> -> vector<8x64xf32>
    %c8 = arith.constant 8 : index
    %c0_58 = arith.constant 0 : index
    %347 = vector.load %arg7[%c8, %c0_58] : memref<32x64xf32, #tpu.memory_space<vmem>>, vector<8x64xf32>
    tpu.vector_store %arg7[%c8, %c0_58], %346 {strides = array<i32>} : memref<32x64xf32, #tpu.memory_space<vmem>>, vector<8x64xf32>,
    %348 = tpu.concatenate %256, %177 in 1 : vector<8x32xf32>, vector<8x32xf32> -> vector<8x64xf32>
    %c16 = arith.constant 16 : index
    %c0_59 = arith.constant 0 : index
    %349 = vector.load %arg7[%c16, %c0_59] : memref<32x64xf32, #tpu.memory_space<vmem>>, vector<8x64xf32>
    tpu.vector_store %arg7[%c16, %c0_59], %348 {strides = array<i32>} : memref<32x64xf32, #tpu.memory_space<vmem>>, vector<8x64xf32>,
    %350 = tpu.concatenate %339, %94 in 1 : vector<8x32xf32>, vector<8x32xf32> -> vector<8x64xf32>
    %c24 = arith.constant 24 : index
    %c0_60 = arith.constant 0 : index
    %351 = vector.load %arg7[%c24, %c0_60] : memref<32x64xf32, #tpu.memory_space<vmem>>, vector<8x64xf32>
    tpu.vector_store %arg7[%c24, %c0_60], %350 {strides = array<i32>} : memref<32x64xf32, #tpu.memory_space<vmem>>, vector<8x64xf32>,
    %352 = tpu.concatenate %326, %332 in 1 : vector<8x32xf32>, vector<8x32xf32> -> vector<8x64xf32>
    %c0_61 = arith.constant 0 : index
    %c0_62 = arith.constant 0 : index
    %353 = vector.load %arg8[%c0_61, %c0_62] : memref<16x64xf32, #tpu.memory_space<vmem>>, vector<8x64xf32>
    tpu.vector_store %arg8[%c0_61, %c0_62], %352 {strides = array<i32>} : memref<16x64xf32, #tpu.memory_space<vmem>>, vector<8x64xf32>,
    %354 = tpu.concatenate %329, %335 in 1 : vector<8x32xf32>, vector<8x32xf32> -> vector<8x64xf32>
    %c8_63 = arith.constant 8 : index
    %c0_64 = arith.constant 0 : index
    %355 = vector.load %arg8[%c8_63, %c0_64] : memref<16x64xf32, #tpu.memory_space<vmem>>, vector<8x64xf32>
    tpu.vector_store %arg8[%c8_63, %c0_64], %354 {strides = array<i32>} : memref<16x64xf32, #tpu.memory_space<vmem>>, vector<8x64xf32>,
    return
  }
}

module attributes {stable_mosaic.version = 11 : i64} {
  func.func @_bilstm_kernel(%arg0: memref<64x21xbf16, #tpu.memory_space<vmem>>, %arg1: memref<8x1xi32, #tpu.memory_space<vmem>>, %arg2: memref<21x256xbf16, #tpu.memory_space<vmem>>, %arg3: memref<64x256xbf16, #tpu.memory_space<vmem>>, %arg4: memref<1x256xf32, #tpu.memory_space<vmem>>, %arg5: memref<8x64xf32, #tpu.memory_space<vmem>>, %arg6: memref<8x64xf32, #tpu.memory_space<vmem>>, %arg7: memref<64x64xf32, #tpu.memory_space<vmem>>, %arg8: memref<16x64xf32, #tpu.memory_space<vmem>>) attributes {dimension_semantics = [], scalar_prefetch = 0 : i64, scratch_operands = 0 : i64, tpu.core_type = #tpu.core_type<tc>} {
    %c0 = arith.constant 0 : index
    %c0_0 = arith.constant 0 : index
    %0 = vector.load %arg0[%c0, %c0_0] : memref<64x21xbf16, #tpu.memory_space<vmem>>, vector<64x21xbf16>
    %c0_1 = arith.constant 0 : index
    %c0_2 = arith.constant 0 : index
    %1 = vector.load %arg2[%c0_1, %c0_2] : memref<21x256xbf16, #tpu.memory_space<vmem>>, vector<21x256xbf16>
    %cst = arith.constant dense<0.000000e+00> : vector<64x256xf32>
    %2 = tpu.matmul %0, %1, %cst {dimension_numbers = #tpu.dot_dimension_numbers<[1], [0], [0], [1], [0, 0, 1, 1], [], []>} : vector<64x21xbf16>, vector<21x256xbf16>, vector<64x256xf32> -> vector<64x256xf32>
    %c0_3 = arith.constant 0 : index
    %c0_4 = arith.constant 0 : index
    %3 = vector.load %arg4[%c0_3, %c0_4] : memref<1x256xf32, #tpu.memory_space<vmem>>, vector<1x256xf32>
    %4 = vector.broadcast %3 : vector<1x256xf32> to vector<64x256xf32>
    %5 = arith.addf %2, %4 : vector<64x256xf32>
    %c0_5 = arith.constant 0 : index
    %c0_6 = arith.constant 0 : index
    %6 = vector.load %arg1[%c0_5, %c0_6] : memref<8x1xi32, #tpu.memory_space<vmem>>, vector<8x1xi32>
    %c0_7 = arith.constant 0 : index
    %c0_8 = arith.constant 0 : index
    %7 = vector.load %arg3[%c0_7, %c0_8] : memref<64x256xbf16, #tpu.memory_space<vmem>>, vector<64x256xbf16>
    %c0_9 = arith.constant 0 : index
    %c0_10 = arith.constant 0 : index
    %8 = vector.load %arg5[%c0_9, %c0_10] : memref<8x64xf32, #tpu.memory_space<vmem>>, vector<8x32xf32>
    %c0_11 = arith.constant 0 : index
    %c32 = arith.constant 32 : index
    %9 = vector.load %arg5[%c0_11, %c32] : memref<8x64xf32, #tpu.memory_space<vmem>>, vector<8x32xf32>
    %c0_12 = arith.constant 0 : index
    %c0_13 = arith.constant 0 : index
    %10 = vector.load %arg6[%c0_12, %c0_13] : memref<8x64xf32, #tpu.memory_space<vmem>>, vector<8x32xf32>
    %c0_14 = arith.constant 0 : index
    %c32_15 = arith.constant 32 : index
    %11 = vector.load %arg6[%c0_14, %c32_15] : memref<8x64xf32, #tpu.memory_space<vmem>>, vector<8x32xf32>
    %12 = tpu.concatenate %8, %9 in 1 : vector<8x32xf32>, vector<8x32xf32> -> vector<8x64xf32>
    %13 = arith.truncf %12 : vector<8x64xf32> to vector<8x64xbf16>
    %cst_16 = arith.constant dense<0.000000e+00> : vector<8x256xf32>
    %14 = tpu.matmul %13, %7, %cst_16 {dimension_numbers = #tpu.dot_dimension_numbers<[1], [0], [0], [1], [0, 0, 1, 1], [], []>} : vector<8x64xbf16>, vector<64x256xbf16>, vector<8x256xf32> -> vector<8x256xf32>
    %15 = vector.extract_strided_slice %5 {offsets = [0, 0], sizes = [8, 128], strides = [1, 1]} : vector<64x256xf32> to vector<8x128xf32>
    %16 = vector.extract_strided_slice %14 {offsets = [0, 0], sizes = [8, 128], strides = [1, 1]} : vector<8x256xf32> to vector<8x128xf32>
    %17 = arith.addf %15, %16 : vector<8x128xf32>
    %18 = vector.extract_strided_slice %5 {offsets = [56, 128], sizes = [8, 128], strides = [1, 1]} : vector<64x256xf32> to vector<8x128xf32>
    %19 = vector.extract_strided_slice %14 {offsets = [0, 128], sizes = [8, 128], strides = [1, 1]} : vector<8x256xf32> to vector<8x128xf32>
    %20 = arith.addf %18, %19 : vector<8x128xf32>
    %21 = vector.extract_strided_slice %17 {offsets = [0, 0], sizes = [8, 32], strides = [1, 1]} : vector<8x128xf32> to vector<8x32xf32>
    %22 = arith.negf %21 : vector<8x32xf32>
    %23 = math.exp %22 : vector<8x32xf32>
    %cst_17 = arith.constant 1.000000e+00 : f32
    %24 = vector.broadcast %cst_17 : f32 to vector<8x32xf32>
    %25 = arith.addf %24, %23 : vector<8x32xf32>
    %26 = arith.divf %24, %25 : vector<8x32xf32>
    %27 = vector.extract_strided_slice %17 {offsets = [0, 32], sizes = [8, 32], strides = [1, 1]} : vector<8x128xf32> to vector<8x32xf32>
    %28 = arith.negf %27 : vector<8x32xf32>
    %29 = math.exp %28 : vector<8x32xf32>
    %cst_18 = arith.constant 1.000000e+00 : f32
    %30 = vector.broadcast %cst_18 : f32 to vector<8x32xf32>
    %31 = arith.addf %30, %29 : vector<8x32xf32>
    %32 = arith.divf %30, %31 : vector<8x32xf32>
    %33 = vector.extract_strided_slice %17 {offsets = [0, 64], sizes = [8, 32], strides = [1, 1]} : vector<8x128xf32> to vector<8x32xf32>
    %34 = math.tanh %33 : vector<8x32xf32>
    %35 = vector.extract_strided_slice %17 {offsets = [0, 96], sizes = [8, 32], strides = [1, 1]} : vector<8x128xf32> to vector<8x32xf32>
    %36 = arith.negf %35 : vector<8x32xf32>
    %37 = math.exp %36 : vector<8x32xf32>
    %cst_19 = arith.constant 1.000000e+00 : f32
    %38 = vector.broadcast %cst_19 : f32 to vector<8x32xf32>
    %39 = arith.addf %38, %37 : vector<8x32xf32>
    %40 = arith.divf %38, %39 : vector<8x32xf32>
    %41 = arith.mulf %32, %10 : vector<8x32xf32>
    %42 = arith.mulf %26, %34 : vector<8x32xf32>
    %43 = arith.addf %41, %42 : vector<8x32xf32>
    %44 = math.tanh %43 : vector<8x32xf32>
    %45 = arith.mulf %40, %44 : vector<8x32xf32>
    %46 = vector.extract_strided_slice %20 {offsets = [0, 0], sizes = [8, 32], strides = [1, 1]} : vector<8x128xf32> to vector<8x32xf32>
    %47 = arith.negf %46 : vector<8x32xf32>
    %48 = math.exp %47 : vector<8x32xf32>
    %cst_20 = arith.constant 1.000000e+00 : f32
    %49 = vector.broadcast %cst_20 : f32 to vector<8x32xf32>
    %50 = arith.addf %49, %48 : vector<8x32xf32>
    %51 = arith.divf %49, %50 : vector<8x32xf32>
    %52 = vector.extract_strided_slice %20 {offsets = [0, 32], sizes = [8, 32], strides = [1, 1]} : vector<8x128xf32> to vector<8x32xf32>
    %53 = arith.negf %52 : vector<8x32xf32>
    %54 = math.exp %53 : vector<8x32xf32>
    %cst_21 = arith.constant 1.000000e+00 : f32
    %55 = vector.broadcast %cst_21 : f32 to vector<8x32xf32>
    %56 = arith.addf %55, %54 : vector<8x32xf32>
    %57 = arith.divf %55, %56 : vector<8x32xf32>
    %58 = vector.extract_strided_slice %20 {offsets = [0, 64], sizes = [8, 32], strides = [1, 1]} : vector<8x128xf32> to vector<8x32xf32>
    %59 = math.tanh %58 : vector<8x32xf32>
    %60 = vector.extract_strided_slice %20 {offsets = [0, 96], sizes = [8, 32], strides = [1, 1]} : vector<8x128xf32> to vector<8x32xf32>
    %61 = arith.negf %60 : vector<8x32xf32>
    %62 = math.exp %61 : vector<8x32xf32>
    %cst_22 = arith.constant 1.000000e+00 : f32
    %63 = vector.broadcast %cst_22 : f32 to vector<8x32xf32>
    %64 = arith.addf %63, %62 : vector<8x32xf32>
    %65 = arith.divf %63, %64 : vector<8x32xf32>
    %66 = arith.mulf %57, %11 : vector<8x32xf32>
    %67 = arith.mulf %51, %59 : vector<8x32xf32>
    %68 = arith.addf %66, %67 : vector<8x32xf32>
    %69 = math.tanh %68 : vector<8x32xf32>
    %70 = arith.mulf %65, %69 : vector<8x32xf32>
    %c0_i32 = arith.constant 0 : i32
    %71 = vector.broadcast %c0_i32 : i32 to vector<8x1xi32>
    %72 = arith.cmpi sgt, %6, %71 : vector<8x1xi32>
    %c7_i32 = arith.constant 7 : i32
    %73 = vector.broadcast %c7_i32 : i32 to vector<8x1xi32>
    %74 = arith.cmpi sgt, %6, %73 : vector<8x1xi32>
    %75 = vector.shape_cast %72 : vector<8x1xi1> to vector<8x1xi1>
    %76 = vector.broadcast %75 : vector<8x1xi1> to vector<8x32xi1>
    %77 = arith.select %76, %45, %8 : vector<8x32xi1>, vector<8x32xf32>
    %78 = vector.shape_cast %72 : vector<8x1xi1> to vector<8x1xi1>
    %79 = vector.broadcast %78 : vector<8x1xi1> to vector<8x32xi1>
    %80 = arith.select %79, %43, %10 : vector<8x32xi1>, vector<8x32xf32>
    %81 = vector.shape_cast %74 : vector<8x1xi1> to vector<8x1xi1>
    %82 = vector.broadcast %81 : vector<8x1xi1> to vector<8x32xi1>
    %83 = arith.select %82, %70, %9 : vector<8x32xi1>, vector<8x32xf32>
    %84 = vector.shape_cast %74 : vector<8x1xi1> to vector<8x1xi1>
    %85 = vector.broadcast %84 : vector<8x1xi1> to vector<8x32xi1>
    %86 = arith.select %85, %68, %11 : vector<8x32xi1>, vector<8x32xf32>
    %cst_23 = arith.constant 0.000000e+00 : f32
    %87 = vector.shape_cast %72 : vector<8x1xi1> to vector<8x1xi1>
    %88 = vector.broadcast %87 : vector<8x1xi1> to vector<8x32xi1>
    %89 = vector.broadcast %cst_23 : f32 to vector<8x32xf32>
    %90 = arith.select %88, %45, %89 : vector<8x32xi1>, vector<8x32xf32>
    %cst_24 = arith.constant 0.000000e+00 : f32
    %91 = vector.shape_cast %74 : vector<8x1xi1> to vector<8x1xi1>
    %92 = vector.broadcast %91 : vector<8x1xi1> to vector<8x32xi1>
    %93 = vector.broadcast %cst_24 : f32 to vector<8x32xf32>
    %94 = arith.select %92, %70, %93 : vector<8x32xi1>, vector<8x32xf32>
    %95 = tpu.concatenate %77, %83 in 1 : vector<8x32xf32>, vector<8x32xf32> -> vector<8x64xf32>
    %96 = arith.truncf %95 : vector<8x64xf32> to vector<8x64xbf16>
    %cst_25 = arith.constant dense<0.000000e+00> : vector<8x256xf32>
    %97 = tpu.matmul %96, %7, %cst_25 {dimension_numbers = #tpu.dot_dimension_numbers<[1], [0], [0], [1], [0, 0, 1, 1], [], []>} : vector<8x64xbf16>, vector<64x256xbf16>, vector<8x256xf32> -> vector<8x256xf32>
    %98 = vector.extract_strided_slice %5 {offsets = [8, 0], sizes = [8, 128], strides = [1, 1]} : vector<64x256xf32> to vector<8x128xf32>
    %99 = vector.extract_strided_slice %97 {offsets = [0, 0], sizes = [8, 128], strides = [1, 1]} : vector<8x256xf32> to vector<8x128xf32>
    %100 = arith.addf %98, %99 : vector<8x128xf32>
    %101 = vector.extract_strided_slice %5 {offsets = [48, 128], sizes = [8, 128], strides = [1, 1]} : vector<64x256xf32> to vector<8x128xf32>
    %102 = vector.extract_strided_slice %97 {offsets = [0, 128], sizes = [8, 128], strides = [1, 1]} : vector<8x256xf32> to vector<8x128xf32>
    %103 = arith.addf %101, %102 : vector<8x128xf32>
    %104 = vector.extract_strided_slice %100 {offsets = [0, 0], sizes = [8, 32], strides = [1, 1]} : vector<8x128xf32> to vector<8x32xf32>
    %105 = arith.negf %104 : vector<8x32xf32>
    %106 = math.exp %105 : vector<8x32xf32>
    %cst_26 = arith.constant 1.000000e+00 : f32
    %107 = vector.broadcast %cst_26 : f32 to vector<8x32xf32>
    %108 = arith.addf %107, %106 : vector<8x32xf32>
    %109 = arith.divf %107, %108 : vector<8x32xf32>
    %110 = vector.extract_strided_slice %100 {offsets = [0, 32], sizes = [8, 32], strides = [1, 1]} : vector<8x128xf32> to vector<8x32xf32>
    %111 = arith.negf %110 : vector<8x32xf32>
    %112 = math.exp %111 : vector<8x32xf32>
    %cst_27 = arith.constant 1.000000e+00 : f32
    %113 = vector.broadcast %cst_27 : f32 to vector<8x32xf32>
    %114 = arith.addf %113, %112 : vector<8x32xf32>
    %115 = arith.divf %113, %114 : vector<8x32xf32>
    %116 = vector.extract_strided_slice %100 {offsets = [0, 64], sizes = [8, 32], strides = [1, 1]} : vector<8x128xf32> to vector<8x32xf32>
    %117 = math.tanh %116 : vector<8x32xf32>
    %118 = vector.extract_strided_slice %100 {offsets = [0, 96], sizes = [8, 32], strides = [1, 1]} : vector<8x128xf32> to vector<8x32xf32>
    %119 = arith.negf %118 : vector<8x32xf32>
    %120 = math.exp %119 : vector<8x32xf32>
    %cst_28 = arith.constant 1.000000e+00 : f32
    %121 = vector.broadcast %cst_28 : f32 to vector<8x32xf32>
    %122 = arith.addf %121, %120 : vector<8x32xf32>
    %123 = arith.divf %121, %122 : vector<8x32xf32>
    %124 = arith.mulf %115, %80 : vector<8x32xf32>
    %125 = arith.mulf %109, %117 : vector<8x32xf32>
    %126 = arith.addf %124, %125 : vector<8x32xf32>
    %127 = math.tanh %126 : vector<8x32xf32>
    %128 = arith.mulf %123, %127 : vector<8x32xf32>
    %129 = vector.extract_strided_slice %103 {offsets = [0, 0], sizes = [8, 32], strides = [1, 1]} : vector<8x128xf32> to vector<8x32xf32>
    %130 = arith.negf %129 : vector<8x32xf32>
    %131 = math.exp %130 : vector<8x32xf32>
    %cst_29 = arith.constant 1.000000e+00 : f32
    %132 = vector.broadcast %cst_29 : f32 to vector<8x32xf32>
    %133 = arith.addf %132, %131 : vector<8x32xf32>
    %134 = arith.divf %132, %133 : vector<8x32xf32>
    %135 = vector.extract_strided_slice %103 {offsets = [0, 32], sizes = [8, 32], strides = [1, 1]} : vector<8x128xf32> to vector<8x32xf32>
    %136 = arith.negf %135 : vector<8x32xf32>
    %137 = math.exp %136 : vector<8x32xf32>
    %cst_30 = arith.constant 1.000000e+00 : f32
    %138 = vector.broadcast %cst_30 : f32 to vector<8x32xf32>
    %139 = arith.addf %138, %137 : vector<8x32xf32>
    %140 = arith.divf %138, %139 : vector<8x32xf32>
    %141 = vector.extract_strided_slice %103 {offsets = [0, 64], sizes = [8, 32], strides = [1, 1]} : vector<8x128xf32> to vector<8x32xf32>
    %142 = math.tanh %141 : vector<8x32xf32>
    %143 = vector.extract_strided_slice %103 {offsets = [0, 96], sizes = [8, 32], strides = [1, 1]} : vector<8x128xf32> to vector<8x32xf32>
    %144 = arith.negf %143 : vector<8x32xf32>
    %145 = math.exp %144 : vector<8x32xf32>
    %cst_31 = arith.constant 1.000000e+00 : f32
    %146 = vector.broadcast %cst_31 : f32 to vector<8x32xf32>
    %147 = arith.addf %146, %145 : vector<8x32xf32>
    %148 = arith.divf %146, %147 : vector<8x32xf32>
    %149 = arith.mulf %140, %86 : vector<8x32xf32>
    %150 = arith.mulf %134, %142 : vector<8x32xf32>
    %151 = arith.addf %149, %150 : vector<8x32xf32>
    %152 = math.tanh %151 : vector<8x32xf32>
    %153 = arith.mulf %148, %152 : vector<8x32xf32>
    %c1_i32 = arith.constant 1 : i32
    %154 = vector.broadcast %c1_i32 : i32 to vector<8x1xi32>
    %155 = arith.cmpi sgt, %6, %154 : vector<8x1xi32>
    %c6_i32 = arith.constant 6 : i32
    %156 = vector.broadcast %c6_i32 : i32 to vector<8x1xi32>
    %157 = arith.cmpi sgt, %6, %156 : vector<8x1xi32>
    %158 = vector.shape_cast %155 : vector<8x1xi1> to vector<8x1xi1>
    %159 = vector.broadcast %158 : vector<8x1xi1> to vector<8x32xi1>
    %160 = arith.select %159, %128, %77 : vector<8x32xi1>, vector<8x32xf32>
    %161 = vector.shape_cast %155 : vector<8x1xi1> to vector<8x1xi1>
    %162 = vector.broadcast %161 : vector<8x1xi1> to vector<8x32xi1>
    %163 = arith.select %162, %126, %80 : vector<8x32xi1>, vector<8x32xf32>
    %164 = vector.shape_cast %157 : vector<8x1xi1> to vector<8x1xi1>
    %165 = vector.broadcast %164 : vector<8x1xi1> to vector<8x32xi1>
    %166 = arith.select %165, %153, %83 : vector<8x32xi1>, vector<8x32xf32>
    %167 = vector.shape_cast %157 : vector<8x1xi1> to vector<8x1xi1>
    %168 = vector.broadcast %167 : vector<8x1xi1> to vector<8x32xi1>
    %169 = arith.select %168, %151, %86 : vector<8x32xi1>, vector<8x32xf32>
    %cst_32 = arith.constant 0.000000e+00 : f32
    %170 = vector.shape_cast %155 : vector<8x1xi1> to vector<8x1xi1>
    %171 = vector.broadcast %170 : vector<8x1xi1> to vector<8x32xi1>
    %172 = vector.broadcast %cst_32 : f32 to vector<8x32xf32>
    %173 = arith.select %171, %128, %172 : vector<8x32xi1>, vector<8x32xf32>
    %cst_33 = arith.constant 0.000000e+00 : f32
    %174 = vector.shape_cast %157 : vector<8x1xi1> to vector<8x1xi1>
    %175 = vector.broadcast %174 : vector<8x1xi1> to vector<8x32xi1>
    %176 = vector.broadcast %cst_33 : f32 to vector<8x32xf32>
    %177 = arith.select %175, %153, %176 : vector<8x32xi1>, vector<8x32xf32>
    %178 = tpu.concatenate %160, %166 in 1 : vector<8x32xf32>, vector<8x32xf32> -> vector<8x64xf32>
    %179 = arith.truncf %178 : vector<8x64xf32> to vector<8x64xbf16>
    %cst_34 = arith.constant dense<0.000000e+00> : vector<8x256xf32>
    %180 = tpu.matmul %179, %7, %cst_34 {dimension_numbers = #tpu.dot_dimension_numbers<[1], [0], [0], [1], [0, 0, 1, 1], [], []>} : vector<8x64xbf16>, vector<64x256xbf16>, vector<8x256xf32> -> vector<8x256xf32>
    %181 = vector.extract_strided_slice %5 {offsets = [16, 0], sizes = [8, 128], strides = [1, 1]} : vector<64x256xf32> to vector<8x128xf32>
    %182 = vector.extract_strided_slice %180 {offsets = [0, 0], sizes = [8, 128], strides = [1, 1]} : vector<8x256xf32> to vector<8x128xf32>
    %183 = arith.addf %181, %182 : vector<8x128xf32>
    %184 = vector.extract_strided_slice %5 {offsets = [40, 128], sizes = [8, 128], strides = [1, 1]} : vector<64x256xf32> to vector<8x128xf32>
    %185 = vector.extract_strided_slice %180 {offsets = [0, 128], sizes = [8, 128], strides = [1, 1]} : vector<8x256xf32> to vector<8x128xf32>
    %186 = arith.addf %184, %185 : vector<8x128xf32>
    %187 = vector.extract_strided_slice %183 {offsets = [0, 0], sizes = [8, 32], strides = [1, 1]} : vector<8x128xf32> to vector<8x32xf32>
    %188 = arith.negf %187 : vector<8x32xf32>
    %189 = math.exp %188 : vector<8x32xf32>
    %cst_35 = arith.constant 1.000000e+00 : f32
    %190 = vector.broadcast %cst_35 : f32 to vector<8x32xf32>
    %191 = arith.addf %190, %189 : vector<8x32xf32>
    %192 = arith.divf %190, %191 : vector<8x32xf32>
    %193 = vector.extract_strided_slice %183 {offsets = [0, 32], sizes = [8, 32], strides = [1, 1]} : vector<8x128xf32> to vector<8x32xf32>
    %194 = arith.negf %193 : vector<8x32xf32>
    %195 = math.exp %194 : vector<8x32xf32>
    %cst_36 = arith.constant 1.000000e+00 : f32
    %196 = vector.broadcast %cst_36 : f32 to vector<8x32xf32>
    %197 = arith.addf %196, %195 : vector<8x32xf32>
    %198 = arith.divf %196, %197 : vector<8x32xf32>
    %199 = vector.extract_strided_slice %183 {offsets = [0, 64], sizes = [8, 32], strides = [1, 1]} : vector<8x128xf32> to vector<8x32xf32>
    %200 = math.tanh %199 : vector<8x32xf32>
    %201 = vector.extract_strided_slice %183 {offsets = [0, 96], sizes = [8, 32], strides = [1, 1]} : vector<8x128xf32> to vector<8x32xf32>
    %202 = arith.negf %201 : vector<8x32xf32>
    %203 = math.exp %202 : vector<8x32xf32>
    %cst_37 = arith.constant 1.000000e+00 : f32
    %204 = vector.broadcast %cst_37 : f32 to vector<8x32xf32>
    %205 = arith.addf %204, %203 : vector<8x32xf32>
    %206 = arith.divf %204, %205 : vector<8x32xf32>
    %207 = arith.mulf %198, %163 : vector<8x32xf32>
    %208 = arith.mulf %192, %200 : vector<8x32xf32>
    %209 = arith.addf %207, %208 : vector<8x32xf32>
    %210 = math.tanh %209 : vector<8x32xf32>
    %211 = arith.mulf %206, %210 : vector<8x32xf32>
    %212 = vector.extract_strided_slice %186 {offsets = [0, 0], sizes = [8, 32], strides = [1, 1]} : vector<8x128xf32> to vector<8x32xf32>
    %213 = arith.negf %212 : vector<8x32xf32>
    %214 = math.exp %213 : vector<8x32xf32>
    %cst_38 = arith.constant 1.000000e+00 : f32
    %215 = vector.broadcast %cst_38 : f32 to vector<8x32xf32>
    %216 = arith.addf %215, %214 : vector<8x32xf32>
    %217 = arith.divf %215, %216 : vector<8x32xf32>
    %218 = vector.extract_strided_slice %186 {offsets = [0, 32], sizes = [8, 32], strides = [1, 1]} : vector<8x128xf32> to vector<8x32xf32>
    %219 = arith.negf %218 : vector<8x32xf32>
    %220 = math.exp %219 : vector<8x32xf32>
    %cst_39 = arith.constant 1.000000e+00 : f32
    %221 = vector.broadcast %cst_39 : f32 to vector<8x32xf32>
    %222 = arith.addf %221, %220 : vector<8x32xf32>
    %223 = arith.divf %221, %222 : vector<8x32xf32>
    %224 = vector.extract_strided_slice %186 {offsets = [0, 64], sizes = [8, 32], strides = [1, 1]} : vector<8x128xf32> to vector<8x32xf32>
    %225 = math.tanh %224 : vector<8x32xf32>
    %226 = vector.extract_strided_slice %186 {offsets = [0, 96], sizes = [8, 32], strides = [1, 1]} : vector<8x128xf32> to vector<8x32xf32>
    %227 = arith.negf %226 : vector<8x32xf32>
    %228 = math.exp %227 : vector<8x32xf32>
    %cst_40 = arith.constant 1.000000e+00 : f32
    %229 = vector.broadcast %cst_40 : f32 to vector<8x32xf32>
    %230 = arith.addf %229, %228 : vector<8x32xf32>
    %231 = arith.divf %229, %230 : vector<8x32xf32>
    %232 = arith.mulf %223, %169 : vector<8x32xf32>
    %233 = arith.mulf %217, %225 : vector<8x32xf32>
    %234 = arith.addf %232, %233 : vector<8x32xf32>
    %235 = math.tanh %234 : vector<8x32xf32>
    %236 = arith.mulf %231, %235 : vector<8x32xf32>
    %c2_i32 = arith.constant 2 : i32
    %237 = vector.broadcast %c2_i32 : i32 to vector<8x1xi32>
    %238 = arith.cmpi sgt, %6, %237 : vector<8x1xi32>
    %c5_i32 = arith.constant 5 : i32
    %239 = vector.broadcast %c5_i32 : i32 to vector<8x1xi32>
    %240 = arith.cmpi sgt, %6, %239 : vector<8x1xi32>
    %241 = vector.shape_cast %238 : vector<8x1xi1> to vector<8x1xi1>
    %242 = vector.broadcast %241 : vector<8x1xi1> to vector<8x32xi1>
    %243 = arith.select %242, %211, %160 : vector<8x32xi1>, vector<8x32xf32>
    %244 = vector.shape_cast %238 : vector<8x1xi1> to vector<8x1xi1>
    %245 = vector.broadcast %244 : vector<8x1xi1> to vector<8x32xi1>
    %246 = arith.select %245, %209, %163 : vector<8x32xi1>, vector<8x32xf32>
    %247 = vector.shape_cast %240 : vector<8x1xi1> to vector<8x1xi1>
    %248 = vector.broadcast %247 : vector<8x1xi1> to vector<8x32xi1>
    %249 = arith.select %248, %236, %166 : vector<8x32xi1>, vector<8x32xf32>
    %250 = vector.shape_cast %240 : vector<8x1xi1> to vector<8x1xi1>
    %251 = vector.broadcast %250 : vector<8x1xi1> to vector<8x32xi1>
    %252 = arith.select %251, %234, %169 : vector<8x32xi1>, vector<8x32xf32>
    %cst_41 = arith.constant 0.000000e+00 : f32
    %253 = vector.shape_cast %238 : vector<8x1xi1> to vector<8x1xi1>
    %254 = vector.broadcast %253 : vector<8x1xi1> to vector<8x32xi1>
    %255 = vector.broadcast %cst_41 : f32 to vector<8x32xf32>
    %256 = arith.select %254, %211, %255 : vector<8x32xi1>, vector<8x32xf32>
    %cst_42 = arith.constant 0.000000e+00 : f32
    %257 = vector.shape_cast %240 : vector<8x1xi1> to vector<8x1xi1>
    %258 = vector.broadcast %257 : vector<8x1xi1> to vector<8x32xi1>
    %259 = vector.broadcast %cst_42 : f32 to vector<8x32xf32>
    %260 = arith.select %258, %236, %259 : vector<8x32xi1>, vector<8x32xf32>
    %261 = tpu.concatenate %243, %249 in 1 : vector<8x32xf32>, vector<8x32xf32> -> vector<8x64xf32>
    %262 = arith.truncf %261 : vector<8x64xf32> to vector<8x64xbf16>
    %cst_43 = arith.constant dense<0.000000e+00> : vector<8x256xf32>
    %263 = tpu.matmul %262, %7, %cst_43 {dimension_numbers = #tpu.dot_dimension_numbers<[1], [0], [0], [1], [0, 0, 1, 1], [], []>} : vector<8x64xbf16>, vector<64x256xbf16>, vector<8x256xf32> -> vector<8x256xf32>
    %264 = vector.extract_strided_slice %5 {offsets = [24, 0], sizes = [8, 128], strides = [1, 1]} : vector<64x256xf32> to vector<8x128xf32>
    %265 = vector.extract_strided_slice %263 {offsets = [0, 0], sizes = [8, 128], strides = [1, 1]} : vector<8x256xf32> to vector<8x128xf32>
    %266 = arith.addf %264, %265 : vector<8x128xf32>
    %267 = vector.extract_strided_slice %5 {offsets = [32, 128], sizes = [8, 128], strides = [1, 1]} : vector<64x256xf32> to vector<8x128xf32>
    %268 = vector.extract_strided_slice %263 {offsets = [0, 128], sizes = [8, 128], strides = [1, 1]} : vector<8x256xf32> to vector<8x128xf32>
    %269 = arith.addf %267, %268 : vector<8x128xf32>
    %270 = vector.extract_strided_slice %266 {offsets = [0, 0], sizes = [8, 32], strides = [1, 1]} : vector<8x128xf32> to vector<8x32xf32>
    %271 = arith.negf %270 : vector<8x32xf32>
    %272 = math.exp %271 : vector<8x32xf32>
    %cst_44 = arith.constant 1.000000e+00 : f32
    %273 = vector.broadcast %cst_44 : f32 to vector<8x32xf32>
    %274 = arith.addf %273, %272 : vector<8x32xf32>
    %275 = arith.divf %273, %274 : vector<8x32xf32>
    %276 = vector.extract_strided_slice %266 {offsets = [0, 32], sizes = [8, 32], strides = [1, 1]} : vector<8x128xf32> to vector<8x32xf32>
    %277 = arith.negf %276 : vector<8x32xf32>
    %278 = math.exp %277 : vector<8x32xf32>
    %cst_45 = arith.constant 1.000000e+00 : f32
    %279 = vector.broadcast %cst_45 : f32 to vector<8x32xf32>
    %280 = arith.addf %279, %278 : vector<8x32xf32>
    %281 = arith.divf %279, %280 : vector<8x32xf32>
    %282 = vector.extract_strided_slice %266 {offsets = [0, 64], sizes = [8, 32], strides = [1, 1]} : vector<8x128xf32> to vector<8x32xf32>
    %283 = math.tanh %282 : vector<8x32xf32>
    %284 = vector.extract_strided_slice %266 {offsets = [0, 96], sizes = [8, 32], strides = [1, 1]} : vector<8x128xf32> to vector<8x32xf32>
    %285 = arith.negf %284 : vector<8x32xf32>
    %286 = math.exp %285 : vector<8x32xf32>
    %cst_46 = arith.constant 1.000000e+00 : f32
    %287 = vector.broadcast %cst_46 : f32 to vector<8x32xf32>
    %288 = arith.addf %287, %286 : vector<8x32xf32>
    %289 = arith.divf %287, %288 : vector<8x32xf32>
    %290 = arith.mulf %281, %246 : vector<8x32xf32>
    %291 = arith.mulf %275, %283 : vector<8x32xf32>
    %292 = arith.addf %290, %291 : vector<8x32xf32>
    %293 = math.tanh %292 : vector<8x32xf32>
    %294 = arith.mulf %289, %293 : vector<8x32xf32>
    %295 = vector.extract_strided_slice %269 {offsets = [0, 0], sizes = [8, 32], strides = [1, 1]} : vector<8x128xf32> to vector<8x32xf32>
    %296 = arith.negf %295 : vector<8x32xf32>
    %297 = math.exp %296 : vector<8x32xf32>
    %cst_47 = arith.constant 1.000000e+00 : f32
    %298 = vector.broadcast %cst_47 : f32 to vector<8x32xf32>
    %299 = arith.addf %298, %297 : vector<8x32xf32>
    %300 = arith.divf %298, %299 : vector<8x32xf32>
    %301 = vector.extract_strided_slice %269 {offsets = [0, 32], sizes = [8, 32], strides = [1, 1]} : vector<8x128xf32> to vector<8x32xf32>
    %302 = arith.negf %301 : vector<8x32xf32>
    %303 = math.exp %302 : vector<8x32xf32>
    %cst_48 = arith.constant 1.000000e+00 : f32
    %304 = vector.broadcast %cst_48 : f32 to vector<8x32xf32>
    %305 = arith.addf %304, %303 : vector<8x32xf32>
    %306 = arith.divf %304, %305 : vector<8x32xf32>
    %307 = vector.extract_strided_slice %269 {offsets = [0, 64], sizes = [8, 32], strides = [1, 1]} : vector<8x128xf32> to vector<8x32xf32>
    %308 = math.tanh %307 : vector<8x32xf32>
    %309 = vector.extract_strided_slice %269 {offsets = [0, 96], sizes = [8, 32], strides = [1, 1]} : vector<8x128xf32> to vector<8x32xf32>
    %310 = arith.negf %309 : vector<8x32xf32>
    %311 = math.exp %310 : vector<8x32xf32>
    %cst_49 = arith.constant 1.000000e+00 : f32
    %312 = vector.broadcast %cst_49 : f32 to vector<8x32xf32>
    %313 = arith.addf %312, %311 : vector<8x32xf32>
    %314 = arith.divf %312, %313 : vector<8x32xf32>
    %315 = arith.mulf %306, %252 : vector<8x32xf32>
    %316 = arith.mulf %300, %308 : vector<8x32xf32>
    %317 = arith.addf %315, %316 : vector<8x32xf32>
    %318 = math.tanh %317 : vector<8x32xf32>
    %319 = arith.mulf %314, %318 : vector<8x32xf32>
    %c3_i32 = arith.constant 3 : i32
    %320 = vector.broadcast %c3_i32 : i32 to vector<8x1xi32>
    %321 = arith.cmpi sgt, %6, %320 : vector<8x1xi32>
    %c4_i32 = arith.constant 4 : i32
    %322 = vector.broadcast %c4_i32 : i32 to vector<8x1xi32>
    %323 = arith.cmpi sgt, %6, %322 : vector<8x1xi32>
    %324 = vector.shape_cast %321 : vector<8x1xi1> to vector<8x1xi1>
    %325 = vector.broadcast %324 : vector<8x1xi1> to vector<8x32xi1>
    %326 = arith.select %325, %294, %243 : vector<8x32xi1>, vector<8x32xf32>
    %327 = vector.shape_cast %321 : vector<8x1xi1> to vector<8x1xi1>
    %328 = vector.broadcast %327 : vector<8x1xi1> to vector<8x32xi1>
    %329 = arith.select %328, %292, %246 : vector<8x32xi1>, vector<8x32xf32>
    %330 = vector.shape_cast %323 : vector<8x1xi1> to vector<8x1xi1>
    %331 = vector.broadcast %330 : vector<8x1xi1> to vector<8x32xi1>
    %332 = arith.select %331, %319, %249 : vector<8x32xi1>, vector<8x32xf32>
    %333 = vector.shape_cast %323 : vector<8x1xi1> to vector<8x1xi1>
    %334 = vector.broadcast %333 : vector<8x1xi1> to vector<8x32xi1>
    %335 = arith.select %334, %317, %252 : vector<8x32xi1>, vector<8x32xf32>
    %cst_50 = arith.constant 0.000000e+00 : f32
    %336 = vector.shape_cast %321 : vector<8x1xi1> to vector<8x1xi1>
    %337 = vector.broadcast %336 : vector<8x1xi1> to vector<8x32xi1>
    %338 = vector.broadcast %cst_50 : f32 to vector<8x32xf32>
    %339 = arith.select %337, %294, %338 : vector<8x32xi1>, vector<8x32xf32>
    %cst_51 = arith.constant 0.000000e+00 : f32
    %340 = vector.shape_cast %323 : vector<8x1xi1> to vector<8x1xi1>
    %341 = vector.broadcast %340 : vector<8x1xi1> to vector<8x32xi1>
    %342 = vector.broadcast %cst_51 : f32 to vector<8x32xf32>
    %343 = arith.select %341, %319, %342 : vector<8x32xi1>, vector<8x32xf32>
    %344 = tpu.concatenate %326, %332 in 1 : vector<8x32xf32>, vector<8x32xf32> -> vector<8x64xf32>
    %345 = arith.truncf %344 : vector<8x64xf32> to vector<8x64xbf16>
    %cst_52 = arith.constant dense<0.000000e+00> : vector<8x256xf32>
    %346 = tpu.matmul %345, %7, %cst_52 {dimension_numbers = #tpu.dot_dimension_numbers<[1], [0], [0], [1], [0, 0, 1, 1], [], []>} : vector<8x64xbf16>, vector<64x256xbf16>, vector<8x256xf32> -> vector<8x256xf32>
    %347 = vector.extract_strided_slice %5 {offsets = [32, 0], sizes = [8, 128], strides = [1, 1]} : vector<64x256xf32> to vector<8x128xf32>
    %348 = vector.extract_strided_slice %346 {offsets = [0, 0], sizes = [8, 128], strides = [1, 1]} : vector<8x256xf32> to vector<8x128xf32>
    %349 = arith.addf %347, %348 : vector<8x128xf32>
    %350 = vector.extract_strided_slice %5 {offsets = [24, 128], sizes = [8, 128], strides = [1, 1]} : vector<64x256xf32> to vector<8x128xf32>
    %351 = vector.extract_strided_slice %346 {offsets = [0, 128], sizes = [8, 128], strides = [1, 1]} : vector<8x256xf32> to vector<8x128xf32>
    %352 = arith.addf %350, %351 : vector<8x128xf32>
    %353 = vector.extract_strided_slice %349 {offsets = [0, 0], sizes = [8, 32], strides = [1, 1]} : vector<8x128xf32> to vector<8x32xf32>
    %354 = arith.negf %353 : vector<8x32xf32>
    %355 = math.exp %354 : vector<8x32xf32>
    %cst_53 = arith.constant 1.000000e+00 : f32
    %356 = vector.broadcast %cst_53 : f32 to vector<8x32xf32>
    %357 = arith.addf %356, %355 : vector<8x32xf32>
    %358 = arith.divf %356, %357 : vector<8x32xf32>
    %359 = vector.extract_strided_slice %349 {offsets = [0, 32], sizes = [8, 32], strides = [1, 1]} : vector<8x128xf32> to vector<8x32xf32>
    %360 = arith.negf %359 : vector<8x32xf32>
    %361 = math.exp %360 : vector<8x32xf32>
    %cst_54 = arith.constant 1.000000e+00 : f32
    %362 = vector.broadcast %cst_54 : f32 to vector<8x32xf32>
    %363 = arith.addf %362, %361 : vector<8x32xf32>
    %364 = arith.divf %362, %363 : vector<8x32xf32>
    %365 = vector.extract_strided_slice %349 {offsets = [0, 64], sizes = [8, 32], strides = [1, 1]} : vector<8x128xf32> to vector<8x32xf32>
    %366 = math.tanh %365 : vector<8x32xf32>
    %367 = vector.extract_strided_slice %349 {offsets = [0, 96], sizes = [8, 32], strides = [1, 1]} : vector<8x128xf32> to vector<8x32xf32>
    %368 = arith.negf %367 : vector<8x32xf32>
    %369 = math.exp %368 : vector<8x32xf32>
    %cst_55 = arith.constant 1.000000e+00 : f32
    %370 = vector.broadcast %cst_55 : f32 to vector<8x32xf32>
    %371 = arith.addf %370, %369 : vector<8x32xf32>
    %372 = arith.divf %370, %371 : vector<8x32xf32>
    %373 = arith.mulf %364, %329 : vector<8x32xf32>
    %374 = arith.mulf %358, %366 : vector<8x32xf32>
    %375 = arith.addf %373, %374 : vector<8x32xf32>
    %376 = math.tanh %375 : vector<8x32xf32>
    %377 = arith.mulf %372, %376 : vector<8x32xf32>
    %378 = vector.extract_strided_slice %352 {offsets = [0, 0], sizes = [8, 32], strides = [1, 1]} : vector<8x128xf32> to vector<8x32xf32>
    %379 = arith.negf %378 : vector<8x32xf32>
    %380 = math.exp %379 : vector<8x32xf32>
    %cst_56 = arith.constant 1.000000e+00 : f32
    %381 = vector.broadcast %cst_56 : f32 to vector<8x32xf32>
    %382 = arith.addf %381, %380 : vector<8x32xf32>
    %383 = arith.divf %381, %382 : vector<8x32xf32>
    %384 = vector.extract_strided_slice %352 {offsets = [0, 32], sizes = [8, 32], strides = [1, 1]} : vector<8x128xf32> to vector<8x32xf32>
    %385 = arith.negf %384 : vector<8x32xf32>
    %386 = math.exp %385 : vector<8x32xf32>
    %cst_57 = arith.constant 1.000000e+00 : f32
    %387 = vector.broadcast %cst_57 : f32 to vector<8x32xf32>
    %388 = arith.addf %387, %386 : vector<8x32xf32>
    %389 = arith.divf %387, %388 : vector<8x32xf32>
    %390 = vector.extract_strided_slice %352 {offsets = [0, 64], sizes = [8, 32], strides = [1, 1]} : vector<8x128xf32> to vector<8x32xf32>
    %391 = math.tanh %390 : vector<8x32xf32>
    %392 = vector.extract_strided_slice %352 {offsets = [0, 96], sizes = [8, 32], strides = [1, 1]} : vector<8x128xf32> to vector<8x32xf32>
    %393 = arith.negf %392 : vector<8x32xf32>
    %394 = math.exp %393 : vector<8x32xf32>
    %cst_58 = arith.constant 1.000000e+00 : f32
    %395 = vector.broadcast %cst_58 : f32 to vector<8x32xf32>
    %396 = arith.addf %395, %394 : vector<8x32xf32>
    %397 = arith.divf %395, %396 : vector<8x32xf32>
    %398 = arith.mulf %389, %335 : vector<8x32xf32>
    %399 = arith.mulf %383, %391 : vector<8x32xf32>
    %400 = arith.addf %398, %399 : vector<8x32xf32>
    %401 = math.tanh %400 : vector<8x32xf32>
    %402 = arith.mulf %397, %401 : vector<8x32xf32>
    %c4_i32_59 = arith.constant 4 : i32
    %403 = vector.broadcast %c4_i32_59 : i32 to vector<8x1xi32>
    %404 = arith.cmpi sgt, %6, %403 : vector<8x1xi32>
    %c3_i32_60 = arith.constant 3 : i32
    %405 = vector.broadcast %c3_i32_60 : i32 to vector<8x1xi32>
    %406 = arith.cmpi sgt, %6, %405 : vector<8x1xi32>
    %407 = vector.shape_cast %404 : vector<8x1xi1> to vector<8x1xi1>
    %408 = vector.broadcast %407 : vector<8x1xi1> to vector<8x32xi1>
    %409 = arith.select %408, %377, %326 : vector<8x32xi1>, vector<8x32xf32>
    %410 = vector.shape_cast %404 : vector<8x1xi1> to vector<8x1xi1>
    %411 = vector.broadcast %410 : vector<8x1xi1> to vector<8x32xi1>
    %412 = arith.select %411, %375, %329 : vector<8x32xi1>, vector<8x32xf32>
    %413 = vector.shape_cast %406 : vector<8x1xi1> to vector<8x1xi1>
    %414 = vector.broadcast %413 : vector<8x1xi1> to vector<8x32xi1>
    %415 = arith.select %414, %402, %332 : vector<8x32xi1>, vector<8x32xf32>
    %416 = vector.shape_cast %406 : vector<8x1xi1> to vector<8x1xi1>
    %417 = vector.broadcast %416 : vector<8x1xi1> to vector<8x32xi1>
    %418 = arith.select %417, %400, %335 : vector<8x32xi1>, vector<8x32xf32>
    %cst_61 = arith.constant 0.000000e+00 : f32
    %419 = vector.shape_cast %404 : vector<8x1xi1> to vector<8x1xi1>
    %420 = vector.broadcast %419 : vector<8x1xi1> to vector<8x32xi1>
    %421 = vector.broadcast %cst_61 : f32 to vector<8x32xf32>
    %422 = arith.select %420, %377, %421 : vector<8x32xi1>, vector<8x32xf32>
    %cst_62 = arith.constant 0.000000e+00 : f32
    %423 = vector.shape_cast %406 : vector<8x1xi1> to vector<8x1xi1>
    %424 = vector.broadcast %423 : vector<8x1xi1> to vector<8x32xi1>
    %425 = vector.broadcast %cst_62 : f32 to vector<8x32xf32>
    %426 = arith.select %424, %402, %425 : vector<8x32xi1>, vector<8x32xf32>
    %427 = tpu.concatenate %409, %415 in 1 : vector<8x32xf32>, vector<8x32xf32> -> vector<8x64xf32>
    %428 = arith.truncf %427 : vector<8x64xf32> to vector<8x64xbf16>
    %cst_63 = arith.constant dense<0.000000e+00> : vector<8x256xf32>
    %429 = tpu.matmul %428, %7, %cst_63 {dimension_numbers = #tpu.dot_dimension_numbers<[1], [0], [0], [1], [0, 0, 1, 1], [], []>} : vector<8x64xbf16>, vector<64x256xbf16>, vector<8x256xf32> -> vector<8x256xf32>
    %430 = vector.extract_strided_slice %5 {offsets = [40, 0], sizes = [8, 128], strides = [1, 1]} : vector<64x256xf32> to vector<8x128xf32>
    %431 = vector.extract_strided_slice %429 {offsets = [0, 0], sizes = [8, 128], strides = [1, 1]} : vector<8x256xf32> to vector<8x128xf32>
    %432 = arith.addf %430, %431 : vector<8x128xf32>
    %433 = vector.extract_strided_slice %5 {offsets = [16, 128], sizes = [8, 128], strides = [1, 1]} : vector<64x256xf32> to vector<8x128xf32>
    %434 = vector.extract_strided_slice %429 {offsets = [0, 128], sizes = [8, 128], strides = [1, 1]} : vector<8x256xf32> to vector<8x128xf32>
    %435 = arith.addf %433, %434 : vector<8x128xf32>
    %436 = vector.extract_strided_slice %432 {offsets = [0, 0], sizes = [8, 32], strides = [1, 1]} : vector<8x128xf32> to vector<8x32xf32>
    %437 = arith.negf %436 : vector<8x32xf32>
    %438 = math.exp %437 : vector<8x32xf32>
    %cst_64 = arith.constant 1.000000e+00 : f32
    %439 = vector.broadcast %cst_64 : f32 to vector<8x32xf32>
    %440 = arith.addf %439, %438 : vector<8x32xf32>
    %441 = arith.divf %439, %440 : vector<8x32xf32>
    %442 = vector.extract_strided_slice %432 {offsets = [0, 32], sizes = [8, 32], strides = [1, 1]} : vector<8x128xf32> to vector<8x32xf32>
    %443 = arith.negf %442 : vector<8x32xf32>
    %444 = math.exp %443 : vector<8x32xf32>
    %cst_65 = arith.constant 1.000000e+00 : f32
    %445 = vector.broadcast %cst_65 : f32 to vector<8x32xf32>
    %446 = arith.addf %445, %444 : vector<8x32xf32>
    %447 = arith.divf %445, %446 : vector<8x32xf32>
    %448 = vector.extract_strided_slice %432 {offsets = [0, 64], sizes = [8, 32], strides = [1, 1]} : vector<8x128xf32> to vector<8x32xf32>
    %449 = math.tanh %448 : vector<8x32xf32>
    %450 = vector.extract_strided_slice %432 {offsets = [0, 96], sizes = [8, 32], strides = [1, 1]} : vector<8x128xf32> to vector<8x32xf32>
    %451 = arith.negf %450 : vector<8x32xf32>
    %452 = math.exp %451 : vector<8x32xf32>
    %cst_66 = arith.constant 1.000000e+00 : f32
    %453 = vector.broadcast %cst_66 : f32 to vector<8x32xf32>
    %454 = arith.addf %453, %452 : vector<8x32xf32>
    %455 = arith.divf %453, %454 : vector<8x32xf32>
    %456 = arith.mulf %447, %412 : vector<8x32xf32>
    %457 = arith.mulf %441, %449 : vector<8x32xf32>
    %458 = arith.addf %456, %457 : vector<8x32xf32>
    %459 = math.tanh %458 : vector<8x32xf32>
    %460 = arith.mulf %455, %459 : vector<8x32xf32>
    %461 = vector.extract_strided_slice %435 {offsets = [0, 0], sizes = [8, 32], strides = [1, 1]} : vector<8x128xf32> to vector<8x32xf32>
    %462 = arith.negf %461 : vector<8x32xf32>
    %463 = math.exp %462 : vector<8x32xf32>
    %cst_67 = arith.constant 1.000000e+00 : f32
    %464 = vector.broadcast %cst_67 : f32 to vector<8x32xf32>
    %465 = arith.addf %464, %463 : vector<8x32xf32>
    %466 = arith.divf %464, %465 : vector<8x32xf32>
    %467 = vector.extract_strided_slice %435 {offsets = [0, 32], sizes = [8, 32], strides = [1, 1]} : vector<8x128xf32> to vector<8x32xf32>
    %468 = arith.negf %467 : vector<8x32xf32>
    %469 = math.exp %468 : vector<8x32xf32>
    %cst_68 = arith.constant 1.000000e+00 : f32
    %470 = vector.broadcast %cst_68 : f32 to vector<8x32xf32>
    %471 = arith.addf %470, %469 : vector<8x32xf32>
    %472 = arith.divf %470, %471 : vector<8x32xf32>
    %473 = vector.extract_strided_slice %435 {offsets = [0, 64], sizes = [8, 32], strides = [1, 1]} : vector<8x128xf32> to vector<8x32xf32>
    %474 = math.tanh %473 : vector<8x32xf32>
    %475 = vector.extract_strided_slice %435 {offsets = [0, 96], sizes = [8, 32], strides = [1, 1]} : vector<8x128xf32> to vector<8x32xf32>
    %476 = arith.negf %475 : vector<8x32xf32>
    %477 = math.exp %476 : vector<8x32xf32>
    %cst_69 = arith.constant 1.000000e+00 : f32
    %478 = vector.broadcast %cst_69 : f32 to vector<8x32xf32>
    %479 = arith.addf %478, %477 : vector<8x32xf32>
    %480 = arith.divf %478, %479 : vector<8x32xf32>
    %481 = arith.mulf %472, %418 : vector<8x32xf32>
    %482 = arith.mulf %466, %474 : vector<8x32xf32>
    %483 = arith.addf %481, %482 : vector<8x32xf32>
    %484 = math.tanh %483 : vector<8x32xf32>
    %485 = arith.mulf %480, %484 : vector<8x32xf32>
    %c5_i32_70 = arith.constant 5 : i32
    %486 = vector.broadcast %c5_i32_70 : i32 to vector<8x1xi32>
    %487 = arith.cmpi sgt, %6, %486 : vector<8x1xi32>
    %c2_i32_71 = arith.constant 2 : i32
    %488 = vector.broadcast %c2_i32_71 : i32 to vector<8x1xi32>
    %489 = arith.cmpi sgt, %6, %488 : vector<8x1xi32>
    %490 = vector.shape_cast %487 : vector<8x1xi1> to vector<8x1xi1>
    %491 = vector.broadcast %490 : vector<8x1xi1> to vector<8x32xi1>
    %492 = arith.select %491, %460, %409 : vector<8x32xi1>, vector<8x32xf32>
    %493 = vector.shape_cast %487 : vector<8x1xi1> to vector<8x1xi1>
    %494 = vector.broadcast %493 : vector<8x1xi1> to vector<8x32xi1>
    %495 = arith.select %494, %458, %412 : vector<8x32xi1>, vector<8x32xf32>
    %496 = vector.shape_cast %489 : vector<8x1xi1> to vector<8x1xi1>
    %497 = vector.broadcast %496 : vector<8x1xi1> to vector<8x32xi1>
    %498 = arith.select %497, %485, %415 : vector<8x32xi1>, vector<8x32xf32>
    %499 = vector.shape_cast %489 : vector<8x1xi1> to vector<8x1xi1>
    %500 = vector.broadcast %499 : vector<8x1xi1> to vector<8x32xi1>
    %501 = arith.select %500, %483, %418 : vector<8x32xi1>, vector<8x32xf32>
    %cst_72 = arith.constant 0.000000e+00 : f32
    %502 = vector.shape_cast %487 : vector<8x1xi1> to vector<8x1xi1>
    %503 = vector.broadcast %502 : vector<8x1xi1> to vector<8x32xi1>
    %504 = vector.broadcast %cst_72 : f32 to vector<8x32xf32>
    %505 = arith.select %503, %460, %504 : vector<8x32xi1>, vector<8x32xf32>
    %cst_73 = arith.constant 0.000000e+00 : f32
    %506 = vector.shape_cast %489 : vector<8x1xi1> to vector<8x1xi1>
    %507 = vector.broadcast %506 : vector<8x1xi1> to vector<8x32xi1>
    %508 = vector.broadcast %cst_73 : f32 to vector<8x32xf32>
    %509 = arith.select %507, %485, %508 : vector<8x32xi1>, vector<8x32xf32>
    %510 = tpu.concatenate %492, %498 in 1 : vector<8x32xf32>, vector<8x32xf32> -> vector<8x64xf32>
    %511 = arith.truncf %510 : vector<8x64xf32> to vector<8x64xbf16>
    %cst_74 = arith.constant dense<0.000000e+00> : vector<8x256xf32>
    %512 = tpu.matmul %511, %7, %cst_74 {dimension_numbers = #tpu.dot_dimension_numbers<[1], [0], [0], [1], [0, 0, 1, 1], [], []>} : vector<8x64xbf16>, vector<64x256xbf16>, vector<8x256xf32> -> vector<8x256xf32>
    %513 = vector.extract_strided_slice %5 {offsets = [48, 0], sizes = [8, 128], strides = [1, 1]} : vector<64x256xf32> to vector<8x128xf32>
    %514 = vector.extract_strided_slice %512 {offsets = [0, 0], sizes = [8, 128], strides = [1, 1]} : vector<8x256xf32> to vector<8x128xf32>
    %515 = arith.addf %513, %514 : vector<8x128xf32>
    %516 = vector.extract_strided_slice %5 {offsets = [8, 128], sizes = [8, 128], strides = [1, 1]} : vector<64x256xf32> to vector<8x128xf32>
    %517 = vector.extract_strided_slice %512 {offsets = [0, 128], sizes = [8, 128], strides = [1, 1]} : vector<8x256xf32> to vector<8x128xf32>
    %518 = arith.addf %516, %517 : vector<8x128xf32>
    %519 = vector.extract_strided_slice %515 {offsets = [0, 0], sizes = [8, 32], strides = [1, 1]} : vector<8x128xf32> to vector<8x32xf32>
    %520 = arith.negf %519 : vector<8x32xf32>
    %521 = math.exp %520 : vector<8x32xf32>
    %cst_75 = arith.constant 1.000000e+00 : f32
    %522 = vector.broadcast %cst_75 : f32 to vector<8x32xf32>
    %523 = arith.addf %522, %521 : vector<8x32xf32>
    %524 = arith.divf %522, %523 : vector<8x32xf32>
    %525 = vector.extract_strided_slice %515 {offsets = [0, 32], sizes = [8, 32], strides = [1, 1]} : vector<8x128xf32> to vector<8x32xf32>
    %526 = arith.negf %525 : vector<8x32xf32>
    %527 = math.exp %526 : vector<8x32xf32>
    %cst_76 = arith.constant 1.000000e+00 : f32
    %528 = vector.broadcast %cst_76 : f32 to vector<8x32xf32>
    %529 = arith.addf %528, %527 : vector<8x32xf32>
    %530 = arith.divf %528, %529 : vector<8x32xf32>
    %531 = vector.extract_strided_slice %515 {offsets = [0, 64], sizes = [8, 32], strides = [1, 1]} : vector<8x128xf32> to vector<8x32xf32>
    %532 = math.tanh %531 : vector<8x32xf32>
    %533 = vector.extract_strided_slice %515 {offsets = [0, 96], sizes = [8, 32], strides = [1, 1]} : vector<8x128xf32> to vector<8x32xf32>
    %534 = arith.negf %533 : vector<8x32xf32>
    %535 = math.exp %534 : vector<8x32xf32>
    %cst_77 = arith.constant 1.000000e+00 : f32
    %536 = vector.broadcast %cst_77 : f32 to vector<8x32xf32>
    %537 = arith.addf %536, %535 : vector<8x32xf32>
    %538 = arith.divf %536, %537 : vector<8x32xf32>
    %539 = arith.mulf %530, %495 : vector<8x32xf32>
    %540 = arith.mulf %524, %532 : vector<8x32xf32>
    %541 = arith.addf %539, %540 : vector<8x32xf32>
    %542 = math.tanh %541 : vector<8x32xf32>
    %543 = arith.mulf %538, %542 : vector<8x32xf32>
    %544 = vector.extract_strided_slice %518 {offsets = [0, 0], sizes = [8, 32], strides = [1, 1]} : vector<8x128xf32> to vector<8x32xf32>
    %545 = arith.negf %544 : vector<8x32xf32>
    %546 = math.exp %545 : vector<8x32xf32>
    %cst_78 = arith.constant 1.000000e+00 : f32
    %547 = vector.broadcast %cst_78 : f32 to vector<8x32xf32>
    %548 = arith.addf %547, %546 : vector<8x32xf32>
    %549 = arith.divf %547, %548 : vector<8x32xf32>
    %550 = vector.extract_strided_slice %518 {offsets = [0, 32], sizes = [8, 32], strides = [1, 1]} : vector<8x128xf32> to vector<8x32xf32>
    %551 = arith.negf %550 : vector<8x32xf32>
    %552 = math.exp %551 : vector<8x32xf32>
    %cst_79 = arith.constant 1.000000e+00 : f32
    %553 = vector.broadcast %cst_79 : f32 to vector<8x32xf32>
    %554 = arith.addf %553, %552 : vector<8x32xf32>
    %555 = arith.divf %553, %554 : vector<8x32xf32>
    %556 = vector.extract_strided_slice %518 {offsets = [0, 64], sizes = [8, 32], strides = [1, 1]} : vector<8x128xf32> to vector<8x32xf32>
    %557 = math.tanh %556 : vector<8x32xf32>
    %558 = vector.extract_strided_slice %518 {offsets = [0, 96], sizes = [8, 32], strides = [1, 1]} : vector<8x128xf32> to vector<8x32xf32>
    %559 = arith.negf %558 : vector<8x32xf32>
    %560 = math.exp %559 : vector<8x32xf32>
    %cst_80 = arith.constant 1.000000e+00 : f32
    %561 = vector.broadcast %cst_80 : f32 to vector<8x32xf32>
    %562 = arith.addf %561, %560 : vector<8x32xf32>
    %563 = arith.divf %561, %562 : vector<8x32xf32>
    %564 = arith.mulf %555, %501 : vector<8x32xf32>
    %565 = arith.mulf %549, %557 : vector<8x32xf32>
    %566 = arith.addf %564, %565 : vector<8x32xf32>
    %567 = math.tanh %566 : vector<8x32xf32>
    %568 = arith.mulf %563, %567 : vector<8x32xf32>
    %c6_i32_81 = arith.constant 6 : i32
    %569 = vector.broadcast %c6_i32_81 : i32 to vector<8x1xi32>
    %570 = arith.cmpi sgt, %6, %569 : vector<8x1xi32>
    %c1_i32_82 = arith.constant 1 : i32
    %571 = vector.broadcast %c1_i32_82 : i32 to vector<8x1xi32>
    %572 = arith.cmpi sgt, %6, %571 : vector<8x1xi32>
    %573 = vector.shape_cast %570 : vector<8x1xi1> to vector<8x1xi1>
    %574 = vector.broadcast %573 : vector<8x1xi1> to vector<8x32xi1>
    %575 = arith.select %574, %543, %492 : vector<8x32xi1>, vector<8x32xf32>
    %576 = vector.shape_cast %570 : vector<8x1xi1> to vector<8x1xi1>
    %577 = vector.broadcast %576 : vector<8x1xi1> to vector<8x32xi1>
    %578 = arith.select %577, %541, %495 : vector<8x32xi1>, vector<8x32xf32>
    %579 = vector.shape_cast %572 : vector<8x1xi1> to vector<8x1xi1>
    %580 = vector.broadcast %579 : vector<8x1xi1> to vector<8x32xi1>
    %581 = arith.select %580, %568, %498 : vector<8x32xi1>, vector<8x32xf32>
    %582 = vector.shape_cast %572 : vector<8x1xi1> to vector<8x1xi1>
    %583 = vector.broadcast %582 : vector<8x1xi1> to vector<8x32xi1>
    %584 = arith.select %583, %566, %501 : vector<8x32xi1>, vector<8x32xf32>
    %cst_83 = arith.constant 0.000000e+00 : f32
    %585 = vector.shape_cast %570 : vector<8x1xi1> to vector<8x1xi1>
    %586 = vector.broadcast %585 : vector<8x1xi1> to vector<8x32xi1>
    %587 = vector.broadcast %cst_83 : f32 to vector<8x32xf32>
    %588 = arith.select %586, %543, %587 : vector<8x32xi1>, vector<8x32xf32>
    %cst_84 = arith.constant 0.000000e+00 : f32
    %589 = vector.shape_cast %572 : vector<8x1xi1> to vector<8x1xi1>
    %590 = vector.broadcast %589 : vector<8x1xi1> to vector<8x32xi1>
    %591 = vector.broadcast %cst_84 : f32 to vector<8x32xf32>
    %592 = arith.select %590, %568, %591 : vector<8x32xi1>, vector<8x32xf32>
    %593 = tpu.concatenate %575, %581 in 1 : vector<8x32xf32>, vector<8x32xf32> -> vector<8x64xf32>
    %594 = arith.truncf %593 : vector<8x64xf32> to vector<8x64xbf16>
    %cst_85 = arith.constant dense<0.000000e+00> : vector<8x256xf32>
    %595 = tpu.matmul %594, %7, %cst_85 {dimension_numbers = #tpu.dot_dimension_numbers<[1], [0], [0], [1], [0, 0, 1, 1], [], []>} : vector<8x64xbf16>, vector<64x256xbf16>, vector<8x256xf32> -> vector<8x256xf32>
    %596 = vector.extract_strided_slice %5 {offsets = [56, 0], sizes = [8, 128], strides = [1, 1]} : vector<64x256xf32> to vector<8x128xf32>
    %597 = vector.extract_strided_slice %595 {offsets = [0, 0], sizes = [8, 128], strides = [1, 1]} : vector<8x256xf32> to vector<8x128xf32>
    %598 = arith.addf %596, %597 : vector<8x128xf32>
    %599 = vector.extract_strided_slice %5 {offsets = [0, 128], sizes = [8, 128], strides = [1, 1]} : vector<64x256xf32> to vector<8x128xf32>
    %600 = vector.extract_strided_slice %595 {offsets = [0, 128], sizes = [8, 128], strides = [1, 1]} : vector<8x256xf32> to vector<8x128xf32>
    %601 = arith.addf %599, %600 : vector<8x128xf32>
    %602 = vector.extract_strided_slice %598 {offsets = [0, 0], sizes = [8, 32], strides = [1, 1]} : vector<8x128xf32> to vector<8x32xf32>
    %603 = arith.negf %602 : vector<8x32xf32>
    %604 = math.exp %603 : vector<8x32xf32>
    %cst_86 = arith.constant 1.000000e+00 : f32
    %605 = vector.broadcast %cst_86 : f32 to vector<8x32xf32>
    %606 = arith.addf %605, %604 : vector<8x32xf32>
    %607 = arith.divf %605, %606 : vector<8x32xf32>
    %608 = vector.extract_strided_slice %598 {offsets = [0, 32], sizes = [8, 32], strides = [1, 1]} : vector<8x128xf32> to vector<8x32xf32>
    %609 = arith.negf %608 : vector<8x32xf32>
    %610 = math.exp %609 : vector<8x32xf32>
    %cst_87 = arith.constant 1.000000e+00 : f32
    %611 = vector.broadcast %cst_87 : f32 to vector<8x32xf32>
    %612 = arith.addf %611, %610 : vector<8x32xf32>
    %613 = arith.divf %611, %612 : vector<8x32xf32>
    %614 = vector.extract_strided_slice %598 {offsets = [0, 64], sizes = [8, 32], strides = [1, 1]} : vector<8x128xf32> to vector<8x32xf32>
    %615 = math.tanh %614 : vector<8x32xf32>
    %616 = vector.extract_strided_slice %598 {offsets = [0, 96], sizes = [8, 32], strides = [1, 1]} : vector<8x128xf32> to vector<8x32xf32>
    %617 = arith.negf %616 : vector<8x32xf32>
    %618 = math.exp %617 : vector<8x32xf32>
    %cst_88 = arith.constant 1.000000e+00 : f32
    %619 = vector.broadcast %cst_88 : f32 to vector<8x32xf32>
    %620 = arith.addf %619, %618 : vector<8x32xf32>
    %621 = arith.divf %619, %620 : vector<8x32xf32>
    %622 = arith.mulf %613, %578 : vector<8x32xf32>
    %623 = arith.mulf %607, %615 : vector<8x32xf32>
    %624 = arith.addf %622, %623 : vector<8x32xf32>
    %625 = math.tanh %624 : vector<8x32xf32>
    %626 = arith.mulf %621, %625 : vector<8x32xf32>
    %627 = vector.extract_strided_slice %601 {offsets = [0, 0], sizes = [8, 32], strides = [1, 1]} : vector<8x128xf32> to vector<8x32xf32>
    %628 = arith.negf %627 : vector<8x32xf32>
    %629 = math.exp %628 : vector<8x32xf32>
    %cst_89 = arith.constant 1.000000e+00 : f32
    %630 = vector.broadcast %cst_89 : f32 to vector<8x32xf32>
    %631 = arith.addf %630, %629 : vector<8x32xf32>
    %632 = arith.divf %630, %631 : vector<8x32xf32>
    %633 = vector.extract_strided_slice %601 {offsets = [0, 32], sizes = [8, 32], strides = [1, 1]} : vector<8x128xf32> to vector<8x32xf32>
    %634 = arith.negf %633 : vector<8x32xf32>
    %635 = math.exp %634 : vector<8x32xf32>
    %cst_90 = arith.constant 1.000000e+00 : f32
    %636 = vector.broadcast %cst_90 : f32 to vector<8x32xf32>
    %637 = arith.addf %636, %635 : vector<8x32xf32>
    %638 = arith.divf %636, %637 : vector<8x32xf32>
    %639 = vector.extract_strided_slice %601 {offsets = [0, 64], sizes = [8, 32], strides = [1, 1]} : vector<8x128xf32> to vector<8x32xf32>
    %640 = math.tanh %639 : vector<8x32xf32>
    %641 = vector.extract_strided_slice %601 {offsets = [0, 96], sizes = [8, 32], strides = [1, 1]} : vector<8x128xf32> to vector<8x32xf32>
    %642 = arith.negf %641 : vector<8x32xf32>
    %643 = math.exp %642 : vector<8x32xf32>
    %cst_91 = arith.constant 1.000000e+00 : f32
    %644 = vector.broadcast %cst_91 : f32 to vector<8x32xf32>
    %645 = arith.addf %644, %643 : vector<8x32xf32>
    %646 = arith.divf %644, %645 : vector<8x32xf32>
    %647 = arith.mulf %638, %584 : vector<8x32xf32>
    %648 = arith.mulf %632, %640 : vector<8x32xf32>
    %649 = arith.addf %647, %648 : vector<8x32xf32>
    %650 = math.tanh %649 : vector<8x32xf32>
    %651 = arith.mulf %646, %650 : vector<8x32xf32>
    %c7_i32_92 = arith.constant 7 : i32
    %652 = vector.broadcast %c7_i32_92 : i32 to vector<8x1xi32>
    %653 = arith.cmpi sgt, %6, %652 : vector<8x1xi32>
    %c0_i32_93 = arith.constant 0 : i32
    %654 = vector.broadcast %c0_i32_93 : i32 to vector<8x1xi32>
    %655 = arith.cmpi sgt, %6, %654 : vector<8x1xi32>
    %656 = vector.shape_cast %653 : vector<8x1xi1> to vector<8x1xi1>
    %657 = vector.broadcast %656 : vector<8x1xi1> to vector<8x32xi1>
    %658 = arith.select %657, %626, %575 : vector<8x32xi1>, vector<8x32xf32>
    %659 = vector.shape_cast %653 : vector<8x1xi1> to vector<8x1xi1>
    %660 = vector.broadcast %659 : vector<8x1xi1> to vector<8x32xi1>
    %661 = arith.select %660, %624, %578 : vector<8x32xi1>, vector<8x32xf32>
    %662 = vector.shape_cast %655 : vector<8x1xi1> to vector<8x1xi1>
    %663 = vector.broadcast %662 : vector<8x1xi1> to vector<8x32xi1>
    %664 = arith.select %663, %651, %581 : vector<8x32xi1>, vector<8x32xf32>
    %665 = vector.shape_cast %655 : vector<8x1xi1> to vector<8x1xi1>
    %666 = vector.broadcast %665 : vector<8x1xi1> to vector<8x32xi1>
    %667 = arith.select %666, %649, %584 : vector<8x32xi1>, vector<8x32xf32>
    %cst_94 = arith.constant 0.000000e+00 : f32
    %668 = vector.shape_cast %653 : vector<8x1xi1> to vector<8x1xi1>
    %669 = vector.broadcast %668 : vector<8x1xi1> to vector<8x32xi1>
    %670 = vector.broadcast %cst_94 : f32 to vector<8x32xf32>
    %671 = arith.select %669, %626, %670 : vector<8x32xi1>, vector<8x32xf32>
    %cst_95 = arith.constant 0.000000e+00 : f32
    %672 = vector.shape_cast %655 : vector<8x1xi1> to vector<8x1xi1>
    %673 = vector.broadcast %672 : vector<8x1xi1> to vector<8x32xi1>
    %674 = vector.broadcast %cst_95 : f32 to vector<8x32xf32>
    %675 = arith.select %673, %651, %674 : vector<8x32xi1>, vector<8x32xf32>
    %676 = tpu.concatenate %90, %675 in 1 : vector<8x32xf32>, vector<8x32xf32> -> vector<8x64xf32>
    %c0_96 = arith.constant 0 : index
    %c0_97 = arith.constant 0 : index
    %677 = vector.load %arg7[%c0_96, %c0_97] : memref<64x64xf32, #tpu.memory_space<vmem>>, vector<8x64xf32>
    tpu.vector_store %arg7[%c0_96, %c0_97], %676 {strides = array<i32>} : memref<64x64xf32, #tpu.memory_space<vmem>>, vector<8x64xf32>,
    %678 = tpu.concatenate %173, %592 in 1 : vector<8x32xf32>, vector<8x32xf32> -> vector<8x64xf32>
    %c8 = arith.constant 8 : index
    %c0_98 = arith.constant 0 : index
    %679 = vector.load %arg7[%c8, %c0_98] : memref<64x64xf32, #tpu.memory_space<vmem>>, vector<8x64xf32>
    tpu.vector_store %arg7[%c8, %c0_98], %678 {strides = array<i32>} : memref<64x64xf32, #tpu.memory_space<vmem>>, vector<8x64xf32>,
    %680 = tpu.concatenate %256, %509 in 1 : vector<8x32xf32>, vector<8x32xf32> -> vector<8x64xf32>
    %c16 = arith.constant 16 : index
    %c0_99 = arith.constant 0 : index
    %681 = vector.load %arg7[%c16, %c0_99] : memref<64x64xf32, #tpu.memory_space<vmem>>, vector<8x64xf32>
    tpu.vector_store %arg7[%c16, %c0_99], %680 {strides = array<i32>} : memref<64x64xf32, #tpu.memory_space<vmem>>, vector<8x64xf32>,
    %682 = tpu.concatenate %339, %426 in 1 : vector<8x32xf32>, vector<8x32xf32> -> vector<8x64xf32>
    %c24 = arith.constant 24 : index
    %c0_100 = arith.constant 0 : index
    %683 = vector.load %arg7[%c24, %c0_100] : memref<64x64xf32, #tpu.memory_space<vmem>>, vector<8x64xf32>
    tpu.vector_store %arg7[%c24, %c0_100], %682 {strides = array<i32>} : memref<64x64xf32, #tpu.memory_space<vmem>>, vector<8x64xf32>,
    %684 = tpu.concatenate %422, %343 in 1 : vector<8x32xf32>, vector<8x32xf32> -> vector<8x64xf32>
    %c32_101 = arith.constant 32 : index
    %c0_102 = arith.constant 0 : index
    %685 = vector.load %arg7[%c32_101, %c0_102] : memref<64x64xf32, #tpu.memory_space<vmem>>, vector<8x64xf32>
    tpu.vector_store %arg7[%c32_101, %c0_102], %684 {strides = array<i32>} : memref<64x64xf32, #tpu.memory_space<vmem>>, vector<8x64xf32>,
    %686 = tpu.concatenate %505, %260 in 1 : vector<8x32xf32>, vector<8x32xf32> -> vector<8x64xf32>
    %c40 = arith.constant 40 : index
    %c0_103 = arith.constant 0 : index
    %687 = vector.load %arg7[%c40, %c0_103] : memref<64x64xf32, #tpu.memory_space<vmem>>, vector<8x64xf32>
    tpu.vector_store %arg7[%c40, %c0_103], %686 {strides = array<i32>} : memref<64x64xf32, #tpu.memory_space<vmem>>, vector<8x64xf32>,
    %688 = tpu.concatenate %588, %177 in 1 : vector<8x32xf32>, vector<8x32xf32> -> vector<8x64xf32>
    %c48 = arith.constant 48 : index
    %c0_104 = arith.constant 0 : index
    %689 = vector.load %arg7[%c48, %c0_104] : memref<64x64xf32, #tpu.memory_space<vmem>>, vector<8x64xf32>
    tpu.vector_store %arg7[%c48, %c0_104], %688 {strides = array<i32>} : memref<64x64xf32, #tpu.memory_space<vmem>>, vector<8x64xf32>,
    %690 = tpu.concatenate %671, %94 in 1 : vector<8x32xf32>, vector<8x32xf32> -> vector<8x64xf32>
    %c56 = arith.constant 56 : index
    %c0_105 = arith.constant 0 : index
    %691 = vector.load %arg7[%c56, %c0_105] : memref<64x64xf32, #tpu.memory_space<vmem>>, vector<8x64xf32>
    tpu.vector_store %arg7[%c56, %c0_105], %690 {strides = array<i32>} : memref<64x64xf32, #tpu.memory_space<vmem>>, vector<8x64xf32>,
    %692 = tpu.concatenate %658, %664 in 1 : vector<8x32xf32>, vector<8x32xf32> -> vector<8x64xf32>
    %c0_106 = arith.constant 0 : index
    %c0_107 = arith.constant 0 : index
    %693 = vector.load %arg8[%c0_106, %c0_107] : memref<16x64xf32, #tpu.memory_space<vmem>>, vector<8x64xf32>
    tpu.vector_store %arg8[%c0_106, %c0_107], %692 {strides = array<i32>} : memref<16x64xf32, #tpu.memory_space<vmem>>, vector<8x64xf32>,
    %694 = tpu.concatenate %661, %667 in 1 : vector<8x32xf32>, vector<8x32xf32> -> vector<8x64xf32>
    %c8_108 = arith.constant 8 : index
    %c0_109 = arith.constant 0 : index
    %695 = vector.load %arg8[%c8_108, %c0_109] : memref<16x64xf32, #tpu.memory_space<vmem>>, vector<8x64xf32>
    tpu.vector_store %arg8[%c8_108, %c0_109], %694 {strides = array<i32>} : memref<16x64xf32, #tpu.memory_space<vmem>>, vector<8x64xf32>,
    return
  }
}

</mosaic_0001>

<bundles_post_ra>
// kernel: custom-call.6
= control target key start
LH: loop header
LB: loop body
LE: loop exit
PB: predicated region body
PF: predicated region fallthrough
CT: control target
= control target key end

     0   :  { %s6_s0 = inlined_call_operand.vmem [shape: u32[2,5], index: 0, kind: output, shape index: {}]  }

// kernel: squeeze.6
= control target key start
LH: loop header
LB: loop body
LE: loop exit
PB: predicated region body
PF: predicated region fallthrough
CT: control target
= control target key end

     0   :  { %vm7_vm0 = vcmask 39936   ;;  %s39_s0 = inlined_call_operand.vmem [shape: s32[10], index: 0, kind: input, shape index: {}]   ;;  %s40_s1 = inlined_call_operand.vmem [shape: s32[2,5], index: 1, kind: output, shape index: {}]  }
   0x1   :  { %v4_v0 = vld [vmem:[%s39_s0] sm:$0x1]  ;;  %s22_s0 = smov 123  }
   0x2   :  { %5 = vst [vmem:[#allocation1] sm:$0x1] %v4_v0 }
   0x9   :  { %v9_v1 = vld [vmem:[#allocation1] sm:$0x1]  }
   0xa   :  { %v6_v2 = vld [vmem:[#allocation1] sm:$0x1]   ;;  %10 = vrot.lane.b32.xlu0 %v9_v1, %s22_s0 }
   0xb   :  { %8 = vst.msk [vmem:[#allocation0] sm:$0x1] %vm7_vm0, %v6_v2  }
  0x7c   :  { %v11_v3 = vpop.permute.xlu0 %10  }
  0x7d   :  { %14 = vst.msk [vmem:[#allocation0 + $0x1] sm:$0x1] %vm7_vm0, %v11_v3  }
  0x84   :  { %v18_v4 = vld [vmem:[#allocation0] sm:$0x3] }
  0x85   :  { %20 = vst [vmem:[%s40_s1] sm:$0x3] %v18_v4 }

// kernel: squeeze.28
= control target key start
LH: loop header
LB: loop body
LE: loop exit
PB: predicated region body
PF: predicated region fallthrough
CT: control target
= control target key end

     0   :  { %vm7_vm0 = vcmask 261120   ;;  %s37_s0 = inlined_call_operand.vmem [shape: f32[3,64], index: 0, kind: input, shape index: {}]   ;;  %s38_s1 = inlined_call_operand.vmem [shape: f32[6,32], index: 1, kind: output, shape index: {}]  }
   0x1   :  { %v4_v0 = vld [vmem:[%s37_s0] sm:$0xf]  ;;  %s17_s0 = smov 96  }
   0x2   :  { %5 = vst [vmem:[#allocation0] sm:$0xf] %v4_v0 }
   0x9   :  { %v9_v1 = vld [vmem:[#allocation0] sm:$0x7]  }
   0xa   :  { %v6_v2 = vld [vmem:[#allocation0] sm:$0x7]   ;;  %10 = vrot.lane.b32.xlu0 %v9_v1, %s17_s0 }
   0xb   :  { %8 = vst.msk [vmem:[%s38_s1] ss:$2 sm:$0x7] %vm7_vm0, %v6_v2  }
  0x7c   :  { %v11_v3 = vpop.permute.xlu0 %10  }
  0x7d   :  { %15 = vst.msk [vmem:[%s38_s1 + $0x1] ss:$2 sm:$0x7] %vm7_vm0, %v11_v3  }

// kernel: squeeze.30
= control target key start
LH: loop header
LB: loop body
LE: loop exit
PB: predicated region body
PF: predicated region fallthrough
CT: control target
= control target key end

     0   :  { %vm11_vm0 = vcmask 261120   ;;  %s42_s0 = inlined_call_operand.vmem [shape: f32[2,3,32], index: 0, kind: input, shape index: {}]   ;;  %s43_s1 = inlined_call_operand.vmem [shape: f32[6,32], index: 1, kind: output, shape index: {}]  }
   0x1   :  { %v18_v0 = vld [vmem:[%s42_s0 + $0x4] sm:$0xf]  ;;  %v8_v1 = vld [vmem:[%s42_s0] sm:$0xf] }
   0x2   :  { %7 = vst [vmem:[#allocation0 + $0x8] sm:$0xf] %v18_v0  ;;  %9 = vst [vmem:[#allocation0] sm:$0xf] %v8_v1 }
   0x9   :  { %v10_v2 = vld [vmem:[#allocation0] sm:$0x7]   ;;  %v14_v3 = vld [vmem:[#allocation0 + $0x8] sm:$0x7]  }
   0xa   :  { %12 = vst.msk [vmem:[%s43_s1] sm:$0x7] %vm11_vm0, %v10_v2   ;;  %19 = vst.msk [vmem:[%s43_s1 + $0x3] sm:$0x7] %vm11_vm0, %v14_v3  }

// kernel: tulvae_forward.5
= control target key start
LH: loop header
LB: loop body
LE: loop exit
PB: predicated region body
PF: predicated region fallthrough
CT: control target
= control target key end

     0   :  { %vm101_vm0 = vcmask 1041408   ;;  %vm102_vm1 = vcmask 1042432   ;;  %v1510_v5 = vmov 0   ;;  %v1511_v7 = vmov 65535   ;;  %s2233_s0 = inlined_call_operand.vmem [shape: bf16[64,21], index: 0, kind: input, shape index: {}]   ;;  %s2234_s1 = inlined_call_operand.vmem [shape: s32[8,1], index: 1, kind: input, shape index: {}]   ;;  %s2235_s2 = inlined_call_operand.vmem [shape: bf16[21,256], index: 2, kind: input, shape index: {}]   ;;  %s2236_s3 = inlined_call_operand.vmem [shape: bf16[64,256], index: 3, kind: input, shape index: {}]   ;;  %s2237_s4 = inlined_call_operand.vmem [shape: f32[1,256], index: 4, kind: input, shape index: {}]   ;;  %s2238_s5 = inlined_call_operand.vmem [shape: f32[8,64], index: 5, kind: input, shape index: {}]   ;;  %s2239_s6 = inlined_call_operand.vmem [shape: f32[8,64], index: 6, kind: input, shape index: {}]   ;;  %s2240_s7 = inlined_call_operand.vmem [shape: f32[64,64], index: 7, kind: output, shape index: {0}]   ;;  %s2241_s8 = inlined_call_operand.hbm [shape: f32[16,64], index: 8, kind: output, shape index: {1}]  }
   0x1   :  { %v1337_v0 = vld [vmem:[%s2235_s2 + $0x4] ss:$8 sps:$4 sm:$0xff]   ;;  %v1341_v2 = vld [vmem:[%s2235_s2] ss:$8 sps:$4 sm:$0xff]   ;;  %v40_v4 = vld [vmem:[%s2235_s2 + $0x10] sm:$0x77]  ;;  %143 = vmatprep.mubr.bf16.mxu0 %v1510_v5  ;;  %273 = vmatprep.mubr.bf16.mxu1 %v1510_v5 }
   0x2   :  { %v1569_v1 = vld [vmem:[%s2236_s3 + $0x4] ss:$8 sps:$4 sm:$0xff]   ;;  %111 = vmatprep.subr.bf16.mxu0 %v1337_v0  ;;  %v1577_v3 = vld [vmem:[%s2236_s3] ss:$8 sps:$4 sm:$0xff]   ;;  %v1290_v6 = vcombine.high %v40_v4, %v40_v4  ;;  %v103_v8 = vsel %vm101_vm0, 4294967295, %v1511_v7  ;;  %v1289_v10 = vcombine.low %v40_v4, %v40_v4  ;;  %1335 = vset.pattern.permute.xlu1 %v1510_v5  ;;  %vm88_vm2 = vcmask 171008  }
   0x3   :  { %241 = vmatprep.subr.bf16.mxu1 %v1569_v1  ;;  %v1587_v9 = vld [vmem:[%s2236_s3 + $0x14] ss:$8 sps:$4 sm:$0xff]   ;;  %112 = vmatpush1.bf16.msra.mxu0 %v1341_v2  ;;  %v104_v11 = vsel %vm102_vm1, %v103_v8, 0  ;;  %v1595_v12 = vld [vmem:[%s2236_s3 + $0x10] ss:$8 sps:$4 sm:$0xff]   ;;  %v1348_v16 = vld [vmem:[%s2233_s0] sm:$0xff]  }
   0x4   :  { %242 = vmatpush1.bf16.msra.mxu1 %v1577_v3  ;;  %v109_v13 = vand.u32 %v1290_v6, %v104_v11  ;;  %v106_v14 = vand.u32 %v1289_v10, %v104_v11  ;;  %v1602_v15 = vld [vmem:[%s2236_s3 + $0x24] ss:$8 sps:$4 sm:$0xff]   ;;  %1336 = vset.pattern.permute.xlu0 %v1510_v5  ;;  %v1612_v17 = vld [vmem:[%s2236_s3 + $0x20] ss:$8 sps:$4 sm:$0xff]   ;;  %v1618_v18 = vld [vmem:[%s2236_s3 + $0x34] ss:$8 sps:$4 sm:$0xff]  }
   0x5   :  { %243 = vmatprep.subr.bf16.mxu1 %v1587_v9  ;;  %v1625_v19 = vld [vmem:[%s2239_s6] sm:$0xff]  ;;  %v1631_v20 = vld [vmem:[%s2236_s3 + $0x30] ss:$8 sps:$4 sm:$0xff]  }
   0x6   :  { %113 = vmatprep.subr.bf16.mxu0 %v109_v13  ;;  %v1637_v21 = vld [vmem:[%s2238_s5] sm:$0xff] }
   0x7   :  { %114 = vmatpush1.bf16.msra.mxu0 %v106_v14 }
   0x8   :  { %244 = vmatpush1.bf16.msra.mxu1 %v1595_v12  ;;  %496 = vmatprep.subr.bf16.mxu0 %v1569_v1 }
   0x9   :  { %245 = vmatprep.subr.bf16.mxu1 %v1602_v15 }
   0xa   :  { %1291 = vmatmul.mubr.msk.bf16.vlgmr.msra.gmra.mrb[0].mxu0 %vm88_vm2, %v1348_v16 }
   0xb   :  { %153 = vmatprep.mubr.bf16.mxu0 %v1510_v5 }
   0xc   :  { %246 = vmatpush1.bf16.msra.mxu1 %v1612_v17 }
   0xd   :  { %14 = vsyncpa [#allocation3], 0  ;;  %247 = vmatprep.subr.bf16.mxu1 %v1618_v18  ;;  %s1512_s10 = smov 32   ;;  %497 = vmatpush1.bf16.msra.mxu0 %v1577_v3  ;;  %v1355_v22 = vld [vmem:[%s2233_s0 + $0x8] sm:$0xff]   ;;  %v196_v23 = vpack.c.bf16 %v1637_v21, %v1637_v21  ;;  %vm237_vm3 = vcmask 523264   ;;  %v1356_v24 = vld [vmem:[%s2233_s0 + $0x10] sm:$0xff]   ;;  %v43_v26 = vlaneseq }
   0xe   :  { %292 = vrot.lane.b32.xlu1 %v1625_v19, %s1512_s10  ;;  %498 = vmatprep.subr.bf16.mxu0 %v1587_v9  ;;  %v1357_v25 = vld [vmem:[%s2233_s0 + $0x18] sm:$0xff]   ;;  %v41_v29 = vld [vmem:[%s2237_s4] sm:$0x3]  ;;  %s1513_s0 = smov 64   ;;  %vm195_vm8 = vcmask 261120   ;;  %s1515_s28 = smov [#allocation2]  }
   0xf   :  { %v44_v27 = vshrl.u32 %v43_v26, 7  ;;  %s1270_s29 = sshll.u32 %s1515_s28, 4  ;;  %s1271_s29 = int_to_ptr.vmem [resolvable:$true] %s1270_s29 }
  0x10   :  { %248 = vmatpush1.bf16.msra.mxu1 %v1631_v20  ;;  %s1486_s30 = scalar_lea.vmem %s1271_s29, 256  ;;  %p1491_p1 = scmp.lt.s32.totalorder %s1271_s29, %s1271_s29 }
  0x11   :  { %374 = vmatprep.subr.bf16.mxu1 %v1569_v1  ;;  %499 = vmatpush1.bf16.msra.mxu0 %v1595_v12  ;;  %v49_v28 = vsub.s32 1, %v44_v27  ;;  %v45_v30 = vsub.s32 0, %v44_v27  ;;  %p1487_p0 = scmp.ne.s32.totalorder %s1271_s29, %s1486_s30  ;;  %p1492_p2 = scmp.lt.s32.totalorder %s1486_s30, %s1486_s30 }
  0x12   :  { %1292 = vmatmul.mubr.msk.bf16.gmra.mrb[4].mxu0 %vm88_vm2, %v1355_v22  ;;  %500 = vmatprep.subr.bf16.mxu0 %v1602_v15 }
  0x13   :  { %1303 = vmatmul.mubr.msk.bf16.vlgmr.msra.gmra.mrb[0].mxu1 %vm237_vm3, %v196_v23  ;;  %163 = vmatprep.mubr.bf16.mxu0 %v1510_v5  ;;  %v50_v31 = vrot.slane %v41_v29, %v49_v28  ;;  %v46_v33 = vrot.slane %v41_v29, %v45_v30  ;;  %p1493_p3 = por %p1492_p2, %p1491_p1 }
  0x14   :  { %375 = vmatpush1.bf16.msra.mxu1 %v1577_v3  ;;  %406 = vmatprep.mubr.bf16.mxu1 %v1510_v5 }
  0x15   :  { %376 = vmatprep.subr.bf16.mxu1 %v1587_v9  ;;  %501 = vmatpush1.bf16.msra.mxu0 %v1612_v17  ;;  %p1494_p4 = pnand %p1493_p3, %p1487_p0 }
  0x16   :  { %502 = vmatprep.subr.bf16.mxu0 %v1618_v18 }
  0x18   :  { %377 = vmatpush1.bf16.msra.mxu1 %v1595_v12 }
  0x19   :  { %378 = vmatprep.subr.bf16.mxu1 %v1602_v15  ;;  %503 = vmatpush1.bf16.msra.mxu0 %v1631_v20 }
  0x1a   :  { %1293 = vmatmul.mubr.msk.bf16.gmra.mrb[8].mxu0 %vm88_vm2, %v1356_v24  ;;  %740 = vmatprep.subr.bf16.mxu0 %v1569_v1  ;;  %v1715_v24 = vld [vmem:[%s2234_s1] sm:$0xff]  ;;  %s1514_s1 = smov 96  }
  0x1b   :  { %173 = vmatprep.mubr.bf16.mxu0 %v1510_v5  ;;  %vm336_vm4 = vcmp.gt.s32.totalorder %v1715_v24, 0  ;;  %vm337_vm5 = vcmp.gt.s32.totalorder %v1715_v24, 7  ;;  %vm465_vm9 = vcmp.gt.s32.totalorder %v1715_v24, 1  ;;  %vm466_vm10 = vcmp.gt.s32.totalorder %v1715_v24, 6 }
  0x1c   :  { %379 = vmatpush1.bf16.msra.mxu1 %v1612_v17  ;;  %v338_v29 = vsel %vm336_vm4, 1, %v1510_v5  ;;  %vm587_vm13 = vcmp.gt.s32.totalorder %v1715_v24, 2  ;;  %vm588_vm14 = vcmp.gt.s32.totalorder %v1715_v24, 5  ;;  %vm709_vm1 = vcmp.gt.s32.totalorder %v1715_v24, 3 }
  0x1d   :  { %380 = vmatprep.subr.bf16.mxu1 %v1618_v18 }
  0x20   :  { %381 = vmatpush1.bf16.msra.mxu1 %v1631_v20 }
  0x21   :  { %618 = vmatprep.subr.bf16.mxu1 %v1569_v1 }
  0x22   :  { %1294 = vmatmul.mubr.msk.bf16.gmra.mrb[12].mxu0 %vm88_vm2, %v1357_v25  ;;  %vm710_vm2 = vcmp.gt.s32.totalorder %v1715_v24, 4 }
  0x23   :  { %528 = vmatprep.mubr.bf16.mxu0 %v1510_v5 }
  0xdd   :  { %v145_v32 = vpop.f32.mrb[0].mxu0 }
  0xde   :  { %v147_v34 = vpop.f32.mrb[1].mxu0  ;;  %v146_v40 = vadd.f32 %v145_v32, %v46_v33 }
  0xdf   :  { %v1682_v35 = vadd.f32 %v147_v34, %v50_v31  ;;  %v149_v36 = vpop.f32.mrb[2].mxu0  ;;  %v349_v34 = vsel %vm337_vm5, 1, %v1510_v5 }
  0xe0   :  { %v1684_v37 = vadd.f32 %v149_v36, %v46_v33  ;;  %v151_v38 = vpop.f32.mrb[3].mxu0  ;;  %v1725_v36 = vpop.permute.xlu1 %292 }
  0xe1   :  { %v1686_v39 = vadd.f32 %v151_v38, %v50_v31 }
  0xe5   :  { %v155_v41 = vpop.f32.mrb[4].mxu0 }
  0xe6   :  { %v275_v42 = vpop.f32.mrb[0].mxu1  ;;  %v1688_v43 = vadd.f32 %v155_v41, %v46_v33  ;;  %v157_v45 = vpop.f32.mrb[5].mxu0 }
  0xe7   :  { %v282_v44 = vadd.f32 %v275_v42, %v146_v40  ;;  %v277_v46 = vpop.f32.mrb[1].mxu1  ;;  %v1690_v47 = vadd.f32 %v157_v45, %v50_v31  ;;  %v159_v48 = vpop.f32.mrb[6].mxu0 }
  0xe8   :  { %v279_v49 = vpop.f32.mrb[2].mxu1  ;;  %v1692_v50 = vadd.f32 %v159_v48, %v46_v33  ;;  %v161_v51 = vpop.f32.mrb[7].mxu0 }
  0xe9   :  { %1358 = vtanh.f32 %v282_v44  ;;  %v280_v52 = vpop.f32.mrb[3].mxu1  ;;  %v1694_v53 = vadd.f32 %v161_v51, %v50_v31  ;;  %v1304_v14 = vmul.f32 -1.442695, %v282_v44 }
  0xed   :  { %v165_v54 = vpop.f32.mrb[8].mxu0 }
  0xee   :  { %v1696_v55 = vadd.f32 %v165_v54, %v46_v33  ;;  %v167_v56 = vpop.f32.mrb[9].mxu0 }
  0xef   :  { %v1698_v57 = vadd.f32 %v167_v56, %v50_v31  ;;  %v169_v58 = vpop.f32.mrb[10].mxu0 }
  0xf0   :  { %v1700_v59 = vadd.f32 %v169_v58, %v46_v33  ;;  %v171_v60 = vpop.f32.mrb[11].mxu0 }
  0xf1   :  { %v1702_v61 = vadd.f32 %v171_v60, %v50_v31 }
  0xf3   :  { %v1359_v62 = vpop.eup %1358 }
  0xf4   :  { %297 = vrot.lane.b32.xlu0 %v1359_v62, %s1513_s0 }
  0xf5   :  { %v175_v63 = vpop.f32.mrb[12].mxu0 }
  0xf6   :  { %v1705_v0 = vadd.f32 %v175_v63, %v46_v33  ;;  %v177_v2 = vpop.f32.mrb[13].mxu0 }
  0xf7   :  { %v1707_v4 = vadd.f32 %v177_v2, %v50_v31  ;;  %v179_v6 = vpop.f32.mrb[14].mxu0 }
  0xf8   :  { %v1709_v7 = vadd.f32 %v179_v6, %v46_v33  ;;  %v181_v8 = vpop.f32.mrb[15].mxu0 }
  0xf9   :  { %v182_v10 = vadd.f32 %v181_v8, %v50_v31 }
  0xfb   :  { %v283_v11 = vadd.f32 %v277_v46, %v182_v10 }
  0xfd   :  { %1360 = vtanh.f32 %v283_v11  ;;  %v1305_v23 = vmul.f32 -1.442695, %v283_v11 }
  0xfe   :  { %1362 = vpow2.f32 %v1304_v14 }
 0x107   :  { %v1361_v13 = vpop.eup %1360 }
 0x108   :  { %321 = vrot.lane.b32.xlu0 %v1361_v13, %s1513_s0  ;;  %v1363_v16 = vpop.eup %1362 }
 0x109   :  { %v287_v22 = vadd.f32 1.0, %v1363_v16 }
 0x10b   :  { %1364 = vrcp.f32 %v287_v22 }
 0x10c   :  { %1366 = vpow2.f32 %v1305_v23 }
 0x115   :  { %v1365_v25 = vpop.eup %1364 }
 0x116   :  { %v1367_v28 = vpop.eup %1366  ;;  %v295_v38 = vmul.f32 %v1365_v25, %v1725_v36 }
 0x117   :  { %v315_v30 = vadd.f32 1.0, %v1367_v28 }
 0x119   :  { %1368 = vrcp.f32 %v315_v30 }
 0x123   :  { %v1369_v31 = vpop.eup %1368 }
 0x124   :  { %v319_v44 = vmul.f32 %v1369_v31, %v1625_v19 }
 0x166   :  { %v298_v26 = vpop.permute.xlu0 %297 }
 0x167   :  { %v300_v27 = vmul.f32 %v1365_v25, %v298_v26 }
 0x169   :  { %302 = vrot.lane.b32.xlu1 %v300_v27, %s1512_s10 }
 0x16d   :  { %340 = vperm.xlu1 %1335, %v338_v29  }
 0x17a   :  { %v322_v32 = vpop.permute.xlu0 %321 }
 0x17b   :  { %v324_v33 = vmul.f32 %v1369_v31, %v322_v32 }
 0x17d   :  { %326 = vrot.lane.b32.xlu0 %v324_v33, %s1512_s10 }
 0x181   :  { %351 = vperm.xlu0 %1336, %v349_v34  }
 0x185   :  { %344 = vrot.lane.b32.xlu0 %v1637_v21, %s1514_s1 }
 0x1db   :  { %v303_v40 = vpop.permute.xlu1 %302 }
 0x1dc   :  { %v1728_v41 = vadd.f32 %v303_v40, %v295_v38 }
 0x1de   :  { %1370 = vtanh.f32 %v1728_v41 }
 0x1e8   :  { %v1371_v42 = vpop.eup %1370 }
 0x1e9   :  { %308 = vrot.lane.b32.xlu1 %v1371_v42, %s1513_s0  ;;  %v467_v42 = vsel %vm465_vm9, 1, %v1510_v5 }
 0x1ec   :  { %v1739_v49 = vpop.permute.xlu1 %340 }
 0x1ed   :  { %vm342_vm6 = vcmp.eq.s32.totalorder %v1739_v49, 1 }
 0x1ef   :  { %v327_v45 = vpop.permute.xlu0 %326 }
 0x1f0   :  { %v1733_v46 = vadd.f32 %v327_v45, %v319_v44  ;;  %v474_v44 = vsel %vm466_vm10, 1, %v1510_v5  ;;  %v1788_v45 = vsel %vm342_vm6, %v1728_v41, %v1725_v36 }
 0x1f2   :  { %1372 = vtanh.f32 %v1733_v46 }
 0x1fc   :  { %v1373_v48 = vpop.eup %1372 }
 0x1fd   :  { %332 = vrot.lane.b32.xlu1 %v1373_v48, %s1513_s0 }
 0x200   :  { %v1741_v51 = vpop.permute.xlu0 %351 }
 0x201   :  { %354 = vrot.lane.b32.xlu1 %v1637_v21, %s1513_s0  ;;  %vm353_vm7 = vcmp.eq.s32.totalorder %v1741_v51, 1 }
 0x204   :  { %v345_v54 = vpop.permute.xlu0 %344 }
 0x25b   :  { %v309_v52 = vpop.permute.xlu1 %308 }
 0x25c   :  { %v1743_v56 = vmul.f32 %v1365_v25, %v309_v52  ;;  %v1795_v52 = vsel %vm353_vm7, %v1733_v46, %v1625_v19 }
 0x25e   :  { %v1749_v58 = vsel %vm342_vm6, %v1743_v56, %v345_v54 }
 0x25f   :  { %362 = vrot.lane.b32.xlu0 %v1749_v58, %s1512_s10 }
 0x26f   :  { %v333_v60 = vpop.permute.xlu1 %332 }
 0x270   :  { %v1753_v21 = vmul.f32 %v1369_v31, %v333_v60 }
 0x272   :  { %v360_v49 = vsel %vm353_vm7, %v1753_v21, 0.0 }
 0x273   :  { %v355_v62 = vpop.permute.xlu1 %354 }
 0x274   :  { %v1759_v63 = vsel %vm353_vm7, %v1753_v21, %v355_v62 }
 0x275   :  { %366 = vrot.lane.b32.xlu1 %v1759_v63, %s1513_s0 }
 0x2d1   :  { %v363_v2 = vpop.permute.xlu0 %362 }
 0x2e7   :  { %v367_v6 = vpop.permute.xlu1 %366 }
 0x2e8   :  { %v369_v8 = vsel %vm195_vm8, %v363_v2, %v367_v6 }
 0x2e9   :  { %v370_v10 = vpack.c.bf16 %v369_v8, %v369_v8 }
 0x2eb   :  { %1306 = vmatmul.mubr.msk.bf16.vlgmr.msra.gmra.mrb[4].mxu1 %vm237_vm3, %v370_v10 }
 0x2ec   :  { %619 = vmatpush1.bf16.msra.mxu1 %v1577_v3  ;;  %650 = vmatprep.mubr.bf16.mxu1 %v1510_v5 }
 0x2ed   :  { %620 = vmatprep.subr.bf16.mxu1 %v1587_v9 }
 0x2f0   :  { %621 = vmatpush1.bf16.msra.mxu1 %v1595_v12 }
 0x2f1   :  { %622 = vmatprep.subr.bf16.mxu1 %v1602_v15 }
 0x2f4   :  { %623 = vmatpush1.bf16.msra.mxu1 %v1612_v17 }
 0x2f5   :  { %624 = vmatprep.subr.bf16.mxu1 %v1618_v18 }
 0x2f8   :  { %625 = vmatpush1.bf16.msra.mxu1 %v1631_v20 }
 0x2f9   :  { %850 = vmatprep.subr.bf16.mxu1 %v1569_v1 }
 0x3be   :  { %v408_v11 = vpop.f32.mrb[4].mxu1 }
 0x3bf   :  { %v415_v13 = vadd.f32 %v408_v11, %v1684_v37  ;;  %v410_v14 = vpop.f32.mrb[5].mxu1 }
 0x3c0   :  { %v416_v16 = vadd.f32 %v410_v14, %v1707_v4  ;;  %v412_v22 = vpop.f32.mrb[6].mxu1 }
 0x3c1   :  { %1374 = vtanh.f32 %v415_v13  ;;  %v413_v23 = vpop.f32.mrb[7].mxu1  ;;  %v1307_v27 = vmul.f32 -1.442695, %v415_v13 }
 0x3c2   :  { %1376 = vtanh.f32 %v416_v16  ;;  %v1308_v28 = vmul.f32 -1.442695, %v416_v16 }
 0x3c3   :  { %1378 = vpow2.f32 %v1307_v27 }
 0x3c4   :  { %1380 = vpow2.f32 %v1308_v28 }
 0x3cb   :  { %v1375_v25 = vpop.eup %1374 }
 0x3cc   :  { %v1377_v26 = vpop.eup %1376  ;;  %426 = vrot.lane.b32.xlu0 %v1375_v25, %s1513_s0 }
 0x3cd   :  { %450 = vrot.lane.b32.xlu1 %v1377_v26, %s1513_s0  ;;  %v1379_v29 = vpop.eup %1378 }
 0x3ce   :  { %v1381_v30 = vpop.eup %1380  ;;  %v420_v37 = vadd.f32 1.0, %v1379_v29 }
 0x3cf   :  { %v444_v31 = vadd.f32 1.0, %v1381_v30 }
 0x3d0   :  { %1382 = vrcp.f32 %v420_v37 }
 0x3d1   :  { %1384 = vrcp.f32 %v444_v31 }
 0x3da   :  { %v1383_v4 = vpop.eup %1382 }
 0x3db   :  { %v1385_v33 = vpop.eup %1384  ;;  %v424_v48 = vmul.f32 %v1383_v4, %v1788_v45 }
 0x3dc   :  { %v448_v60 = vmul.f32 %v1385_v33, %v1795_v52 }
 0x43e   :  { %v427_v32 = vpop.permute.xlu0 %426 }
 0x43f   :  { %v429_v34 = vmul.f32 %v1383_v4, %v427_v32  ;;  %v451_v38 = vpop.permute.xlu1 %450 }
 0x440   :  { %v453_v40 = vmul.f32 %v1385_v33, %v451_v38 }
 0x441   :  { %431 = vrot.lane.b32.xlu0 %v429_v34, %s1512_s10 }
 0x442   :  { %455 = vrot.lane.b32.xlu1 %v453_v40, %s1512_s10 }
 0x445   :  { %469 = vperm.xlu0 %1336, %v467_v42  }
 0x446   :  { %476 = vperm.xlu1 %1335, %v474_v44  }
 0x4b3   :  { %v432_v54 = vpop.permute.xlu0 %431 }
 0x4b4   :  { %v1798_v62 = vadd.f32 %v432_v54, %v424_v48  ;;  %v456_v2 = vpop.permute.xlu1 %455 }
 0x4b5   :  { %v1800_v6 = vadd.f32 %v456_v2, %v448_v60  ;;  %v589_v60 = vsel %vm587_vm13, 1, %v1510_v5  ;;  %v596_v2 = vsel %vm588_vm14, 1, %v1510_v5 }
 0x4b6   :  { %1386 = vtanh.f32 %v1798_v62 }
 0x4b7   :  { %1388 = vtanh.f32 %v1800_v6 }
 0x4c0   :  { %v1387_v36 = vpop.eup %1386 }
 0x4c1   :  { %v1389_v41 = vpop.eup %1388  ;;  %437 = vrot.lane.b32.xlu0 %v1387_v36, %s1513_s0 }
 0x4c2   :  { %461 = vrot.lane.b32.xlu1 %v1389_v41, %s1513_s0 }
 0x4c4   :  { %v1806_v19 = vpop.permute.xlu0 %469 }
 0x4c5   :  { %v1808_v46 = vpop.permute.xlu1 %476  ;;  %vm471_vm11 = vcmp.eq.s32.totalorder %v1806_v19, 1 }
 0x4c6   :  { %vm478_vm12 = vcmp.eq.s32.totalorder %v1808_v46, 1  ;;  %v1857_v36 = vsel %vm471_vm11, %v1798_v62, %v1788_v45 }
 0x533   :  { %v438_v8 = vpop.permute.xlu0 %437 }
 0x534   :  { %v1810_v10 = vmul.f32 %v1383_v4, %v438_v8  ;;  %v462_v11 = vpop.permute.xlu1 %461  ;;  %v1864_v8 = vsel %vm478_vm12, %v1800_v6, %v1795_v52 }
 0x535   :  { %v1813_v13 = vmul.f32 %v1385_v33, %v462_v11 }
 0x536   :  { %v1820_v14 = vsel %vm471_vm11, %v1810_v10, %v1749_v58 }
 0x537   :  { %484 = vrot.lane.b32.xlu0 %v1820_v14, %s1512_s10  ;;  %v1828_v16 = vsel %vm478_vm12, %v1813_v13, %v1759_v63 }
 0x538   :  { %488 = vrot.lane.b32.xlu1 %v1828_v16, %s1513_s0 }
 0x5a9   :  { %v485_v22 = vpop.permute.xlu0 %484 }
 0x5aa   :  { %v489_v23 = vpop.permute.xlu1 %488 }
 0x5ab   :  { %v491_v25 = vsel %vm195_vm8, %v485_v22, %v489_v23 }
 0x5ac   :  { %v492_v26 = vpack.c.bf16 %v491_v25, %v491_v25 }
 0x5ae   :  { %1309 = vmatmul.mubr.msk.bf16.vlgmr.msra.gmra.mrb[16].mxu0 %vm237_vm3, %v492_v26 }
 0x5af   :  { %741 = vmatpush1.bf16.msra.mxu0 %v1577_v3  ;;  %772 = vmatprep.mubr.bf16.mxu0 %v1510_v5 }
 0x5b0   :  { %742 = vmatprep.subr.bf16.mxu0 %v1587_v9 }
 0x5b3   :  { %743 = vmatpush1.bf16.msra.mxu0 %v1595_v12 }
 0x5b4   :  { %744 = vmatprep.subr.bf16.mxu0 %v1602_v15 }
 0x5b7   :  { %745 = vmatpush1.bf16.msra.mxu0 %v1612_v17 }
 0x5b8   :  { %746 = vmatprep.subr.bf16.mxu0 %v1618_v18 }
 0x5bb   :  { %747 = vmatpush1.bf16.msra.mxu0 %v1631_v20 }
 0x5bc   :  { %960 = vmatprep.subr.bf16.mxu0 %v1569_v1 }
 0x681   :  { %v530_v58 = vpop.f32.mrb[16].mxu0 }
 0x682   :  { %v537_v63 = vadd.f32 %v530_v58, %v1688_v43  ;;  %v532_v27 = vpop.f32.mrb[17].mxu0 }
 0x683   :  { %v538_v28 = vadd.f32 %v532_v27, %v1702_v61  ;;  %v534_v29 = vpop.f32.mrb[18].mxu0 }
 0x684   :  { %1390 = vtanh.f32 %v537_v63  ;;  %v535_v30 = vpop.f32.mrb[19].mxu0  ;;  %v1310_v4 = vmul.f32 -1.442695, %v537_v63 }
 0x685   :  { %1392 = vtanh.f32 %v538_v28  ;;  %v1311_v32 = vmul.f32 -1.442695, %v538_v28 }
 0x686   :  { %1394 = vpow2.f32 %v1310_v4 }
 0x687   :  { %1396 = vpow2.f32 %v1311_v32 }
 0x68e   :  { %v1391_v37 = vpop.eup %1390 }
 0x68f   :  { %v1393_v31 = vpop.eup %1392  ;;  %548 = vrot.lane.b32.xlu0 %v1391_v37, %s1513_s0 }
 0x690   :  { %572 = vrot.lane.b32.xlu1 %v1393_v31, %s1513_s0  ;;  %v1395_v33 = vpop.eup %1394 }
 0x691   :  { %v1397_v34 = vpop.eup %1396  ;;  %v542_v43 = vadd.f32 1.0, %v1395_v33 }
 0x692   :  { %v566_v38 = vadd.f32 1.0, %v1397_v34 }
 0x693   :  { %1398 = vrcp.f32 %v542_v43 }
 0x694   :  { %1400 = vrcp.f32 %v566_v38 }
 0x69d   :  { %v1399_v61 = vpop.eup %1398 }
 0x69e   :  { %v1401_v42 = vpop.eup %1400  ;;  %v546_v41 = vmul.f32 %v1399_v61, %v1857_v36 }
 0x69f   :  { %v570_v22 = vmul.f32 %v1401_v42, %v1864_v8 }
 0x701   :  { %v549_v40 = vpop.permute.xlu0 %548 }
 0x702   :  { %v551_v44 = vmul.f32 %v1399_v61, %v549_v40  ;;  %v573_v48 = vpop.permute.xlu1 %572 }
 0x703   :  { %v575_v54 = vmul.f32 %v1401_v42, %v573_v48 }
 0x704   :  { %553 = vrot.lane.b32.xlu0 %v551_v44, %s1512_s10 }
 0x705   :  { %577 = vrot.lane.b32.xlu1 %v575_v54, %s1512_s10 }
 0x708   :  { %591 = vperm.xlu0 %1336, %v589_v60  }
 0x709   :  { %598 = vperm.xlu1 %1335, %v596_v2  }
 0x776   :  { %v554_v11 = vpop.permute.xlu0 %553 }
 0x777   :  { %v1867_v23 = vadd.f32 %v554_v11, %v546_v41  ;;  %v578_v25 = vpop.permute.xlu1 %577 }
 0x778   :  { %v1869_v26 = vadd.f32 %v578_v25, %v570_v22  ;;  %v711_v25 = vsel %vm709_vm1, 1, %v1510_v5 }
 0x779   :  { %1402 = vtanh.f32 %v1867_v23 }
 0x77a   :  { %1404 = vtanh.f32 %v1869_v26 }
 0x783   :  { %v1403_v45 = vpop.eup %1402 }
 0x784   :  { %v1405_v62 = vpop.eup %1404  ;;  %559 = vrot.lane.b32.xlu0 %v1403_v45, %s1513_s0  ;;  %v718_v45 = vsel %vm710_vm2, 1, %v1510_v5 }
 0x785   :  { %583 = vrot.lane.b32.xlu1 %v1405_v62, %s1513_s0 }
 0x787   :  { %v1875_v52 = vpop.permute.xlu0 %591 }
 0x788   :  { %v1877_v6 = vpop.permute.xlu1 %598  ;;  %vm593_vm15 = vcmp.eq.s32.totalorder %v1875_v52, 1 }
 0x789   :  { %vm600_vm0 = vcmp.eq.s32.totalorder %v1877_v6, 1  ;;  %v1926_v62 = vsel %vm593_vm15, %v1867_v23, %v1857_v36 }
 0x78a   :  { %v1933_v24 = vsel %vm600_vm0, %v1869_v26, %v1864_v8 }
 0x7f6   :  { %v560_v58 = vpop.permute.xlu0 %559 }
 0x7f7   :  { %v1879_v63 = vmul.f32 %v1399_v61, %v560_v58  ;;  %v584_v27 = vpop.permute.xlu1 %583 }
 0x7f8   :  { %v1882_v28 = vmul.f32 %v1401_v42, %v584_v27 }
 0x7f9   :  { %v1889_v29 = vsel %vm593_vm15, %v1879_v63, %v1820_v14 }
 0x7fa   :  { %606 = vrot.lane.b32.xlu0 %v1889_v29, %s1512_s10  ;;  %v1897_v30 = vsel %vm600_vm0, %v1882_v28, %v1828_v16 }
 0x7fb   :  { %610 = vrot.lane.b32.xlu1 %v1897_v30, %s1513_s0 }
 0x86c   :  { %v607_v37 = vpop.permute.xlu0 %606 }
 0x86d   :  { %v611_v31 = vpop.permute.xlu1 %610 }
 0x86e   :  { %v613_v4 = vsel %vm195_vm8, %v607_v37, %v611_v31 }
 0x86f   :  { %v614_v32 = vpack.c.bf16 %v613_v4, %v613_v4 }
 0x871   :  { %1312 = vmatmul.mubr.msk.bf16.vlgmr.msra.gmra.mrb[8].mxu1 %vm237_vm3, %v614_v32 }
 0x872   :  { %851 = vmatpush1.bf16.msra.mxu1 %v1577_v3  ;;  %882 = vmatprep.mubr.bf16.mxu1 %v1510_v5 }
 0x873   :  { %852 = vmatprep.subr.bf16.mxu1 %v1587_v9 }
 0x876   :  { %853 = vmatpush1.bf16.msra.mxu1 %v1595_v12 }
 0x877   :  { %854 = vmatprep.subr.bf16.mxu1 %v1602_v15 }
 0x87a   :  { %855 = vmatpush1.bf16.msra.mxu1 %v1612_v17 }
 0x87b   :  { %856 = vmatprep.subr.bf16.mxu1 %v1618_v18 }
 0x87e   :  { %857 = vmatpush1.bf16.msra.mxu1 %v1631_v20 }
 0x87f   :  { %1070 = vmatprep.subr.bf16.mxu1 %v1569_v1 }
 0x944   :  { %v652_v14 = vpop.f32.mrb[8].mxu1 }
 0x945   :  { %v659_v16 = vadd.f32 %v652_v14, %v1692_v50  ;;  %v654_v33 = vpop.f32.mrb[9].mxu1 }
 0x946   :  { %v660_v34 = vadd.f32 %v654_v33, %v1698_v57  ;;  %v656_v43 = vpop.f32.mrb[10].mxu1 }
 0x947   :  { %1406 = vtanh.f32 %v659_v16  ;;  %v657_v38 = vpop.f32.mrb[11].mxu1  ;;  %v1313_v42 = vmul.f32 -1.442695, %v659_v16 }
 0x948   :  { %1408 = vtanh.f32 %v660_v34  ;;  %v1314_v44 = vmul.f32 -1.442695, %v660_v34 }
 0x949   :  { %1410 = vpow2.f32 %v1313_v42 }
 0x94a   :  { %1412 = vpow2.f32 %v1314_v44 }
 0x951   :  { %v1407_v61 = vpop.eup %1406 }
 0x952   :  { %v1409_v40 = vpop.eup %1408  ;;  %670 = vrot.lane.b32.xlu0 %v1407_v61, %s1513_s0 }
 0x953   :  { %694 = vrot.lane.b32.xlu1 %v1409_v40, %s1513_s0  ;;  %v1411_v1 = vpop.eup %1410 }
 0x954   :  { %v1413_v48 = vpop.eup %1412  ;;  %v664_v50 = vadd.f32 1.0, %v1411_v1 }
 0x955   :  { %v688_v54 = vadd.f32 1.0, %v1413_v48 }
 0x956   :  { %1414 = vrcp.f32 %v664_v50 }
 0x957   :  { %1416 = vrcp.f32 %v688_v54 }
 0x960   :  { %v1415_v57 = vpop.eup %1414 }
 0x961   :  { %v1417_v2 = vpop.eup %1416  ;;  %v668_v58 = vmul.f32 %v1415_v57, %v1926_v62 }
 0x962   :  { %v692_v37 = vmul.f32 %v1417_v2, %v1933_v24 }
 0x9c4   :  { %v671_v60 = vpop.permute.xlu0 %670 }
 0x9c5   :  { %v673_v41 = vmul.f32 %v1415_v57, %v671_v60  ;;  %v695_v11 = vpop.permute.xlu1 %694 }
 0x9c6   :  { %v697_v22 = vmul.f32 %v1417_v2, %v695_v11 }
 0x9c7   :  { %675 = vrot.lane.b32.xlu0 %v673_v41, %s1512_s10 }
 0x9c8   :  { %699 = vrot.lane.b32.xlu1 %v697_v22, %s1512_s10 }
 0x9cb   :  { %713 = vperm.xlu0 %1336, %v711_v25  }
 0x9cc   :  { %720 = vperm.xlu1 %1335, %v718_v45  }
 0xa39   :  { %v676_v27 = vpop.permute.xlu0 %675 }
 0xa3a   :  { %v1936_v31 = vadd.f32 %v676_v27, %v668_v58  ;;  %v700_v4 = vpop.permute.xlu1 %699 }
 0xa3b   :  { %v1938_v32 = vadd.f32 %v700_v4, %v692_v37 }
 0xa3c   :  { %1418 = vtanh.f32 %v1936_v31 }
 0xa3d   :  { %1420 = vtanh.f32 %v1938_v32 }
 0xa46   :  { %v1419_v36 = vpop.eup %1418 }
 0xa47   :  { %v1421_v23 = vpop.eup %1420  ;;  %681 = vrot.lane.b32.xlu0 %v1419_v36, %s1513_s0 }
 0xa48   :  { %705 = vrot.lane.b32.xlu1 %v1421_v23, %s1513_s0 }
 0xa4a   :  { %v1944_v8 = vpop.permute.xlu0 %713 }
 0xa4b   :  { %v1946_v26 = vpop.permute.xlu1 %720  ;;  %vm715_vm4 = vcmp.eq.s32.totalorder %v1944_v8, 1 }
 0xa4c   :  { %vm722_vm5 = vcmp.eq.s32.totalorder %v1946_v26, 1  ;;  %v1990_v36 = vsel %vm715_vm4, %v1936_v31, %v1926_v62 }
 0xab9   :  { %v682_v14 = vpop.permute.xlu0 %681 }
 0xaba   :  { %v1948_v16 = vmul.f32 %v1415_v57, %v682_v14  ;;  %v706_v33 = vpop.permute.xlu1 %705  ;;  %v1997_v14 = vsel %vm722_vm5, %v1938_v32, %v1933_v24 }
 0xabb   :  { %v1951_v34 = vmul.f32 %v1417_v2, %v706_v33 }
 0xabc   :  { %v1958_v43 = vsel %vm715_vm4, %v1948_v16, %v1889_v29  ;;  %v725_v19 = vsel %vm715_vm4, %v1948_v16, 0.0  ;;  %v482_v16 = vsel %vm478_vm12, %v1813_v13, 0.0 }
 0xabd   :  { %728 = vrot.lane.b32.xlu0 %v1958_v43, %s1512_s10  ;;  %v1966_v38 = vsel %vm722_vm5, %v1951_v34, %v1897_v30 }
 0xabe   :  { %732 = vrot.lane.b32.xlu1 %v1966_v38, %s1513_s0 }
 0xb2f   :  { %v729_v61 = vpop.permute.xlu0 %728 }
 0xb30   :  { %v733_v40 = vpop.permute.xlu1 %732 }
 0xb31   :  { %v735_v42 = vsel %vm195_vm8, %v729_v61, %v733_v40 }
 0xb32   :  { %v736_v44 = vpack.c.bf16 %v735_v42, %v735_v42 }
 0xb34   :  { %1315 = vmatmul.mubr.msk.bf16.vlgmr.msra.gmra.mrb[20].mxu0 %vm237_vm3, %v736_v44 }
 0xb35   :  { %961 = vmatpush1.bf16.msra.mxu0 %v1577_v3  ;;  %992 = vmatprep.mubr.bf16.mxu0 %v1510_v5 }
 0xb36   :  { %962 = vmatprep.subr.bf16.mxu0 %v1587_v9 }
 0xb39   :  { %963 = vmatpush1.bf16.msra.mxu0 %v1595_v12 }
 0xb3a   :  { %964 = vmatprep.subr.bf16.mxu0 %v1602_v15 }
 0xb3d   :  { %965 = vmatpush1.bf16.msra.mxu0 %v1612_v17 }
 0xb3e   :  { %966 = vmatprep.subr.bf16.mxu0 %v1618_v18 }
 0xb41   :  { %967 = vmatpush1.bf16.msra.mxu0 %v1631_v20 }
 0xc07   :  { %v774_v29 = vpop.f32.mrb[20].mxu0 }
 0xc08   :  { %v781_v30 = vadd.f32 %v774_v29, %v1696_v55  ;;  %v776_v1 = vpop.f32.mrb[21].mxu0 }
 0xc09   :  { %v782_v48 = vadd.f32 %v776_v1, %v1694_v53  ;;  %v778_v50 = vpop.f32.mrb[22].mxu0 }
 0xc0a   :  { %1422 = vtanh.f32 %v781_v30  ;;  %v779_v54 = vpop.f32.mrb[23].mxu0  ;;  %v1316_v2 = vmul.f32 -1.442695, %v781_v30 }
 0xc0b   :  { %1424 = vtanh.f32 %v782_v48  ;;  %v1317_v41 = vmul.f32 -1.442695, %v782_v48 }
 0xc0c   :  { %1426 = vpow2.f32 %v1316_v2 }
 0xc0d   :  { %1428 = vpow2.f32 %v1317_v41 }
 0xc14   :  { %v1423_v57 = vpop.eup %1422 }
 0xc15   :  { %v1425_v60 = vpop.eup %1424  ;;  %792 = vrot.lane.b32.xlu0 %v1423_v57, %s1513_s0 }
 0xc16   :  { %816 = vrot.lane.b32.xlu1 %v1425_v60, %s1513_s0  ;;  %v1427_v11 = vpop.eup %1426 }
 0xc17   :  { %v1429_v22 = vpop.eup %1428  ;;  %v786_v55 = vadd.f32 1.0, %v1427_v11 }
 0xc18   :  { %v810_v25 = vadd.f32 1.0, %v1429_v22 }
 0xc19   :  { %1430 = vrcp.f32 %v786_v55 }
 0xc1a   :  { %1432 = vrcp.f32 %v810_v25 }
 0xc23   :  { %v1431_v53 = vpop.eup %1430 }
 0xc24   :  { %v1433_v58 = vpop.eup %1432  ;;  %v790_v23 = vmul.f32 %v1431_v53, %v1990_v36 }
 0xc25   :  { %v814_v61 = vmul.f32 %v1433_v58, %v1997_v14 }
 0xc87   :  { %v793_v45 = vpop.permute.xlu0 %792 }
 0xc88   :  { %v795_v27 = vmul.f32 %v1431_v53, %v793_v45  ;;  %v817_v37 = vpop.permute.xlu1 %816 }
 0xc89   :  { %v819_v4 = vmul.f32 %v1433_v58, %v817_v37 }
 0xc8a   :  { %797 = vrot.lane.b32.xlu0 %v795_v27, %s1512_s10 }
 0xc8b   :  { %821 = vrot.lane.b32.xlu1 %v819_v4, %s1512_s10 }
 0xcfc   :  { %v798_v33 = vpop.permute.xlu0 %797 }
 0xcfd   :  { %v800_v40 = vadd.f32 %v798_v33, %v790_v23  ;;  %v822_v42 = vpop.permute.xlu1 %821 }
 0xcfe   :  { %v824_v44 = vadd.f32 %v822_v42, %v814_v61 }
 0xcff   :  { %1434 = vtanh.f32 %v800_v40 }
 0xd00   :  { %1436 = vtanh.f32 %v824_v44  ;;  %v834_v37 = vsel %vm715_vm4, %v824_v44, %v1997_v14 }
 0xd09   :  { %v1435_v29 = vpop.eup %1434 }
 0xd0a   :  { %v1437_v30 = vpop.eup %1436  ;;  %803 = vrot.lane.b32.xlu0 %v1435_v29, %s1513_s0 }
 0xd0b   :  { %827 = vrot.lane.b32.xlu1 %v1437_v30, %s1513_s0 }
 0xd7c   :  { %v804_v62 = vpop.permute.xlu0 %803 }
 0xd7d   :  { %v2002_v31 = vmul.f32 %v1431_v53, %v804_v62  ;;  %v828_v1 = vpop.permute.xlu1 %827 }
 0xd7e   :  { %v2004_v24 = vmul.f32 %v1433_v58, %v828_v1  ;;  %v832_v58 = vsel %vm722_vm5, %v800_v40, %v1990_v36 }
 0xd7f   :  { %v2010_v32 = vsel %vm722_vm5, %v2002_v31, %v1958_v43  ;;  %v835_v52 = vsel %vm722_vm5, %v2002_v31, 0.0 }
 0xd80   :  { %838 = vrot.lane.b32.xlu0 %v2010_v32, %s1512_s10  ;;  %v2018_v48 = vsel %vm715_vm4, %v2004_v24, %v1966_v38 }
 0xd81   :  { %842 = vrot.lane.b32.xlu1 %v2018_v48, %s1513_s0 }
 0xdf2   :  { %v839_v50 = vpop.permute.xlu0 %838 }
 0xdf3   :  { %v843_v54 = vpop.permute.xlu1 %842 }
 0xdf4   :  { %v845_v57 = vsel %vm195_vm8, %v839_v50, %v843_v54 }
 0xdf5   :  { %v846_v60 = vpack.c.bf16 %v845_v57, %v845_v57 }
 0xdf7   :  { %1318 = vmatmul.mubr.msk.bf16.vlgmr.msra.gmra.mrb[12].mxu1 %vm237_vm3, %v846_v60 }
 0xdf8   :  { %1071 = vmatpush1.bf16.msra.mxu1 %v1577_v3  ;;  %1102 = vmatprep.mubr.bf16.mxu1 %v1510_v5 }
 0xdf9   :  { %1072 = vmatprep.subr.bf16.mxu1 %v1587_v9 }
 0xdfc   :  { %1073 = vmatpush1.bf16.msra.mxu1 %v1595_v12 }
 0xdfd   :  { %1074 = vmatprep.subr.bf16.mxu1 %v1602_v15 }
 0xe00   :  { %1075 = vmatpush1.bf16.msra.mxu1 %v1612_v17 }
 0xe01   :  { %1076 = vmatprep.subr.bf16.mxu1 %v1618_v18 }
 0xe04   :  { %1077 = vmatpush1.bf16.msra.mxu1 %v1631_v20 }
 0xeca   :  { %v884_v43 = vpop.f32.mrb[12].mxu1 }
 0xecb   :  { %v891_v38 = vadd.f32 %v884_v43, %v1700_v59  ;;  %v886_v2 = vpop.f32.mrb[13].mxu1 }
 0xecc   :  { %v892_v3 = vadd.f32 %v886_v2, %v1690_v47  ;;  %v888_v41 = vpop.f32.mrb[14].mxu1 }
 0xecd   :  { %1438 = vtanh.f32 %v891_v38  ;;  %v889_v5 = vpop.f32.mrb[15].mxu1  ;;  %v1319_v15 = vmul.f32 -1.442695, %v891_v38 }
 0xece   :  { %1440 = vtanh.f32 %v892_v3  ;;  %v1320_v17 = vmul.f32 -1.442695, %v892_v3 }
 0xecf   :  { %1442 = vpow2.f32 %v1319_v15 }
 0xed0   :  { %1444 = vpow2.f32 %v1320_v17 }
 0xed7   :  { %v1439_v9 = vpop.eup %1438 }
 0xed8   :  { %v1441_v12 = vpop.eup %1440  ;;  %902 = vrot.lane.b32.xlu0 %v1439_v9, %s1513_s0 }
 0xed9   :  { %926 = vrot.lane.b32.xlu1 %v1441_v12, %s1513_s0  ;;  %v1443_v18 = vpop.eup %1442 }
 0xeda   :  { %v1445_v20 = vpop.eup %1444  ;;  %v896_v59 = vadd.f32 1.0, %v1443_v18 }
 0xedb   :  { %v920_v11 = vadd.f32 1.0, %v1445_v20 }
 0xedc   :  { %1446 = vrcp.f32 %v896_v59 }
 0xedd   :  { %1448 = vrcp.f32 %v920_v11 }
 0xee6   :  { %v1447_v47 = vpop.eup %1446 }
 0xee7   :  { %v1449_v55 = vpop.eup %1448  ;;  %v900_v27 = vmul.f32 %v1447_v47, %v832_v58 }
 0xee8   :  { %v924_v23 = vmul.f32 %v1449_v55, %v834_v37 }
 0xf4a   :  { %v903_v22 = vpop.permute.xlu0 %902 }
 0xf4b   :  { %v905_v25 = vmul.f32 %v1447_v47, %v903_v22  ;;  %v927_v53 = vpop.permute.xlu1 %926 }
 0xf4c   :  { %v929_v45 = vmul.f32 %v1449_v55, %v927_v53 }
 0xf4d   :  { %907 = vrot.lane.b32.xlu0 %v905_v25, %s1512_s10 }
 0xf4e   :  { %931 = vrot.lane.b32.xlu1 %v929_v45, %s1512_s10 }
 0xfbf   :  { %v908_v4 = vpop.permute.xlu0 %907 }
 0xfc0   :  { %v910_v33 = vadd.f32 %v908_v4, %v900_v27  ;;  %v932_v61 = vpop.permute.xlu1 %931 }
 0xfc1   :  { %v934_v42 = vadd.f32 %v932_v61, %v924_v23 }
 0xfc2   :  { %1450 = vtanh.f32 %v910_v33 }
 0xfc3   :  { %1452 = vtanh.f32 %v934_v42  ;;  %v944_v53 = vsel %vm593_vm15, %v934_v42, %v834_v37 }
 0xfcc   :  { %v1451_v29 = vpop.eup %1450 }
 0xfcd   :  { %v1453_v30 = vpop.eup %1452  ;;  %913 = vrot.lane.b32.xlu0 %v1451_v29, %s1513_s0 }
 0xfce   :  { %937 = vrot.lane.b32.xlu1 %v1453_v30, %s1513_s0 }
0x103f   :  { %v914_v62 = vpop.permute.xlu0 %913 }
0x1040   :  { %v2046_v36 = vmul.f32 %v1447_v47, %v914_v62  ;;  %v938_v40 = vpop.permute.xlu1 %937 }
0x1041   :  { %v2048_v1 = vmul.f32 %v1449_v55, %v938_v40  ;;  %v942_v55 = vsel %vm600_vm0, %v910_v33, %v832_v58 }
0x1042   :  { %v941_v14 = vsel %vm600_vm0, %v2046_v36, %v2010_v32  ;;  %v945_v8 = vsel %vm600_vm0, %v2046_v36, 0.0 }
0x1043   :  { %948 = vrot.lane.b32.xlu0 %v941_v14, %s1512_s10  ;;  %v943_v44 = vsel %vm593_vm15, %v2048_v1, %v2018_v48 }
0x1044   :  { %952 = vrot.lane.b32.xlu1 %v943_v44, %s1513_s0 }
0x10b5   :  { %v949_v50 = vpop.permute.xlu0 %948 }
0x10b6   :  { %v953_v54 = vpop.permute.xlu1 %952 }
0x10b7   :  { %v955_v57 = vsel %vm195_vm8, %v949_v50, %v953_v54 }
0x10b8   :  { %v956_v60 = vpack.c.bf16 %v955_v57, %v955_v57 }
0x10ba   :  { %1321 = vmatmul.mubr.msk.bf16.vlgmr.msra.gmra.mrb[24].mxu0 %vm237_vm3, %v956_v60 }
0x118d   :  { %v994_v43 = vpop.f32.mrb[24].mxu0 }
0x118e   :  { %v1001_v38 = vadd.f32 %v994_v43, %v1705_v0  ;;  %v996_v32 = vpop.f32.mrb[25].mxu0 }
0x118f   :  { %v1002_v2 = vadd.f32 %v996_v32, %v1686_v39  ;;  %v998_v3 = vpop.f32.mrb[26].mxu0 }
0x1190   :  { %1454 = vtanh.f32 %v1001_v38  ;;  %v999_v41 = vpop.f32.mrb[27].mxu0  ;;  %v1322_v9 = vmul.f32 -1.442695, %v1001_v38 }
0x1191   :  { %1456 = vtanh.f32 %v1002_v2  ;;  %v1323_v12 = vmul.f32 -1.442695, %v1002_v2 }
0x1192   :  { %1458 = vpow2.f32 %v1322_v9 }
0x1193   :  { %1460 = vpow2.f32 %v1323_v12 }
0x119a   :  { %v1455_v48 = vpop.eup %1454 }
0x119b   :  { %v1457_v5 = vpop.eup %1456  ;;  %1012 = vrot.lane.b32.xlu0 %v1455_v48, %s1513_s0 }
0x119c   :  { %1036 = vrot.lane.b32.xlu1 %v1457_v5, %s1513_s0  ;;  %v1459_v15 = vpop.eup %1458 }
0x119d   :  { %v1461_v17 = vpop.eup %1460  ;;  %v1006_v0 = vadd.f32 1.0, %v1459_v15 }
0x119e   :  { %v1030_v18 = vadd.f32 1.0, %v1461_v17 }
0x119f   :  { %1462 = vrcp.f32 %v1006_v0 }
0x11a0   :  { %1464 = vrcp.f32 %v1030_v18 }
0x11a9   :  { %v1463_v39 = vpop.eup %1462 }
0x11aa   :  { %v1465_v59 = vpop.eup %1464  ;;  %v1010_v25 = vmul.f32 %v1463_v39, %v942_v55 }
0x11ab   :  { %v1034_v27 = vmul.f32 %v1465_v59, %v944_v53 }
0x120d   :  { %v1013_v20 = vpop.permute.xlu0 %1012 }
0x120e   :  { %v1015_v11 = vmul.f32 %v1463_v39, %v1013_v20  ;;  %v1037_v47 = vpop.permute.xlu1 %1036 }
0x120f   :  { %v1039_v22 = vmul.f32 %v1465_v59, %v1037_v47 }
0x1210   :  { %1017 = vrot.lane.b32.xlu0 %v1015_v11, %s1512_s10 }
0x1211   :  { %1041 = vrot.lane.b32.xlu1 %v1039_v22, %s1512_s10 }
0x1282   :  { %v1018_v45 = vpop.permute.xlu0 %1017 }
0x1283   :  { %v1020_v4 = vadd.f32 %v1018_v45, %v1010_v25  ;;  %v1042_v23 = vpop.permute.xlu1 %1041 }
0x1284   :  { %v1044_v61 = vadd.f32 %v1042_v23, %v1034_v27 }
0x1285   :  { %1466 = vtanh.f32 %v1020_v4 }
0x1286   :  { %1468 = vtanh.f32 %v1044_v61  ;;  %v1054_v47 = vsel %vm471_vm11, %v1044_v61, %v944_v53  ;;  %v359_v53 = vsel %vm342_vm6, %v1743_v56, 0.0  ;;  %v481_v61 = vsel %vm471_vm11, %v1810_v10, 0.0 }
0x1287   :  { %v603_v56 = vsel %vm593_vm15, %v1879_v63, 0.0  ;;  %v726_v10 = vsel %vm722_vm5, %v1951_v34, 0.0  ;;  %v604_v63 = vsel %vm600_vm0, %v1882_v28, 0.0 }
0x128f   :  { %v1467_v29 = vpop.eup %1466 }
0x1290   :  { %v1469_v30 = vpop.eup %1468  ;;  %1023 = vrot.lane.b32.xlu0 %v1467_v29, %s1513_s0 }
0x1291   :  { %1047 = vrot.lane.b32.xlu1 %v1469_v30, %s1513_s0 }
0x1302   :  { %v1024_v62 = vpop.permute.xlu0 %1023 }
0x1303   :  { %v2074_v40 = vmul.f32 %v1463_v39, %v1024_v62  ;;  %v1048_v58 = vpop.permute.xlu1 %1047  ;;  %v946_v62 = vsel %vm593_vm15, %v2048_v1, 0.0 }
0x1304   :  { %v1050_v33 = vmul.f32 %v1465_v59, %v1048_v58  ;;  %v1052_v59 = vsel %vm478_vm12, %v1020_v4, %v942_v55  ;;  %v836_v58 = vsel %vm715_vm4, %v2004_v24, 0.0 }
0x1305   :  { %v2079_v37 = vsel %vm478_vm12, %v2074_v40, %v941_v14  ;;  %v1055_v26 = vsel %vm478_vm12, %v2074_v40, 0.0 }
0x1306   :  { %1058 = vrot.lane.b32.xlu0 %v2079_v37, %s1512_s10  ;;  %v2085_v42 = vsel %vm471_vm11, %v1050_v33, %v943_v44  ;;  %v1056_v4 = vsel %vm471_vm11, %v1050_v33, 0.0 }
0x1307   :  { %1062 = vrot.lane.b32.xlu1 %v2085_v42, %s1513_s0 }
0x1378   :  { %v1059_v50 = vpop.permute.xlu0 %1058 }
0x1379   :  { %v1063_v54 = vpop.permute.xlu1 %1062 }
0x137a   :  { %v1065_v57 = vsel %vm195_vm8, %v1059_v50, %v1063_v54 }
0x137b   :  { %v1066_v60 = vpack.c.bf16 %v1065_v57, %v1065_v57 }
0x137d   :  { %1324 = vmatmul.mubr.msk.bf16.vlgmr.msra.gmra.mrb[16].mxu1 %vm237_vm3, %v1066_v60 }
0x1450   :  { %v1104_v43 = vpop.f32.mrb[16].mxu1 }
0x1451   :  { %v1111_v14 = vadd.f32 %v1104_v43, %v1709_v7  ;;  %v1106_v38 = vpop.f32.mrb[17].mxu1 }
0x1452   :  { %v1112_v32 = vadd.f32 %v1106_v38, %v1682_v35  ;;  %v1108_v2 = vpop.f32.mrb[18].mxu1 }
0x1453   :  { %1470 = vtanh.f32 %v1111_v14  ;;  %v1109_v44 = vpop.f32.mrb[19].mxu1  ;;  %v1325_v48 = vmul.f32 -1.442695, %v1111_v14 }
0x1454   :  { %1472 = vtanh.f32 %v1112_v32  ;;  %v1326_v5 = vmul.f32 -1.442695, %v1112_v32 }
0x1455   :  { %1474 = vpow2.f32 %v1325_v48 }
0x1456   :  { %1476 = vpow2.f32 %v1326_v5 }
0x145d   :  { %v1471_v3 = vpop.eup %1470 }
0x145e   :  { %v1473_v41 = vpop.eup %1472  ;;  %1122 = vrot.lane.b32.xlu0 %v1471_v3, %s1513_s0 }
0x145f   :  { %1146 = vrot.lane.b32.xlu1 %v1473_v41, %s1513_s0  ;;  %v1475_v9 = vpop.eup %1474 }
0x1460   :  { %v1477_v12 = vpop.eup %1476  ;;  %v1116_v7 = vadd.f32 1.0, %v1475_v9 }
0x1461   :  { %v1140_v15 = vadd.f32 1.0, %v1477_v12 }
0x1462   :  { %1478 = vrcp.f32 %v1116_v7 }
0x1463   :  { %1480 = vrcp.f32 %v1140_v15 }
0x146c   :  { %v1479_v35 = vpop.eup %1478 }
0x146d   :  { %v1481_v0 = vpop.eup %1480  ;;  %v1120_v11 = vmul.f32 %v1479_v35, %v1052_v59 }
0x146e   :  { %v1144_v25 = vmul.f32 %v1481_v0, %v1054_v47 }
0x14d0   :  { %v1123_v17 = vpop.permute.xlu0 %1122 }
0x14d1   :  { %v1125_v18 = vmul.f32 %v1479_v35, %v1123_v17  ;;  %v1147_v39 = vpop.permute.xlu1 %1146 }
0x14d2   :  { %v1149_v20 = vmul.f32 %v1481_v0, %v1147_v39 }
0x14d3   :  { %1127 = vrot.lane.b32.xlu0 %v1125_v18, %s1512_s10 }
0x14d4   :  { %1151 = vrot.lane.b32.xlu1 %v1149_v20, %s1512_s10 }
0x1545   :  { %v1128_v22 = vpop.permute.xlu0 %1127 }
0x1546   :  { %v1130_v45 = vadd.f32 %v1128_v22, %v1120_v11  ;;  %v1152_v27 = vpop.permute.xlu1 %1151 }
0x1547   :  { %v1154_v23 = vadd.f32 %v1152_v27, %v1144_v25 }
0x1548   :  { %1482 = vtanh.f32 %v1130_v45  ;;  %v1162_v55 = vsel %vm353_vm7, %v1130_v45, %v1052_v59 }
0x1549   :  { %1484 = vtanh.f32 %v1154_v23  ;;  %v1164_v13 = vsel %vm342_vm6, %v1154_v23, %v1054_v47 }
0x1552   :  { %v1483_v29 = vpop.eup %1482 }
0x1553   :  { %v1485_v30 = vpop.eup %1484  ;;  %1133 = vrot.lane.b32.xlu0 %v1483_v29, %s1513_s0 }
0x1554   :  { %1157 = vrot.lane.b32.xlu1 %v1485_v30, %s1513_s0 }
0x1557   :  { %1258 = vrot.lane.b32.xlu0 %v1162_v55, %s1514_s1 }
0x1558   :  { %1168 = vrot.lane.b32.xlu1 %v359_v53, %s1512_s10 }
0x155b   :  { %1182 = vrot.lane.b32.xlu0 %v1056_v4, %s1513_s0 }
0x155c   :  { %1178 = vrot.lane.b32.xlu1 %v481_v61, %s1512_s10 }
0x155f   :  { %1192 = vrot.lane.b32.xlu0 %v946_v62, %s1513_s0 }
0x1560   :  { %1188 = vrot.lane.b32.xlu1 %v603_v56, %s1512_s10 }
0x1563   :  { %1202 = vrot.lane.b32.xlu0 %v836_v58, %s1513_s0 }
0x1564   :  { %1198 = vrot.lane.b32.xlu1 %v725_v19, %s1512_s10 }
0x1567   :  { %1212 = vrot.lane.b32.xlu0 %v726_v10, %s1513_s0 }
0x1568   :  { %1208 = vrot.lane.b32.xlu1 %v835_v52, %s1512_s10 }
0x156b   :  { %1222 = vrot.lane.b32.xlu0 %v604_v63, %s1513_s0 }
0x156c   :  { %1218 = vrot.lane.b32.xlu1 %v945_v8, %s1512_s10 }
0x156f   :  { %1232 = vrot.lane.b32.xlu0 %v482_v16, %s1513_s0 }
0x1570   :  { %1228 = vrot.lane.b32.xlu1 %v1055_v26, %s1512_s10 }
0x15c5   :  { %v1134_v28 = vpop.permute.xlu0 %1133 }
0x15c6   :  { %v1136_v34 = vmul.f32 %v1479_v35, %v1134_v28  ;;  %v1158_v31 = vpop.permute.xlu1 %1157 }
0x15c7   :  { %v1160_v24 = vmul.f32 %v1481_v0, %v1158_v31 }
0x15c8   :  { %v1161_v6 = vsel %vm353_vm7, %v1136_v34, %v2079_v37  ;;  %v1165_v50 = vsel %vm353_vm7, %v1136_v34, 0.0 }
0x15c9   :  { %1248 = vrot.lane.b32.xlu0 %v1161_v6, %s1512_s10  ;;  %v1259_v36 = vpop.permute.xlu0 %1258  ;;  %v1163_v46 = vsel %vm342_vm6, %v1160_v24, %v2085_v42  ;;  %v1166_v33 = vsel %vm342_vm6, %v1160_v24, 0.0 }
0x15ca   :  { %v1261_v1 = vsel %vm195_vm8, %v1259_v36, %v1164_v13  ;;  %1252 = vrot.lane.b32.xlu1 %v1163_v46, %s1513_s0  ;;  %v1169_v40 = vpop.permute.xlu1 %1168 }
0x15cb   :  { %1262 = vst.msk [vmem:[#allocation2 + $0x8] sm:$0xff] %vm237_vm3, %v1261_v1 }
0x15cd   :  { %v1183_v37 = vpop.permute.xlu0 %1182  ;;  %1172 = vrot.lane.b32.xlu0 %v1166_v33, %s1513_s0 }
0x15ce   :  { %1238 = vrot.lane.b32.xlu1 %v1165_v50, %s1512_s10  ;;  %v1179_v54 = vpop.permute.xlu1 %1178 }
0x15cf   :  { %v1185_v42 = vsel %vm195_vm8, %v1179_v54, %v1183_v37 }
0x15d0   :  { %1186 = vst.msk [vmem:[%s2240_s7 + $0x8] sm:$0xff] %vm237_vm3, %v1185_v42 }
0x15d1   :  { %v1193_v57 = vpop.permute.xlu0 %1192  ;;  %1242 = vrot.lane.b32.xlu0 %v360_v49, %s1513_s0 }
0x15d2   :  { %v1189_v60 = vpop.permute.xlu1 %1188 }
0x15d3   :  { %v1195_v43 = vsel %vm195_vm8, %v1189_v60, %v1193_v57 }
0x15d4   :  { %1196 = vst.msk [vmem:[%s2240_s7 + $0x10] sm:$0xff] %vm237_vm3, %v1195_v43 }
0x15d5   :  { %v1203_v14 = vpop.permute.xlu0 %1202 }
0x15d6   :  { %v1199_v38 = vpop.permute.xlu1 %1198 }
0x15d7   :  { %v1205_v32 = vsel %vm195_vm8, %v1199_v38, %v1203_v14 }
0x15d8   :  { %1206 = vst.msk [vmem:[%s2240_s7 + $0x18] sm:$0xff] %vm237_vm3, %v1205_v32 }
0x15d9   :  { %v1213_v51 = vpop.permute.xlu0 %1212 }
0x15da   :  { %v1209_v21 = vpop.permute.xlu1 %1208 }
0x15db   :  { %v1215_v2 = vsel %vm195_vm8, %v1209_v21, %v1213_v51 }
0x15dc   :  { %1216 = vst.msk [vmem:[%s2240_s7 + $0x20] sm:$0xff] %vm237_vm3, %v1215_v2 }
0x15dd   :  { %v1223_v44 = vpop.permute.xlu0 %1222 }
0x15de   :  { %v1219_v3 = vpop.permute.xlu1 %1218 }
0x15df   :  { %v1225_v41 = vsel %vm195_vm8, %v1219_v3, %v1223_v44 }
0x15e0   :  { %1226 = vst.msk [vmem:[%s2240_s7 + $0x28] sm:$0xff] %vm237_vm3, %v1225_v41 }
0x15e1   :  { %v1233_v48 = vpop.permute.xlu0 %1232 }
0x15e2   :  { %v1229_v5 = vpop.permute.xlu1 %1228 }
0x15e3   :  { %v1235_v9 = vsel %vm195_vm8, %v1229_v5, %v1233_v48 }
0x15e4   :  { %1236 = vst.msk [vmem:[%s2240_s7 + $0x30] sm:$0xff] %vm237_vm3, %v1235_v9 }
0x163b   :  { %v1249_v12 = vpop.permute.xlu0 %1248 }
0x163c   :  { %v1253_v7 = vpop.permute.xlu1 %1252 }
0x163d   :  { %v1255_v15 = vsel %vm195_vm8, %v1249_v12, %v1253_v7 }
0x163e   :  { %1256 = vst.msk [vmem:[#allocation2] sm:$0xff] %vm237_vm3, %v1255_v15 }
0x163f   :  { %v1173_v35 = vpop.permute.xlu0 %1172 }
0x1640   :  { %1497 = shalt.err (!%p1494_p4)
}
0x1641   :  { %s1498_s6 = scalar_lea.hbm %s2241_s8, 256 }
0x1642   :  { %p1499_p5 = scmp.ne.s32.totalorder %s2241_s8, %s1498_s6  ;;  %p1502_p6 = scmp.lt.u32.totalorder %s1498_s6, %s2241_s8 }
0x1644   :  { %p1504_p7 = pnand %p1502_p6, %p1499_p5 }
0x1646   :  { %1507 = shalt.err (!%p1504_p7)
}
0x1647   :  { %s1516_s13 = smov 128   ;;  %s1517_s14 = smov 8   ;;  %v1175_v17 = vsel %vm195_vm8, %v1169_v40, %v1173_v35  ;;  %v1239_v0 = vpop.permute.xlu1 %1238  ;;  %v1243_v18 = vpop.permute.xlu0 %1242 }
0x1648   :  { %1276 = dma.vmem_to_hbm [thread:$0]  %s1271_s29, 256, %s2241_s8, [#allocation3], %s1516_s13, %s1516_s13, %s1517_s14   ;;  %v1245_v39 = vsel %vm195_vm8, %v1239_v0, %v1243_v18 }
0x1649   :  { %1176 = vst.msk [vmem:[%s2240_s7] sm:$0xff] %vm237_vm3, %v1175_v17  ;;  %1246 = vst.msk [vmem:[%s2240_s7 + $0x38] sm:$0xff] %vm237_vm3, %v1245_v39 }
0x164a   :  { %1508 = dma.done.wait [#allocation3], 256  }
0x164b   :  { %1509 = vsyncadd [#allocation3], 4294967040 }
0x164c   :  { %1282 = vsyncpa [#allocation3], 1 }

// kernel: tulvae_forward.4
= control target key start
LH: loop header
LB: loop body
LE: loop exit
PB: predicated region body
PF: predicated region fallthrough
CT: control target
= control target key end

     0   :  { %v913_v2 = vmov 0   ;;  %s1319_s0 = inlined_call_operand.vmem [shape: bf16[32,64], index: 0, kind: input, shape index: {}]   ;;  %s1320_s1 = inlined_call_operand.vmem [shape: s32[8,1], index: 1, kind: input, shape index: {}]   ;;  %s1321_s2 = inlined_call_operand.vmem [shape: bf16[64,256], index: 2, kind: input, shape index: {}]   ;;  %s1322_s3 = inlined_call_operand.vmem [shape: bf16[64,256], index: 3, kind: input, shape index: {}]   ;;  %s1323_s4 = inlined_call_operand.vmem [shape: f32[1,256], index: 4, kind: input, shape index: {}]   ;;  %s1324_s5 = inlined_call_operand.vmem [shape: f32[8,64], index: 5, kind: input, shape index: {}, may-alias: {5,6}]   ;;  %s1325_s6 = inlined_call_operand.vmem [shape: f32[8,64], index: 6, kind: input, shape index: {}, may-alias: {5,6}]   ;;  %s1326_s7 = inlined_call_operand.hbm [shape: f32[32,64], index: 7, kind: output, shape index: {0}]   ;;  %s1327_s8 = inlined_call_operand.vmem [shape: f32[16,64], index: 8, kind: output, shape index: {1}]  }
   0x1   :  { %v799_v0 = vld [vmem:[%s1321_s2 + $0x4] ss:$8 sps:$4 sm:$0xff]   ;;  %v801_v1 = vld [vmem:[%s1321_s2] ss:$8 sps:$4 sm:$0xff]   ;;  %143 = vmatprep.mubr.bf16.mxu0 %v913_v2  ;;  %252 = vmatprep.mubr.bf16.mxu1 %v913_v2  ;;  %v805_v5 = vld [vmem:[%s1321_s2 + $0x14] ss:$8 sps:$4 sm:$0xff]  }
   0x2   :  { %111 = vmatprep.subr.bf16.mxu0 %v799_v0  ;;  %v802_v3 = vld [vmem:[%s1322_s3 + $0x4] ss:$8 sps:$4 sm:$0xff]   ;;  %v979_v4 = vld [vmem:[%s1322_s3] ss:$8 sps:$4 sm:$0xff]   ;;  %797 = vset.pattern.permute.xlu1 %v913_v2  ;;  %v807_v6 = vld [vmem:[%s1321_s2 + $0x10] ss:$8 sps:$4 sm:$0xff]  }
   0x3   :  { %112 = vmatpush1.bf16.msra.mxu0 %v801_v1  ;;  %798 = vset.pattern.permute.xlu0 %v913_v2  ;;  %v992_v7 = vld [vmem:[%s1322_s3 + $0x14] ss:$8 sps:$4 sm:$0xff]   ;;  %v998_v8 = vld [vmem:[%s1322_s3 + $0x10] ss:$8 sps:$4 sm:$0xff]   ;;  %v811_v9 = vld [vmem:[%s1321_s2 + $0x24] ss:$8 sps:$4 sm:$0xff]  }
   0x4   :  { %220 = vmatprep.subr.bf16.mxu1 %v802_v3  ;;  %113 = vmatprep.subr.bf16.mxu0 %v805_v5  ;;  %v813_v10 = vld [vmem:[%s1321_s2 + $0x20] ss:$8 sps:$4 sm:$0xff]   ;;  %v1010_v11 = vld [vmem:[%s1322_s3 + $0x24] ss:$8 sps:$4 sm:$0xff]   ;;  %v817_v12 = vld [vmem:[%s1321_s2 + $0x34] ss:$8 sps:$4 sm:$0xff]  }
   0x5   :  { %221 = vmatpush1.bf16.msra.mxu1 %v979_v4  ;;  %v1019_v13 = vld [vmem:[%s1322_s3 + $0x20] ss:$8 sps:$4 sm:$0xff]   ;;  %v1025_v14 = vld [vmem:[%s1322_s3 + $0x34] ss:$8 sps:$4 sm:$0xff]   ;;  %v819_v15 = vld [vmem:[%s1321_s2 + $0x30] ss:$8 sps:$4 sm:$0xff]  }
   0x6   :  { %222 = vmatprep.subr.bf16.mxu1 %v992_v7  ;;  %v1033_v16 = vld [vmem:[%s1322_s3 + $0x30] ss:$8 sps:$4 sm:$0xff]   ;;  %v1039_v17 = vld [vmem:[%s1324_s5] sm:$0xff] }
   0x7   :  { %114 = vmatpush1.bf16.msra.mxu0 %v807_v6  ;;  %v1044_v18 = vld [vmem:[%s1325_s6] sm:$0xff] }
   0x8   :  { %115 = vmatprep.subr.bf16.mxu0 %v811_v9 }
   0x9   :  { %223 = vmatpush1.bf16.msra.mxu1 %v998_v8 }
   0xa   :  { %224 = vmatprep.subr.bf16.mxu1 %v1010_v11 }
   0xb   :  { %116 = vmatpush1.bf16.msra.mxu0 %v813_v10 }
   0xc   :  { %117 = vmatprep.subr.bf16.mxu0 %v817_v12 }
   0xd   :  { %225 = vmatpush1.bf16.msra.mxu1 %v1019_v13 }
   0xe   :  { %14 = vsyncpa [#allocation3], 0  ;;  %226 = vmatprep.subr.bf16.mxu1 %v1025_v14  ;;  %v823_v19 = vld [vmem:[%s1319_s0] sm:$0xff]   ;;  %s914_s3 = smov 32   ;;  %vm104_vm0 = vcmask 523264   ;;  %v176_v20 = vpack.c.bf16 %v1039_v17, %v1039_v17  ;;  %v824_v21 = vld [vmem:[%s1319_s0 + $0x8] sm:$0xff]   ;;  %v44_v22 = vlaneseq }
   0xf   :  { %271 = vrot.lane.b32.xlu1 %v1044_v18, %s914_s3  ;;  %118 = vmatpush1.bf16.msra.mxu0 %v819_v15  ;;  %v42_v25 = vld [vmem:[%s1323_s4] sm:$0x3]  ;;  %s915_s4 = smov 64   ;;  %vm175_vm5 = vcmask 261120   ;;  %s917_s23 = smov [#allocation2]  }
  0x10   :  { %353 = vmatprep.subr.bf16.mxu0 %v802_v3  ;;  %v45_v23 = vshrl.u32 %v44_v22, 7  ;;  %v1098_v59 = vld [vmem:[%s1320_s1] sm:$0xff]  ;;  %s916_s1 = smov 96   ;;  %s743_s24 = sshll.u32 %s917_s23, 4  ;;  %s744_s24 = int_to_ptr.vmem [resolvable:$true] %s743_s24 }
  0x11   :  { %227 = vmatpush1.bf16.msra.mxu1 %v1033_v16  ;;  %vm315_vm1 = vcmp.gt.s32.totalorder %v1098_v59, 0  ;;  %vm316_vm2 = vcmp.gt.s32.totalorder %v1098_v59, 3  ;;  %vm444_vm6 = vcmp.gt.s32.totalorder %v1098_v59, 1  ;;  %vm445_vm7 = vcmp.gt.s32.totalorder %v1098_v59, 2  ;;  %s889_s25 = scalar_lea.vmem %s744_s24, 512  ;;  %p894_p1 = scmp.lt.s32.totalorder %s744_s24, %s744_s24 }
  0x12   :  { %768 = vmatmul.mubr.msk.bf16.vlgmr.msra.gmra.mrb[0].mxu0 %vm104_vm0, %v823_v19  ;;  %475 = vmatprep.subr.bf16.mxu1 %v802_v3  ;;  %v46_v24 = vsub.s32 0, %v45_v23  ;;  %v50_v26 = vsub.s32 1, %v45_v23  ;;  %v317_v63 = vsel %vm315_vm1, 1, %v913_v2  ;;  %v328_v5 = vsel %vm316_vm2, 1, %v913_v2  ;;  %p890_p0 = scmp.ne.s32.totalorder %s744_s24, %s889_s25  ;;  %p895_p2 = scmp.lt.s32.totalorder %s889_s25, %s889_s25 }
  0x13   :  { %153 = vmatprep.mubr.bf16.mxu0 %v913_v2  ;;  %354 = vmatpush1.bf16.msra.mxu0 %v979_v4 }
  0x14   :  { %778 = vmatmul.mubr.msk.bf16.vlgmr.msra.gmra.mrb[0].mxu1 %vm104_vm0, %v176_v20  ;;  %355 = vmatprep.subr.bf16.mxu0 %v992_v7  ;;  %v47_v27 = vrot.slane %v42_v25, %v46_v24  ;;  %v51_v28 = vrot.slane %v42_v25, %v50_v26  ;;  %p896_p3 = por %p895_p2, %p894_p1 }
  0x15   :  { %476 = vmatpush1.bf16.msra.mxu1 %v979_v4  ;;  %507 = vmatprep.mubr.bf16.mxu1 %v913_v2 }
  0x16   :  { %477 = vmatprep.subr.bf16.mxu1 %v992_v7  ;;  %p897_p4 = pnand %p896_p3, %p890_p0 }
  0x17   :  { %356 = vmatpush1.bf16.msra.mxu0 %v998_v8 }
  0x18   :  { %357 = vmatprep.subr.bf16.mxu0 %v1010_v11 }
  0x19   :  { %478 = vmatpush1.bf16.msra.mxu1 %v998_v8 }
  0x1a   :  { %769 = vmatmul.mubr.msk.bf16.gmra.mrb[4].mxu0 %vm104_vm0, %v824_v21  ;;  %479 = vmatprep.subr.bf16.mxu1 %v1010_v11 }
  0x1b   :  { %358 = vmatpush1.bf16.msra.mxu0 %v1019_v13  ;;  %385 = vmatprep.mubr.bf16.mxu0 %v913_v2 }
  0x1c   :  { %359 = vmatprep.subr.bf16.mxu0 %v1025_v14 }
  0x1d   :  { %480 = vmatpush1.bf16.msra.mxu1 %v1019_v13 }
  0x1e   :  { %481 = vmatprep.subr.bf16.mxu1 %v1025_v14 }
  0x1f   :  { %360 = vmatpush1.bf16.msra.mxu0 %v1033_v16 }
  0x20   :  { %585 = vmatprep.subr.bf16.mxu0 %v802_v3 }
  0x21   :  { %482 = vmatpush1.bf16.msra.mxu1 %v1033_v16 }
  0x81   :  { %v1108_v6 = vpop.permute.xlu1 %271 }
  0xe5   :  { %v145_v29 = vpop.f32.mrb[0].mxu0 }
  0xe6   :  { %v146_v30 = vadd.f32 %v145_v29, %v47_v27  ;;  %v147_v31 = vpop.f32.mrb[1].mxu0 }
  0xe7   :  { %v1081_v32 = vadd.f32 %v147_v31, %v51_v28  ;;  %v149_v33 = vpop.f32.mrb[2].mxu0  ;;  %v254_v34 = vpop.f32.mrb[0].mxu1 }
  0xe8   :  { %v1083_v35 = vadd.f32 %v149_v33, %v47_v27  ;;  %v261_v36 = vadd.f32 %v254_v34, %v146_v30  ;;  %v151_v37 = vpop.f32.mrb[3].mxu0  ;;  %v256_v38 = vpop.f32.mrb[1].mxu1 }
  0xe9   :  { %v1085_v39 = vadd.f32 %v151_v37, %v51_v28  ;;  %v258_v40 = vpop.f32.mrb[2].mxu1 }
  0xea   :  { %825 = vtanh.f32 %v261_v36  ;;  %v259_v41 = vpop.f32.mrb[3].mxu1  ;;  %v779_v53 = vmul.f32 -1.442695, %v261_v36 }
  0xed   :  { %v155_v42 = vpop.f32.mrb[4].mxu0 }
  0xee   :  { %v1087_v43 = vadd.f32 %v155_v42, %v47_v27  ;;  %v157_v44 = vpop.f32.mrb[5].mxu0 }
  0xef   :  { %v1089_v45 = vadd.f32 %v157_v44, %v51_v28  ;;  %v159_v46 = vpop.f32.mrb[6].mxu0 }
  0xf0   :  { %v1091_v47 = vadd.f32 %v159_v46, %v47_v27  ;;  %v161_v48 = vpop.f32.mrb[7].mxu0 }
  0xf1   :  { %v162_v49 = vadd.f32 %v161_v48, %v51_v28 }
  0xf3   :  { %v262_v50 = vadd.f32 %v256_v38, %v162_v49 }
  0xf4   :  { %v826_v51 = vpop.eup %825 }
  0xf5   :  { %827 = vtanh.f32 %v262_v50  ;;  %276 = vrot.lane.b32.xlu0 %v826_v51, %s915_s4  ;;  %v780_v54 = vmul.f32 -1.442695, %v262_v50 }
  0xf6   :  { %829 = vpow2.f32 %v779_v53  ;;  %v446_v53 = vsel %vm444_vm6, 1, %v913_v2 }
  0xf7   :  { %831 = vpow2.f32 %v780_v54  ;;  %v453_v54 = vsel %vm445_vm7, 1, %v913_v2 }
  0xff   :  { %v828_v52 = vpop.eup %827 }
 0x100   :  { %300 = vrot.lane.b32.xlu0 %v828_v52, %s915_s4  ;;  %v830_v55 = vpop.eup %829 }
 0x101   :  { %v266_v56 = vadd.f32 1.0, %v830_v55  ;;  %v832_v57 = vpop.eup %831 }
 0x102   :  { %v294_v58 = vadd.f32 1.0, %v832_v57 }
 0x103   :  { %833 = vrcp.f32 %v266_v56 }
 0x104   :  { %835 = vrcp.f32 %v294_v58 }
 0x10d   :  { %v834_v60 = vpop.eup %833 }
 0x10e   :  { %v836_v0 = vpop.eup %835  ;;  %v274_v9 = vmul.f32 %v834_v60, %v1108_v6 }
 0x10f   :  { %v298_v15 = vmul.f32 %v836_v0, %v1044_v18 }
 0x167   :  { %v277_v61 = vpop.permute.xlu0 %276 }
 0x168   :  { %v279_v62 = vmul.f32 %v834_v60, %v277_v61 }
 0x16a   :  { %281 = vrot.lane.b32.xlu1 %v279_v62, %s914_s3 }
 0x16e   :  { %319 = vperm.xlu1 %797, %v317_v63  }
 0x172   :  { %v301_v1 = vpop.permute.xlu0 %300 }
 0x173   :  { %v303_v3 = vmul.f32 %v836_v0, %v301_v1 }
 0x175   :  { %305 = vrot.lane.b32.xlu0 %v303_v3, %s914_s3 }
 0x179   :  { %330 = vperm.xlu0 %798, %v328_v5  }
 0x17d   :  { %323 = vrot.lane.b32.xlu0 %v1039_v17, %s916_s1 }
 0x1dc   :  { %v282_v10 = vpop.permute.xlu1 %281 }
 0x1dd   :  { %v1111_v12 = vadd.f32 %v282_v10, %v274_v9 }
 0x1df   :  { %837 = vtanh.f32 %v1111_v12 }
 0x1e7   :  { %v306_v19 = vpop.permute.xlu0 %305 }
 0x1e8   :  { %v1115_v20 = vadd.f32 %v306_v19, %v298_v15 }
 0x1e9   :  { %v838_v21 = vpop.eup %837 }
 0x1ea   :  { %839 = vtanh.f32 %v1115_v20  ;;  %287 = vrot.lane.b32.xlu1 %v838_v21, %s915_s4 }
 0x1ed   :  { %v1122_v23 = vpop.permute.xlu1 %319 }
 0x1ee   :  { %vm321_vm3 = vcmp.eq.s32.totalorder %v1122_v23, 1 }
 0x1ef   :  { %v327_v55 = vsel %vm321_vm3, %v1111_v12, %v1108_v6 }
 0x1f4   :  { %v840_v22 = vpop.eup %839 }
 0x1f5   :  { %311 = vrot.lane.b32.xlu1 %v840_v22, %s915_s4 }
 0x1f8   :  { %v1124_v24 = vpop.permute.xlu0 %330 }
 0x1f9   :  { %333 = vrot.lane.b32.xlu1 %v1039_v17, %s915_s4  ;;  %vm332_vm4 = vcmp.eq.s32.totalorder %v1124_v24, 1 }
 0x1fa   :  { %v337_v57 = vsel %vm332_vm4, %v1115_v20, %v1044_v18 }
 0x1fc   :  { %v324_v26 = vpop.permute.xlu0 %323 }
 0x25c   :  { %v288_v25 = vpop.permute.xlu1 %287 }
 0x25d   :  { %v1126_v27 = vmul.f32 %v834_v60, %v288_v25 }
 0x25f   :  { %v1132_v28 = vsel %vm321_vm3, %v1126_v27, %v324_v26 }
 0x260   :  { %341 = vrot.lane.b32.xlu0 %v1132_v28, %s914_s3 }
 0x267   :  { %v312_v29 = vpop.permute.xlu1 %311 }
 0x268   :  { %v1136_v17 = vmul.f32 %v836_v0, %v312_v29 }
 0x26b   :  { %v334_v30 = vpop.permute.xlu1 %333 }
 0x26c   :  { %v1142_v31 = vsel %vm332_vm4, %v1136_v17, %v334_v30 }
 0x26d   :  { %345 = vrot.lane.b32.xlu1 %v1142_v31, %s915_s4 }
 0x2d2   :  { %v342_v33 = vpop.permute.xlu0 %341 }
 0x2df   :  { %v346_v34 = vpop.permute.xlu1 %345 }
 0x2e0   :  { %v348_v36 = vsel %vm175_vm5, %v342_v33, %v346_v34 }
 0x2e1   :  { %v349_v37 = vpack.c.bf16 %v348_v36, %v348_v36 }
 0x2e3   :  { %781 = vmatmul.mubr.msk.bf16.vlgmr.msra.gmra.mrb[8].mxu0 %vm104_vm0, %v349_v37 }
 0x2e4   :  { %586 = vmatpush1.bf16.msra.mxu0 %v979_v4  ;;  %617 = vmatprep.mubr.bf16.mxu0 %v913_v2 }
 0x2e5   :  { %587 = vmatprep.subr.bf16.mxu0 %v992_v7 }
 0x2e8   :  { %588 = vmatpush1.bf16.msra.mxu0 %v998_v8 }
 0x2e9   :  { %589 = vmatprep.subr.bf16.mxu0 %v1010_v11 }
 0x2ec   :  { %590 = vmatpush1.bf16.msra.mxu0 %v1019_v13 }
 0x2ed   :  { %591 = vmatprep.subr.bf16.mxu0 %v1025_v14 }
 0x2f0   :  { %592 = vmatpush1.bf16.msra.mxu0 %v1033_v16 }
 0x3b6   :  { %v387_v38 = vpop.f32.mrb[8].mxu0 }
 0x3b7   :  { %v394_v40 = vadd.f32 %v387_v38, %v1083_v35  ;;  %v389_v41 = vpop.f32.mrb[9].mxu0 }
 0x3b8   :  { %v395_v4 = vadd.f32 %v389_v41, %v1089_v45  ;;  %v391_v42 = vpop.f32.mrb[10].mxu0 }
 0x3b9   :  { %841 = vtanh.f32 %v394_v40  ;;  %v392_v44 = vpop.f32.mrb[11].mxu0  ;;  %v782_v11 = vmul.f32 -1.442695, %v394_v40 }
 0x3ba   :  { %843 = vtanh.f32 %v395_v4  ;;  %v783_v13 = vmul.f32 -1.442695, %v395_v4 }
 0x3bb   :  { %845 = vpow2.f32 %v782_v11 }
 0x3bc   :  { %847 = vpow2.f32 %v783_v13 }
 0x3c3   :  { %v842_v7 = vpop.eup %841 }
 0x3c4   :  { %v844_v8 = vpop.eup %843  ;;  %405 = vrot.lane.b32.xlu0 %v842_v7, %s915_s4 }
 0x3c5   :  { %429 = vrot.lane.b32.xlu1 %v844_v8, %s915_s4  ;;  %v846_v14 = vpop.eup %845 }
 0x3c6   :  { %v848_v16 = vpop.eup %847  ;;  %v399_v35 = vadd.f32 1.0, %v846_v14 }
 0x3c7   :  { %v423_v46 = vadd.f32 1.0, %v848_v16 }
 0x3c8   :  { %849 = vrcp.f32 %v399_v35 }
 0x3c9   :  { %851 = vrcp.f32 %v423_v46 }
 0x3d2   :  { %v850_v45 = vpop.eup %849 }
 0x3d3   :  { %v852_v49 = vpop.eup %851  ;;  %v403_v56 = vmul.f32 %v850_v45, %v327_v55 }
 0x3d4   :  { %v427_v59 = vmul.f32 %v852_v49, %v337_v57 }
 0x436   :  { %v406_v48 = vpop.permute.xlu0 %405 }
 0x437   :  { %v408_v50 = vmul.f32 %v850_v45, %v406_v48  ;;  %v430_v51 = vpop.permute.xlu1 %429 }
 0x438   :  { %v432_v52 = vmul.f32 %v852_v49, %v430_v51 }
 0x439   :  { %410 = vrot.lane.b32.xlu0 %v408_v50, %s914_s3 }
 0x43a   :  { %434 = vrot.lane.b32.xlu1 %v432_v52, %s914_s3 }
 0x43d   :  { %448 = vperm.xlu0 %798, %v446_v53  }
 0x43e   :  { %455 = vperm.xlu1 %797, %v453_v54  }
 0x4ab   :  { %v411_v58 = vpop.permute.xlu0 %410 }
 0x4ac   :  { %v413_v60 = vadd.f32 %v411_v58, %v403_v56  ;;  %v435_v61 = vpop.permute.xlu1 %434 }
 0x4ad   :  { %v437_v62 = vadd.f32 %v435_v61, %v427_v59 }
 0x4ae   :  { %853 = vtanh.f32 %v413_v60 }
 0x4af   :  { %855 = vtanh.f32 %v437_v62 }
 0x4b8   :  { %v854_v2 = vpop.eup %853 }
 0x4b9   :  { %v856_v63 = vpop.eup %855  ;;  %416 = vrot.lane.b32.xlu0 %v854_v2, %s915_s4 }
 0x4ba   :  { %440 = vrot.lane.b32.xlu1 %v856_v63, %s915_s4 }
 0x4bc   :  { %v1176_v0 = vpop.permute.xlu0 %448 }
 0x4bd   :  { %v1178_v1 = vpop.permute.xlu1 %455  ;;  %vm450_vm8 = vcmp.eq.s32.totalorder %v1176_v0, 1 }
 0x4be   :  { %vm457_vm9 = vcmp.eq.s32.totalorder %v1178_v1, 1  ;;  %v452_v7 = vsel %vm450_vm8, %v413_v60, %v327_v55 }
 0x4bf   :  { %v459_v11 = vsel %vm457_vm9, %v437_v62, %v337_v57 }
 0x52b   :  { %v417_v3 = vpop.permute.xlu0 %416 }
 0x52c   :  { %v1180_v5 = vmul.f32 %v850_v45, %v417_v3  ;;  %v441_v18 = vpop.permute.xlu1 %440 }
 0x52d   :  { %v1183_v6 = vmul.f32 %v852_v49, %v441_v18 }
 0x52e   :  { %v451_v9 = vsel %vm450_vm8, %v1180_v5, %v1132_v28 }
 0x52f   :  { %463 = vrot.lane.b32.xlu0 %v451_v9, %s914_s3  ;;  %v458_v10 = vsel %vm457_vm9, %v1183_v6, %v1142_v31 }
 0x530   :  { %467 = vrot.lane.b32.xlu1 %v458_v10, %s915_s4 }
 0x5a1   :  { %v464_v12 = vpop.permute.xlu0 %463 }
 0x5a2   :  { %v468_v15 = vpop.permute.xlu1 %467 }
 0x5a3   :  { %v470_v19 = vsel %vm175_vm5, %v464_v12, %v468_v15 }
 0x5a4   :  { %v471_v20 = vpack.c.bf16 %v470_v19, %v470_v19 }
 0x5a6   :  { %784 = vmatmul.mubr.msk.bf16.vlgmr.msra.gmra.mrb[4].mxu1 %vm104_vm0, %v471_v20 }
 0x679   :  { %v509_v21 = vpop.f32.mrb[4].mxu1 }
 0x67a   :  { %v516_v22 = vadd.f32 %v509_v21, %v1087_v43  ;;  %v511_v25 = vpop.f32.mrb[5].mxu1 }
 0x67b   :  { %v517_v26 = vadd.f32 %v511_v25, %v1085_v39  ;;  %v513_v28 = vpop.f32.mrb[6].mxu1 }
 0x67c   :  { %857 = vtanh.f32 %v516_v22  ;;  %v514_v29 = vpop.f32.mrb[7].mxu1  ;;  %v785_v33 = vmul.f32 -1.442695, %v516_v22 }
 0x67d   :  { %859 = vtanh.f32 %v517_v26  ;;  %v786_v34 = vmul.f32 -1.442695, %v517_v26 }
 0x67e   :  { %861 = vpow2.f32 %v785_v33 }
 0x67f   :  { %863 = vpow2.f32 %v786_v34 }
 0x686   :  { %v858_v30 = vpop.eup %857 }
 0x687   :  { %v860_v31 = vpop.eup %859  ;;  %527 = vrot.lane.b32.xlu0 %v858_v30, %s915_s4 }
 0x688   :  { %551 = vrot.lane.b32.xlu1 %v860_v31, %s915_s4  ;;  %v862_v36 = vpop.eup %861 }
 0x689   :  { %v864_v37 = vpop.eup %863  ;;  %v521_v43 = vadd.f32 1.0, %v862_v36 }
 0x68a   :  { %v545_v38 = vadd.f32 1.0, %v864_v37 }
 0x68b   :  { %865 = vrcp.f32 %v521_v43 }
 0x68c   :  { %867 = vrcp.f32 %v545_v38 }
 0x695   :  { %v866_v39 = vpop.eup %865 }
 0x696   :  { %v868_v41 = vpop.eup %867  ;;  %v525_v8 = vmul.f32 %v866_v39, %v452_v7 }
 0x697   :  { %v549_v14 = vmul.f32 %v868_v41, %v459_v11 }
 0x6f9   :  { %v528_v40 = vpop.permute.xlu0 %527 }
 0x6fa   :  { %v530_v4 = vmul.f32 %v866_v39, %v528_v40  ;;  %v552_v42 = vpop.permute.xlu1 %551 }
 0x6fb   :  { %v554_v44 = vmul.f32 %v868_v41, %v552_v42  ;;  %v339_v42 = vsel %vm332_vm4, %v1136_v17, 0.0 }
 0x6fc   :  { %532 = vrot.lane.b32.xlu0 %v530_v4, %s914_s3  ;;  %v461_v4 = vsel %vm457_vm9, %v1183_v6, 0.0 }
 0x6fd   :  { %556 = vrot.lane.b32.xlu1 %v554_v44, %s914_s3 }
 0x76e   :  { %v533_v13 = vpop.permute.xlu0 %532 }
 0x76f   :  { %v535_v16 = vadd.f32 %v533_v13, %v525_v8  ;;  %v557_v35 = vpop.permute.xlu1 %556 }
 0x770   :  { %v559_v46 = vadd.f32 %v557_v35, %v549_v14 }
 0x771   :  { %869 = vtanh.f32 %v535_v16  ;;  %v567_v28 = vsel %vm457_vm9, %v535_v16, %v452_v7 }
 0x772   :  { %871 = vtanh.f32 %v559_v46  ;;  %v1237_v30 = vsel %vm450_vm8, %v559_v46, %v459_v11 }
 0x77b   :  { %v870_v45 = vpop.eup %869 }
 0x77c   :  { %v872_v48 = vpop.eup %871  ;;  %538 = vrot.lane.b32.xlu0 %v870_v45, %s915_s4 }
 0x77d   :  { %562 = vrot.lane.b32.xlu1 %v872_v48, %s915_s4 }
 0x7ee   :  { %v539_v49 = vpop.permute.xlu0 %538 }
 0x7ef   :  { %v1210_v50 = vmul.f32 %v866_v39, %v539_v49  ;;  %v563_v51 = vpop.permute.xlu1 %562  ;;  %v338_v39 = vsel %vm321_vm3, %v1126_v27, 0.0 }
 0x7f0   :  { %v565_v52 = vmul.f32 %v868_v41, %v563_v51  ;;  %v460_v41 = vsel %vm450_vm8, %v1180_v5, 0.0 }
 0x7f1   :  { %v1215_v53 = vsel %vm457_vm9, %v1210_v50, %v451_v9  ;;  %v570_v27 = vsel %vm457_vm9, %v1210_v50, 0.0 }
 0x7f2   :  { %573 = vrot.lane.b32.xlu0 %v1215_v53, %s914_s3  ;;  %v1221_v54 = vsel %vm450_vm8, %v565_v52, %v458_v10  ;;  %v571_v40 = vsel %vm450_vm8, %v565_v52, 0.0 }
 0x7f3   :  { %577 = vrot.lane.b32.xlu1 %v1221_v54, %s915_s4 }
 0x864   :  { %v574_v55 = vpop.permute.xlu0 %573 }
 0x865   :  { %v578_v56 = vpop.permute.xlu1 %577 }
 0x866   :  { %v580_v57 = vsel %vm175_vm5, %v574_v55, %v578_v56 }
 0x867   :  { %v581_v58 = vpack.c.bf16 %v580_v57, %v580_v57 }
 0x869   :  { %787 = vmatmul.mubr.msk.bf16.vlgmr.msra.gmra.mrb[12].mxu0 %vm104_vm0, %v581_v58 }
 0x93c   :  { %v619_v59 = vpop.f32.mrb[12].mxu0 }
 0x93d   :  { %v626_v60 = vadd.f32 %v619_v59, %v1091_v47  ;;  %v621_v61 = vpop.f32.mrb[13].mxu0 }
 0x93e   :  { %v627_v62 = vadd.f32 %v621_v61, %v1081_v32  ;;  %v623_v2 = vpop.f32.mrb[14].mxu0 }
 0x93f   :  { %873 = vtanh.f32 %v626_v60  ;;  %v624_v63 = vpop.f32.mrb[15].mxu0  ;;  %v788_v9 = vmul.f32 -1.442695, %v626_v60 }
 0x940   :  { %875 = vtanh.f32 %v627_v62  ;;  %v789_v10 = vmul.f32 -1.442695, %v627_v62 }
 0x941   :  { %877 = vpow2.f32 %v788_v9 }
 0x942   :  { %879 = vpow2.f32 %v789_v10 }
 0x949   :  { %v874_v3 = vpop.eup %873 }
 0x94a   :  { %v876_v18 = vpop.eup %875  ;;  %637 = vrot.lane.b32.xlu0 %v874_v3, %s915_s4 }
 0x94b   :  { %661 = vrot.lane.b32.xlu1 %v876_v18, %s915_s4  ;;  %v878_v12 = vpop.eup %877 }
 0x94c   :  { %v880_v15 = vpop.eup %879  ;;  %v631_v47 = vadd.f32 1.0, %v878_v12 }
 0x94d   :  { %v655_v19 = vadd.f32 1.0, %v880_v15 }
 0x94e   :  { %881 = vrcp.f32 %v631_v47 }
 0x94f   :  { %883 = vrcp.f32 %v655_v19 }
 0x958   :  { %v882_v32 = vpop.eup %881 }
 0x959   :  { %v884_v21 = vpop.eup %883  ;;  %v635_v29 = vmul.f32 %v882_v32, %v567_v28 }
 0x95a   :  { %v659_v33 = vmul.f32 %v884_v21, %v1237_v30 }
 0x9bc   :  { %v638_v20 = vpop.permute.xlu0 %637 }
 0x9bd   :  { %v640_v22 = vmul.f32 %v882_v32, %v638_v20  ;;  %v662_v25 = vpop.permute.xlu1 %661 }
 0x9be   :  { %v664_v26 = vmul.f32 %v884_v21, %v662_v25 }
 0x9bf   :  { %642 = vrot.lane.b32.xlu0 %v640_v22, %s914_s3 }
 0x9c0   :  { %666 = vrot.lane.b32.xlu1 %v664_v26, %s914_s3 }
 0xa31   :  { %v643_v31 = vpop.permute.xlu0 %642 }
 0xa32   :  { %v645_v34 = vadd.f32 %v643_v31, %v635_v29  ;;  %v667_v36 = vpop.permute.xlu1 %666 }
 0xa33   :  { %v1240_v37 = vadd.f32 %v667_v36, %v659_v33 }
 0xa34   :  { %885 = vtanh.f32 %v645_v34  ;;  %v677_v35 = vsel %vm332_vm4, %v645_v34, %v567_v28 }
 0xa35   :  { %887 = vtanh.f32 %v1240_v37 }
 0xa3e   :  { %v886_v43 = vpop.eup %885 }
 0xa3f   :  { %v888_v38 = vpop.eup %887  ;;  %648 = vrot.lane.b32.xlu0 %v886_v43, %s915_s4 }
 0xa40   :  { %672 = vrot.lane.b32.xlu1 %v888_v38, %s915_s4 }
 0xa43   :  { %683 = vrot.lane.b32.xlu0 %v338_v39, %s914_s3 }
 0xa44   :  { %697 = vrot.lane.b32.xlu1 %v571_v40, %s915_s4 }
 0xa47   :  { %693 = vrot.lane.b32.xlu0 %v460_v41, %s914_s3 }
 0xa48   :  { %707 = vrot.lane.b32.xlu1 %v461_v4, %s915_s4 }
 0xa4b   :  { %703 = vrot.lane.b32.xlu0 %v570_v27, %s914_s3 }
 0xa4c   :  { %717 = vrot.lane.b32.xlu1 %v339_v42, %s915_s4 }
 0xab1   :  { %v649_v0 = vpop.permute.xlu0 %648 }
 0xab2   :  { %v651_v5 = vmul.f32 %v882_v32, %v649_v0  ;;  %v673_v44 = vpop.permute.xlu1 %672 }
 0xab3   :  { %v675_v7 = vmul.f32 %v884_v21, %v673_v44 }
 0xab4   :  { %v680_v6 = vsel %vm332_vm4, %v651_v5, 0.0  ;;  %v676_v17 = vsel %vm332_vm4, %v651_v5, %v1215_v53 }
 0xab5   :  { %713 = vrot.lane.b32.xlu0 %v680_v6, %s914_s3  ;;  %v684_v8 = vpop.permute.xlu0 %683  ;;  %v681_v1 = vsel %vm321_vm3, %v675_v7, 0.0  ;;  %v678_v14 = vsel %vm321_vm3, %v675_v7, %v1221_v54 }
 0xab6   :  { %687 = vrot.lane.b32.xlu1 %v681_v1, %s915_s4  ;;  %v698_v11 = vpop.permute.xlu1 %697 }
 0xab9   :  { %723 = vrot.lane.b32.xlu0 %v676_v17, %s914_s3  ;;  %v694_v13 = vpop.permute.xlu0 %693 }
 0xaba   :  { %v700_v16 = vsel %vm175_vm5, %v694_v13, %v698_v11  ;;  %727 = vrot.lane.b32.xlu1 %v678_v14, %s915_s4  ;;  %v708_v46 = vpop.permute.xlu1 %707 }
 0xabb   :  { %701 = vst.msk [vmem:[#allocation2 + $0x8] sm:$0xff] %vm104_vm0, %v700_v16 }
 0xabd   :  { %733 = vrot.lane.b32.xlu0 %v677_v35, %s916_s1  ;;  %v704_v45 = vpop.permute.xlu0 %703 }
 0xabe   :  { %v710_v48 = vsel %vm175_vm5, %v704_v45, %v708_v46  ;;  %v718_v49 = vpop.permute.xlu1 %717 }
 0xabf   :  { %711 = vst.msk [vmem:[#allocation2 + $0x10] sm:$0xff] %vm104_vm0, %v710_v48 }
 0xb27   :  { %v714_v50 = vpop.permute.xlu0 %713 }
 0xb28   :  { %v720_v51 = vsel %vm175_vm5, %v714_v50, %v718_v49  ;;  %v688_v52 = vpop.permute.xlu1 %687 }
 0xb29   :  { %721 = vst.msk [vmem:[#allocation2 + $0x18] sm:$0xff] %vm104_vm0, %v720_v51  ;;  %v690_v24 = vsel %vm175_vm5, %v684_v8, %v688_v52 }
 0xb2a   :  { %691 = vst.msk [vmem:[#allocation2] sm:$0xff] %vm104_vm0, %v690_v24 }
 0xb2b   :  { %v724_v53 = vpop.permute.xlu0 %723 }
 0xb2c   :  { %900 = shalt.err (!%p897_p4)
}
 0xb2d   :  { %s901_s28 = scalar_lea.hbm %s1326_s7, 512 }
 0xb2e   :  { %p902_p5 = scmp.ne.s32.totalorder %s1326_s7, %s901_s28  ;;  %p905_p6 = scmp.lt.u32.totalorder %s901_s28, %s1326_s7 }
 0xb30   :  { %p907_p7 = pnand %p905_p6, %p902_p5 }
 0xb32   :  { %910 = shalt.err (!%p907_p7)
}
 0xb33   :  { %s918_s11 = smov 128   ;;  %s919_s12 = smov 8   ;;  %v728_v54 = vpop.permute.xlu1 %727  ;;  %v734_v56 = vpop.permute.xlu0 %733  ;;  %v679_v57 = vsel %vm321_vm3, %v1240_v37, %v1237_v30 }
 0xb34   :  { %749 = dma.vmem_to_hbm [thread:$0]  %s744_s24, 512, %s1326_s7, [#allocation3], %s918_s11, %s918_s11, %s919_s12   ;;  %v730_v55 = vsel %vm175_vm5, %v724_v53, %v728_v54  ;;  %v736_v58 = vsel %vm175_vm5, %v734_v56, %v679_v57 }
 0xb35   :  { %731 = vst.msk [vmem:[%s1327_s8] sm:$0xff] %vm104_vm0, %v730_v55  ;;  %737 = vst.msk [vmem:[%s1327_s8 + $0x8] sm:$0xff] %vm104_vm0, %v736_v58 }
 0xb36   :  { %911 = dma.done.wait [#allocation3], 512  }
 0xb37   :  { %912 = vsyncadd [#allocation3], 4294966784 }
 0xb38   :  { %757 = vsyncpa [#allocation3], 1 }

// kernel: tulvae_forward.3
= control target key start
LH: loop header
LB: loop body
LE: loop exit
PB: predicated region body
PF: predicated region fallthrough
CT: control target
= control target key end

     0   :  { %14 = vsyncpa [#allocation3], 0  ;;  %s2121_s27 = smov [#allocation2]   ;;  %s3162_s0 = inlined_call_operand.vmem [shape: bf16[64,16], index: 0, kind: input, shape index: {}]   ;;  %s3163_s1 = inlined_call_operand.vmem [shape: s32[8,1], index: 1, kind: input, shape index: {}]   ;;  %s3164_s2 = inlined_call_operand.vmem [shape: bf16[16,512], index: 2, kind: input, shape index: {}]   ;;  %s3165_s3 = inlined_call_operand.hbm [shape: bf16[128,512], index: 3, kind: input, shape index: {}]   ;;  %s3166_s4 = inlined_call_operand.vmem [shape: f32[1,512], index: 4, kind: input, shape index: {}]   ;;  %s3167_s5 = inlined_call_operand.vmem [shape: f32[8,128], index: 5, kind: input, shape index: {}, may-alias: {5,6}]   ;;  %s3168_s6 = inlined_call_operand.vmem [shape: f32[8,128], index: 6, kind: input, shape index: {}, may-alias: {5,6}]   ;;  %s3169_s7 = inlined_call_operand.vmem [shape: f32[64,128], index: 7, kind: output, shape index: {0}]   ;;  %s3170_s8 = inlined_call_operand.vmem [shape: f32[16,128], index: 8, kind: output, shape index: {1}]  }
   0x1   :  { %s26_s28 = sshll.u32 %s2121_s27, 4  ;;  %s2097_s9 = scalar_lea.hbm %s3165_s3, 4096  ;;  %s27_s28 = int_to_ptr.vmem [resolvable:$true] %s26_s28 }
   0x2   :  { %p2098_p0 = scmp.ne.s32.totalorder %s3165_s3, %s2097_s9  ;;  %p2101_p1 = scmp.lt.u32.totalorder %s2097_s9, %s3165_s3 }
   0x4   :  { %p2103_p2 = pnand %p2101_p1, %p2098_p0 }
   0x6   :  { %2106 = shalt.err (!%p2103_p2)
}
   0x7   :  { %s2107_s14 = scalar_lea.vmem %s27_s28, 4096  ;;  %p2112_p4 = scmp.lt.s32.totalorder %s27_s28, %s27_s28 }
   0x8   :  { %p2108_p3 = scmp.ne.s32.totalorder %s27_s28, %s2107_s14  ;;  %p2113_p5 = scmp.lt.s32.totalorder %s2107_s14, %s2107_s14 }
   0xa   :  { %p2114_p6 = por %p2113_p5, %p2112_p4 }
   0xc   :  { %p2115_p7 = pnand %p2114_p6, %p2108_p3 }
   0xe   :  { %2118 = shalt.err (!%p2115_p7)
}
   0xf   :  { %s2122_s15 = smov 256   ;;  %s2123_s16 = smov 16  }
  0x10   :  { %32 = dma.hbm_to_vmem [thread:$0]  %s3165_s3, 4096, %s27_s28, [#allocation3], %s2122_s15, %s2122_s15, %s2123_s16  }
  0x11   :  { %2119 = dma.done.wait [#allocation3], 4096  }
  0x12   :  { %2120 = vsyncadd [#allocation3], 4294963200  ;;  %v3171_v0 = vmov 0   ;;  %v1815_v1 = vld [vmem:[%s3164_s2 + $0x4] ss:$16 sps:$4 sm:$0xff]   ;;  %vm117_vm0 = vcmask 130048   ;;  %v57_v47 = vlaneseq }
  0x13   :  { %162 = vmatprep.mubr.bf16.mxu0 %v3171_v0  ;;  %235 = vmatprep.mubr.bf16.mxu1 %v3171_v0  ;;  %v1817_v2 = vld [vmem:[%s3164_s2] ss:$16 sps:$4 sm:$0xff]   ;;  %v1819_v4 = vld [vmem:[%s3164_s2 + $0xc] ss:$16 sps:$4 sm:$0xff]   ;;  %v2199_v5 = vld [vmem:[#allocation2 + $0x4] ss:$16 sps:$4 sm:$0xff]  }
  0x14   :  { %1813 = vset.pattern.permute.xlu1 %v3171_v0  ;;  %1814 = vset.pattern.permute.xlu0 %v3171_v0  ;;  %v1818_v3 = vld [vmem:[%s3162_s0] sm:$0xff]   ;;  %v1823_v6 = vld [vmem:[%s3164_s2 + $0x8] ss:$16 sps:$4 sm:$0xff]   ;;  %v2210_v9 = vld [vmem:[#allocation2 + $0xc] ss:$16 sps:$4 sm:$0xff]   ;;  %v58_v48 = vshrl.u32 %v57_v47, 7 }
  0x15   :  { %130 = vmatprep.subr.bf16.mxu0 %v1815_v1  ;;  %v2204_v7 = vld [vmem:[#allocation2] ss:$16 sps:$4 sm:$0xff]   ;;  %203 = vmatprep.subr.bf16.mxu1 %v1819_v4  ;;  %v2206_v8 = vld [vmem:[#allocation2 + $0x24] ss:$16 sps:$4 sm:$0xff]   ;;  %v2215_v11 = vld [vmem:[#allocation2 + $0x8] ss:$16 sps:$4 sm:$0xff]  }
  0x16   :  { %131 = vmatpush1.bf16.msra.mxu0 %v1817_v2  ;;  %204 = vmatpush1.bf16.msra.mxu1 %v1823_v6  ;;  %v2213_v10 = vld [vmem:[#allocation2 + $0x20] ss:$16 sps:$4 sm:$0xff]   ;;  %v1831_v12 = vld [vmem:[%s3162_s0 + $0x8] sm:$0xff]   ;;  %v2223_v13 = vld [vmem:[#allocation2 + $0x44] ss:$16 sps:$4 sm:$0xff]   ;;  %v59_v49 = vsub.s32 0, %v58_v48 }
  0x17   :  { %473 = vmatprep.subr.bf16.mxu0 %v2199_v5  ;;  %514 = vmatprep.subr.bf16.mxu1 %v2210_v9  ;;  %v2226_v14 = vld [vmem:[#allocation2 + $0x2c] ss:$16 sps:$4 sm:$0xff]   ;;  %v2228_v15 = vld [vmem:[#allocation2 + $0x40] ss:$16 sps:$4 sm:$0xff]   ;;  %v2232_v16 = vld [vmem:[#allocation2 + $0x28] ss:$16 sps:$4 sm:$0xff]  }
  0x18   :  { %v2236_v17 = vld [vmem:[#allocation2 + $0x64] ss:$16 sps:$4 sm:$0xff]   ;;  %v2239_v18 = vld [vmem:[#allocation2 + $0x4c] ss:$16 sps:$4 sm:$0xff]   ;;  %v2241_v19 = vld [vmem:[#allocation2 + $0x60] ss:$16 sps:$4 sm:$0xff]  }
  0x19   :  { %1736 = vmatmul.mubr.msk.bf16.vlgmr.msra.gmra.mrb[0].mxu0 %vm117_vm0, %v1818_v3  ;;  %1740 = vmatmul.mubr.msk.bf16.vlgmr.msra.gmra.mrb[0].mxu1 %vm117_vm0, %v1818_v3  ;;  %v2244_v20 = vld [vmem:[#allocation2 + $0x48] ss:$16 sps:$4 sm:$0xff]   ;;  %v2248_v21 = vld [vmem:[#allocation2 + $0x84] ss:$16 sps:$4 sm:$0xff]   ;;  %v2252_v22 = vld [vmem:[#allocation2 + $0x6c] ss:$16 sps:$4 sm:$0xff]  }
  0x1a   :  { %474 = vmatpush1.bf16.msra.mxu0 %v2204_v7  ;;  %172 = vmatprep.mubr.bf16.mxu0 %v3171_v0  ;;  %v1844_v23 = vld [vmem:[%s3162_s0 + $0x10] sm:$0xff]   ;;  %v2263_v25 = vld [vmem:[#allocation2 + $0x68] ss:$16 sps:$4 sm:$0xff]   ;;  %v2269_v27 = vld [vmem:[#allocation2 + $0x8c] ss:$16 sps:$4 sm:$0xff]   ;;  %v63_v51 = vsub.s32 1, %v58_v48 }
  0x1b   :  { %475 = vmatprep.subr.bf16.mxu0 %v2206_v8  ;;  %515 = vmatpush1.bf16.msra.mxu1 %v2215_v11  ;;  %v2259_v24 = vld [vmem:[#allocation2 + $0x80] ss:$16 sps:$4 sm:$0xff]   ;;  %v2265_v26 = vld [vmem:[#allocation2 + $0xa4] ss:$16 sps:$4 sm:$0xff]   ;;  %v2277_v29 = vld [vmem:[#allocation2 + $0x88] ss:$16 sps:$4 sm:$0xff]  }
  0x1c   :  { %516 = vmatprep.subr.bf16.mxu1 %v2226_v14  ;;  %245 = vmatprep.mubr.bf16.mxu1 %v3171_v0  ;;  %v2275_v28 = vld [vmem:[#allocation2 + $0xa0] ss:$16 sps:$4 sm:$0xff]   ;;  %v2279_v30 = vld [vmem:[#allocation2 + $0xc4] ss:$16 sps:$4 sm:$0xff]   ;;  %v2283_v31 = vld [vmem:[#allocation2 + $0xac] ss:$16 sps:$4 sm:$0xff]  }
  0x1d   :  { %v1857_v32 = vld [vmem:[%s3162_s0 + $0x18] sm:$0xff]   ;;  %v2290_v33 = vld [vmem:[#allocation2 + $0xc0] ss:$16 sps:$4 sm:$0xff]   ;;  %v2298_v35 = vld [vmem:[#allocation2 + $0xe4] ss:$16 sps:$4 sm:$0xff]   ;;  %s2125_s0 = smov 64  }
  0x1e   :  { %476 = vmatpush1.bf16.msra.mxu0 %v2213_v10  ;;  %v2294_v34 = vld [vmem:[#allocation2 + $0xa8] ss:$16 sps:$4 sm:$0xff]   ;;  %v2300_v36 = vld [vmem:[#allocation2 + $0xcc] ss:$16 sps:$4 sm:$0xff]   ;;  %v2305_v37 = vld [vmem:[%s3168_s6] sm:$0xff]  ;;  %v67_v52 = vsub.s32 2, %v58_v48 }
  0x1f   :  { %477 = vmatprep.subr.bf16.mxu0 %v2223_v13  ;;  %517 = vmatpush1.bf16.msra.mxu1 %v2232_v16  ;;  %v2313_v38 = vld [vmem:[#allocation2 + $0xe0] ss:$16 sps:$4 sm:$0xff]   ;;  %v2315_v39 = vld [vmem:[#allocation2 + $0xc8] ss:$16 sps:$4 sm:$0xff]   ;;  %v2324_v41 = vld [vmem:[#allocation2 + $0xec] ss:$16 sps:$4 sm:$0xff]  }
  0x20   :  { %518 = vmatprep.subr.bf16.mxu1 %v2239_v18  ;;  %573 = vrot.lane.b32.xlu0 %v2305_v37, %s2125_s0  ;;  %v2320_v40 = vld [vmem:[%s3167_s5] sm:$0xff]  ;;  %v2332_v43 = vld [vmem:[#allocation2 + $0xe8] ss:$16 sps:$4 sm:$0xff]   ;;  %v71_v54 = vsub.s32 3, %v58_v48  ;;  %vm311_vm4 = vcmask 523264  }
  0x21   :  { %1737 = vmatmul.mubr.msk.bf16.gmra.mrb[4].mxu0 %vm117_vm0, %v1831_v12  ;;  %1741 = vmatmul.mubr.msk.bf16.gmra.mrb[4].mxu1 %vm117_vm0, %v1831_v12  ;;  %v312_v42 = vpack.c.bf16 %v2320_v40, %v2320_v40  ;;  %v2376_v44 = vld [vmem:[%s3163_s1] sm:$0xff] }
  0x22   :  { %478 = vmatpush1.bf16.msra.mxu0 %v2228_v15  ;;  %182 = vmatprep.mubr.bf16.mxu0 %v3171_v0  ;;  %vm607_vm1 = vcmp.gt.s32.totalorder %v2376_v44, 0  ;;  %vm608_vm2 = vcmp.gt.s32.totalorder %v2376_v44, 7  ;;  %v55_v50 = vld [vmem:[%s3166_s4] sm:$0xf]  ;;  %vm765_vm6 = vcmp.gt.s32.totalorder %v2376_v44, 1  ;;  %vm766_vm7 = vcmp.gt.s32.totalorder %v2376_v44, 6 }
  0x23   :  { %479 = vmatprep.subr.bf16.mxu0 %v2236_v17  ;;  %519 = vmatpush1.bf16.msra.mxu1 %v2244_v20  ;;  %v609_v45 = vsel %vm607_vm1, 1, %v3171_v0  ;;  %v620_v46 = vsel %vm608_vm2, 1, %v3171_v0  ;;  %v60_v55 = vrot.slane %v55_v50, %v59_v49  ;;  %v64_v57 = vrot.slane %v55_v50, %v63_v51 }
  0x24   :  { %520 = vmatprep.subr.bf16.mxu1 %v2252_v22  ;;  %255 = vmatprep.mubr.bf16.mxu1 %v3171_v0  ;;  %v68_v61 = vrot.slane %v55_v50, %v67_v52  ;;  %v72_v1 = vrot.slane %v55_v50, %v71_v54  ;;  %vm919_vm9 = vcmp.gt.s32.totalorder %v2376_v44, 2  ;;  %vm920_vm10 = vcmp.gt.s32.totalorder %v2376_v44, 5 }
  0x25   :  { %611 = vperm.xlu1 %1813, %v609_v45   ;;  %vm1073_vm13 = vcmp.gt.s32.totalorder %v2376_v44, 3  ;;  %vm1074_vm14 = vcmp.gt.s32.totalorder %v2376_v44, 4  ;;  %v2670_v44 = vld [vmem:[#allocation2] ss:$16 sps:$4 sm:$0xff]  }
  0x26   :  { %480 = vmatpush1.bf16.msra.mxu0 %v2241_v19 }
  0x27   :  { %481 = vmatprep.subr.bf16.mxu0 %v2248_v21  ;;  %521 = vmatpush1.bf16.msra.mxu1 %v2263_v25 }
  0x28   :  { %522 = vmatprep.subr.bf16.mxu1 %v2269_v27 }
  0x29   :  { %1738 = vmatmul.mubr.msk.bf16.gmra.mrb[8].mxu0 %vm117_vm0, %v1844_v23  ;;  %1742 = vmatmul.mubr.msk.bf16.gmra.mrb[8].mxu1 %vm117_vm0, %v1844_v23 }
  0x2a   :  { %482 = vmatpush1.bf16.msra.mxu0 %v2259_v24  ;;  %192 = vmatprep.mubr.bf16.mxu0 %v3171_v0 }
  0x2b   :  { %483 = vmatprep.subr.bf16.mxu0 %v2265_v26  ;;  %523 = vmatpush1.bf16.msra.mxu1 %v2277_v29 }
  0x2c   :  { %524 = vmatprep.subr.bf16.mxu1 %v2283_v31  ;;  %265 = vmatprep.mubr.bf16.mxu1 %v3171_v0 }
  0x2d   :  { %615 = vrot.lane.b32.xlu1 %v2320_v40, %s2125_s0 }
  0x2e   :  { %484 = vmatpush1.bf16.msra.mxu0 %v2275_v28 }
  0x2f   :  { %485 = vmatprep.subr.bf16.mxu0 %v2279_v30  ;;  %525 = vmatpush1.bf16.msra.mxu1 %v2294_v34 }
  0x30   :  { %526 = vmatprep.subr.bf16.mxu1 %v2300_v36 }
  0x31   :  { %1739 = vmatmul.mubr.msk.bf16.gmra.mrb[12].mxu0 %vm117_vm0, %v1857_v32  ;;  %1743 = vmatmul.mubr.msk.bf16.gmra.mrb[12].mxu1 %vm117_vm0, %v1857_v32 }
  0x32   :  { %486 = vmatpush1.bf16.msra.mxu0 %v2290_v33  ;;  %505 = vmatprep.mubr.bf16.mxu0 %v3171_v0 }
  0x33   :  { %487 = vmatprep.subr.bf16.mxu0 %v2298_v35  ;;  %527 = vmatpush1.bf16.msra.mxu1 %v2315_v39 }
  0x34   :  { %528 = vmatprep.subr.bf16.mxu1 %v2324_v41  ;;  %546 = vmatprep.mubr.bf16.mxu1 %v3171_v0 }
  0x35   :  { %622 = vperm.xlu1 %1813, %v620_v46  }
  0x36   :  { %488 = vmatpush1.bf16.msra.mxu0 %v2313_v38 }
  0x37   :  { %635 = vmatprep.subr.bf16.mxu0 %v2199_v5  ;;  %529 = vmatpush1.bf16.msra.mxu1 %v2332_v43 }
  0x38   :  { %676 = vmatprep.subr.bf16.mxu1 %v2210_v9 }
  0x39   :  { %506 = vmatmul.mubr.bf16.vlgmr.msra.gmra.mrb[16].mxu0 %v312_v42 }
  0x3a   :  { %636 = vmatpush1.bf16.msra.mxu0 %v2204_v7  ;;  %667 = vmatprep.mubr.bf16.mxu0 %v3171_v0 }
  0x3b   :  { %637 = vmatprep.subr.bf16.mxu0 %v2206_v8  ;;  %547 = vmatmul.mubr.bf16.vlgmr.msra.gmra.mrb[16].mxu1 %v312_v42 }
  0x3c   :  { %677 = vmatpush1.bf16.msra.mxu1 %v2215_v11  ;;  %708 = vmatprep.mubr.bf16.mxu1 %v3171_v0 }
  0x3d   :  { %678 = vmatprep.subr.bf16.mxu1 %v2226_v14 }
  0x3e   :  { %638 = vmatpush1.bf16.msra.mxu0 %v2213_v10 }
  0x3f   :  { %639 = vmatprep.subr.bf16.mxu0 %v2223_v13 }
  0x40   :  { %679 = vmatpush1.bf16.msra.mxu1 %v2232_v16 }
  0x41   :  { %680 = vmatprep.subr.bf16.mxu1 %v2239_v18 }
  0x42   :  { %640 = vmatpush1.bf16.msra.mxu0 %v2228_v15 }
  0x43   :  { %641 = vmatprep.subr.bf16.mxu0 %v2236_v17 }
  0x44   :  { %681 = vmatpush1.bf16.msra.mxu1 %v2244_v20 }
  0x45   :  { %682 = vmatprep.subr.bf16.mxu1 %v2252_v22 }
  0x46   :  { %642 = vmatpush1.bf16.msra.mxu0 %v2241_v19 }
  0x47   :  { %643 = vmatprep.subr.bf16.mxu0 %v2248_v21 }
  0x48   :  { %683 = vmatpush1.bf16.msra.mxu1 %v2263_v25 }
  0x49   :  { %684 = vmatprep.subr.bf16.mxu1 %v2269_v27 }
  0x4a   :  { %644 = vmatpush1.bf16.msra.mxu0 %v2259_v24 }
  0x4b   :  { %645 = vmatprep.subr.bf16.mxu0 %v2265_v26 }
  0x4c   :  { %685 = vmatpush1.bf16.msra.mxu1 %v2277_v29 }
  0x4d   :  { %686 = vmatprep.subr.bf16.mxu1 %v2283_v31 }
  0x4e   :  { %646 = vmatpush1.bf16.msra.mxu0 %v2275_v28 }
  0x4f   :  { %647 = vmatprep.subr.bf16.mxu0 %v2279_v30 }
  0x50   :  { %687 = vmatpush1.bf16.msra.mxu1 %v2294_v34 }
  0x51   :  { %688 = vmatprep.subr.bf16.mxu1 %v2300_v36 }
  0x52   :  { %648 = vmatpush1.bf16.msra.mxu0 %v2290_v33 }
  0x53   :  { %649 = vmatprep.subr.bf16.mxu0 %v2298_v35 }
  0x54   :  { %689 = vmatpush1.bf16.msra.mxu1 %v2315_v39 }
  0x55   :  { %690 = vmatprep.subr.bf16.mxu1 %v2324_v41 }
  0x56   :  { %650 = vmatpush1.bf16.msra.mxu0 %v2313_v38 }
  0x57   :  { %789 = vmatprep.subr.bf16.mxu0 %v2199_v5 }
  0x58   :  { %691 = vmatpush1.bf16.msra.mxu1 %v2332_v43 }
  0x59   :  { %830 = vmatprep.subr.bf16.mxu1 %v2210_v9 }
  0xec   :  { %v2387_v53 = vpop.f32.mrb[0].mxu0  ;;  %v237_v63 = vpop.f32.mrb[0].mxu1 }
  0xed   :  { %v2389_v56 = vpop.f32.mrb[1].mxu0  ;;  %v2395_v2 = vadd.f32 %v237_v63, %v68_v61  ;;  %v239_v3 = vpop.f32.mrb[1].mxu1 }
  0xee   :  { %v168_v58 = vpop.f32.mrb[2].mxu0  ;;  %v2397_v4 = vadd.f32 %v239_v3, %v72_v1  ;;  %v241_v6 = vpop.f32.mrb[2].mxu1 }
  0xef   :  { %v2391_v59 = vadd.f32 %v168_v58, %v60_v55  ;;  %v170_v60 = vpop.f32.mrb[3].mxu0  ;;  %3189 = vst [vmem:[#allocation5_spill] sm:$0xff] %v2395_v2  ;;  %v2399_v12 = vadd.f32 %v241_v6, %v68_v61  ;;  %v243_v23 = vpop.f32.mrb[3].mxu1 }
  0xf0   :  { %v2393_v62 = vadd.f32 %v170_v60, %v64_v57  ;;  %3190 = vst [vmem:[#allocation6_spill] sm:$0xff] %v2397_v4  ;;  %v2401_v42 = vadd.f32 %v243_v23, %v72_v1 }
  0xf1   :  { %3191 = vst [vmem:[#allocation7_spill] sm:$0xff] %v2399_v12 }
  0xf2   :  { %3192 = vst [vmem:[#allocation8_spill] sm:$0xff] %v2401_v42 }
  0xf4   :  { %v174_v32 = vpop.f32.mrb[4].mxu0  ;;  %v247_v52 = vpop.f32.mrb[4].mxu1 }
  0xf5   :  { %v2403_v45 = vadd.f32 %v174_v32, %v60_v55  ;;  %v176_v46 = vpop.f32.mrb[5].mxu0  ;;  %v2411_v54 = vadd.f32 %v247_v52, %v68_v61  ;;  %v249_v58 = vpop.f32.mrb[5].mxu1 }
  0xf6   :  { %v2405_v47 = vadd.f32 %v176_v46, %v64_v57  ;;  %v178_v48 = vpop.f32.mrb[6].mxu0  ;;  %v2413_v60 = vadd.f32 %v249_v58, %v72_v1  ;;  %v251_v63 = vpop.f32.mrb[6].mxu1 }
  0xf7   :  { %3193 = vst [vmem:[#allocation9_spill] sm:$0xff] %v2403_v45  ;;  %v2407_v49 = vadd.f32 %v178_v48, %v60_v55  ;;  %v180_v50 = vpop.f32.mrb[7].mxu0  ;;  %3197 = vst [vmem:[#allocation13_spill] sm:$0xff] %v2411_v54  ;;  %v2415_v3 = vadd.f32 %v251_v63, %v68_v61  ;;  %v253_v6 = vpop.f32.mrb[7].mxu1 }
  0xf8   :  { %3194 = vst [vmem:[#allocation10_spill] sm:$0xff] %v2405_v47  ;;  %v2409_v51 = vadd.f32 %v180_v50, %v64_v57  ;;  %3198 = vst [vmem:[#allocation14_spill] sm:$0xff] %v2413_v60  ;;  %v2417_v32 = vadd.f32 %v253_v6, %v72_v1 }
  0xf9   :  { %3195 = vst [vmem:[#allocation11_spill] sm:$0xff] %v2407_v49  ;;  %3199 = vst [vmem:[#allocation15_spill] sm:$0xff] %v2415_v3 }
  0xfa   :  { %3196 = vst [vmem:[#allocation12_spill] sm:$0xff] %v2409_v51  ;;  %3200 = vst [vmem:[#allocation16_spill] sm:$0xff] %v2417_v32 }
  0xfc   :  { %v184_v23 = vpop.f32.mrb[8].mxu0  ;;  %v257_v58 = vpop.f32.mrb[8].mxu1 }
  0xfd   :  { %v2419_v46 = vadd.f32 %v184_v23, %v60_v55  ;;  %v186_v48 = vpop.f32.mrb[9].mxu0  ;;  %v2427_v42 = vadd.f32 %v257_v58, %v68_v61  ;;  %v259_v63 = vpop.f32.mrb[9].mxu1 }
  0xfe   :  { %v2421_v0 = vadd.f32 %v186_v48, %v64_v57  ;;  %v188_v50 = vpop.f32.mrb[10].mxu0  ;;  %v2429_v12 = vadd.f32 %v259_v63, %v72_v1  ;;  %v261_v60 = vpop.f32.mrb[10].mxu1 }
  0xff   :  { %3201 = vst [vmem:[#allocation17_spill] sm:$0xff] %v2419_v46  ;;  %v2423_v4 = vadd.f32 %v188_v50, %v60_v55  ;;  %v190_v52 = vpop.f32.mrb[11].mxu0  ;;  %3205 = vst [vmem:[#allocation21_spill] sm:$0xff] %v2427_v42  ;;  %v2431_v6 = vadd.f32 %v261_v60, %v68_v61  ;;  %v263_v23 = vpop.f32.mrb[11].mxu1 }
 0x100   :  { %3202 = vst [vmem:[#allocation18_spill] sm:$0xff] %v2421_v0  ;;  %v2425_v2 = vadd.f32 %v190_v52, %v64_v57  ;;  %3206 = vst [vmem:[#allocation22_spill] sm:$0xff] %v2429_v12  ;;  %v2433_v32 = vadd.f32 %v263_v23, %v72_v1  ;;  %v165_v23 = vadd.f32 %v2387_v53, %v60_v55 }
 0x101   :  { %3203 = vst [vmem:[#allocation19_spill] sm:$0xff] %v2423_v4  ;;  %3207 = vst [vmem:[#allocation23_spill] sm:$0xff] %v2431_v6 }
 0x102   :  { %3204 = vst [vmem:[#allocation20_spill] sm:$0xff] %v2425_v2  ;;  %3208 = vst [vmem:[#allocation24_spill] sm:$0xff] %v2433_v32 }
 0x104   :  { %v194_v54 = vpop.f32.mrb[12].mxu0  ;;  %v267_v63 = vpop.f32.mrb[12].mxu1 }
 0x105   :  { %v2435_v48 = vadd.f32 %v194_v54, %v60_v55  ;;  %v196_v50 = vpop.f32.mrb[13].mxu0  ;;  %v2443_v3 = vadd.f32 %v267_v63, %v68_v61  ;;  %v269_v60 = vpop.f32.mrb[13].mxu1 }
 0x106   :  { %v2437_v4 = vadd.f32 %v196_v50, %v64_v57  ;;  %v198_v52 = vpop.f32.mrb[14].mxu0  ;;  %v2445_v46 = vadd.f32 %v269_v60, %v72_v1  ;;  %v271_v12 = vpop.f32.mrb[14].mxu1 }
 0x107   :  { %3209 = vst [vmem:[#allocation25_spill] sm:$0xff] %v2435_v48  ;;  %v2439_v2 = vadd.f32 %v198_v52, %v60_v55  ;;  %v200_v58 = vpop.f32.mrb[15].mxu0  ;;  %v273_v54 = vpop.f32.mrb[15].mxu1  ;;  %v167_v48 = vadd.f32 %v2389_v56, %v64_v57  ;;  %v272_v52 = vadd.f32 %v271_v12, %v68_v61 }
 0x108   :  { %3210 = vst [vmem:[#allocation26_spill] sm:$0xff] %v2437_v4  ;;  %v2441_v0 = vadd.f32 %v200_v58, %v64_v57  ;;  %v274_v58 = vadd.f32 %v273_v54, %v72_v1 }
 0x109   :  { %3211 = vst [vmem:[#allocation27_spill] sm:$0xff] %v2439_v2 }
 0x10a   :  { %3212 = vst [vmem:[#allocation28_spill] sm:$0xff] %v2441_v0 }
 0x10c   :  { %v507_v50 = vpop.f32.mrb[16].mxu0 }
 0x10d   :  { %v555_v4 = vadd.f32 %v507_v50, %v165_v23  ;;  %v509_v51 = vpop.f32.mrb[17].mxu0 }
 0x10e   :  { %v556_v2 = vadd.f32 %v509_v51, %v167_v48  ;;  %v511_v42 = vpop.f32.mrb[18].mxu0  ;;  %v548_v63 = vpop.f32.mrb[16].mxu1 }
 0x10f   :  { %v1776_v0 = vmul.f32 -1.442695, %v555_v4  ;;  %v512_v49 = vpop.f32.mrb[19].mxu0  ;;  %v557_v32 = vadd.f32 %v548_v63, %v272_v52  ;;  %v550_v60 = vpop.f32.mrb[17].mxu1 }
 0x110   :  { %v558_v47 = vadd.f32 %v550_v60, %v274_v58  ;;  %v552_v6 = vpop.f32.mrb[18].mxu1  ;;  %v1777_v51 = vmul.f32 -1.442695, %v556_v2 }
 0x111   :  { %1873 = vpow2.f32 %v1776_v0  ;;  %v1778_v45 = vmul.f32 -1.442695, %v557_v32  ;;  %v553_v53 = vpop.f32.mrb[19].mxu1  ;;  %v2451_v6 = vpop.permute.xlu0 %573 }
 0x113   :  { %1875 = vpow2.f32 %v1778_v45  ;;  %v1779_v45 = vmul.f32 -1.442695, %v558_v47 }
 0x114   :  { %1877 = vtanh.f32 %v556_v2 }
 0x11b   :  { %v1874_v55 = vpop.eup %1873 }
 0x11c   :  { %v562_v56 = vadd.f32 1.0, %v1874_v55 }
 0x11d   :  { %v1876_v57 = vpop.eup %1875 }
 0x11e   :  { %1879 = vrcp.f32 %v562_v56  ;;  %v588_v61 = vadd.f32 1.0, %v1876_v57  ;;  %v1878_v1 = vpop.eup %1877 }
 0x11f   :  { %1881 = vtanh.f32 %v558_v47  ;;  %v2461_v47 = vpop.permute.xlu1 %611 }
 0x120   :  { %1883 = vrcp.f32 %v588_v61  ;;  %3213 = vst [vmem:[#allocation29_spill] sm:$0xff] %v2461_v47  ;;  %vm613_vm3 = vcmp.eq.s32.totalorder %v2461_v47, 1 }
 0x121   :  { %1885 = vpow2.f32 %v1777_v51 }
 0x122   :  { %1887 = vpow2.f32 %v1779_v45 }
 0x123   :  { %v616_v57 = vpop.permute.xlu1 %615 }
 0x128   :  { %v1880_v4 = vpop.eup %1879 }
 0x129   :  { %v577_v12 = vmul.f32 %v1880_v4, %v1878_v1  ;;  %v1882_v42 = vpop.eup %1881  ;;  %v576_v54 = vmul.f32 %v1880_v4, %v2451_v6 }
 0x12a   :  { %v1884_v0 = vpop.eup %1883 }
 0x12b   :  { %579 = vrot.lane.b32.xlu0 %v577_v12, %s2125_s0  ;;  %v599_v49 = vmul.f32 %v1884_v0, %v1882_v42  ;;  %v1886_v32 = vpop.eup %1885  ;;  %v598_v63 = vmul.f32 %v1884_v0, %v2305_v37  ;;  %v2475_v42 = vpop.permute.xlu1 %622 }
 0x12c   :  { %v569_v48 = vadd.f32 1.0, %v1886_v32  ;;  %v1888_v23 = vpop.eup %1887  ;;  %3216 = vst [vmem:[#allocation32_spill] sm:$0xff] %v2475_v42  ;;  %vm624_vm5 = vcmp.eq.s32.totalorder %v2475_v42, 1  ;;  %v3217_v32 = vmov 0  }
 0x12d   :  { %v595_v58 = vadd.f32 1.0, %v1888_v23 }
 0x12e   :  { %1889 = vrcp.f32 %v569_v48 }
 0x12f   :  { %601 = vrot.lane.b32.xlu0 %v599_v49, %s2125_s0 }
 0x138   :  { %v1890_v53 = vpop.eup %1889 }
 0x19d   :  { %v580_v50 = vpop.permute.xlu0 %579 }
 0x19e   :  { %v2454_v52 = vadd.f32 %v580_v50, %v576_v54 }
 0x1a0   :  { %1891 = vtanh.f32 %v2454_v52 }
 0x1a1   :  { %v602_v2 = vpop.permute.xlu0 %601  ;;  %1893 = vrcp.f32 %v595_v58 }
 0x1a2   :  { %v2458_v60 = vadd.f32 %v602_v2, %v598_v63 }
 0x1a4   :  { %1895 = vtanh.f32 %v2458_v60 }
 0x1aa   :  { %v1892_v55 = vpop.eup %1891 }
 0x1ab   :  { %v2463_v56 = vmul.f32 %v1892_v55, %v1890_v53  ;;  %v1894_v61 = vpop.eup %1893 }
 0x1ad   :  { %3214 = vst [vmem:[#allocation30_spill] sm:$0xff] %v2463_v56  ;;  %v2469_v1 = vsel %vm613_vm3, %v2463_v56, %v616_v57 }
 0x1ae   :  { %v1896_v4 = vpop.eup %1895  ;;  %630 = vrot.lane.b32.xlu0 %v2469_v1, %s2125_s0 }
 0x1af   :  { %v2473_v12 = vmul.f32 %v1896_v4, %v1894_v61 }
 0x1b1   :  { %3215 = vst [vmem:[#allocation31_spill] sm:$0xff] %v2473_v12  ;;  %v2482_v0 = vsel %vm624_vm5, %v2473_v12, %v2320_v40  ;;  %v767_v40 = vsel %vm765_vm6, 1, %v3217_v32 }
 0x1b2   :  { %769 = vperm.xlu0 %1814, %v767_v40  }
 0x220   :  { %v631_v49 = vpop.permute.xlu0 %630 }
 0x221   :  { %v633_v51 = vsel %vm311_vm4, %v631_v49, %v2482_v0 }
 0x222   :  { %v634_v45 = vpack.c.bf16 %v633_v51, %v633_v51 }
 0x224   :  { %668 = vmatmul.mubr.bf16.vlgmr.msra.gmra.mrb[20].mxu0 %v634_v45  ;;  %709 = vmatmul.mubr.bf16.vlgmr.msra.gmra.mrb[20].mxu1 %v634_v45 }
 0x225   :  { %790 = vmatpush1.bf16.msra.mxu0 %v2204_v7  ;;  %831 = vmatpush1.bf16.msra.mxu1 %v2215_v11 }
 0x226   :  { %791 = vmatprep.subr.bf16.mxu0 %v2206_v8  ;;  %832 = vmatprep.subr.bf16.mxu1 %v2226_v14 }
 0x227   :  { %821 = vmatprep.mubr.bf16.mxu0 %v3217_v32  ;;  %862 = vmatprep.mubr.bf16.mxu1 %v3217_v32 }
 0x229   :  { %792 = vmatpush1.bf16.msra.mxu0 %v2213_v10  ;;  %833 = vmatpush1.bf16.msra.mxu1 %v2232_v16 }
 0x22a   :  { %793 = vmatprep.subr.bf16.mxu0 %v2223_v13  ;;  %834 = vmatprep.subr.bf16.mxu1 %v2239_v18 }
 0x22d   :  { %794 = vmatpush1.bf16.msra.mxu0 %v2228_v15  ;;  %835 = vmatpush1.bf16.msra.mxu1 %v2244_v20 }
 0x22e   :  { %795 = vmatprep.subr.bf16.mxu0 %v2236_v17  ;;  %836 = vmatprep.subr.bf16.mxu1 %v2252_v22 }
 0x231   :  { %796 = vmatpush1.bf16.msra.mxu0 %v2241_v19  ;;  %837 = vmatpush1.bf16.msra.mxu1 %v2263_v25 }
 0x232   :  { %797 = vmatprep.subr.bf16.mxu0 %v2248_v21  ;;  %838 = vmatprep.subr.bf16.mxu1 %v2269_v27 }
 0x235   :  { %798 = vmatpush1.bf16.msra.mxu0 %v2259_v24  ;;  %839 = vmatpush1.bf16.msra.mxu1 %v2277_v29 }
 0x236   :  { %799 = vmatprep.subr.bf16.mxu0 %v2265_v26  ;;  %840 = vmatprep.subr.bf16.mxu1 %v2283_v31 }
 0x239   :  { %800 = vmatpush1.bf16.msra.mxu0 %v2275_v28  ;;  %841 = vmatpush1.bf16.msra.mxu1 %v2294_v34 }
 0x23a   :  { %801 = vmatprep.subr.bf16.mxu0 %v2279_v30  ;;  %842 = vmatprep.subr.bf16.mxu1 %v2300_v36 }
 0x23d   :  { %802 = vmatpush1.bf16.msra.mxu0 %v2290_v33  ;;  %843 = vmatpush1.bf16.msra.mxu1 %v2315_v39 }
 0x23e   :  { %803 = vmatprep.subr.bf16.mxu0 %v2298_v35  ;;  %844 = vmatprep.subr.bf16.mxu1 %v2324_v41 }
 0x241   :  { %804 = vmatpush1.bf16.msra.mxu0 %v2313_v38  ;;  %845 = vmatpush1.bf16.msra.mxu1 %v2332_v43 }
 0x242   :  { %943 = vmatprep.subr.bf16.mxu0 %v2199_v5  ;;  %984 = vmatprep.subr.bf16.mxu1 %v2210_v9 }
 0x2f7   :  { %v669_v48 = vpop.f32.mrb[20].mxu0  ;;  %v710_v23 = vpop.f32.mrb[20].mxu1 }
 0x2f8   :  { %v717_v54 = vadd.f32 %v669_v48, %v2391_v59  ;;  %v719_v50 = vadd.f32 %v710_v23, %v2443_v3  ;;  %v671_v58 = vpop.f32.mrb[21].mxu0  ;;  %v712_v63 = vpop.f32.mrb[21].mxu1 }
 0x2f9   :  { %v718_v2 = vadd.f32 %v671_v58, %v2393_v62  ;;  %v720_v53 = vadd.f32 %v712_v63, %v2445_v46  ;;  %v673_v55 = vpop.f32.mrb[22].mxu0  ;;  %v714_v57 = vpop.f32.mrb[22].mxu1 }
 0x2fa   :  { %v1780_v61 = vmul.f32 -1.442695, %v717_v54  ;;  %v1782_v4 = vmul.f32 -1.442695, %v719_v50  ;;  %v674_v49 = vpop.f32.mrb[23].mxu0  ;;  %v715_v51 = vpop.f32.mrb[23].mxu1  ;;  %v2534_v57 = vsel %vm613_vm3, %v2454_v52, %v2451_v6 }
 0x2fb   :  { %v774_v54 = vsel %vm766_vm7, 1, %v3217_v32  ;;  %v1781_v50 = vmul.f32 -1.442695, %v718_v2  ;;  %v1783_v63 = vmul.f32 -1.442695, %v720_v53 }
 0x2fc   :  { %1897 = vpow2.f32 %v1780_v61 }
 0x2fd   :  { %1899 = vpow2.f32 %v1782_v4 }
 0x2fe   :  { %1901 = vtanh.f32 %v718_v2  ;;  %v2543_v2 = vsel %vm624_vm5, %v2458_v60, %v2305_v37 }
 0x2ff   :  { %1903 = vtanh.f32 %v720_v53 }
 0x306   :  { %v1898_v45 = vpop.eup %1897 }
 0x307   :  { %v1900_v40 = vpop.eup %1899  ;;  %v724_v12 = vadd.f32 1.0, %v1898_v45 }
 0x308   :  { %v746_v59 = vadd.f32 1.0, %v1900_v40  ;;  %v1902_v3 = vpop.eup %1901 }
 0x309   :  { %1905 = vrcp.f32 %v724_v12  ;;  %v1904_v62 = vpop.eup %1903 }
 0x30a   :  { %1907 = vrcp.f32 %v746_v59  ;;  %v2550_v59 = vpop.permute.xlu0 %769 }
 0x30b   :  { %1909 = vpow2.f32 %v1781_v50  ;;  %3218 = vst [vmem:[#allocation33_spill] sm:$0xff] %v2550_v59  ;;  %vm771_vm8 = vcmp.eq.s32.totalorder %v2550_v59, 1 }
 0x30c   :  { %1911 = vpow2.f32 %v1783_v63 }
 0x313   :  { %v1906_v48 = vpop.eup %1905 }
 0x314   :  { %v1908_v46 = vpop.eup %1907  ;;  %v735_v23 = vmul.f32 %v1906_v48, %v1902_v3  ;;  %v734_v4 = vmul.f32 %v1906_v48, %v2534_v57 }
 0x315   :  { %v757_v58 = vmul.f32 %v1908_v46, %v1904_v62  ;;  %v1910_v12 = vpop.eup %1909  ;;  %v756_v53 = vmul.f32 %v1908_v46, %v2543_v2  ;;  %v921_v46 = vsel %vm919_vm9, 1, %v3217_v32 }
 0x316   :  { %737 = vrot.lane.b32.xlu1 %v735_v23, %s2125_s0  ;;  %v731_v55 = vadd.f32 1.0, %v1910_v12  ;;  %v1912_v61 = vpop.eup %1911 }
 0x317   :  { %v753_v45 = vadd.f32 1.0, %v1912_v61 }
 0x318   :  { %1913 = vrcp.f32 %v731_v55 }
 0x31a   :  { %759 = vrot.lane.b32.xlu1 %v757_v58, %s2125_s0  ;;  %v928_v58 = vsel %vm920_vm10, 1, %v3217_v32 }
 0x31e   :  { %776 = vperm.xlu1 %1813, %v774_v54  }
 0x322   :  { %v1914_v40 = vpop.eup %1913 }
 0x388   :  { %v738_v49 = vpop.permute.xlu1 %737 }
 0x389   :  { %v2537_v51 = vadd.f32 %v738_v49, %v734_v4 }
 0x38b   :  { %1915 = vtanh.f32 %v2537_v51 }
 0x38c   :  { %v760_v6 = vpop.permute.xlu1 %759  ;;  %1917 = vrcp.f32 %v753_v45 }
 0x38d   :  { %v2547_v52 = vadd.f32 %v760_v6, %v756_v53 }
 0x38f   :  { %1919 = vtanh.f32 %v2547_v52 }
 0x395   :  { %v1916_v3 = vpop.eup %1915 }
 0x396   :  { %v2552_v62 = vmul.f32 %v1916_v3, %v1914_v40  ;;  %v1918_v37 = vpop.eup %1917 }
 0x398   :  { %3219 = vst [vmem:[#allocation34_spill] sm:$0xff] %v2552_v62  ;;  %v2560_v60 = vsel %vm771_vm8, %v2552_v62, %v2469_v1 }
 0x399   :  { %v1920_v48 = vpop.eup %1919  ;;  %784 = vrot.lane.b32.xlu0 %v2560_v60, %s2125_s0 }
 0x39a   :  { %v2565_v23 = vmul.f32 %v1920_v48, %v1918_v37 }
 0x39c   :  { %3220 = vst [vmem:[#allocation35_spill] sm:$0xff] %v2565_v23 }
 0x39d   :  { %923 = vperm.xlu0 %1814, %v921_v46   ;;  %v2569_v54 = vpop.permute.xlu1 %776 }
 0x39e   :  { %3221 = vst [vmem:[#allocation36_spill] sm:$0xff] %v2569_v54  ;;  %vm778_vm11 = vcmp.eq.s32.totalorder %v2569_v54, 1 }
 0x39f   :  { %v2576_v1 = vsel %vm778_vm11, %v2565_v23, %v2482_v0  ;;  %v3237_v23 = vld [vmem:[#allocation16_spill] sm:$0xff] }
 0x3a1   :  { %930 = vperm.xlu0 %1814, %v928_v58  }
 0x40b   :  { %v785_v50 = vpop.permute.xlu0 %784 }
 0x40c   :  { %v787_v63 = vsel %vm311_vm4, %v785_v50, %v2576_v1 }
 0x40d   :  { %v788_v12 = vpack.c.bf16 %v787_v63, %v787_v63 }
 0x40f   :  { %822 = vmatmul.mubr.bf16.vlgmr.msra.gmra.mrb[24].mxu0 %v788_v12  ;;  %863 = vmatmul.mubr.bf16.vlgmr.msra.gmra.mrb[24].mxu1 %v788_v12 }
 0x410   :  { %944 = vmatpush1.bf16.msra.mxu0 %v2204_v7  ;;  %985 = vmatpush1.bf16.msra.mxu1 %v2215_v11 }
 0x411   :  { %945 = vmatprep.subr.bf16.mxu0 %v2206_v8  ;;  %986 = vmatprep.subr.bf16.mxu1 %v2226_v14 }
 0x412   :  { %975 = vmatprep.mubr.bf16.mxu0 %v3217_v32  ;;  %1016 = vmatprep.mubr.bf16.mxu1 %v3217_v32 }
 0x414   :  { %946 = vmatpush1.bf16.msra.mxu0 %v2213_v10  ;;  %987 = vmatpush1.bf16.msra.mxu1 %v2232_v16  ;;  %v3222_v10 = vld [vmem:[#allocation9_spill] sm:$0xff] }
 0x415   :  { %947 = vmatprep.subr.bf16.mxu0 %v2223_v13  ;;  %988 = vmatprep.subr.bf16.mxu1 %v2239_v18  ;;  %v3223_v13 = vld [vmem:[#allocation23_spill] sm:$0xff] }
 0x418   :  { %948 = vmatpush1.bf16.msra.mxu0 %v2228_v15  ;;  %989 = vmatpush1.bf16.msra.mxu1 %v2244_v20 }
 0x419   :  { %949 = vmatprep.subr.bf16.mxu0 %v2236_v17  ;;  %990 = vmatprep.subr.bf16.mxu1 %v2252_v22  ;;  %v3224_v17 = vld [vmem:[#allocation10_spill] sm:$0xff] }
 0x41c   :  { %950 = vmatpush1.bf16.msra.mxu0 %v2241_v19  ;;  %991 = vmatpush1.bf16.msra.mxu1 %v2263_v25  ;;  %v3225_v19 = vld [vmem:[#allocation24_spill] sm:$0xff] }
 0x41d   :  { %951 = vmatprep.subr.bf16.mxu0 %v2248_v21  ;;  %992 = vmatprep.subr.bf16.mxu1 %v2269_v27 }
 0x420   :  { %952 = vmatpush1.bf16.msra.mxu0 %v2259_v24  ;;  %993 = vmatpush1.bf16.msra.mxu1 %v2277_v29 }
 0x421   :  { %953 = vmatprep.subr.bf16.mxu0 %v2265_v26  ;;  %994 = vmatprep.subr.bf16.mxu1 %v2283_v31 }
 0x424   :  { %954 = vmatpush1.bf16.msra.mxu0 %v2275_v28  ;;  %995 = vmatpush1.bf16.msra.mxu1 %v2294_v34 }
 0x425   :  { %955 = vmatprep.subr.bf16.mxu0 %v2279_v30  ;;  %996 = vmatprep.subr.bf16.mxu1 %v2300_v36 }
 0x428   :  { %956 = vmatpush1.bf16.msra.mxu0 %v2290_v33  ;;  %997 = vmatpush1.bf16.msra.mxu1 %v2315_v39 }
 0x429   :  { %957 = vmatprep.subr.bf16.mxu0 %v2298_v35  ;;  %998 = vmatprep.subr.bf16.mxu1 %v2324_v41 }
 0x42c   :  { %958 = vmatpush1.bf16.msra.mxu0 %v2313_v38  ;;  %999 = vmatpush1.bf16.msra.mxu1 %v2332_v43 }
 0x42d   :  { %1097 = vmatprep.subr.bf16.mxu0 %v2199_v5  ;;  %1138 = vmatprep.subr.bf16.mxu1 %v2210_v9 }
 0x4e2   :  { %v823_v7 = vpop.f32.mrb[24].mxu0  ;;  %v864_v8 = vpop.f32.mrb[24].mxu1 }
 0x4e3   :  { %v871_v11 = vadd.f32 %v823_v7, %v3222_v10  ;;  %v873_v14 = vadd.f32 %v864_v8, %v3223_v13  ;;  %v825_v15 = vpop.f32.mrb[25].mxu0  ;;  %v866_v16 = vpop.f32.mrb[25].mxu1  ;;  %v2624_v8 = vsel %vm771_vm8, %v2537_v51, %v2534_v57 }
 0x4e4   :  { %v872_v18 = vadd.f32 %v825_v15, %v3224_v17  ;;  %v874_v20 = vadd.f32 %v866_v16, %v3225_v19  ;;  %v827_v0 = vpop.f32.mrb[26].mxu0  ;;  %v868_v55 = vpop.f32.mrb[26].mxu1  ;;  %v2633_v16 = vsel %vm778_vm11, %v2547_v52, %v2543_v2 }
 0x4e5   :  { %v1784_v61 = vmul.f32 -1.442695, %v871_v11  ;;  %v1786_v4 = vmul.f32 -1.442695, %v873_v14  ;;  %v828_v49 = vpop.f32.mrb[27].mxu0  ;;  %v869_v5 = vpop.f32.mrb[27].mxu1 }
 0x4e6   :  { %v1785_v50 = vmul.f32 -1.442695, %v872_v18  ;;  %v1787_v63 = vmul.f32 -1.442695, %v874_v20  ;;  %v2640_v19 = vpop.permute.xlu0 %923  ;;  %v1082_v49 = vsel %vm1074_vm14, 1, %v3217_v32 }
 0x4e7   :  { %1921 = vpow2.f32 %v1784_v61  ;;  %vm925_vm12 = vcmp.eq.s32.totalorder %v2640_v19, 1  ;;  %v1075_v61 = vsel %vm1073_vm13, 1, %v3217_v32 }
 0x4e8   :  { %1923 = vpow2.f32 %v1786_v4 }
 0x4e9   :  { %1925 = vtanh.f32 %v872_v18 }
 0x4ea   :  { %1927 = vtanh.f32 %v874_v20  ;;  %v2659_v5 = vpop.permute.xlu0 %930 }
 0x4eb   :  { %vm932_vm15 = vcmp.eq.s32.totalorder %v2659_v5, 1 }
 0x4f1   :  { %v1922_v9 = vpop.eup %1921 }
 0x4f2   :  { %v1924_v45 = vpop.eup %1923  ;;  %v878_v53 = vadd.f32 1.0, %v1922_v9 }
 0x4f3   :  { %v900_v6 = vadd.f32 1.0, %v1924_v45  ;;  %v1926_v40 = vpop.eup %1925 }
 0x4f4   :  { %1929 = vrcp.f32 %v878_v53  ;;  %v1928_v3 = vpop.eup %1927 }
 0x4f5   :  { %1931 = vrcp.f32 %v900_v6  ;;  %v2673_v6 = vld [vmem:[#allocation2 + $0x8] ss:$16 sps:$4 sm:$0xff]  }
 0x4f6   :  { %1933 = vpow2.f32 %v1785_v50  ;;  %v2699_v50 = vld [vmem:[#allocation2 + $0x48] ss:$16 sps:$4 sm:$0xff]  }
 0x4f7   :  { %1935 = vpow2.f32 %v1787_v63  ;;  %v2702_v63 = vld [vmem:[#allocation2 + $0x64] ss:$16 sps:$4 sm:$0xff]  }
 0x4fe   :  { %v1930_v37 = vpop.eup %1929 }
 0x4ff   :  { %v1932_v48 = vpop.eup %1931  ;;  %v889_v46 = vmul.f32 %v1930_v37, %v1926_v40  ;;  %v888_v11 = vmul.f32 %v1930_v37, %v2624_v8  ;;  %v2676_v40 = vld [vmem:[#allocation2 + $0x24] ss:$16 sps:$4 sm:$0xff]   ;;  %v2687_v37 = vld [vmem:[#allocation2 + $0x28] ss:$16 sps:$4 sm:$0xff]  }
 0x500   :  { %v911_v58 = vmul.f32 %v1932_v48, %v1928_v3  ;;  %v1934_v12 = vpop.eup %1933  ;;  %v910_v17 = vmul.f32 %v1932_v48, %v2633_v16  ;;  %v2684_v3 = vld [vmem:[#allocation2 + $0x20] ss:$16 sps:$4 sm:$0xff]   ;;  %v2690_v48 = vld [vmem:[#allocation2 + $0x44] ss:$16 sps:$4 sm:$0xff]  }
 0x501   :  { %891 = vrot.lane.b32.xlu1 %v889_v46, %s2125_s0  ;;  %v885_v7 = vadd.f32 1.0, %v1934_v12  ;;  %v1936_v10 = vpop.eup %1935  ;;  %v2693_v46 = vld [vmem:[#allocation2 + $0x4c] ss:$16 sps:$4 sm:$0xff]   ;;  %v2706_v12 = vld [vmem:[#allocation2 + $0x60] ss:$16 sps:$4 sm:$0xff]  }
 0x502   :  { %v907_v15 = vadd.f32 1.0, %v1936_v10 }
 0x503   :  { %1937 = vrcp.f32 %v885_v7 }
 0x505   :  { %913 = vrot.lane.b32.xlu1 %v911_v58, %s2125_s0  ;;  %v2696_v58 = vld [vmem:[#allocation2 + $0x40] ss:$16 sps:$4 sm:$0xff]  }
 0x50d   :  { %v1938_v18 = vpop.eup %1937 }
 0x573   :  { %v892_v13 = vpop.permute.xlu1 %891 }
 0x574   :  { %v2627_v14 = vadd.f32 %v892_v13, %v888_v11 }
 0x576   :  { %1939 = vtanh.f32 %v2627_v14 }
 0x577   :  { %v914_v57 = vpop.permute.xlu1 %913  ;;  %1941 = vrcp.f32 %v907_v15 }
 0x578   :  { %v2637_v51 = vadd.f32 %v914_v57, %v910_v17 }
 0x57a   :  { %1943 = vtanh.f32 %v2637_v51 }
 0x580   :  { %v1940_v20 = vpop.eup %1939 }
 0x581   :  { %v2642_v0 = vmul.f32 %v1940_v20, %v1938_v18  ;;  %v1942_v2 = vpop.eup %1941 }
 0x583   :  { %3226 = vst [vmem:[#allocation9_spill] sm:$0xff] %v2642_v0  ;;  %v2650_v52 = vsel %vm925_vm12, %v2642_v0, %v2560_v60 }
 0x584   :  { %v1944_v55 = vpop.eup %1943  ;;  %938 = vrot.lane.b32.xlu1 %v2650_v52, %s2125_s0 }
 0x585   :  { %v2655_v4 = vmul.f32 %v1944_v55, %v1942_v2 }
 0x587   :  { %3227 = vst [vmem:[#allocation23_spill] sm:$0xff] %v2655_v4  ;;  %v2666_v9 = vsel %vm932_vm15, %v2655_v4, %v2576_v1  ;;  %v2679_v1 = vld [vmem:[#allocation2 + $0x2c] ss:$16 sps:$4 sm:$0xff]  }
 0x588   :  { %1077 = vperm.xlu1 %1813, %v1075_v61  }
 0x58c   :  { %1084 = vperm.xlu1 %1813, %v1082_v49  }
 0x5f6   :  { %v939_v60 = vpop.permute.xlu1 %938 }
 0x5f7   :  { %v941_v45 = vsel %vm311_vm4, %v939_v60, %v2666_v9 }
 0x5f8   :  { %v942_v53 = vpack.c.bf16 %v941_v45, %v941_v45 }
 0x5fa   :  { %976 = vmatmul.mubr.bf16.vlgmr.msra.gmra.mrb[28].mxu0 %v942_v53  ;;  %1017 = vmatmul.mubr.bf16.vlgmr.msra.gmra.mrb[28].mxu1 %v942_v53 }
 0x5fb   :  { %1098 = vmatpush1.bf16.msra.mxu0 %v2670_v44  ;;  %1139 = vmatpush1.bf16.msra.mxu1 %v2673_v6 }
 0x5fc   :  { %1099 = vmatprep.subr.bf16.mxu0 %v2676_v40  ;;  %1140 = vmatprep.subr.bf16.mxu1 %v2679_v1 }
 0x5fd   :  { %1129 = vmatprep.mubr.bf16.mxu0 %v3217_v32  ;;  %1170 = vmatprep.mubr.bf16.mxu1 %v3217_v32 }
 0x5ff   :  { %1100 = vmatpush1.bf16.msra.mxu0 %v2684_v3  ;;  %1141 = vmatpush1.bf16.msra.mxu1 %v2687_v37 }
 0x600   :  { %1101 = vmatprep.subr.bf16.mxu0 %v2690_v48  ;;  %1142 = vmatprep.subr.bf16.mxu1 %v2693_v46 }
 0x603   :  { %1102 = vmatpush1.bf16.msra.mxu0 %v2696_v58  ;;  %1143 = vmatpush1.bf16.msra.mxu1 %v2699_v50 }
 0x604   :  { %1103 = vmatprep.subr.bf16.mxu0 %v2702_v63  ;;  %1144 = vmatprep.subr.bf16.mxu1 %v2252_v22  ;;  %v2729_v22 = vld [vmem:[#allocation2 + $0xc] ss:$16 sps:$4 sm:$0xff]  }
 0x607   :  { %1104 = vmatpush1.bf16.msra.mxu0 %v2706_v12  ;;  %1145 = vmatpush1.bf16.msra.mxu1 %v2263_v25 }
 0x608   :  { %1105 = vmatprep.subr.bf16.mxu0 %v2248_v21  ;;  %1146 = vmatprep.subr.bf16.mxu1 %v2269_v27  ;;  %v2726_v21 = vld [vmem:[#allocation2 + $0x4] ss:$16 sps:$4 sm:$0xff]  }
 0x60b   :  { %1106 = vmatpush1.bf16.msra.mxu0 %v2259_v24  ;;  %1147 = vmatpush1.bf16.msra.mxu1 %v2277_v29 }
 0x60c   :  { %1107 = vmatprep.subr.bf16.mxu0 %v2265_v26  ;;  %1148 = vmatprep.subr.bf16.mxu1 %v2283_v31  ;;  %v3228_v26 = vld [vmem:[#allocation11_spill] sm:$0xff] }
 0x60f   :  { %1108 = vmatpush1.bf16.msra.mxu0 %v2275_v28  ;;  %1149 = vmatpush1.bf16.msra.mxu1 %v2294_v34  ;;  %v3229_v28 = vld [vmem:[#allocation21_spill] sm:$0xff] }
 0x610   :  { %1109 = vmatprep.subr.bf16.mxu0 %v2279_v30  ;;  %1150 = vmatprep.subr.bf16.mxu1 %v2300_v36 }
 0x613   :  { %1110 = vmatpush1.bf16.msra.mxu0 %v2290_v33  ;;  %1151 = vmatpush1.bf16.msra.mxu1 %v2315_v39  ;;  %v3230_v33 = vld [vmem:[#allocation12_spill] sm:$0xff] }
 0x614   :  { %1111 = vmatprep.subr.bf16.mxu0 %v2298_v35  ;;  %1152 = vmatprep.subr.bf16.mxu1 %v2324_v41  ;;  %v3231_v35 = vld [vmem:[#allocation22_spill] sm:$0xff] }
 0x617   :  { %1112 = vmatpush1.bf16.msra.mxu0 %v2313_v38  ;;  %1153 = vmatpush1.bf16.msra.mxu1 %v2332_v43 }
 0x618   :  { %1239 = vmatprep.subr.bf16.mxu0 %v2726_v21  ;;  %1280 = vmatprep.subr.bf16.mxu1 %v2729_v22 }
 0x6cd   :  { %v977_v24 = vpop.f32.mrb[28].mxu0  ;;  %v1018_v25 = vpop.f32.mrb[28].mxu1 }
 0x6ce   :  { %v1025_v27 = vadd.f32 %v977_v24, %v3228_v26  ;;  %v1027_v29 = vadd.f32 %v1018_v25, %v3229_v28  ;;  %v979_v30 = vpop.f32.mrb[29].mxu0  ;;  %v1020_v31 = vpop.f32.mrb[29].mxu1  ;;  %v2742_v24 = vsel %vm925_vm12, %v2627_v14, %v2624_v8 }
 0x6cf   :  { %v1026_v34 = vadd.f32 %v979_v30, %v3230_v33  ;;  %v1028_v36 = vadd.f32 %v1020_v31, %v3231_v35  ;;  %v981_v38 = vpop.f32.mrb[30].mxu0  ;;  %v1022_v39 = vpop.f32.mrb[30].mxu1  ;;  %v2751_v30 = vsel %vm932_vm15, %v2637_v51, %v2633_v16 }
 0x6d0   :  { %v1788_v41 = vmul.f32 -1.442695, %v1025_v27  ;;  %v1790_v43 = vmul.f32 -1.442695, %v1027_v29  ;;  %v982_v7 = vpop.f32.mrb[31].mxu0  ;;  %v1023_v10 = vpop.f32.mrb[31].mxu1 }
 0x6d1   :  { %v1789_v49 = vmul.f32 -1.442695, %v1026_v34  ;;  %v1791_v60 = vmul.f32 -1.442695, %v1028_v36 }
 0x6d2   :  { %1945 = vpow2.f32 %v1788_v41 }
 0x6d3   :  { %1947 = vpow2.f32 %v1790_v43 }
 0x6d4   :  { %1949 = vtanh.f32 %v1026_v34  ;;  %v2758_v34 = vpop.permute.xlu1 %1077 }
 0x6d5   :  { %1951 = vtanh.f32 %v1028_v36  ;;  %vm1079_vm0 = vcmp.eq.s32.totalorder %v2758_v34, 1 }
 0x6d8   :  { %v2773_v41 = vpop.permute.xlu1 %1084 }
 0x6d9   :  { %vm1086_vm1 = vcmp.eq.s32.totalorder %v2773_v41, 1 }
 0x6dc   :  { %v1946_v11 = vpop.eup %1945 }
 0x6dd   :  { %v1948_v13 = vpop.eup %1947  ;;  %v1032_v15 = vadd.f32 1.0, %v1946_v11  ;;  %v2801_v11 = vld [vmem:[#allocation2 + $0x68] ss:$16 sps:$4 sm:$0xff]  }
 0x6de   :  { %v1054_v17 = vadd.f32 1.0, %v1948_v13  ;;  %v1950_v57 = vpop.eup %1949  ;;  %v2804_v13 = vld [vmem:[#allocation2 + $0x84] ss:$16 sps:$4 sm:$0xff]  }
 0x6df   :  { %1953 = vrcp.f32 %v1032_v15  ;;  %v1952_v18 = vpop.eup %1951  ;;  %v2807_v15 = vld [vmem:[#allocation2 + $0x8c] ss:$16 sps:$4 sm:$0xff]  }
 0x6e0   :  { %1955 = vrcp.f32 %v1054_v17  ;;  %v2810_v17 = vld [vmem:[#allocation2 + $0x80] ss:$16 sps:$4 sm:$0xff]  }
 0x6e1   :  { %1957 = vpow2.f32 %v1789_v49  ;;  %v2831_v49 = vld [vmem:[#allocation2 + $0xcc] ss:$16 sps:$4 sm:$0xff]  }
 0x6e2   :  { %1959 = vpow2.f32 %v1791_v60  ;;  %v2834_v60 = vld [vmem:[#allocation2 + $0xc0] ss:$16 sps:$4 sm:$0xff]  }
 0x6e9   :  { %v1954_v20 = vpop.eup %1953 }
 0x6ea   :  { %v1956_v2 = vpop.eup %1955  ;;  %v1043_v55 = vmul.f32 %v1954_v20, %v1950_v57  ;;  %v1042_v26 = vmul.f32 %v1954_v20, %v2742_v24  ;;  %v2813_v57 = vld [vmem:[#allocation2 + $0x88] ss:$16 sps:$4 sm:$0xff]   ;;  %v2819_v20 = vld [vmem:[#allocation2 + $0xac] ss:$16 sps:$4 sm:$0xff]  }
 0x6eb   :  { %v1065_v61 = vmul.f32 %v1956_v2, %v1952_v18  ;;  %v1958_v45 = vpop.eup %1957  ;;  %v1064_v31 = vmul.f32 %v1956_v2, %v2751_v30  ;;  %v2816_v18 = vld [vmem:[#allocation2 + $0xa4] ss:$16 sps:$4 sm:$0xff]   ;;  %v2822_v2 = vld [vmem:[#allocation2 + $0xa0] ss:$16 sps:$4 sm:$0xff]  }
 0x6ec   :  { %1045 = vrot.lane.b32.xlu0 %v1043_v55, %s2125_s0  ;;  %v1039_v53 = vadd.f32 1.0, %v1958_v45  ;;  %v1960_v25 = vpop.eup %1959  ;;  %v2825_v55 = vld [vmem:[#allocation2 + $0xa8] ss:$16 sps:$4 sm:$0xff]  }
 0x6ed   :  { %v1061_v29 = vadd.f32 1.0, %v1960_v25  ;;  %v2837_v45 = vld [vmem:[#allocation2 + $0xc8] ss:$16 sps:$4 sm:$0xff]   ;;  %v2843_v25 = vld [vmem:[#allocation2 + $0xec] ss:$16 sps:$4 sm:$0xff]  }
 0x6ee   :  { %1961 = vrcp.f32 %v1039_v53  ;;  %v2840_v53 = vld [vmem:[#allocation2 + $0xe4] ss:$16 sps:$4 sm:$0xff]  }
 0x6f0   :  { %1067 = vrot.lane.b32.xlu0 %v1065_v61, %s2125_s0  ;;  %v2828_v61 = vld [vmem:[#allocation2 + $0xc4] ss:$16 sps:$4 sm:$0xff]  }
 0x6f8   :  { %v1962_v33 = vpop.eup %1961 }
 0x75e   :  { %v1046_v27 = vpop.permute.xlu0 %1045 }
 0x75f   :  { %v2745_v28 = vadd.f32 %v1046_v27, %v1042_v26  ;;  %v2846_v26 = vld [vmem:[#allocation2 + $0xe0] ss:$16 sps:$4 sm:$0xff]   ;;  %v2849_v27 = vld [vmem:[#allocation2 + $0xe8] ss:$16 sps:$4 sm:$0xff]  }
 0x761   :  { %1963 = vtanh.f32 %v2745_v28 }
 0x762   :  { %v1068_v8 = vpop.permute.xlu0 %1067  ;;  %1965 = vrcp.f32 %v1061_v29 }
 0x763   :  { %v2755_v14 = vadd.f32 %v1068_v8, %v1064_v31  ;;  %v3234_v8 = vld [vmem:[#allocation17_spill] sm:$0xff] }
 0x765   :  { %1967 = vtanh.f32 %v2755_v14 }
 0x76b   :  { %v1964_v35 = vpop.eup %1963 }
 0x76c   :  { %v2760_v36 = vmul.f32 %v1964_v35, %v1962_v33  ;;  %v1966_v16 = vpop.eup %1965  ;;  %v3235_v35 = vld [vmem:[#allocation15_spill] sm:$0xff] }
 0x76e   :  { %3232 = vst [vmem:[#allocation10_spill] sm:$0xff] %v2760_v36  ;;  %v2767_v51 = vsel %vm1079_vm0, %v2760_v36, %v2650_v52 }
 0x76f   :  { %v1968_v38 = vpop.eup %1967  ;;  %1092 = vrot.lane.b32.xlu0 %v2767_v51, %s2125_s0 }
 0x770   :  { %v2771_v39 = vmul.f32 %v1968_v38, %v1966_v16 }
 0x772   :  { %3233 = vst [vmem:[#allocation24_spill] sm:$0xff] %v2771_v39  ;;  %v2780_v43 = vsel %vm1086_vm1, %v2771_v39, %v2666_v9  ;;  %v2797_v9 = vld [vmem:[#allocation2 + $0x6c] ss:$16 sps:$4 sm:$0xff]  }
 0x7e1   :  { %v1093_v7 = vpop.permute.xlu0 %1092 }
 0x7e2   :  { %v1095_v52 = vsel %vm311_vm4, %v1093_v7, %v2780_v43 }
 0x7e3   :  { %v1096_v10 = vpack.c.bf16 %v1095_v52, %v1095_v52  ;;  %v3236_v52 = vld [vmem:[#allocation18_spill] sm:$0xff] }
 0x7e5   :  { %1130 = vmatmul.mubr.bf16.vlgmr.msra.gmra.mrb[32].mxu0 %v1096_v10  ;;  %1171 = vmatmul.mubr.bf16.vlgmr.msra.gmra.mrb[32].mxu1 %v1096_v10 }
 0x7e6   :  { %1240 = vmatpush1.bf16.msra.mxu0 %v2670_v44  ;;  %1281 = vmatpush1.bf16.msra.mxu1 %v2673_v6 }
 0x7e7   :  { %1241 = vmatprep.subr.bf16.mxu0 %v2676_v40  ;;  %1282 = vmatprep.subr.bf16.mxu1 %v2679_v1 }
 0x7e8   :  { %1271 = vmatprep.mubr.bf16.mxu0 %v3217_v32  ;;  %1312 = vmatprep.mubr.bf16.mxu1 %v3217_v32 }
 0x7ea   :  { %1242 = vmatpush1.bf16.msra.mxu0 %v2684_v3  ;;  %1283 = vmatpush1.bf16.msra.mxu1 %v2687_v37 }
 0x7eb   :  { %1243 = vmatprep.subr.bf16.mxu0 %v2690_v48  ;;  %1284 = vmatprep.subr.bf16.mxu1 %v2693_v46 }
 0x7ee   :  { %1244 = vmatpush1.bf16.msra.mxu0 %v2696_v58  ;;  %1285 = vmatpush1.bf16.msra.mxu1 %v2699_v50 }
 0x7ef   :  { %1245 = vmatprep.subr.bf16.mxu0 %v2702_v63  ;;  %1286 = vmatprep.subr.bf16.mxu1 %v2797_v9 }
 0x7f2   :  { %1246 = vmatpush1.bf16.msra.mxu0 %v2706_v12  ;;  %1287 = vmatpush1.bf16.msra.mxu1 %v2801_v11 }
 0x7f3   :  { %1247 = vmatprep.subr.bf16.mxu0 %v2804_v13  ;;  %1288 = vmatprep.subr.bf16.mxu1 %v2807_v15 }
 0x7f6   :  { %1248 = vmatpush1.bf16.msra.mxu0 %v2810_v17  ;;  %1289 = vmatpush1.bf16.msra.mxu1 %v2813_v57 }
 0x7f7   :  { %1249 = vmatprep.subr.bf16.mxu0 %v2816_v18  ;;  %1290 = vmatprep.subr.bf16.mxu1 %v2819_v20 }
 0x7fa   :  { %1250 = vmatpush1.bf16.msra.mxu0 %v2822_v2  ;;  %1291 = vmatpush1.bf16.msra.mxu1 %v2825_v55 }
 0x7fb   :  { %1251 = vmatprep.subr.bf16.mxu0 %v2828_v61  ;;  %1292 = vmatprep.subr.bf16.mxu1 %v2831_v49 }
 0x7fe   :  { %1252 = vmatpush1.bf16.msra.mxu0 %v2834_v60  ;;  %1293 = vmatpush1.bf16.msra.mxu1 %v2837_v45 }
 0x7ff   :  { %1253 = vmatprep.subr.bf16.mxu0 %v2840_v53  ;;  %1294 = vmatprep.subr.bf16.mxu1 %v2843_v25 }
 0x802   :  { %1254 = vmatpush1.bf16.msra.mxu0 %v2846_v26  ;;  %1295 = vmatpush1.bf16.msra.mxu1 %v2849_v27 }
 0x803   :  { %1381 = vmatprep.subr.bf16.mxu0 %v2726_v21  ;;  %1422 = vmatprep.subr.bf16.mxu1 %v2729_v22 }
 0x8b8   :  { %v1131_v29 = vpop.f32.mrb[32].mxu0  ;;  %v1172_v31 = vpop.f32.mrb[32].mxu1 }
 0x8b9   :  { %v1179_v33 = vadd.f32 %v1131_v29, %v3234_v8  ;;  %v1181_v16 = vadd.f32 %v1172_v31, %v3235_v35  ;;  %v1133_v38 = vpop.f32.mrb[33].mxu0  ;;  %v1174_v7 = vpop.f32.mrb[33].mxu1 }
 0x8ba   :  { %v1180_v10 = vadd.f32 %v1133_v38, %v3236_v52  ;;  %v1182_v39 = vadd.f32 %v1174_v7, %v3237_v23  ;;  %v1135_v4 = vpop.f32.mrb[34].mxu0  ;;  %v1176_v42 = vpop.f32.mrb[34].mxu1 }
 0x8bb   :  { %v1792_v0 = vmul.f32 -1.442695, %v1179_v33  ;;  %v1794_v36 = vmul.f32 -1.442695, %v1181_v16  ;;  %v1136_v47 = vpop.f32.mrb[35].mxu0  ;;  %v1177_v56 = vpop.f32.mrb[35].mxu1  ;;  %v2870_v33 = vsel %vm1086_vm1, %v2755_v14, %v2751_v30 }
 0x8bc   :  { %v1793_v47 = vmul.f32 -1.442695, %v1180_v10  ;;  %v1795_v56 = vmul.f32 -1.442695, %v1182_v39 }
 0x8bd   :  { %1969 = vpow2.f32 %v1792_v0 }
 0x8be   :  { %1971 = vpow2.f32 %v1794_v36 }
 0x8bf   :  { %1973 = vtanh.f32 %v1180_v10 }
 0x8c0   :  { %1975 = vtanh.f32 %v1182_v39 }
 0x8c7   :  { %v1970_v59 = vpop.eup %1969 }
 0x8c8   :  { %v1972_v62 = vpop.eup %1971  ;;  %v1186_v54 = vadd.f32 1.0, %v1970_v59 }
 0x8c9   :  { %v1208_v29 = vadd.f32 1.0, %v1972_v62  ;;  %v1974_v31 = vpop.eup %1973 }
 0x8ca   :  { %1977 = vrcp.f32 %v1186_v54  ;;  %v1976_v8 = vpop.eup %1975  ;;  %v2864_v54 = vsel %vm1079_vm0, %v2745_v28, %v2742_v24 }
 0x8cb   :  { %1979 = vrcp.f32 %v1208_v29 }
 0x8cc   :  { %1981 = vpow2.f32 %v1793_v47  ;;  %v3238_v47 = vld [vmem:[#allocation19_spill] sm:$0xff] }
 0x8cd   :  { %1983 = vpow2.f32 %v1795_v56 }
 0x8d4   :  { %v1978_v35 = vpop.eup %1977 }
 0x8d5   :  { %v1980_v23 = vpop.eup %1979  ;;  %v1197_v4 = vmul.f32 %v1978_v35, %v1974_v31  ;;  %v1196_v39 = vmul.f32 %v1978_v35, %v2864_v54 }
 0x8d6   :  { %v1219_v42 = vmul.f32 %v1980_v23, %v1976_v8  ;;  %v1982_v59 = vpop.eup %1981  ;;  %v1218_v16 = vmul.f32 %v1980_v23, %v2870_v33 }
 0x8d7   :  { %1199 = vrot.lane.b32.xlu1 %v1197_v4, %s2125_s0  ;;  %v1984_v0 = vpop.eup %1983  ;;  %v1193_v62 = vadd.f32 1.0, %v1982_v59  ;;  %v3239_v59 = vld [vmem:[#allocation13_spill] sm:$0xff] }
 0x8d8   :  { %1221 = vrot.lane.b32.xlu0 %v1219_v42, %s2125_s0  ;;  %v1215_v36 = vadd.f32 1.0, %v1984_v0 }
 0x8d9   :  { %1985 = vrcp.f32 %v1193_v62 }
 0x8da   :  { %1987 = vrcp.f32 %v1215_v36 }
 0x8e3   :  { %v1986_v24 = vpop.eup %1985 }
 0x8e4   :  { %v1988_v28 = vpop.eup %1987 }
 0x949   :  { %v1200_v38 = vpop.permute.xlu1 %1199 }
 0x94a   :  { %v1222_v7 = vpop.permute.xlu0 %1221  ;;  %v2874_v52 = vadd.f32 %v1200_v38, %v1196_v39  ;;  %v3240_v39 = vld [vmem:[#allocation20_spill] sm:$0xff]  ;;  %v3241_v38 = vld [vmem:[#allocation14_spill] sm:$0xff] }
 0x94b   :  { %v2876_v10 = vadd.f32 %v1222_v7, %v1218_v16 }
 0x94c   :  { %1989 = vtanh.f32 %v2874_v52 }
 0x94d   :  { %1991 = vtanh.f32 %v2876_v10 }
 0x956   :  { %v1990_v30 = vpop.eup %1989 }
 0x957   :  { %v1992_v14 = vpop.eup %1991  ;;  %v2880_v29 = vmul.f32 %v1990_v30, %v1986_v24 }
 0x958   :  { %v2882_v31 = vmul.f32 %v1992_v14, %v1988_v28 }
 0x959   :  { %v2888_v8 = vsel %vm1086_vm1, %v2880_v29, %v2767_v51 }
 0x95a   :  { %1234 = vrot.lane.b32.xlu1 %v2888_v8, %s2125_s0  ;;  %v2896_v35 = vsel %vm1079_vm0, %v2882_v31, %v2780_v43 }
 0x9cc   :  { %v1235_v23 = vpop.permute.xlu1 %1234 }
 0x9cd   :  { %v1237_v4 = vsel %vm311_vm4, %v1235_v23, %v2896_v35 }
 0x9ce   :  { %v1238_v42 = vpack.c.bf16 %v1237_v4, %v1237_v4 }
 0x9d0   :  { %1272 = vmatmul.mubr.bf16.vlgmr.msra.gmra.mrb[36].mxu0 %v1238_v42  ;;  %1313 = vmatmul.mubr.bf16.vlgmr.msra.gmra.mrb[36].mxu1 %v1238_v42 }
 0x9d1   :  { %1382 = vmatpush1.bf16.msra.mxu0 %v2670_v44  ;;  %1423 = vmatpush1.bf16.msra.mxu1 %v2673_v6 }
 0x9d2   :  { %1383 = vmatprep.subr.bf16.mxu0 %v2676_v40  ;;  %1424 = vmatprep.subr.bf16.mxu1 %v2679_v1 }
 0x9d3   :  { %1413 = vmatprep.mubr.bf16.mxu0 %v3217_v32  ;;  %1454 = vmatprep.mubr.bf16.mxu1 %v3217_v32 }
 0x9d5   :  { %1384 = vmatpush1.bf16.msra.mxu0 %v2684_v3  ;;  %1425 = vmatpush1.bf16.msra.mxu1 %v2687_v37 }
 0x9d6   :  { %1385 = vmatprep.subr.bf16.mxu0 %v2690_v48  ;;  %1426 = vmatprep.subr.bf16.mxu1 %v2693_v46 }
 0x9d9   :  { %1386 = vmatpush1.bf16.msra.mxu0 %v2696_v58  ;;  %1427 = vmatpush1.bf16.msra.mxu1 %v2699_v50 }
 0x9da   :  { %1387 = vmatprep.subr.bf16.mxu0 %v2702_v63  ;;  %1428 = vmatprep.subr.bf16.mxu1 %v2797_v9 }
 0x9dd   :  { %1388 = vmatpush1.bf16.msra.mxu0 %v2706_v12  ;;  %1429 = vmatpush1.bf16.msra.mxu1 %v2801_v11 }
 0x9de   :  { %1389 = vmatprep.subr.bf16.mxu0 %v2804_v13  ;;  %1430 = vmatprep.subr.bf16.mxu1 %v2807_v15 }
 0x9e1   :  { %1390 = vmatpush1.bf16.msra.mxu0 %v2810_v17  ;;  %1431 = vmatpush1.bf16.msra.mxu1 %v2813_v57 }
 0x9e2   :  { %1391 = vmatprep.subr.bf16.mxu0 %v2816_v18  ;;  %1432 = vmatprep.subr.bf16.mxu1 %v2819_v20 }
 0x9e5   :  { %1392 = vmatpush1.bf16.msra.mxu0 %v2822_v2  ;;  %1433 = vmatpush1.bf16.msra.mxu1 %v2825_v55 }
 0x9e6   :  { %1393 = vmatprep.subr.bf16.mxu0 %v2828_v61  ;;  %1434 = vmatprep.subr.bf16.mxu1 %v2831_v49 }
 0x9e9   :  { %1394 = vmatpush1.bf16.msra.mxu0 %v2834_v60  ;;  %1435 = vmatpush1.bf16.msra.mxu1 %v2837_v45 }
 0x9ea   :  { %1395 = vmatprep.subr.bf16.mxu0 %v2840_v53  ;;  %1436 = vmatprep.subr.bf16.mxu1 %v2843_v25 }
 0x9ed   :  { %1396 = vmatpush1.bf16.msra.mxu0 %v2846_v26  ;;  %1437 = vmatpush1.bf16.msra.mxu1 %v2849_v27 }
 0x9ee   :  { %1523 = vmatprep.subr.bf16.mxu0 %v2726_v21  ;;  %1564 = vmatprep.subr.bf16.mxu1 %v2729_v22 }
 0xaa3   :  { %v1273_v51 = vpop.f32.mrb[36].mxu0  ;;  %v1314_v43 = vpop.f32.mrb[36].mxu1 }
 0xaa4   :  { %v1321_v56 = vadd.f32 %v1273_v51, %v3238_v47  ;;  %v1323_v0 = vadd.f32 %v1314_v43, %v3239_v59  ;;  %v1275_v62 = vpop.f32.mrb[37].mxu0  ;;  %v1316_v36 = vpop.f32.mrb[37].mxu1 }
 0xaa5   :  { %v1322_v16 = vadd.f32 %v1275_v62, %v3240_v39  ;;  %v1324_v7 = vadd.f32 %v1316_v36, %v3241_v38  ;;  %v1277_v24 = vpop.f32.mrb[38].mxu0  ;;  %v1318_v28 = vpop.f32.mrb[38].mxu1 }
 0xaa6   :  { %v1796_v30 = vmul.f32 -1.442695, %v1321_v56  ;;  %v1798_v14 = vmul.f32 -1.442695, %v1323_v0  ;;  %v1278_v23 = vpop.f32.mrb[39].mxu0  ;;  %v1319_v21 = vpop.f32.mrb[39].mxu1 }
 0xaa7   :  { %v1797_v56 = vmul.f32 -1.442695, %v1322_v16  ;;  %v1799_v0 = vmul.f32 -1.442695, %v1324_v7  ;;  %v2950_v23 = vsel %vm1079_vm0, %v2876_v10, %v2870_v33 }
 0xaa8   :  { %1993 = vpow2.f32 %v1796_v30 }
 0xaa9   :  { %1995 = vpow2.f32 %v1798_v14  ;;  %v2944_v14 = vsel %vm1086_vm1, %v2874_v52, %v2864_v54 }
 0xaaa   :  { %1997 = vtanh.f32 %v1322_v16 }
 0xaab   :  { %1999 = vtanh.f32 %v1324_v7 }
 0xab2   :  { %v1994_v22 = vpop.eup %1993 }
 0xab3   :  { %v1996_v4 = vpop.eup %1995  ;;  %v1328_v42 = vadd.f32 1.0, %v1994_v22 }
 0xab4   :  { %v1350_v51 = vadd.f32 1.0, %v1996_v4  ;;  %v1998_v43 = vpop.eup %1997 }
 0xab5   :  { %2001 = vrcp.f32 %v1328_v42  ;;  %v2000_v47 = vpop.eup %1999 }
 0xab6   :  { %2003 = vrcp.f32 %v1350_v51 }
 0xab7   :  { %2005 = vpow2.f32 %v1797_v56 }
 0xab8   :  { %2007 = vpow2.f32 %v1799_v0 }
 0xabf   :  { %v2002_v59 = vpop.eup %2001 }
 0xac0   :  { %v2004_v62 = vpop.eup %2003  ;;  %v1339_v36 = vmul.f32 %v2002_v59, %v1998_v43  ;;  %v1338_v16 = vmul.f32 %v2002_v59, %v2944_v14 }
 0xac1   :  { %v1361_v39 = vmul.f32 %v2004_v62, %v2000_v47  ;;  %v2006_v38 = vpop.eup %2005  ;;  %v1360_v7 = vmul.f32 %v2004_v62, %v2950_v23 }
 0xac2   :  { %1341 = vrot.lane.b32.xlu0 %v1339_v36, %s2125_s0  ;;  %v2008_v24 = vpop.eup %2007  ;;  %v1335_v28 = vadd.f32 1.0, %v2006_v38 }
 0xac3   :  { %1363 = vrot.lane.b32.xlu1 %v1361_v39, %s2125_s0  ;;  %v1357_v30 = vadd.f32 1.0, %v2008_v24 }
 0xac4   :  { %2009 = vrcp.f32 %v1335_v28 }
 0xac5   :  { %2011 = vrcp.f32 %v1357_v30 }
 0xace   :  { %v2010_v54 = vpop.eup %2009 }
 0xacf   :  { %v2012_v52 = vpop.eup %2011 }
 0xb34   :  { %v1342_v21 = vpop.permute.xlu0 %1341 }
 0xb35   :  { %v1364_v22 = vpop.permute.xlu1 %1363  ;;  %v2954_v4 = vadd.f32 %v1342_v21, %v1338_v16 }
 0xb36   :  { %v2956_v42 = vadd.f32 %v1364_v22, %v1360_v7 }
 0xb37   :  { %2013 = vtanh.f32 %v2954_v4  ;;  %v1370_v0 = vsel %vm932_vm15, %v2954_v4, %v2944_v14 }
 0xb38   :  { %2015 = vtanh.f32 %v2956_v42  ;;  %v3026_v38 = vsel %vm925_vm12, %v2956_v42, %v2950_v23 }
 0xb41   :  { %v2014_v33 = vpop.eup %2013 }
 0xb42   :  { %v2016_v10 = vpop.eup %2015  ;;  %v2960_v51 = vmul.f32 %v2014_v33, %v2010_v54 }
 0xb43   :  { %v2962_v43 = vmul.f32 %v2016_v10, %v2012_v52  ;;  %v3247_v10 = vld [vmem:[#allocation34_spill] sm:$0xff] }
 0xb44   :  { %v2968_v47 = vsel %vm932_vm15, %v2960_v51, %v2888_v8 }
 0xb45   :  { %1376 = vrot.lane.b32.xlu0 %v2968_v47, %s2125_s0  ;;  %v2976_v59 = vsel %vm925_vm12, %v2962_v43, %v2896_v35 }
 0xbb7   :  { %v1377_v62 = vpop.permute.xlu0 %1376 }
 0xbb8   :  { %v1379_v36 = vsel %vm311_vm4, %v1377_v62, %v2976_v59 }
 0xbb9   :  { %v1380_v39 = vpack.c.bf16 %v1379_v36, %v1379_v36  ;;  %v781_v36 = vsel %vm771_vm8, %v3247_v10, 0.0 }
 0xbbb   :  { %1414 = vmatmul.mubr.bf16.vlgmr.msra.gmra.mrb[40].mxu0 %v1380_v39  ;;  %1455 = vmatmul.mubr.bf16.vlgmr.msra.gmra.mrb[40].mxu1 %v1380_v39 }
 0xbbc   :  { %1524 = vmatpush1.bf16.msra.mxu0 %v2670_v44  ;;  %1565 = vmatpush1.bf16.msra.mxu1 %v2673_v6  ;;  %v3242_v6 = vld [vmem:[#allocation25_spill] sm:$0xff] }
 0xbbd   :  { %1525 = vmatprep.subr.bf16.mxu0 %v2676_v40  ;;  %1566 = vmatprep.subr.bf16.mxu1 %v2679_v1  ;;  %v3243_v1 = vld [vmem:[#allocation7_spill] sm:$0xff] }
 0xbbe   :  { %1555 = vmatprep.mubr.bf16.mxu0 %v3217_v32  ;;  %1596 = vmatprep.mubr.bf16.mxu1 %v3217_v32 }
 0xbc0   :  { %1526 = vmatpush1.bf16.msra.mxu0 %v2684_v3  ;;  %1567 = vmatpush1.bf16.msra.mxu1 %v2687_v37 }
 0xbc1   :  { %1527 = vmatprep.subr.bf16.mxu0 %v2690_v48  ;;  %1568 = vmatprep.subr.bf16.mxu1 %v2693_v46  ;;  %v3244_v46 = vld [vmem:[#allocation26_spill] sm:$0xff] }
 0xbc4   :  { %1528 = vmatpush1.bf16.msra.mxu0 %v2696_v58  ;;  %1569 = vmatpush1.bf16.msra.mxu1 %v2699_v50  ;;  %v3245_v50 = vld [vmem:[#allocation8_spill] sm:$0xff] }
 0xbc5   :  { %1529 = vmatprep.subr.bf16.mxu0 %v2702_v63  ;;  %1570 = vmatprep.subr.bf16.mxu1 %v2797_v9 }
 0xbc8   :  { %1530 = vmatpush1.bf16.msra.mxu0 %v2706_v12  ;;  %1571 = vmatpush1.bf16.msra.mxu1 %v2801_v11 }
 0xbc9   :  { %1531 = vmatprep.subr.bf16.mxu0 %v2804_v13  ;;  %1572 = vmatprep.subr.bf16.mxu1 %v2807_v15 }
 0xbcc   :  { %1532 = vmatpush1.bf16.msra.mxu0 %v2810_v17  ;;  %1573 = vmatpush1.bf16.msra.mxu1 %v2813_v57 }
 0xbcd   :  { %1533 = vmatprep.subr.bf16.mxu0 %v2816_v18  ;;  %1574 = vmatprep.subr.bf16.mxu1 %v2819_v20 }
 0xbd0   :  { %1534 = vmatpush1.bf16.msra.mxu0 %v2822_v2  ;;  %1575 = vmatpush1.bf16.msra.mxu1 %v2825_v55 }
 0xbd1   :  { %1535 = vmatprep.subr.bf16.mxu0 %v2828_v61  ;;  %1576 = vmatprep.subr.bf16.mxu1 %v2831_v49 }
 0xbd4   :  { %1536 = vmatpush1.bf16.msra.mxu0 %v2834_v60  ;;  %1577 = vmatpush1.bf16.msra.mxu1 %v2837_v45 }
 0xbd5   :  { %1537 = vmatprep.subr.bf16.mxu0 %v2840_v53  ;;  %1578 = vmatprep.subr.bf16.mxu1 %v2843_v25 }
 0xbd8   :  { %1538 = vmatpush1.bf16.msra.mxu0 %v2846_v26  ;;  %1579 = vmatpush1.bf16.msra.mxu1 %v2849_v27 }
 0xc8e   :  { %v1415_v32 = vpop.f32.mrb[40].mxu0  ;;  %v1456_v44 = vpop.f32.mrb[40].mxu1 }
 0xc8f   :  { %v1463_v40 = vadd.f32 %v1415_v32, %v3242_v6  ;;  %v1465_v3 = vadd.f32 %v1456_v44, %v3243_v1  ;;  %v1417_v37 = vpop.f32.mrb[41].mxu0  ;;  %v1458_v48 = vpop.f32.mrb[41].mxu1 }
 0xc90   :  { %v1464_v58 = vadd.f32 %v1417_v37, %v3244_v46  ;;  %v1466_v63 = vadd.f32 %v1458_v48, %v3245_v50  ;;  %v1419_v12 = vpop.f32.mrb[42].mxu0  ;;  %v1460_v9 = vpop.f32.mrb[42].mxu1  ;;  %v3249_v37 = vld [vmem:[#allocation27_spill] sm:$0xff]  ;;  %v3250_v46 = vld [vmem:[#allocation5_spill] sm:$0xff] }
 0xc91   :  { %v1800_v11 = vmul.f32 -1.442695, %v1463_v40  ;;  %v1802_v13 = vmul.f32 -1.442695, %v1465_v3  ;;  %v1420_v15 = vpop.f32.mrb[43].mxu0  ;;  %v1461_v17 = vpop.f32.mrb[43].mxu1 }
 0xc92   :  { %v1801_v25 = vmul.f32 -1.442695, %v1464_v58  ;;  %v1803_v26 = vmul.f32 -1.442695, %v1466_v63  ;;  %v3251_v12 = vld [vmem:[#allocation28_spill] sm:$0xff] }
 0xc93   :  { %2017 = vpow2.f32 %v1800_v11  ;;  %v3252_v11 = vld [vmem:[#allocation6_spill] sm:$0xff] }
 0xc94   :  { %2019 = vpow2.f32 %v1802_v13 }
 0xc95   :  { %2021 = vtanh.f32 %v1464_v58 }
 0xc96   :  { %2023 = vtanh.f32 %v1466_v63 }
 0xc9d   :  { %v2018_v57 = vpop.eup %2017 }
 0xc9e   :  { %v2020_v18 = vpop.eup %2019  ;;  %v1470_v20 = vadd.f32 1.0, %v2018_v57 }
 0xc9f   :  { %v1492_v2 = vadd.f32 1.0, %v2020_v18  ;;  %v2022_v55 = vpop.eup %2021 }
 0xca0   :  { %2025 = vrcp.f32 %v1470_v20  ;;  %v2024_v61 = vpop.eup %2023 }
 0xca1   :  { %2027 = vrcp.f32 %v1492_v2 }
 0xca2   :  { %2029 = vpow2.f32 %v1801_v25 }
 0xca3   :  { %2031 = vpow2.f32 %v1803_v26 }
 0xcaa   :  { %v2026_v49 = vpop.eup %2025 }
 0xcab   :  { %v2028_v60 = vpop.eup %2027  ;;  %v1481_v45 = vmul.f32 %v2026_v49, %v2022_v55  ;;  %v1480_v24 = vmul.f32 %v2026_v49, %v1370_v0 }
 0xcac   :  { %v1503_v53 = vmul.f32 %v2028_v60, %v2024_v61  ;;  %v2030_v27 = vpop.eup %2029  ;;  %v1502_v28 = vmul.f32 %v2028_v60, %v3026_v38 }
 0xcad   :  { %1483 = vrot.lane.b32.xlu1 %v1481_v45, %s2125_s0  ;;  %v2032_v8 = vpop.eup %2031  ;;  %v1477_v35 = vadd.f32 1.0, %v2030_v27 }
 0xcae   :  { %1505 = vrot.lane.b32.xlu0 %v1503_v53, %s2125_s0  ;;  %v1499_v56 = vadd.f32 1.0, %v2032_v8 }
 0xcaf   :  { %2033 = vrcp.f32 %v1477_v35 }
 0xcb0   :  { %2035 = vrcp.f32 %v1499_v56 }
 0xcb9   :  { %v2034_v14 = vpop.eup %2033 }
 0xcba   :  { %v2036_v22 = vpop.eup %2035 }
 0xd1f   :  { %v1484_v30 = vpop.permute.xlu1 %1483 }
 0xd20   :  { %v1506_v16 = vpop.permute.xlu0 %1505  ;;  %v1486_v7 = vadd.f32 %v1484_v30, %v1480_v24  ;;  %v3253_v24 = vld [vmem:[#allocation30_spill] sm:$0xff] }
 0xd21   :  { %v3029_v21 = vadd.f32 %v1506_v16, %v1502_v28  ;;  %v627_v30 = vsel %vm613_vm3, %v3253_v24, 0.0  ;;  %v3255_v16 = vld [vmem:[#allocation10_spill] sm:$0xff] }
 0xd22   :  { %2037 = vtanh.f32 %v1486_v7  ;;  %v1512_v26 = vsel %vm778_vm11, %v1486_v7, %v1370_v0  ;;  %v3256_v0 = vld [vmem:[#allocation9_spill] sm:$0xff] }
 0xd23   :  { %2039 = vtanh.f32 %v3029_v21  ;;  %v935_v7 = vsel %vm925_vm12, %v3256_v0, 0.0 }
 0xd2c   :  { %v2038_v4 = vpop.eup %2037 }
 0xd2d   :  { %v2040_v54 = vpop.eup %2039  ;;  %v1488_v52 = vmul.f32 %v2038_v4, %v2034_v14  ;;  %v1089_v14 = vsel %vm1079_vm0, %v3255_v16, 0.0  ;;  %v1231_v4 = vsel %vm1086_vm1, %v2880_v29, 0.0  ;;  %v1514_v29 = vsel %vm771_vm8, %v3029_v21, %v3026_v38 }
 0xd2e   :  { %v1510_v23 = vmul.f32 %v2040_v54, %v2036_v22  ;;  %v1373_v22 = vsel %vm932_vm15, %v2960_v51, 0.0  ;;  %v1374_v21 = vsel %vm925_vm12, %v2962_v43, 0.0  ;;  %v3259_v43 = vld [vmem:[#allocation24_spill] sm:$0xff] }
 0xd2f   :  { %v3035_v33 = vsel %vm778_vm11, %v1488_v52, %v2968_v47  ;;  %v1515_v54 = vsel %vm778_vm11, %v1488_v52, 0.0  ;;  %v1090_v5 = vsel %vm1086_vm1, %v3259_v43, 0.0 }
 0xd30   :  { %1518 = vrot.lane.b32.xlu1 %v3035_v33, %s2125_s0  ;;  %v3046_v39 = vsel %vm771_vm8, %v1510_v23, %v2976_v59  ;;  %v1516_v6 = vsel %vm771_vm8, %v1510_v23, 0.0 }
 0xd34   :  { %1666 = vrot.lane.b32.xlu1 %v781_v36, %s2125_s0 }
 0xda2   :  { %v1519_v32 = vpop.permute.xlu1 %1518 }
 0xda3   :  { %v1521_v44 = vsel %vm311_vm4, %v1519_v32, %v3046_v39 }
 0xda4   :  { %v1522_v47 = vpack.c.bf16 %v1521_v44, %v1521_v44 }
 0xda6   :  { %1556 = vmatmul.mubr.bf16.vlgmr.msra.gmra.mrb[44].mxu0 %v1522_v47  ;;  %1597 = vmatmul.mubr.bf16.vlgmr.msra.gmra.mrb[44].mxu1 %v1522_v47  ;;  %v1667_v40 = vpop.permute.xlu1 %1666 }
 0xda7   :  { %v1669_v1 = vsel %vm311_vm4, %v1667_v40, %v1516_v6 }
 0xda8   :  { %1670 = vst [vmem:[%s3169_s7 + $0x8] sm:$0xff] %v1669_v1 }
 0xe79   :  { %v1557_v3 = vpop.f32.mrb[44].mxu0  ;;  %v1598_v59 = vpop.f32.mrb[44].mxu1 }
 0xe7a   :  { %v1605_v48 = vadd.f32 %v1557_v3, %v3249_v37  ;;  %v1607_v58 = vadd.f32 %v1598_v59, %v3250_v46  ;;  %v1559_v50 = vpop.f32.mrb[45].mxu0  ;;  %v1600_v63 = vpop.f32.mrb[45].mxu1 }
 0xe7b   :  { %v1606_v9 = vadd.f32 %v1559_v50, %v3251_v12  ;;  %v1608_v13 = vadd.f32 %v1600_v63, %v3252_v11  ;;  %v1561_v15 = vpop.f32.mrb[46].mxu0  ;;  %v1602_v17 = vpop.f32.mrb[46].mxu1 }
 0xe7c   :  { %v1804_v57 = vmul.f32 -1.442695, %v1605_v48  ;;  %v1806_v18 = vmul.f32 -1.442695, %v1607_v58  ;;  %v1562_v20 = vpop.f32.mrb[47].mxu0  ;;  %v1603_v2 = vpop.f32.mrb[47].mxu1 }
 0xe7d   :  { %v1805_v23 = vmul.f32 -1.442695, %v1606_v9  ;;  %v1807_v10 = vmul.f32 -1.442695, %v1608_v13  ;;  %v1232_v48 = vsel %vm1079_vm0, %v2882_v31, 0.0  ;;  %v3258_v58 = vld [vmem:[#allocation23_spill] sm:$0xff] }
 0xe7e   :  { %2041 = vpow2.f32 %v1804_v57  ;;  %v936_v50 = vsel %vm932_vm15, %v3258_v58, 0.0 }
 0xe7f   :  { %2043 = vpow2.f32 %v1806_v18  ;;  %v3260_v18 = vld [vmem:[#allocation35_spill] sm:$0xff] }
 0xe80   :  { %2045 = vtanh.f32 %v1606_v9  ;;  %v782_v20 = vsel %vm778_vm11, %v3260_v18, 0.0 }
 0xe81   :  { %2047 = vtanh.f32 %v1608_v13 }
 0xe88   :  { %v2042_v55 = vpop.eup %2041 }
 0xe89   :  { %v2044_v61 = vpop.eup %2043  ;;  %v1612_v49 = vadd.f32 1.0, %v2042_v55 }
 0xe8a   :  { %v1634_v60 = vadd.f32 1.0, %v2044_v61  ;;  %v2046_v45 = vpop.eup %2045 }
 0xe8b   :  { %2049 = vrcp.f32 %v1612_v49  ;;  %v2048_v53 = vpop.eup %2047 }
 0xe8c   :  { %2051 = vrcp.f32 %v1634_v60 }
 0xe8d   :  { %2053 = vpow2.f32 %v1805_v23 }
 0xe8e   :  { %2055 = vpow2.f32 %v1807_v10 }
 0xe95   :  { %v2050_v25 = vpop.eup %2049 }
 0xe96   :  { %v2052_v27 = vpop.eup %2051  ;;  %v1623_v8 = vmul.f32 %v2050_v25, %v2046_v45  ;;  %v1622_v35 = vmul.f32 %v2050_v25, %v1512_v26 }
 0xe97   :  { %v1645_v56 = vmul.f32 %v2052_v27, %v2048_v53  ;;  %v2054_v51 = vpop.eup %2053  ;;  %v1644_v47 = vmul.f32 %v2052_v27, %v1514_v29 }
 0xe98   :  { %1625 = vrot.lane.b32.xlu0 %v1623_v8, %s2125_s0  ;;  %v2056_v36 = vpop.eup %2055  ;;  %v1619_v32 = vadd.f32 1.0, %v2054_v51 }
 0xe99   :  { %1647 = vrot.lane.b32.xlu1 %v1645_v56, %s2125_s0  ;;  %v1641_v44 = vadd.f32 1.0, %v2056_v36 }
 0xe9a   :  { %2057 = vrcp.f32 %v1619_v32 }
 0xe9b   :  { %2059 = vrcp.f32 %v1641_v44 }
 0xe9c   :  { %1660 = vrot.lane.b32.xlu0 %v627_v30, %s2125_s0 }
 0xe9d   :  { %1678 = vrot.lane.b32.xlu1 %v1089_v14, %s2125_s0 }
 0xea0   :  { %1672 = vrot.lane.b32.xlu0 %v935_v7, %s2125_s0 }
 0xea1   :  { %1690 = vrot.lane.b32.xlu1 %v1373_v22, %s2125_s0 }
 0xea4   :  { %1684 = vrot.lane.b32.xlu0 %v1231_v4, %s2125_s0  ;;  %v2058_v12 = vpop.eup %2057 }
 0xea5   :  { %v2060_v19 = vpop.eup %2059 }
 0xea8   :  { %1696 = vrot.lane.b32.xlu0 %v1515_v54, %s2125_s0 }
 0xf0a   :  { %v1626_v6 = vpop.permute.xlu0 %1625 }
 0xf0b   :  { %v1648_v40 = vpop.permute.xlu1 %1647  ;;  %v1628_v52 = vadd.f32 %v1626_v6, %v1622_v35 }
 0xf0c   :  { %v1650_v1 = vadd.f32 %v1648_v40, %v1644_v47 }
 0xf0d   :  { %2061 = vtanh.f32 %v1628_v52  ;;  %v1654_v59 = vsel %vm624_vm5, %v1628_v52, %v1512_v26 }
 0xf0e   :  { %2063 = vtanh.f32 %v1650_v1  ;;  %v1661_v37 = vpop.permute.xlu0 %1660  ;;  %v1656_v8 = vsel %vm613_vm3, %v1650_v1, %v1514_v29 }
 0xf0f   :  { %v1679_v46 = vpop.permute.xlu1 %1678 }
 0xf10   :  { %v1681_v38 = vsel %vm311_vm4, %v1679_v46, %v1232_v48 }
 0xf11   :  { %1682 = vst [vmem:[%s3169_s7 + $0x18] sm:$0xff] %v1681_v38 }
 0xf12   :  { %v1673_v62 = vpop.permute.xlu0 %1672 }
 0xf13   :  { %v1691_v63 = vpop.permute.xlu1 %1690  ;;  %v1675_v34 = vsel %vm311_vm4, %v1673_v62, %v1374_v21 }
 0xf14   :  { %v1693_v31 = vsel %vm311_vm4, %v1691_v63, %v936_v50  ;;  %1676 = vst [vmem:[%s3169_s7 + $0x10] sm:$0xff] %v1675_v34 }
 0xf15   :  { %1694 = vst [vmem:[%s3169_s7 + $0x28] sm:$0xff] %v1693_v31 }
 0xf16   :  { %v1685_v9 = vpop.permute.xlu0 %1684 }
 0xf17   :  { %v2062_v11 = vpop.eup %2061  ;;  %v1687_v13 = vsel %vm311_vm4, %v1685_v9, %v1090_v5 }
 0xf18   :  { %v2064_v15 = vpop.eup %2063  ;;  %1688 = vst [vmem:[%s3169_s7 + $0x20] sm:$0xff] %v1687_v13  ;;  %v1630_v17 = vmul.f32 %v2062_v11, %v2058_v12 }
 0xf19   :  { %v1652_v57 = vmul.f32 %v2064_v15, %v2060_v19 }
 0xf1a   :  { %v1697_v2 = vpop.permute.xlu0 %1696  ;;  %v1657_v41 = vsel %vm624_vm5, %v1630_v17, 0.0  ;;  %v1653_v55 = vsel %vm624_vm5, %v1630_v17, %v3035_v33  ;;  %v3261_v33 = vld [vmem:[#allocation31_spill] sm:$0xff] }
 0xf1b   :  { %v1658_v61 = vsel %vm613_vm3, %v1652_v57, 0.0  ;;  %v1699_v49 = vsel %vm311_vm4, %v1697_v2, %v782_v20  ;;  %1702 = vrot.lane.b32.xlu1 %v1657_v41, %s2125_s0  ;;  %1708 = vrot.lane.b32.xlu0 %v1653_v55, %s2125_s0  ;;  %v628_v60 = vsel %vm624_vm5, %v3261_v33, 0.0  ;;  %v1655_v53 = vsel %vm613_vm3, %v1652_v57, %v3046_v39 }
 0xf1c   :  { %v1663_v42 = vsel %vm311_vm4, %v1661_v37, %v1658_v61  ;;  %1700 = vst [vmem:[%s3169_s7 + $0x30] sm:$0xff] %v1699_v49 }
 0xf1d   :  { %1664 = vst [vmem:[%s3169_s7] sm:$0xff] %v1663_v42 }
 0xf1f   :  { %1714 = vrot.lane.b32.xlu1 %v1654_v59, %s2125_s0 }
 0xf8d   :  { %v1703_v45 = vpop.permute.xlu1 %1702  ;;  %v1709_v25 = vpop.permute.xlu0 %1708 }
 0xf8e   :  { %v1705_v26 = vsel %vm311_vm4, %v1703_v45, %v628_v60  ;;  %v1711_v27 = vsel %vm311_vm4, %v1709_v25, %v1655_v53 }
 0xf8f   :  { %1706 = vst [vmem:[%s3169_s7 + $0x38] sm:$0xff] %v1705_v26  ;;  %1712 = vst [vmem:[%s3170_s8] sm:$0xff] %v1711_v27 }
 0xf91   :  { %v1715_v35 = vpop.permute.xlu1 %1714 }
 0xf92   :  { %v1717_v56 = vsel %vm311_vm4, %v1715_v35, %v1656_v8 }
 0xf93   :  { %1718 = vst [vmem:[%s3170_s8 + $0x8] sm:$0xff] %v1717_v56 }
 0xf94   :  { %1727 = vsyncpa [#allocation3], 1 }

</bundles_post_ra>
